<compile_context>
chip_gen: v6e
topology: v6e:2x2x1
jax: 0.10.0
libtpu: 0.0.40
codegen_flags: <defaults>
</compile_context>

<pallas_src>
import functools
import math

import jax
import jax.numpy as jnp
from jax import lax
from jax.experimental import pallas as pl
from jax.experimental.pallas import tpu as pltpu

_EPS = 1e-5


# --------------------------------------------------------------------------
# In-kernel helpers (operate on loaded arrays, not refs)
# --------------------------------------------------------------------------

def _mm(x, w):
    """MXU matmul: activations cast to bf16, bf16 weights, f32 accumulation."""
    return jnp.dot(x.astype(jnp.bfloat16), w, preferred_element_type=jnp.float32)


def _layernorm(x, g, b, eps=_EPS):
    mean = jnp.mean(x, axis=-1, keepdims=True)
    xc = x - mean
    var = jnp.mean(xc * xc, axis=-1, keepdims=True)
    return xc * lax.rsqrt(var + eps) * g + b


def _embed(ids, emb, vocab, scale):
    """One-hot MXU embedding lookup: ids (M,1) i32, emb (V,D) bf16 -> (M,D) f32."""
    m = ids.shape[0]
    onehot = (lax.broadcasted_iota(jnp.int32, (m, vocab), 1) == ids
              ).astype(jnp.bfloat16)
    return jnp.dot(onehot, emb, preferred_element_type=jnp.float32) * scale


def _mha(q, k, v, wo, *, B, Sq, Sk, H, dh):
    """Multi-head attention + fused output projection (bias added by caller).

    q: (B*Sq, H*dh) f32, k/v: (B*Sk, H*dh) f32, wo: (H*dh, H*dh) bf16.
    Heads are batched over B via dot_general batch dims; the concat over
    heads is folded into the output projection as a sum over per-head
    (dh, D) row-slices of wo.  Returns (B*Sq, H*dh) f32.
    """
    D = H * dh
    scale = 1.0 / math.sqrt(dh)
    q3 = q.reshape(B, Sq, D)
    k3 = k.reshape(B, Sk, D)
    v3 = v.reshape(B, Sk, D)
    out = jnp.zeros((B * Sq, D), jnp.float32)
    for h in range(H):                                  # static, small H
        sl = slice(h * dh, (h + 1) * dh)
        qh = (q3[:, :, sl] * scale).astype(jnp.bfloat16)   # (B, Sq, dh)
        kh = k3[:, :, sl].astype(jnp.bfloat16)             # (B, Sk, dh)
        vh = v3[:, :, sl].astype(jnp.bfloat16)             # (B, Sk, dh)
        # scores: contract dh, batch over B -- no explicit k transpose.
        s = lax.dot_general(qh, kh, (((2,), (2,)), ((0,), (0,))),
                            preferred_element_type=jnp.float32)  # (B,Sq,Sk)
        m = jnp.max(s, axis=-1, keepdims=True)
        p = jnp.exp(s - m)
        p = p * pl.reciprocal(jnp.sum(p, axis=-1, keepdims=True), approx=True)
        oh = lax.dot_general(p.astype(jnp.bfloat16), vh,
                             (((2,), (1,)), ((0,), (0,))),
                             preferred_element_type=jnp.float32)  # (B,Sq,dh)
        out = out + _mm(oh.reshape(B * Sq, dh), wo[sl, :])
    return out


# --------------------------------------------------------------------------
# Single fused kernel: embeddings -> encoder stack -> decoder stack ->
# final norms -> generator.  Everything stays resident in VMEM.
# --------------------------------------------------------------------------

def _transformer_kernel(*refs, B, S, T, H, dh, n_enc, n_dec, V, emb_scale):
    (src_ids, tgt_ids, src_emb, tgt_emb,
     e_wqkv, e_bqkv, e_wo, e_bo, e_ln1_g, e_ln1_b,
     e_w1, e_b1, e_w2, e_b2, e_ln2_g, e_ln2_b, e_fn_g, e_fn_b,
     d_sa_wqkv, d_sa_bqkv, d_sa_wo, d_sa_bo, d_ln1_g, d_ln1_b,
     d_ca_wq, d_ca_bq, d_ca_wkv, d_ca_bkv, d_ca_wo, d_ca_bo,
     d_ln2_g, d_ln2_b, d_w1, d_b1, d_w2, d_b2, d_ln3_g, d_ln3_b,
     d_fn_g, d_fn_b, gen_w, gen_b, logits_ref) = refs

    D = H * dh

    # ---------------- encoder ----------------
    x = _embed(src_ids[...], src_emb[...], V, emb_scale)       # (B*S, D) f32
    for l in range(n_enc):                                      # static unroll
        # self-attention sub-layer (fused QKV matmul), post-norm
        qkv = _mm(x, e_wqkv[l]) + e_bqkv[l]                     # (B*S, 3D)
        attn = _mha(qkv[:, 0:D], qkv[:, D:2 * D], qkv[:, 2 * D:3 * D],
                    e_wo[l], B=B, Sq=S, Sk=S, H=H, dh=dh) + e_bo[l]
        x = _layernorm(x + attn, e_ln1_g[l], e_ln1_b[l])
        # feed-forward sub-layer (relu)
        hdn = jnp.maximum(_mm(x, e_w1[l]) + e_b1[l], 0.0)
        ff = _mm(hdn, e_w2[l]) + e_b2[l]
        x = _layernorm(x + ff, e_ln2_g[l], e_ln2_b[l])
    mem = _layernorm(x, e_fn_g[...], e_fn_b[...])               # final enc norm

    # ---------------- decoder ----------------
    y = _embed(tgt_ids[...], tgt_emb[...], V, emb_scale)        # (B*T, D) f32
    for l in range(n_dec):                                      # static unroll
        # self-attention (no mask: matches nn.Transformer called w/o masks)
        qkv = _mm(y, d_sa_wqkv[l]) + d_sa_bqkv[l]
        sa = _mha(qkv[:, 0:D], qkv[:, D:2 * D], qkv[:, 2 * D:3 * D],
                  d_sa_wo[l], B=B, Sq=T, Sk=T, H=H, dh=dh) + d_sa_bo[l]
        y = _layernorm(y + sa, d_ln1_g[l], d_ln1_b[l])
        # cross-attention over encoder memory (fused K/V matmul)
        q = _mm(y, d_ca_wq[l]) + d_ca_bq[l]
        kv = _mm(mem, d_ca_wkv[l]) + d_ca_bkv[l]
        ca = _mha(q, kv[:, 0:D], kv[:, D:2 * D], d_ca_wo[l],
                  B=B, Sq=T, Sk=S, H=H, dh=dh) + d_ca_bo[l]
        y = _layernorm(y + ca, d_ln2_g[l], d_ln2_b[l])
        # feed-forward
        hdn = jnp.maximum(_mm(y, d_w1[l]) + d_b1[l], 0.0)
        ff = _mm(hdn, d_w2[l]) + d_b2[l]
        y = _layernorm(y + ff, d_ln3_g[l], d_ln3_b[l])

    # final decoder LayerNorm + generator linear (lane-dense vocab output)
    yf = _layernorm(y, d_fn_g[...], d_fn_b[...])
    logits_ref[...] = (_mm(yf, gen_w[...]) + gen_b[...]).astype(logits_ref.dtype)


# --------------------------------------------------------------------------
# Host-side wrapper: one pallas_call for the whole forward pass.
# --------------------------------------------------------------------------

def transformer_forward(params, src, tgt, *, d_model, nhead):
    """Equivalent of TransformerModel.forward(src, tgt) in eval mode (no masks)."""
    # TODO(synk): dropout (p=0.1) is stochastic and omitted (eval-mode identity).
    B, S = src.shape
    _, T = tgt.shape
    V, D = params["src_emb"].shape
    enc, dec = params["enc"], params["dec"]
    n_enc = enc["wqkv"].shape[0]
    n_dec = dec["sa_wqkv"].shape[0]
    dh = D // nhead
    emb_scale = math.sqrt(d_model)
    vocab = params["gen_w"].shape[-1]

    src_ids = src.reshape(B * S, 1).astype(jnp.int32)
    tgt_ids = tgt.reshape(B * T, 1).astype(jnp.int32)

    args = [
        src_ids, tgt_ids, params["src_emb"], params["tgt_emb"],
        enc["wqkv"], enc["bqkv"], enc["wo"], enc["bo"],
        enc["ln1_g"], enc["ln1_b"], enc["w1"], enc["b1"],
        enc["w2"], enc["b2"], enc["ln2_g"], enc["ln2_b"],
        params["enc_norm_g"], params["enc_norm_b"],
        dec["sa_wqkv"], dec["sa_bqkv"], dec["sa_wo"], dec["sa_bo"],
        dec["ln1_g"], dec["ln1_b"],
        dec["ca_wq"], dec["ca_bq"], dec["ca_wkv"], dec["ca_bkv"],
        dec["ca_wo"], dec["ca_bo"], dec["ln2_g"], dec["ln2_b"],
        dec["w1"], dec["b1"], dec["w2"], dec["b2"],
        dec["ln3_g"], dec["ln3_b"],
        params["dec_norm_g"], params["dec_norm_b"],
        params["gen_w"], params["gen_b"],
    ]

    def _full_spec(shape):
        nd = len(shape)
        return pl.BlockSpec(tuple(shape), lambda i, _nd=nd: (0,) * _nd)

    kernel = functools.partial(
        _transformer_kernel, B=B, S=S, T=T, H=nhead, dh=dh,
        n_enc=n_enc, n_dec=n_dec, V=V, emb_scale=emb_scale)

    logits = pl.pallas_call(
        kernel,
        out_shape=jax.ShapeDtypeStruct((B * T, vocab), jnp.float32),
        grid=(1,),
        in_specs=[_full_spec(a.shape) for a in args],
        out_specs=_full_spec((B * T, vocab)),
        compiler_params=pltpu.CompilerParams(
            dimension_semantics=("arbitrary",)),
    )(*args)
    return logits.reshape(B, T, vocab)


# --------------------------------------------------------------------------
# Deterministic parameter init (synthetic; shapes follow the PyTorch module,
# per-layer weights stacked on a leading axis; matmul weights / embeddings
# stored bf16, biases & LayerNorm params f32)
# --------------------------------------------------------------------------

def init_params(key, vocab_size, d_model, nhead, n_enc, n_dec, dff):
    D, F, V = d_model, dff, vocab_size
    keys = iter(jax.random.split(key, 64))

    def w(shape, scale=0.02, dtype=jnp.bfloat16):
        return (jax.random.normal(next(keys), shape, jnp.float32) * scale
                ).astype(dtype)

    def zeros(shape):
        return jnp.zeros(shape, jnp.float32)

    def ones(shape):
        return jnp.ones(shape, jnp.float32)

    def enc_stack(L):
        return dict(
            wqkv=w((L, D, 3 * D)), bqkv=zeros((L, 1, 3 * D)),
            wo=w((L, D, D)), bo=zeros((L, 1, D)),
            ln1_g=ones((L, 1, D)), ln1_b=zeros((L, 1, D)),
            w1=w((L, D, F)), b1=zeros((L, 1, F)),
            w2=w((L, F, D)), b2=zeros((L, 1, D)),
            ln2_g=ones((L, 1, D)), ln2_b=zeros((L, 1, D)),
        )

    def dec_stack(L):
        return dict(
            sa_wqkv=w((L, D, 3 * D)), sa_bqkv=zeros((L, 1, 3 * D)),
            sa_wo=w((L, D, D)), sa_bo=zeros((L, 1, D)),
            ln1_g=ones((L, 1, D)), ln1_b=zeros((L, 1, D)),
            ca_wq=w((L, D, D)), ca_bq=zeros((L, 1, D)),
            ca_wkv=w((L, D, 2 * D)), ca_bkv=zeros((L, 1, 2 * D)),
            ca_wo=w((L, D, D)), ca_bo=zeros((L, 1, D)),
            ln2_g=ones((L, 1, D)), ln2_b=zeros((L, 1, D)),
            w1=w((L, D, F)), b1=zeros((L, 1, F)),
            w2=w((L, F, D)), b2=zeros((L, 1, D)),
            ln3_g=ones((L, 1, D)), ln3_b=zeros((L, 1, D)),
        )

    return dict(
        src_emb=w((V, D), 1.0),
        tgt_emb=w((V, D), 1.0),
        enc=enc_stack(n_enc),
        dec=dec_stack(n_dec),
        enc_norm_g=ones((1, D)), enc_norm_b=zeros((1, D)),
        dec_norm_g=ones((1, D)), dec_norm_b=zeros((1, D)),
        gen_w=w((D, V)), gen_b=zeros((1, V)),
    )


# --------------------------------------------------------------------------

if __name__ == "__main__":
    VOCAB = 128
    D_MODEL = 64
    NHEAD = 2
    N_ENC = 2
    N_DEC = 2
    DFF = 128
    B, S, T = 2, 8, 8

    root = jax.random.PRNGKey(0)
    k_params, k_src, k_tgt = jax.random.split(root, 3)

    params = init_params(k_params, VOCAB, D_MODEL, NHEAD, N_ENC, N_DEC, DFF)
    src = jax.random.randint(k_src, (B, S), 0, VOCAB, dtype=jnp.int32)
    tgt = jax.random.randint(k_tgt, (B, T), 0, VOCAB, dtype=jnp.int32)

    fwd = jax.jit(functools.partial(transformer_forward,
                                    d_model=D_MODEL, nhead=NHEAD))
    logits = jax.block_until_ready(fwd(params, src, tgt))

    assert logits.shape == (B, T, VOCAB), logits.shape
    assert logits.dtype == jnp.float32
    assert bool(jnp.all(jnp.isfinite(logits)))
    print("KERNEL_OK")
</pallas_src>

<mosaic_0001>
module attributes {stable_mosaic.version = 11 : i64} {
  func.func @_transformer_kernel(%arg0: i32, %arg1: memref<16x1xi32, #tpu.memory_space<vmem>>, %arg2: memref<16x1xi32, #tpu.memory_space<vmem>>, %arg3: memref<128x64xbf16, #tpu.memory_space<vmem>>, %arg4: memref<128x64xbf16, #tpu.memory_space<vmem>>, %arg5: memref<2x64x192xbf16, #tpu.memory_space<vmem>>, %arg6: memref<2x1x192xf32, #tpu.memory_space<vmem>>, %arg7: memref<2x64x64xbf16, #tpu.memory_space<vmem>>, %arg8: memref<2x1x64xf32, #tpu.memory_space<vmem>>, %arg9: memref<2x1x64xf32, #tpu.memory_space<vmem>>, %arg10: memref<2x1x64xf32, #tpu.memory_space<vmem>>, %arg11: memref<2x64x128xbf16, #tpu.memory_space<vmem>>, %arg12: memref<2x1x128xf32, #tpu.memory_space<vmem>>, %arg13: memref<2x128x64xbf16, #tpu.memory_space<vmem>>, %arg14: memref<2x1x64xf32, #tpu.memory_space<vmem>>, %arg15: memref<2x1x64xf32, #tpu.memory_space<vmem>>, %arg16: memref<2x1x64xf32, #tpu.memory_space<vmem>>, %arg17: memref<1x64xf32, #tpu.memory_space<vmem>>, %arg18: memref<1x64xf32, #tpu.memory_space<vmem>>, %arg19: memref<2x64x192xbf16, #tpu.memory_space<vmem>>, %arg20: memref<2x1x192xf32, #tpu.memory_space<vmem>>, %arg21: memref<2x64x64xbf16, #tpu.memory_space<vmem>>, %arg22: memref<2x1x64xf32, #tpu.memory_space<vmem>>, %arg23: memref<2x1x64xf32, #tpu.memory_space<vmem>>, %arg24: memref<2x1x64xf32, #tpu.memory_space<vmem>>, %arg25: memref<2x64x64xbf16, #tpu.memory_space<vmem>>, %arg26: memref<2x1x64xf32, #tpu.memory_space<vmem>>, %arg27: memref<2x64x128xbf16, #tpu.memory_space<vmem>>, %arg28: memref<2x1x128xf32, #tpu.memory_space<vmem>>, %arg29: memref<2x64x64xbf16, #tpu.memory_space<vmem>>, %arg30: memref<2x1x64xf32, #tpu.memory_space<vmem>>, %arg31: memref<2x1x64xf32, #tpu.memory_space<vmem>>, %arg32: memref<2x1x64xf32, #tpu.memory_space<vmem>>, %arg33: memref<2x64x128xbf16, #tpu.memory_space<vmem>>, %arg34: memref<2x1x128xf32, #tpu.memory_space<vmem>>, %arg35: memref<2x128x64xbf16, #tpu.memory_space<vmem>>, %arg36: memref<2x1x64xf32, #tpu.memory_space<vmem>>, %arg37: memref<2x1x64xf32, #tpu.memory_space<vmem>>, %arg38: memref<2x1x64xf32, #tpu.memory_space<vmem>>, %arg39: memref<1x64xf32, #tpu.memory_space<vmem>>, %arg40: memref<1x64xf32, #tpu.memory_space<vmem>>, %arg41: memref<64x128xbf16, #tpu.memory_space<vmem>>, %arg42: memref<1x128xf32, #tpu.memory_space<vmem>>, %arg43: memref<16x128xf32, #tpu.memory_space<vmem>>) attributes {dimension_semantics = [#tpu.dimension_semantics<arbitrary>], iteration_bounds = array<i64: 1>, scalar_prefetch = 0 : i64, scratch_operands = 0 : i64, tpu.core_type = #tpu.core_type<tc>, window_params = [{pipeline_mode = #tpu.pipeline_mode<synchronous>, transform_indices = @transform_0, window_bounds = array<i64: 16, 1>}, {pipeline_mode = #tpu.pipeline_mode<synchronous>, transform_indices = @transform_1, window_bounds = array<i64: 16, 1>}, {pipeline_mode = #tpu.pipeline_mode<synchronous>, transform_indices = @transform_2, window_bounds = array<i64: 128, 64>}, {pipeline_mode = #tpu.pipeline_mode<synchronous>, transform_indices = @transform_3, window_bounds = array<i64: 128, 64>}, {pipeline_mode = #tpu.pipeline_mode<synchronous>, transform_indices = @transform_4, window_bounds = array<i64: 2, 64, 192>}, {pipeline_mode = #tpu.pipeline_mode<synchronous>, transform_indices = @transform_5, window_bounds = array<i64: 2, 1, 192>}, {pipeline_mode = #tpu.pipeline_mode<synchronous>, transform_indices = @transform_6, window_bounds = array<i64: 2, 64, 64>}, {pipeline_mode = #tpu.pipeline_mode<synchronous>, transform_indices = @transform_7, window_bounds = array<i64: 2, 1, 64>}, {pipeline_mode = #tpu.pipeline_mode<synchronous>, transform_indices = @transform_8, window_bounds = array<i64: 2, 1, 64>}, {pipeline_mode = #tpu.pipeline_mode<synchronous>, transform_indices = @transform_9, window_bounds = array<i64: 2, 1, 64>}, {pipeline_mode = #tpu.pipeline_mode<synchronous>, transform_indices = @transform_10, window_bounds = array<i64: 2, 64, 128>}, {pipeline_mode = #tpu.pipeline_mode<synchronous>, transform_indices = @transform_11, window_bounds = array<i64: 2, 1, 128>}, {pipeline_mode = #tpu.pipeline_mode<synchronous>, transform_indices = @transform_12, window_bounds = array<i64: 2, 128, 64>}, {pipeline_mode = #tpu.pipeline_mode<synchronous>, transform_indices = @transform_13, window_bounds = array<i64: 2, 1, 64>}, {pipeline_mode = #tpu.pipeline_mode<synchronous>, transform_indices = @transform_14, window_bounds = array<i64: 2, 1, 64>}, {pipeline_mode = #tpu.pipeline_mode<synchronous>, transform_indices = @transform_15, window_bounds = array<i64: 2, 1, 64>}, {pipeline_mode = #tpu.pipeline_mode<synchronous>, transform_indices = @transform_16, window_bounds = array<i64: 1, 64>}, {pipeline_mode = #tpu.pipeline_mode<synchronous>, transform_indices = @transform_17, window_bounds = array<i64: 1, 64>}, {pipeline_mode = #tpu.pipeline_mode<synchronous>, transform_indices = @transform_18, window_bounds = array<i64: 2, 64, 192>}, {pipeline_mode = #tpu.pipeline_mode<synchronous>, transform_indices = @transform_19, window_bounds = array<i64: 2, 1, 192>}, {pipeline_mode = #tpu.pipeline_mode<synchronous>, transform_indices = @transform_20, window_bounds = array<i64: 2, 64, 64>}, {pipeline_mode = #tpu.pipeline_mode<synchronous>, transform_indices = @transform_21, window_bounds = array<i64: 2, 1, 64>}, {pipeline_mode = #tpu.pipeline_mode<synchronous>, transform_indices = @transform_22, window_bounds = array<i64: 2, 1, 64>}, {pipeline_mode = #tpu.pipeline_mode<synchronous>, transform_indices = @transform_23, window_bounds = array<i64: 2, 1, 64>}, {pipeline_mode = #tpu.pipeline_mode<synchronous>, transform_indices = @transform_24, window_bounds = array<i64: 2, 64, 64>}, {pipeline_mode = #tpu.pipeline_mode<synchronous>, transform_indices = @transform_25, window_bounds = array<i64: 2, 1, 64>}, {pipeline_mode = #tpu.pipeline_mode<synchronous>, transform_indices = @transform_26, window_bounds = array<i64: 2, 64, 128>}, {pipeline_mode = #tpu.pipeline_mode<synchronous>, transform_indices = @transform_27, window_bounds = array<i64: 2, 1, 128>}, {pipeline_mode = #tpu.pipeline_mode<synchronous>, transform_indices = @transform_28, window_bounds = array<i64: 2, 64, 64>}, {pipeline_mode = #tpu.pipeline_mode<synchronous>, transform_indices = @transform_29, window_bounds = array<i64: 2, 1, 64>}, {pipeline_mode = #tpu.pipeline_mode<synchronous>, transform_indices = @transform_30, window_bounds = array<i64: 2, 1, 64>}, {pipeline_mode = #tpu.pipeline_mode<synchronous>, transform_indices = @transform_31, window_bounds = array<i64: 2, 1, 64>}, {pipeline_mode = #tpu.pipeline_mode<synchronous>, transform_indices = @transform_32, window_bounds = array<i64: 2, 64, 128>}, {pipeline_mode = #tpu.pipeline_mode<synchronous>, transform_indices = @transform_33, window_bounds = array<i64: 2, 1, 128>}, {pipeline_mode = #tpu.pipeline_mode<synchronous>, transform_indices = @transform_34, window_bounds = array<i64: 2, 128, 64>}, {pipeline_mode = #tpu.pipeline_mode<synchronous>, transform_indices = @transform_35, window_bounds = array<i64: 2, 1, 64>}, {pipeline_mode = #tpu.pipeline_mode<synchronous>, transform_indices = @transform_36, window_bounds = array<i64: 2, 1, 64>}, {pipeline_mode = #tpu.pipeline_mode<synchronous>, transform_indices = @transform_37, window_bounds = array<i64: 2, 1, 64>}, {pipeline_mode = #tpu.pipeline_mode<synchronous>, transform_indices = @transform_38, window_bounds = array<i64: 1, 64>}, {pipeline_mode = #tpu.pipeline_mode<synchronous>, transform_indices = @transform_39, window_bounds = array<i64: 1, 64>}, {pipeline_mode = #tpu.pipeline_mode<synchronous>, transform_indices = @transform_40, window_bounds = array<i64: 64, 128>}, {pipeline_mode = #tpu.pipeline_mode<synchronous>, transform_indices = @transform_41, window_bounds = array<i64: 1, 128>}, {pipeline_mode = #tpu.pipeline_mode<synchronous>, transform_indices = @transform_42, window_bounds = array<i64: 16, 128>}]} {
    %c0 = arith.constant 0 : index
    %c0_0 = arith.constant 0 : index
    %0 = vector.load %arg1[%c0, %c0_0] : memref<16x1xi32, #tpu.memory_space<vmem>>, vector<16x1xi32>
    %c0_1 = arith.constant 0 : index
    %c0_2 = arith.constant 0 : index
    %1 = vector.load %arg3[%c0_1, %c0_2] : memref<128x64xbf16, #tpu.memory_space<vmem>>, vector<128x64xbf16>
    %2 = tpu.iota {dimensions = array<i32: 1>} : vector<16x128xi32>
    %3 = vector.broadcast %0 : vector<16x1xi32> to vector<16x128xi32>
    %4 = arith.cmpi eq, %2, %3 : vector<16x128xi32>
    %5 = arith.extui %4 : vector<16x128xi1> to vector<16x128xi32>
    %6 = arith.sitofp %5 : vector<16x128xi32> to vector<16x128xf32>
    %7 = arith.truncf %6 : vector<16x128xf32> to vector<16x128xbf16>
    %cst = arith.constant dense<0.000000e+00> : vector<16x64xf32>
    %8 = tpu.matmul %7, %1, %cst {dimension_numbers = #tpu.dot_dimension_numbers<[1], [0], [0], [1], [0, 0, 1, 1], [], []>} : vector<16x128xbf16>, vector<128x64xbf16>, vector<16x64xf32> -> vector<16x64xf32>
    %cst_3 = arith.constant 8.000000e+00 : f32
    %9 = vector.broadcast %cst_3 : f32 to vector<16x64xf32>
    %10 = arith.mulf %8, %9 : vector<16x64xf32>
    %c0_4 = arith.constant 0 : index
    %c0_5 = arith.constant 0 : index
    %c0_6 = arith.constant 0 : index
    %11 = vector.load %arg5[%c0_4, %c0_5, %c0_6] : memref<2x64x192xbf16, #tpu.memory_space<vmem>>, vector<1x64x192xbf16>
    %12 = vector.shape_cast %11 : vector<1x64x192xbf16> to vector<64x192xbf16>
    %13 = arith.truncf %10 : vector<16x64xf32> to vector<16x64xbf16>
    %cst_7 = arith.constant dense<0.000000e+00> : vector<16x192xf32>
    %14 = tpu.matmul %13, %12, %cst_7 {dimension_numbers = #tpu.dot_dimension_numbers<[1], [0], [0], [1], [0, 0, 1, 1], [], []>} : vector<16x64xbf16>, vector<64x192xbf16>, vector<16x192xf32> -> vector<16x192xf32>
    %c0_8 = arith.constant 0 : index
    %c0_9 = arith.constant 0 : index
    %c0_10 = arith.constant 0 : index
    %15 = vector.load %arg6[%c0_8, %c0_9, %c0_10] : memref<2x1x192xf32, #tpu.memory_space<vmem>>, vector<1x1x192xf32>
    %16 = vector.shape_cast %15 : vector<1x1x192xf32> to vector<1x192xf32>
    %17 = vector.broadcast %16 : vector<1x192xf32> to vector<16x192xf32>
    %18 = arith.addf %14, %17 : vector<16x192xf32>
    %19 = vector.extract_strided_slice %18 {offsets = [0, 0], sizes = [16, 64], strides = [1, 1]} : vector<16x192xf32> to vector<16x64xf32>
    %20 = vector.extract_strided_slice %18 {offsets = [0, 64], sizes = [16, 64], strides = [1, 1]} : vector<16x192xf32> to vector<16x64xf32>
    %21 = vector.extract_strided_slice %18 {offsets = [0, 128], sizes = [16, 64], strides = [1, 1]} : vector<16x192xf32> to vector<16x64xf32>
    %c0_11 = arith.constant 0 : index
    %c0_12 = arith.constant 0 : index
    %c0_13 = arith.constant 0 : index
    %22 = vector.load %arg7[%c0_11, %c0_12, %c0_13] : memref<2x64x64xbf16, #tpu.memory_space<vmem>>, vector<1x64x64xbf16>
    %23 = vector.shape_cast %22 : vector<1x64x64xbf16> to vector<64x64xbf16>
    %24 = vector.shape_cast %19 : vector<16x64xf32> to vector<2x8x64xf32>
    %25 = vector.shape_cast %20 : vector<16x64xf32> to vector<2x8x64xf32>
    %26 = vector.shape_cast %21 : vector<16x64xf32> to vector<2x8x64xf32>
    %cst_14 = arith.constant 0.000000e+00 : f32
    %27 = vector.broadcast %cst_14 : f32 to vector<16x64xf32>
    %28 = vector.extract_strided_slice %24 {offsets = [0, 0, 0], sizes = [2, 8, 32], strides = [1, 1, 1]} : vector<2x8x64xf32> to vector<2x8x32xf32>
    %cst_15 = arith.constant 0.176776692 : f32
    %29 = vector.broadcast %cst_15 : f32 to vector<2x8x32xf32>
    %30 = arith.mulf %28, %29 : vector<2x8x32xf32>
    %31 = arith.truncf %30 : vector<2x8x32xf32> to vector<2x8x32xbf16>
    %32 = vector.extract_strided_slice %25 {offsets = [0, 0, 0], sizes = [2, 8, 32], strides = [1, 1, 1]} : vector<2x8x64xf32> to vector<2x8x32xf32>
    %33 = arith.truncf %32 : vector<2x8x32xf32> to vector<2x8x32xbf16>
    %34 = vector.extract_strided_slice %26 {offsets = [0, 0, 0], sizes = [2, 8, 32], strides = [1, 1, 1]} : vector<2x8x64xf32> to vector<2x8x32xf32>
    %35 = arith.truncf %34 : vector<2x8x32xf32> to vector<2x8x32xbf16>
    %cst_16 = arith.constant dense<0.000000e+00> : vector<2x8x8xf32>
    %36 = tpu.matmul %31, %33, %cst_16 {dimension_numbers = #tpu.dot_dimension_numbers<[2], [2], [1], [1], [0, 0, 0, 1, 1, 1], [0], [0]>} : vector<2x8x32xbf16>, vector<2x8x32xbf16>, vector<2x8x8xf32> -> vector<2x8x8xf32>
    %cst_17 = arith.constant dense<0xFF800000> : vector<2x8xf32>
    %37 = vector.multi_reduction <maximumf>, %36, %cst_17 [2] : vector<2x8x8xf32> to vector<2x8xf32>
    %38 = vector.shape_cast %37 : vector<2x8xf32> to vector<2x8x1xf32>
    %39 = vector.broadcast %38 : vector<2x8x1xf32> to vector<2x8x8xf32>
    %40 = arith.subf %36, %39 : vector<2x8x8xf32>
    %41 = math.exp %40 : vector<2x8x8xf32>
    %cst_18 = arith.constant dense<0.000000e+00> : vector<2x8xf32>
    %42 = vector.multi_reduction <add>, %41, %cst_18 [2] : vector<2x8x8xf32> to vector<2x8xf32>
    %43 = vector.shape_cast %42 : vector<2x8xf32> to vector<2x8x1xf32>
    %44 = tpu.reciprocal %43 {approx = true} : vector<2x8x1xf32> -> vector<2x8x1xf32>
    %45 = vector.broadcast %44 : vector<2x8x1xf32> to vector<2x8x8xf32>
    %46 = arith.mulf %41, %45 : vector<2x8x8xf32>
    %47 = arith.truncf %46 : vector<2x8x8xf32> to vector<2x8x8xbf16>
    %cst_19 = arith.constant dense<0.000000e+00> : vector<2x8x32xf32>
    %48 = tpu.matmul %47, %35, %cst_19 {dimension_numbers = #tpu.dot_dimension_numbers<[2], [1], [1], [2], [0, 0, 0, 1, 1, 2], [0], [0]>} : vector<2x8x8xbf16>, vector<2x8x32xbf16>, vector<2x8x32xf32> -> vector<2x8x32xf32>
    %49 = vector.shape_cast %48 : vector<2x8x32xf32> to vector<16x32xf32>
    %50 = vector.extract_strided_slice %23 {offsets = [0, 0], sizes = [32, 64], strides = [1, 1]} : vector<64x64xbf16> to vector<32x64xbf16>
    %51 = arith.truncf %49 : vector<16x32xf32> to vector<16x32xbf16>
    %cst_20 = arith.constant dense<0.000000e+00> : vector<16x64xf32>
    %52 = tpu.matmul %51, %50, %cst_20 {dimension_numbers = #tpu.dot_dimension_numbers<[1], [0], [0], [1], [0, 0, 1, 1], [], []>} : vector<16x32xbf16>, vector<32x64xbf16>, vector<16x64xf32> -> vector<16x64xf32>
    %53 = arith.addf %27, %52 : vector<16x64xf32>
    %54 = vector.extract_strided_slice %24 {offsets = [0, 0, 32], sizes = [2, 8, 32], strides = [1, 1, 1]} : vector<2x8x64xf32> to vector<2x8x32xf32>
    %cst_21 = arith.constant 0.176776692 : f32
    %55 = vector.broadcast %cst_21 : f32 to vector<2x8x32xf32>
    %56 = arith.mulf %54, %55 : vector<2x8x32xf32>
    %57 = arith.truncf %56 : vector<2x8x32xf32> to vector<2x8x32xbf16>
    %58 = vector.extract_strided_slice %25 {offsets = [0, 0, 32], sizes = [2, 8, 32], strides = [1, 1, 1]} : vector<2x8x64xf32> to vector<2x8x32xf32>
    %59 = arith.truncf %58 : vector<2x8x32xf32> to vector<2x8x32xbf16>
    %60 = vector.extract_strided_slice %26 {offsets = [0, 0, 32], sizes = [2, 8, 32], strides = [1, 1, 1]} : vector<2x8x64xf32> to vector<2x8x32xf32>
    %61 = arith.truncf %60 : vector<2x8x32xf32> to vector<2x8x32xbf16>
    %cst_22 = arith.constant dense<0.000000e+00> : vector<2x8x8xf32>
    %62 = tpu.matmul %57, %59, %cst_22 {dimension_numbers = #tpu.dot_dimension_numbers<[2], [2], [1], [1], [0, 0, 0, 1, 1, 1], [0], [0]>} : vector<2x8x32xbf16>, vector<2x8x32xbf16>, vector<2x8x8xf32> -> vector<2x8x8xf32>
    %cst_23 = arith.constant dense<0xFF800000> : vector<2x8xf32>
    %63 = vector.multi_reduction <maximumf>, %62, %cst_23 [2] : vector<2x8x8xf32> to vector<2x8xf32>
    %64 = vector.shape_cast %63 : vector<2x8xf32> to vector<2x8x1xf32>
    %65 = vector.broadcast %64 : vector<2x8x1xf32> to vector<2x8x8xf32>
    %66 = arith.subf %62, %65 : vector<2x8x8xf32>
    %67 = math.exp %66 : vector<2x8x8xf32>
    %cst_24 = arith.constant dense<0.000000e+00> : vector<2x8xf32>
    %68 = vector.multi_reduction <add>, %67, %cst_24 [2] : vector<2x8x8xf32> to vector<2x8xf32>
    %69 = vector.shape_cast %68 : vector<2x8xf32> to vector<2x8x1xf32>
    %70 = tpu.reciprocal %69 {approx = true} : vector<2x8x1xf32> -> vector<2x8x1xf32>
    %71 = vector.broadcast %70 : vector<2x8x1xf32> to vector<2x8x8xf32>
    %72 = arith.mulf %67, %71 : vector<2x8x8xf32>
    %73 = arith.truncf %72 : vector<2x8x8xf32> to vector<2x8x8xbf16>
    %cst_25 = arith.constant dense<0.000000e+00> : vector<2x8x32xf32>
    %74 = tpu.matmul %73, %61, %cst_25 {dimension_numbers = #tpu.dot_dimension_numbers<[2], [1], [1], [2], [0, 0, 0, 1, 1, 2], [0], [0]>} : vector<2x8x8xbf16>, vector<2x8x32xbf16>, vector<2x8x32xf32> -> vector<2x8x32xf32>
    %75 = vector.shape_cast %74 : vector<2x8x32xf32> to vector<16x32xf32>
    %76 = vector.extract_strided_slice %23 {offsets = [32, 0], sizes = [32, 64], strides = [1, 1]} : vector<64x64xbf16> to vector<32x64xbf16>
    %77 = arith.truncf %75 : vector<16x32xf32> to vector<16x32xbf16>
    %cst_26 = arith.constant dense<0.000000e+00> : vector<16x64xf32>
    %78 = tpu.matmul %77, %76, %cst_26 {dimension_numbers = #tpu.dot_dimension_numbers<[1], [0], [0], [1], [0, 0, 1, 1], [], []>} : vector<16x32xbf16>, vector<32x64xbf16>, vector<16x64xf32> -> vector<16x64xf32>
    %79 = arith.addf %53, %78 : vector<16x64xf32>
    %c0_27 = arith.constant 0 : index
    %c0_28 = arith.constant 0 : index
    %c0_29 = arith.constant 0 : index
    %80 = vector.load %arg8[%c0_27, %c0_28, %c0_29] : memref<2x1x64xf32, #tpu.memory_space<vmem>>, vector<1x1x64xf32>
    %81 = vector.shape_cast %80 : vector<1x1x64xf32> to vector<1x64xf32>
    %82 = vector.broadcast %81 : vector<1x64xf32> to vector<16x64xf32>
    %83 = arith.addf %79, %82 : vector<16x64xf32>
    %84 = arith.addf %10, %83 : vector<16x64xf32>
    %c0_30 = arith.constant 0 : index
    %c0_31 = arith.constant 0 : index
    %c0_32 = arith.constant 0 : index
    %85 = vector.load %arg9[%c0_30, %c0_31, %c0_32] : memref<2x1x64xf32, #tpu.memory_space<vmem>>, vector<1x1x64xf32>
    %86 = vector.shape_cast %85 : vector<1x1x64xf32> to vector<1x64xf32>
    %c0_33 = arith.constant 0 : index
    %c0_34 = arith.constant 0 : index
    %c0_35 = arith.constant 0 : index
    %87 = vector.load %arg10[%c0_33, %c0_34, %c0_35] : memref<2x1x64xf32, #tpu.memory_space<vmem>>, vector<1x1x64xf32>
    %88 = vector.shape_cast %87 : vector<1x1x64xf32> to vector<1x64xf32>
    %cst_36 = arith.constant dense<0.000000e+00> : vector<16xf32>
    %89 = vector.multi_reduction <add>, %84, %cst_36 [1] : vector<16x64xf32> to vector<16xf32>
    %90 = vector.shape_cast %89 : vector<16xf32> to vector<16x1xf32>
    %cst_37 = arith.constant 6.400000e+01 : f32
    %91 = vector.broadcast %cst_37 : f32 to vector<16x1xf32>
    %92 = arith.divf %90, %91 : vector<16x1xf32>
    %93 = vector.broadcast %92 : vector<16x1xf32> to vector<16x64xf32>
    %94 = arith.subf %84, %93 : vector<16x64xf32>
    %95 = arith.mulf %94, %94 : vector<16x64xf32>
    %cst_38 = arith.constant dense<0.000000e+00> : vector<16xf32>
    %96 = vector.multi_reduction <add>, %95, %cst_38 [1] : vector<16x64xf32> to vector<16xf32>
    %97 = vector.shape_cast %96 : vector<16xf32> to vector<16x1xf32>
    %cst_39 = arith.constant 6.400000e+01 : f32
    %98 = vector.broadcast %cst_39 : f32 to vector<16x1xf32>
    %99 = arith.divf %97, %98 : vector<16x1xf32>
    %cst_40 = arith.constant 9.99999974E-6 : f32
    %100 = vector.broadcast %cst_40 : f32 to vector<16x1xf32>
    %101 = arith.addf %99, %100 : vector<16x1xf32>
    %102 = math.rsqrt %101 : vector<16x1xf32>
    %103 = vector.broadcast %102 : vector<16x1xf32> to vector<16x64xf32>
    %104 = arith.mulf %94, %103 : vector<16x64xf32>
    %105 = vector.broadcast %86 : vector<1x64xf32> to vector<16x64xf32>
    %106 = arith.mulf %104, %105 : vector<16x64xf32>
    %107 = vector.broadcast %88 : vector<1x64xf32> to vector<16x64xf32>
    %108 = arith.addf %106, %107 : vector<16x64xf32>
    %c0_41 = arith.constant 0 : index
    %c0_42 = arith.constant 0 : index
    %c0_43 = arith.constant 0 : index
    %109 = vector.load %arg11[%c0_41, %c0_42, %c0_43] : memref<2x64x128xbf16, #tpu.memory_space<vmem>>, vector<1x64x128xbf16>
    %110 = vector.shape_cast %109 : vector<1x64x128xbf16> to vector<64x128xbf16>
    %111 = arith.truncf %108 : vector<16x64xf32> to vector<16x64xbf16>
    %cst_44 = arith.constant dense<0.000000e+00> : vector<16x128xf32>
    %112 = tpu.matmul %111, %110, %cst_44 {dimension_numbers = #tpu.dot_dimension_numbers<[1], [0], [0], [1], [0, 0, 1, 1], [], []>} : vector<16x64xbf16>, vector<64x128xbf16>, vector<16x128xf32> -> vector<16x128xf32>
    %c0_45 = arith.constant 0 : index
    %c0_46 = arith.constant 0 : index
    %c0_47 = arith.constant 0 : index
    %113 = vector.load %arg12[%c0_45, %c0_46, %c0_47] : memref<2x1x128xf32, #tpu.memory_space<vmem>>, vector<1x1x128xf32>
    %114 = vector.shape_cast %113 : vector<1x1x128xf32> to vector<1x128xf32>
    %115 = vector.broadcast %114 : vector<1x128xf32> to vector<16x128xf32>
    %116 = arith.addf %112, %115 : vector<16x128xf32>
    %cst_48 = arith.constant 0.000000e+00 : f32
    %117 = vector.broadcast %cst_48 : f32 to vector<16x128xf32>
    %118 = arith.maximumf %116, %117 : vector<16x128xf32>
    %c0_49 = arith.constant 0 : index
    %c0_50 = arith.constant 0 : index
    %c0_51 = arith.constant 0 : index
    %119 = vector.load %arg13[%c0_49, %c0_50, %c0_51] : memref<2x128x64xbf16, #tpu.memory_space<vmem>>, vector<1x128x64xbf16>
    %120 = vector.shape_cast %119 : vector<1x128x64xbf16> to vector<128x64xbf16>
    %121 = arith.truncf %118 : vector<16x128xf32> to vector<16x128xbf16>
    %cst_52 = arith.constant dense<0.000000e+00> : vector<16x64xf32>
    %122 = tpu.matmul %121, %120, %cst_52 {dimension_numbers = #tpu.dot_dimension_numbers<[1], [0], [0], [1], [0, 0, 1, 1], [], []>} : vector<16x128xbf16>, vector<128x64xbf16>, vector<16x64xf32> -> vector<16x64xf32>
    %c0_53 = arith.constant 0 : index
    %c0_54 = arith.constant 0 : index
    %c0_55 = arith.constant 0 : index
    %123 = vector.load %arg14[%c0_53, %c0_54, %c0_55] : memref<2x1x64xf32, #tpu.memory_space<vmem>>, vector<1x1x64xf32>
    %124 = vector.shape_cast %123 : vector<1x1x64xf32> to vector<1x64xf32>
    %125 = vector.broadcast %124 : vector<1x64xf32> to vector<16x64xf32>
    %126 = arith.addf %122, %125 : vector<16x64xf32>
    %127 = arith.addf %108, %126 : vector<16x64xf32>
    %c0_56 = arith.constant 0 : index
    %c0_57 = arith.constant 0 : index
    %c0_58 = arith.constant 0 : index
    %128 = vector.load %arg15[%c0_56, %c0_57, %c0_58] : memref<2x1x64xf32, #tpu.memory_space<vmem>>, vector<1x1x64xf32>
    %129 = vector.shape_cast %128 : vector<1x1x64xf32> to vector<1x64xf32>
    %c0_59 = arith.constant 0 : index
    %c0_60 = arith.constant 0 : index
    %c0_61 = arith.constant 0 : index
    %130 = vector.load %arg16[%c0_59, %c0_60, %c0_61] : memref<2x1x64xf32, #tpu.memory_space<vmem>>, vector<1x1x64xf32>
    %131 = vector.shape_cast %130 : vector<1x1x64xf32> to vector<1x64xf32>
    %cst_62 = arith.constant dense<0.000000e+00> : vector<16xf32>
    %132 = vector.multi_reduction <add>, %127, %cst_62 [1] : vector<16x64xf32> to vector<16xf32>
    %133 = vector.shape_cast %132 : vector<16xf32> to vector<16x1xf32>
    %cst_63 = arith.constant 6.400000e+01 : f32
    %134 = vector.broadcast %cst_63 : f32 to vector<16x1xf32>
    %135 = arith.divf %133, %134 : vector<16x1xf32>
    %136 = vector.broadcast %135 : vector<16x1xf32> to vector<16x64xf32>
    %137 = arith.subf %127, %136 : vector<16x64xf32>
    %138 = arith.mulf %137, %137 : vector<16x64xf32>
    %cst_64 = arith.constant dense<0.000000e+00> : vector<16xf32>
    %139 = vector.multi_reduction <add>, %138, %cst_64 [1] : vector<16x64xf32> to vector<16xf32>
    %140 = vector.shape_cast %139 : vector<16xf32> to vector<16x1xf32>
    %cst_65 = arith.constant 6.400000e+01 : f32
    %141 = vector.broadcast %cst_65 : f32 to vector<16x1xf32>
    %142 = arith.divf %140, %141 : vector<16x1xf32>
    %cst_66 = arith.constant 9.99999974E-6 : f32
    %143 = vector.broadcast %cst_66 : f32 to vector<16x1xf32>
    %144 = arith.addf %142, %143 : vector<16x1xf32>
    %145 = math.rsqrt %144 : vector<16x1xf32>
    %146 = vector.broadcast %145 : vector<16x1xf32> to vector<16x64xf32>
    %147 = arith.mulf %137, %146 : vector<16x64xf32>
    %148 = vector.broadcast %129 : vector<1x64xf32> to vector<16x64xf32>
    %149 = arith.mulf %147, %148 : vector<16x64xf32>
    %150 = vector.broadcast %131 : vector<1x64xf32> to vector<16x64xf32>
    %151 = arith.addf %149, %150 : vector<16x64xf32>
    %c1 = arith.constant 1 : index
    %c0_67 = arith.constant 0 : index
    %c0_68 = arith.constant 0 : index
    %152 = vector.load %arg5[%c1, %c0_67, %c0_68] : memref<2x64x192xbf16, #tpu.memory_space<vmem>>, vector<1x64x192xbf16>
    %153 = vector.shape_cast %152 : vector<1x64x192xbf16> to vector<64x192xbf16>
    %154 = arith.truncf %151 : vector<16x64xf32> to vector<16x64xbf16>
    %cst_69 = arith.constant dense<0.000000e+00> : vector<16x192xf32>
    %155 = tpu.matmul %154, %153, %cst_69 {dimension_numbers = #tpu.dot_dimension_numbers<[1], [0], [0], [1], [0, 0, 1, 1], [], []>} : vector<16x64xbf16>, vector<64x192xbf16>, vector<16x192xf32> -> vector<16x192xf32>
    %c1_70 = arith.constant 1 : index
    %c0_71 = arith.constant 0 : index
    %c0_72 = arith.constant 0 : index
    %156 = vector.load %arg6[%c1_70, %c0_71, %c0_72] : memref<2x1x192xf32, #tpu.memory_space<vmem>>, vector<1x1x192xf32>
    %157 = vector.shape_cast %156 : vector<1x1x192xf32> to vector<1x192xf32>
    %158 = vector.broadcast %157 : vector<1x192xf32> to vector<16x192xf32>
    %159 = arith.addf %155, %158 : vector<16x192xf32>
    %160 = vector.extract_strided_slice %159 {offsets = [0, 0], sizes = [16, 64], strides = [1, 1]} : vector<16x192xf32> to vector<16x64xf32>
    %161 = vector.extract_strided_slice %159 {offsets = [0, 64], sizes = [16, 64], strides = [1, 1]} : vector<16x192xf32> to vector<16x64xf32>
    %162 = vector.extract_strided_slice %159 {offsets = [0, 128], sizes = [16, 64], strides = [1, 1]} : vector<16x192xf32> to vector<16x64xf32>
    %c1_73 = arith.constant 1 : index
    %c0_74 = arith.constant 0 : index
    %c0_75 = arith.constant 0 : index
    %163 = vector.load %arg7[%c1_73, %c0_74, %c0_75] : memref<2x64x64xbf16, #tpu.memory_space<vmem>>, vector<1x64x64xbf16>
    %164 = vector.shape_cast %163 : vector<1x64x64xbf16> to vector<64x64xbf16>
    %165 = vector.shape_cast %160 : vector<16x64xf32> to vector<2x8x64xf32>
    %166 = vector.shape_cast %161 : vector<16x64xf32> to vector<2x8x64xf32>
    %167 = vector.shape_cast %162 : vector<16x64xf32> to vector<2x8x64xf32>
    %cst_76 = arith.constant 0.000000e+00 : f32
    %168 = vector.broadcast %cst_76 : f32 to vector<16x64xf32>
    %169 = vector.extract_strided_slice %165 {offsets = [0, 0, 0], sizes = [2, 8, 32], strides = [1, 1, 1]} : vector<2x8x64xf32> to vector<2x8x32xf32>
    %cst_77 = arith.constant 0.176776692 : f32
    %170 = vector.broadcast %cst_77 : f32 to vector<2x8x32xf32>
    %171 = arith.mulf %169, %170 : vector<2x8x32xf32>
    %172 = arith.truncf %171 : vector<2x8x32xf32> to vector<2x8x32xbf16>
    %173 = vector.extract_strided_slice %166 {offsets = [0, 0, 0], sizes = [2, 8, 32], strides = [1, 1, 1]} : vector<2x8x64xf32> to vector<2x8x32xf32>
    %174 = arith.truncf %173 : vector<2x8x32xf32> to vector<2x8x32xbf16>
    %175 = vector.extract_strided_slice %167 {offsets = [0, 0, 0], sizes = [2, 8, 32], strides = [1, 1, 1]} : vector<2x8x64xf32> to vector<2x8x32xf32>
    %176 = arith.truncf %175 : vector<2x8x32xf32> to vector<2x8x32xbf16>
    %cst_78 = arith.constant dense<0.000000e+00> : vector<2x8x8xf32>
    %177 = tpu.matmul %172, %174, %cst_78 {dimension_numbers = #tpu.dot_dimension_numbers<[2], [2], [1], [1], [0, 0, 0, 1, 1, 1], [0], [0]>} : vector<2x8x32xbf16>, vector<2x8x32xbf16>, vector<2x8x8xf32> -> vector<2x8x8xf32>
    %cst_79 = arith.constant dense<0xFF800000> : vector<2x8xf32>
    %178 = vector.multi_reduction <maximumf>, %177, %cst_79 [2] : vector<2x8x8xf32> to vector<2x8xf32>
    %179 = vector.shape_cast %178 : vector<2x8xf32> to vector<2x8x1xf32>
    %180 = vector.broadcast %179 : vector<2x8x1xf32> to vector<2x8x8xf32>
    %181 = arith.subf %177, %180 : vector<2x8x8xf32>
    %182 = math.exp %181 : vector<2x8x8xf32>
    %cst_80 = arith.constant dense<0.000000e+00> : vector<2x8xf32>
    %183 = vector.multi_reduction <add>, %182, %cst_80 [2] : vector<2x8x8xf32> to vector<2x8xf32>
    %184 = vector.shape_cast %183 : vector<2x8xf32> to vector<2x8x1xf32>
    %185 = tpu.reciprocal %184 {approx = true} : vector<2x8x1xf32> -> vector<2x8x1xf32>
    %186 = vector.broadcast %185 : vector<2x8x1xf32> to vector<2x8x8xf32>
    %187 = arith.mulf %182, %186 : vector<2x8x8xf32>
    %188 = arith.truncf %187 : vector<2x8x8xf32> to vector<2x8x8xbf16>
    %cst_81 = arith.constant dense<0.000000e+00> : vector<2x8x32xf32>
    %189 = tpu.matmul %188, %176, %cst_81 {dimension_numbers = #tpu.dot_dimension_numbers<[2], [1], [1], [2], [0, 0, 0, 1, 1, 2], [0], [0]>} : vector<2x8x8xbf16>, vector<2x8x32xbf16>, vector<2x8x32xf32> -> vector<2x8x32xf32>
    %190 = vector.shape_cast %189 : vector<2x8x32xf32> to vector<16x32xf32>
    %191 = vector.extract_strided_slice %164 {offsets = [0, 0], sizes = [32, 64], strides = [1, 1]} : vector<64x64xbf16> to vector<32x64xbf16>
    %192 = arith.truncf %190 : vector<16x32xf32> to vector<16x32xbf16>
    %cst_82 = arith.constant dense<0.000000e+00> : vector<16x64xf32>
    %193 = tpu.matmul %192, %191, %cst_82 {dimension_numbers = #tpu.dot_dimension_numbers<[1], [0], [0], [1], [0, 0, 1, 1], [], []>} : vector<16x32xbf16>, vector<32x64xbf16>, vector<16x64xf32> -> vector<16x64xf32>
    %194 = arith.addf %168, %193 : vector<16x64xf32>
    %195 = vector.extract_strided_slice %165 {offsets = [0, 0, 32], sizes = [2, 8, 32], strides = [1, 1, 1]} : vector<2x8x64xf32> to vector<2x8x32xf32>
    %cst_83 = arith.constant 0.176776692 : f32
    %196 = vector.broadcast %cst_83 : f32 to vector<2x8x32xf32>
    %197 = arith.mulf %195, %196 : vector<2x8x32xf32>
    %198 = arith.truncf %197 : vector<2x8x32xf32> to vector<2x8x32xbf16>
    %199 = vector.extract_strided_slice %166 {offsets = [0, 0, 32], sizes = [2, 8, 32], strides = [1, 1, 1]} : vector<2x8x64xf32> to vector<2x8x32xf32>
    %200 = arith.truncf %199 : vector<2x8x32xf32> to vector<2x8x32xbf16>
    %201 = vector.extract_strided_slice %167 {offsets = [0, 0, 32], sizes = [2, 8, 32], strides = [1, 1, 1]} : vector<2x8x64xf32> to vector<2x8x32xf32>
    %202 = arith.truncf %201 : vector<2x8x32xf32> to vector<2x8x32xbf16>
    %cst_84 = arith.constant dense<0.000000e+00> : vector<2x8x8xf32>
    %203 = tpu.matmul %198, %200, %cst_84 {dimension_numbers = #tpu.dot_dimension_numbers<[2], [2], [1], [1], [0, 0, 0, 1, 1, 1], [0], [0]>} : vector<2x8x32xbf16>, vector<2x8x32xbf16>, vector<2x8x8xf32> -> vector<2x8x8xf32>
    %cst_85 = arith.constant dense<0xFF800000> : vector<2x8xf32>
    %204 = vector.multi_reduction <maximumf>, %203, %cst_85 [2] : vector<2x8x8xf32> to vector<2x8xf32>
    %205 = vector.shape_cast %204 : vector<2x8xf32> to vector<2x8x1xf32>
    %206 = vector.broadcast %205 : vector<2x8x1xf32> to vector<2x8x8xf32>
    %207 = arith.subf %203, %206 : vector<2x8x8xf32>
    %208 = math.exp %207 : vector<2x8x8xf32>
    %cst_86 = arith.constant dense<0.000000e+00> : vector<2x8xf32>
    %209 = vector.multi_reduction <add>, %208, %cst_86 [2] : vector<2x8x8xf32> to vector<2x8xf32>
    %210 = vector.shape_cast %209 : vector<2x8xf32> to vector<2x8x1xf32>
    %211 = tpu.reciprocal %210 {approx = true} : vector<2x8x1xf32> -> vector<2x8x1xf32>
    %212 = vector.broadcast %211 : vector<2x8x1xf32> to vector<2x8x8xf32>
    %213 = arith.mulf %208, %212 : vector<2x8x8xf32>
    %214 = arith.truncf %213 : vector<2x8x8xf32> to vector<2x8x8xbf16>
    %cst_87 = arith.constant dense<0.000000e+00> : vector<2x8x32xf32>
    %215 = tpu.matmul %214, %202, %cst_87 {dimension_numbers = #tpu.dot_dimension_numbers<[2], [1], [1], [2], [0, 0, 0, 1, 1, 2], [0], [0]>} : vector<2x8x8xbf16>, vector<2x8x32xbf16>, vector<2x8x32xf32> -> vector<2x8x32xf32>
    %216 = vector.shape_cast %215 : vector<2x8x32xf32> to vector<16x32xf32>
    %217 = vector.extract_strided_slice %164 {offsets = [32, 0], sizes = [32, 64], strides = [1, 1]} : vector<64x64xbf16> to vector<32x64xbf16>
    %218 = arith.truncf %216 : vector<16x32xf32> to vector<16x32xbf16>
    %cst_88 = arith.constant dense<0.000000e+00> : vector<16x64xf32>
    %219 = tpu.matmul %218, %217, %cst_88 {dimension_numbers = #tpu.dot_dimension_numbers<[1], [0], [0], [1], [0, 0, 1, 1], [], []>} : vector<16x32xbf16>, vector<32x64xbf16>, vector<16x64xf32> -> vector<16x64xf32>
    %220 = arith.addf %194, %219 : vector<16x64xf32>
    %c1_89 = arith.constant 1 : index
    %c0_90 = arith.constant 0 : index
    %c0_91 = arith.constant 0 : index
    %221 = vector.load %arg8[%c1_89, %c0_90, %c0_91] : memref<2x1x64xf32, #tpu.memory_space<vmem>>, vector<1x1x64xf32>
    %222 = vector.shape_cast %221 : vector<1x1x64xf32> to vector<1x64xf32>
    %223 = vector.broadcast %222 : vector<1x64xf32> to vector<16x64xf32>
    %224 = arith.addf %220, %223 : vector<16x64xf32>
    %225 = arith.addf %151, %224 : vector<16x64xf32>
    %c1_92 = arith.constant 1 : index
    %c0_93 = arith.constant 0 : index
    %c0_94 = arith.constant 0 : index
    %226 = vector.load %arg9[%c1_92, %c0_93, %c0_94] : memref<2x1x64xf32, #tpu.memory_space<vmem>>, vector<1x1x64xf32>
    %227 = vector.shape_cast %226 : vector<1x1x64xf32> to vector<1x64xf32>
    %c1_95 = arith.constant 1 : index
    %c0_96 = arith.constant 0 : index
    %c0_97 = arith.constant 0 : index
    %228 = vector.load %arg10[%c1_95, %c0_96, %c0_97] : memref<2x1x64xf32, #tpu.memory_space<vmem>>, vector<1x1x64xf32>
    %229 = vector.shape_cast %228 : vector<1x1x64xf32> to vector<1x64xf32>
    %cst_98 = arith.constant dense<0.000000e+00> : vector<16xf32>
    %230 = vector.multi_reduction <add>, %225, %cst_98 [1] : vector<16x64xf32> to vector<16xf32>
    %231 = vector.shape_cast %230 : vector<16xf32> to vector<16x1xf32>
    %cst_99 = arith.constant 6.400000e+01 : f32
    %232 = vector.broadcast %cst_99 : f32 to vector<16x1xf32>
    %233 = arith.divf %231, %232 : vector<16x1xf32>
    %234 = vector.broadcast %233 : vector<16x1xf32> to vector<16x64xf32>
    %235 = arith.subf %225, %234 : vector<16x64xf32>
    %236 = arith.mulf %235, %235 : vector<16x64xf32>
    %cst_100 = arith.constant dense<0.000000e+00> : vector<16xf32>
    %237 = vector.multi_reduction <add>, %236, %cst_100 [1] : vector<16x64xf32> to vector<16xf32>
    %238 = vector.shape_cast %237 : vector<16xf32> to vector<16x1xf32>
    %cst_101 = arith.constant 6.400000e+01 : f32
    %239 = vector.broadcast %cst_101 : f32 to vector<16x1xf32>
    %240 = arith.divf %238, %239 : vector<16x1xf32>
    %cst_102 = arith.constant 9.99999974E-6 : f32
    %241 = vector.broadcast %cst_102 : f32 to vector<16x1xf32>
    %242 = arith.addf %240, %241 : vector<16x1xf32>
    %243 = math.rsqrt %242 : vector<16x1xf32>
    %244 = vector.broadcast %243 : vector<16x1xf32> to vector<16x64xf32>
    %245 = arith.mulf %235, %244 : vector<16x64xf32>
    %246 = vector.broadcast %227 : vector<1x64xf32> to vector<16x64xf32>
    %247 = arith.mulf %245, %246 : vector<16x64xf32>
    %248 = vector.broadcast %229 : vector<1x64xf32> to vector<16x64xf32>
    %249 = arith.addf %247, %248 : vector<16x64xf32>
    %c1_103 = arith.constant 1 : index
    %c0_104 = arith.constant 0 : index
    %c0_105 = arith.constant 0 : index
    %250 = vector.load %arg11[%c1_103, %c0_104, %c0_105] : memref<2x64x128xbf16, #tpu.memory_space<vmem>>, vector<1x64x128xbf16>
    %251 = vector.shape_cast %250 : vector<1x64x128xbf16> to vector<64x128xbf16>
    %252 = arith.truncf %249 : vector<16x64xf32> to vector<16x64xbf16>
    %cst_106 = arith.constant dense<0.000000e+00> : vector<16x128xf32>
    %253 = tpu.matmul %252, %251, %cst_106 {dimension_numbers = #tpu.dot_dimension_numbers<[1], [0], [0], [1], [0, 0, 1, 1], [], []>} : vector<16x64xbf16>, vector<64x128xbf16>, vector<16x128xf32> -> vector<16x128xf32>
    %c1_107 = arith.constant 1 : index
    %c0_108 = arith.constant 0 : index
    %c0_109 = arith.constant 0 : index
    %254 = vector.load %arg12[%c1_107, %c0_108, %c0_109] : memref<2x1x128xf32, #tpu.memory_space<vmem>>, vector<1x1x128xf32>
    %255 = vector.shape_cast %254 : vector<1x1x128xf32> to vector<1x128xf32>
    %256 = vector.broadcast %255 : vector<1x128xf32> to vector<16x128xf32>
    %257 = arith.addf %253, %256 : vector<16x128xf32>
    %cst_110 = arith.constant 0.000000e+00 : f32
    %258 = vector.broadcast %cst_110 : f32 to vector<16x128xf32>
    %259 = arith.maximumf %257, %258 : vector<16x128xf32>
    %c1_111 = arith.constant 1 : index
    %c0_112 = arith.constant 0 : index
    %c0_113 = arith.constant 0 : index
    %260 = vector.load %arg13[%c1_111, %c0_112, %c0_113] : memref<2x128x64xbf16, #tpu.memory_space<vmem>>, vector<1x128x64xbf16>
    %261 = vector.shape_cast %260 : vector<1x128x64xbf16> to vector<128x64xbf16>
    %262 = arith.truncf %259 : vector<16x128xf32> to vector<16x128xbf16>
    %cst_114 = arith.constant dense<0.000000e+00> : vector<16x64xf32>
    %263 = tpu.matmul %262, %261, %cst_114 {dimension_numbers = #tpu.dot_dimension_numbers<[1], [0], [0], [1], [0, 0, 1, 1], [], []>} : vector<16x128xbf16>, vector<128x64xbf16>, vector<16x64xf32> -> vector<16x64xf32>
    %c1_115 = arith.constant 1 : index
    %c0_116 = arith.constant 0 : index
    %c0_117 = arith.constant 0 : index
    %264 = vector.load %arg14[%c1_115, %c0_116, %c0_117] : memref<2x1x64xf32, #tpu.memory_space<vmem>>, vector<1x1x64xf32>
    %265 = vector.shape_cast %264 : vector<1x1x64xf32> to vector<1x64xf32>
    %266 = vector.broadcast %265 : vector<1x64xf32> to vector<16x64xf32>
    %267 = arith.addf %263, %266 : vector<16x64xf32>
    %268 = arith.addf %249, %267 : vector<16x64xf32>
    %c1_118 = arith.constant 1 : index
    %c0_119 = arith.constant 0 : index
    %c0_120 = arith.constant 0 : index
    %269 = vector.load %arg15[%c1_118, %c0_119, %c0_120] : memref<2x1x64xf32, #tpu.memory_space<vmem>>, vector<1x1x64xf32>
    %270 = vector.shape_cast %269 : vector<1x1x64xf32> to vector<1x64xf32>
    %c1_121 = arith.constant 1 : index
    %c0_122 = arith.constant 0 : index
    %c0_123 = arith.constant 0 : index
    %271 = vector.load %arg16[%c1_121, %c0_122, %c0_123] : memref<2x1x64xf32, #tpu.memory_space<vmem>>, vector<1x1x64xf32>
    %272 = vector.shape_cast %271 : vector<1x1x64xf32> to vector<1x64xf32>
    %cst_124 = arith.constant dense<0.000000e+00> : vector<16xf32>
    %273 = vector.multi_reduction <add>, %268, %cst_124 [1] : vector<16x64xf32> to vector<16xf32>
    %274 = vector.shape_cast %273 : vector<16xf32> to vector<16x1xf32>
    %cst_125 = arith.constant 6.400000e+01 : f32
    %275 = vector.broadcast %cst_125 : f32 to vector<16x1xf32>
    %276 = arith.divf %274, %275 : vector<16x1xf32>
    %277 = vector.broadcast %276 : vector<16x1xf32> to vector<16x64xf32>
    %278 = arith.subf %268, %277 : vector<16x64xf32>
    %279 = arith.mulf %278, %278 : vector<16x64xf32>
    %cst_126 = arith.constant dense<0.000000e+00> : vector<16xf32>
    %280 = vector.multi_reduction <add>, %279, %cst_126 [1] : vector<16x64xf32> to vector<16xf32>
    %281 = vector.shape_cast %280 : vector<16xf32> to vector<16x1xf32>
    %cst_127 = arith.constant 6.400000e+01 : f32
    %282 = vector.broadcast %cst_127 : f32 to vector<16x1xf32>
    %283 = arith.divf %281, %282 : vector<16x1xf32>
    %cst_128 = arith.constant 9.99999974E-6 : f32
    %284 = vector.broadcast %cst_128 : f32 to vector<16x1xf32>
    %285 = arith.addf %283, %284 : vector<16x1xf32>
    %286 = math.rsqrt %285 : vector<16x1xf32>
    %287 = vector.broadcast %286 : vector<16x1xf32> to vector<16x64xf32>
    %288 = arith.mulf %278, %287 : vector<16x64xf32>
    %289 = vector.broadcast %270 : vector<1x64xf32> to vector<16x64xf32>
    %290 = arith.mulf %288, %289 : vector<16x64xf32>
    %291 = vector.broadcast %272 : vector<1x64xf32> to vector<16x64xf32>
    %292 = arith.addf %290, %291 : vector<16x64xf32>
    %c0_129 = arith.constant 0 : index
    %c0_130 = arith.constant 0 : index
    %293 = vector.load %arg17[%c0_129, %c0_130] : memref<1x64xf32, #tpu.memory_space<vmem>>, vector<1x64xf32>
    %c0_131 = arith.constant 0 : index
    %c0_132 = arith.constant 0 : index
    %294 = vector.load %arg18[%c0_131, %c0_132] : memref<1x64xf32, #tpu.memory_space<vmem>>, vector<1x64xf32>
    %cst_133 = arith.constant dense<0.000000e+00> : vector<16xf32>
    %295 = vector.multi_reduction <add>, %292, %cst_133 [1] : vector<16x64xf32> to vector<16xf32>
    %296 = vector.shape_cast %295 : vector<16xf32> to vector<16x1xf32>
    %cst_134 = arith.constant 6.400000e+01 : f32
    %297 = vector.broadcast %cst_134 : f32 to vector<16x1xf32>
    %298 = arith.divf %296, %297 : vector<16x1xf32>
    %299 = vector.broadcast %298 : vector<16x1xf32> to vector<16x64xf32>
    %300 = arith.subf %292, %299 : vector<16x64xf32>
    %301 = arith.mulf %300, %300 : vector<16x64xf32>
    %cst_135 = arith.constant dense<0.000000e+00> : vector<16xf32>
    %302 = vector.multi_reduction <add>, %301, %cst_135 [1] : vector<16x64xf32> to vector<16xf32>
    %303 = vector.shape_cast %302 : vector<16xf32> to vector<16x1xf32>
    %cst_136 = arith.constant 6.400000e+01 : f32
    %304 = vector.broadcast %cst_136 : f32 to vector<16x1xf32>
    %305 = arith.divf %303, %304 : vector<16x1xf32>
    %cst_137 = arith.constant 9.99999974E-6 : f32
    %306 = vector.broadcast %cst_137 : f32 to vector<16x1xf32>
    %307 = arith.addf %305, %306 : vector<16x1xf32>
    %308 = math.rsqrt %307 : vector<16x1xf32>
    %309 = vector.broadcast %308 : vector<16x1xf32> to vector<16x64xf32>
    %310 = arith.mulf %300, %309 : vector<16x64xf32>
    %311 = vector.broadcast %293 : vector<1x64xf32> to vector<16x64xf32>
    %312 = arith.mulf %310, %311 : vector<16x64xf32>
    %313 = vector.broadcast %294 : vector<1x64xf32> to vector<16x64xf32>
    %314 = arith.addf %312, %313 : vector<16x64xf32>
    %c0_138 = arith.constant 0 : index
    %c0_139 = arith.constant 0 : index
    %315 = vector.load %arg2[%c0_138, %c0_139] : memref<16x1xi32, #tpu.memory_space<vmem>>, vector<16x1xi32>
    %c0_140 = arith.constant 0 : index
    %c0_141 = arith.constant 0 : index
    %316 = vector.load %arg4[%c0_140, %c0_141] : memref<128x64xbf16, #tpu.memory_space<vmem>>, vector<128x64xbf16>
    %317 = tpu.iota {dimensions = array<i32: 1>} : vector<16x128xi32>
    %318 = vector.broadcast %315 : vector<16x1xi32> to vector<16x128xi32>
    %319 = arith.cmpi eq, %317, %318 : vector<16x128xi32>
    %320 = arith.extui %319 : vector<16x128xi1> to vector<16x128xi32>
    %321 = arith.sitofp %320 : vector<16x128xi32> to vector<16x128xf32>
    %322 = arith.truncf %321 : vector<16x128xf32> to vector<16x128xbf16>
    %cst_142 = arith.constant dense<0.000000e+00> : vector<16x64xf32>
    %323 = tpu.matmul %322, %316, %cst_142 {dimension_numbers = #tpu.dot_dimension_numbers<[1], [0], [0], [1], [0, 0, 1, 1], [], []>} : vector<16x128xbf16>, vector<128x64xbf16>, vector<16x64xf32> -> vector<16x64xf32>
    %cst_143 = arith.constant 8.000000e+00 : f32
    %324 = vector.broadcast %cst_143 : f32 to vector<16x64xf32>
    %325 = arith.mulf %323, %324 : vector<16x64xf32>
    %c0_144 = arith.constant 0 : index
    %c0_145 = arith.constant 0 : index
    %c0_146 = arith.constant 0 : index
    %326 = vector.load %arg19[%c0_144, %c0_145, %c0_146] : memref<2x64x192xbf16, #tpu.memory_space<vmem>>, vector<1x64x192xbf16>
    %327 = vector.shape_cast %326 : vector<1x64x192xbf16> to vector<64x192xbf16>
    %328 = arith.truncf %325 : vector<16x64xf32> to vector<16x64xbf16>
    %cst_147 = arith.constant dense<0.000000e+00> : vector<16x192xf32>
    %329 = tpu.matmul %328, %327, %cst_147 {dimension_numbers = #tpu.dot_dimension_numbers<[1], [0], [0], [1], [0, 0, 1, 1], [], []>} : vector<16x64xbf16>, vector<64x192xbf16>, vector<16x192xf32> -> vector<16x192xf32>
    %c0_148 = arith.constant 0 : index
    %c0_149 = arith.constant 0 : index
    %c0_150 = arith.constant 0 : index
    %330 = vector.load %arg20[%c0_148, %c0_149, %c0_150] : memref<2x1x192xf32, #tpu.memory_space<vmem>>, vector<1x1x192xf32>
    %331 = vector.shape_cast %330 : vector<1x1x192xf32> to vector<1x192xf32>
    %332 = vector.broadcast %331 : vector<1x192xf32> to vector<16x192xf32>
    %333 = arith.addf %329, %332 : vector<16x192xf32>
    %334 = vector.extract_strided_slice %333 {offsets = [0, 0], sizes = [16, 64], strides = [1, 1]} : vector<16x192xf32> to vector<16x64xf32>
    %335 = vector.extract_strided_slice %333 {offsets = [0, 64], sizes = [16, 64], strides = [1, 1]} : vector<16x192xf32> to vector<16x64xf32>
    %336 = vector.extract_strided_slice %333 {offsets = [0, 128], sizes = [16, 64], strides = [1, 1]} : vector<16x192xf32> to vector<16x64xf32>
    %c0_151 = arith.constant 0 : index
    %c0_152 = arith.constant 0 : index
    %c0_153 = arith.constant 0 : index
    %337 = vector.load %arg21[%c0_151, %c0_152, %c0_153] : memref<2x64x64xbf16, #tpu.memory_space<vmem>>, vector<1x64x64xbf16>
    %338 = vector.shape_cast %337 : vector<1x64x64xbf16> to vector<64x64xbf16>
    %339 = vector.shape_cast %334 : vector<16x64xf32> to vector<2x8x64xf32>
    %340 = vector.shape_cast %335 : vector<16x64xf32> to vector<2x8x64xf32>
    %341 = vector.shape_cast %336 : vector<16x64xf32> to vector<2x8x64xf32>
    %cst_154 = arith.constant 0.000000e+00 : f32
    %342 = vector.broadcast %cst_154 : f32 to vector<16x64xf32>
    %343 = vector.extract_strided_slice %339 {offsets = [0, 0, 0], sizes = [2, 8, 32], strides = [1, 1, 1]} : vector<2x8x64xf32> to vector<2x8x32xf32>
    %cst_155 = arith.constant 0.176776692 : f32
    %344 = vector.broadcast %cst_155 : f32 to vector<2x8x32xf32>
    %345 = arith.mulf %343, %344 : vector<2x8x32xf32>
    %346 = arith.truncf %345 : vector<2x8x32xf32> to vector<2x8x32xbf16>
    %347 = vector.extract_strided_slice %340 {offsets = [0, 0, 0], sizes = [2, 8, 32], strides = [1, 1, 1]} : vector<2x8x64xf32> to vector<2x8x32xf32>
    %348 = arith.truncf %347 : vector<2x8x32xf32> to vector<2x8x32xbf16>
    %349 = vector.extract_strided_slice %341 {offsets = [0, 0, 0], sizes = [2, 8, 32], strides = [1, 1, 1]} : vector<2x8x64xf32> to vector<2x8x32xf32>
    %350 = arith.truncf %349 : vector<2x8x32xf32> to vector<2x8x32xbf16>
    %cst_156 = arith.constant dense<0.000000e+00> : vector<2x8x8xf32>
    %351 = tpu.matmul %346, %348, %cst_156 {dimension_numbers = #tpu.dot_dimension_numbers<[2], [2], [1], [1], [0, 0, 0, 1, 1, 1], [0], [0]>} : vector<2x8x32xbf16>, vector<2x8x32xbf16>, vector<2x8x8xf32> -> vector<2x8x8xf32>
    %cst_157 = arith.constant dense<0xFF800000> : vector<2x8xf32>
    %352 = vector.multi_reduction <maximumf>, %351, %cst_157 [2] : vector<2x8x8xf32> to vector<2x8xf32>
    %353 = vector.shape_cast %352 : vector<2x8xf32> to vector<2x8x1xf32>
    %354 = vector.broadcast %353 : vector<2x8x1xf32> to vector<2x8x8xf32>
    %355 = arith.subf %351, %354 : vector<2x8x8xf32>
    %356 = math.exp %355 : vector<2x8x8xf32>
    %cst_158 = arith.constant dense<0.000000e+00> : vector<2x8xf32>
    %357 = vector.multi_reduction <add>, %356, %cst_158 [2] : vector<2x8x8xf32> to vector<2x8xf32>
    %358 = vector.shape_cast %357 : vector<2x8xf32> to vector<2x8x1xf32>
    %359 = tpu.reciprocal %358 {approx = true} : vector<2x8x1xf32> -> vector<2x8x1xf32>
    %360 = vector.broadcast %359 : vector<2x8x1xf32> to vector<2x8x8xf32>
    %361 = arith.mulf %356, %360 : vector<2x8x8xf32>
    %362 = arith.truncf %361 : vector<2x8x8xf32> to vector<2x8x8xbf16>
    %cst_159 = arith.constant dense<0.000000e+00> : vector<2x8x32xf32>
    %363 = tpu.matmul %362, %350, %cst_159 {dimension_numbers = #tpu.dot_dimension_numbers<[2], [1], [1], [2], [0, 0, 0, 1, 1, 2], [0], [0]>} : vector<2x8x8xbf16>, vector<2x8x32xbf16>, vector<2x8x32xf32> -> vector<2x8x32xf32>
    %364 = vector.shape_cast %363 : vector<2x8x32xf32> to vector<16x32xf32>
    %365 = vector.extract_strided_slice %338 {offsets = [0, 0], sizes = [32, 64], strides = [1, 1]} : vector<64x64xbf16> to vector<32x64xbf16>
    %366 = arith.truncf %364 : vector<16x32xf32> to vector<16x32xbf16>
    %cst_160 = arith.constant dense<0.000000e+00> : vector<16x64xf32>
    %367 = tpu.matmul %366, %365, %cst_160 {dimension_numbers = #tpu.dot_dimension_numbers<[1], [0], [0], [1], [0, 0, 1, 1], [], []>} : vector<16x32xbf16>, vector<32x64xbf16>, vector<16x64xf32> -> vector<16x64xf32>
    %368 = arith.addf %342, %367 : vector<16x64xf32>
    %369 = vector.extract_strided_slice %339 {offsets = [0, 0, 32], sizes = [2, 8, 32], strides = [1, 1, 1]} : vector<2x8x64xf32> to vector<2x8x32xf32>
    %cst_161 = arith.constant 0.176776692 : f32
    %370 = vector.broadcast %cst_161 : f32 to vector<2x8x32xf32>
    %371 = arith.mulf %369, %370 : vector<2x8x32xf32>
    %372 = arith.truncf %371 : vector<2x8x32xf32> to vector<2x8x32xbf16>
    %373 = vector.extract_strided_slice %340 {offsets = [0, 0, 32], sizes = [2, 8, 32], strides = [1, 1, 1]} : vector<2x8x64xf32> to vector<2x8x32xf32>
    %374 = arith.truncf %373 : vector<2x8x32xf32> to vector<2x8x32xbf16>
    %375 = vector.extract_strided_slice %341 {offsets = [0, 0, 32], sizes = [2, 8, 32], strides = [1, 1, 1]} : vector<2x8x64xf32> to vector<2x8x32xf32>
    %376 = arith.truncf %375 : vector<2x8x32xf32> to vector<2x8x32xbf16>
    %cst_162 = arith.constant dense<0.000000e+00> : vector<2x8x8xf32>
    %377 = tpu.matmul %372, %374, %cst_162 {dimension_numbers = #tpu.dot_dimension_numbers<[2], [2], [1], [1], [0, 0, 0, 1, 1, 1], [0], [0]>} : vector<2x8x32xbf16>, vector<2x8x32xbf16>, vector<2x8x8xf32> -> vector<2x8x8xf32>
    %cst_163 = arith.constant dense<0xFF800000> : vector<2x8xf32>
    %378 = vector.multi_reduction <maximumf>, %377, %cst_163 [2] : vector<2x8x8xf32> to vector<2x8xf32>
    %379 = vector.shape_cast %378 : vector<2x8xf32> to vector<2x8x1xf32>
    %380 = vector.broadcast %379 : vector<2x8x1xf32> to vector<2x8x8xf32>
    %381 = arith.subf %377, %380 : vector<2x8x8xf32>
    %382 = math.exp %381 : vector<2x8x8xf32>
    %cst_164 = arith.constant dense<0.000000e+00> : vector<2x8xf32>
    %383 = vector.multi_reduction <add>, %382, %cst_164 [2] : vector<2x8x8xf32> to vector<2x8xf32>
    %384 = vector.shape_cast %383 : vector<2x8xf32> to vector<2x8x1xf32>
    %385 = tpu.reciprocal %384 {approx = true} : vector<2x8x1xf32> -> vector<2x8x1xf32>
    %386 = vector.broadcast %385 : vector<2x8x1xf32> to vector<2x8x8xf32>
    %387 = arith.mulf %382, %386 : vector<2x8x8xf32>
    %388 = arith.truncf %387 : vector<2x8x8xf32> to vector<2x8x8xbf16>
    %cst_165 = arith.constant dense<0.000000e+00> : vector<2x8x32xf32>
    %389 = tpu.matmul %388, %376, %cst_165 {dimension_numbers = #tpu.dot_dimension_numbers<[2], [1], [1], [2], [0, 0, 0, 1, 1, 2], [0], [0]>} : vector<2x8x8xbf16>, vector<2x8x32xbf16>, vector<2x8x32xf32> -> vector<2x8x32xf32>
    %390 = vector.shape_cast %389 : vector<2x8x32xf32> to vector<16x32xf32>
    %391 = vector.extract_strided_slice %338 {offsets = [32, 0], sizes = [32, 64], strides = [1, 1]} : vector<64x64xbf16> to vector<32x64xbf16>
    %392 = arith.truncf %390 : vector<16x32xf32> to vector<16x32xbf16>
    %cst_166 = arith.constant dense<0.000000e+00> : vector<16x64xf32>
    %393 = tpu.matmul %392, %391, %cst_166 {dimension_numbers = #tpu.dot_dimension_numbers<[1], [0], [0], [1], [0, 0, 1, 1], [], []>} : vector<16x32xbf16>, vector<32x64xbf16>, vector<16x64xf32> -> vector<16x64xf32>
    %394 = arith.addf %368, %393 : vector<16x64xf32>
    %c0_167 = arith.constant 0 : index
    %c0_168 = arith.constant 0 : index
    %c0_169 = arith.constant 0 : index
    %395 = vector.load %arg22[%c0_167, %c0_168, %c0_169] : memref<2x1x64xf32, #tpu.memory_space<vmem>>, vector<1x1x64xf32>
    %396 = vector.shape_cast %395 : vector<1x1x64xf32> to vector<1x64xf32>
    %397 = vector.broadcast %396 : vector<1x64xf32> to vector<16x64xf32>
    %398 = arith.addf %394, %397 : vector<16x64xf32>
    %399 = arith.addf %325, %398 : vector<16x64xf32>
    %c0_170 = arith.constant 0 : index
    %c0_171 = arith.constant 0 : index
    %c0_172 = arith.constant 0 : index
    %400 = vector.load %arg23[%c0_170, %c0_171, %c0_172] : memref<2x1x64xf32, #tpu.memory_space<vmem>>, vector<1x1x64xf32>
    %401 = vector.shape_cast %400 : vector<1x1x64xf32> to vector<1x64xf32>
    %c0_173 = arith.constant 0 : index
    %c0_174 = arith.constant 0 : index
    %c0_175 = arith.constant 0 : index
    %402 = vector.load %arg24[%c0_173, %c0_174, %c0_175] : memref<2x1x64xf32, #tpu.memory_space<vmem>>, vector<1x1x64xf32>
    %403 = vector.shape_cast %402 : vector<1x1x64xf32> to vector<1x64xf32>
    %cst_176 = arith.constant dense<0.000000e+00> : vector<16xf32>
    %404 = vector.multi_reduction <add>, %399, %cst_176 [1] : vector<16x64xf32> to vector<16xf32>
    %405 = vector.shape_cast %404 : vector<16xf32> to vector<16x1xf32>
    %cst_177 = arith.constant 6.400000e+01 : f32
    %406 = vector.broadcast %cst_177 : f32 to vector<16x1xf32>
    %407 = arith.divf %405, %406 : vector<16x1xf32>
    %408 = vector.broadcast %407 : vector<16x1xf32> to vector<16x64xf32>
    %409 = arith.subf %399, %408 : vector<16x64xf32>
    %410 = arith.mulf %409, %409 : vector<16x64xf32>
    %cst_178 = arith.constant dense<0.000000e+00> : vector<16xf32>
    %411 = vector.multi_reduction <add>, %410, %cst_178 [1] : vector<16x64xf32> to vector<16xf32>
    %412 = vector.shape_cast %411 : vector<16xf32> to vector<16x1xf32>
    %cst_179 = arith.constant 6.400000e+01 : f32
    %413 = vector.broadcast %cst_179 : f32 to vector<16x1xf32>
    %414 = arith.divf %412, %413 : vector<16x1xf32>
    %cst_180 = arith.constant 9.99999974E-6 : f32
    %415 = vector.broadcast %cst_180 : f32 to vector<16x1xf32>
    %416 = arith.addf %414, %415 : vector<16x1xf32>
    %417 = math.rsqrt %416 : vector<16x1xf32>
    %418 = vector.broadcast %417 : vector<16x1xf32> to vector<16x64xf32>
    %419 = arith.mulf %409, %418 : vector<16x64xf32>
    %420 = vector.broadcast %401 : vector<1x64xf32> to vector<16x64xf32>
    %421 = arith.mulf %419, %420 : vector<16x64xf32>
    %422 = vector.broadcast %403 : vector<1x64xf32> to vector<16x64xf32>
    %423 = arith.addf %421, %422 : vector<16x64xf32>
    %c0_181 = arith.constant 0 : index
    %c0_182 = arith.constant 0 : index
    %c0_183 = arith.constant 0 : index
    %424 = vector.load %arg25[%c0_181, %c0_182, %c0_183] : memref<2x64x64xbf16, #tpu.memory_space<vmem>>, vector<1x64x64xbf16>
    %425 = vector.shape_cast %424 : vector<1x64x64xbf16> to vector<64x64xbf16>
    %426 = arith.truncf %423 : vector<16x64xf32> to vector<16x64xbf16>
    %cst_184 = arith.constant dense<0.000000e+00> : vector<16x64xf32>
    %427 = tpu.matmul %426, %425, %cst_184 {dimension_numbers = #tpu.dot_dimension_numbers<[1], [0], [0], [1], [0, 0, 1, 1], [], []>} : vector<16x64xbf16>, vector<64x64xbf16>, vector<16x64xf32> -> vector<16x64xf32>
    %c0_185 = arith.constant 0 : index
    %c0_186 = arith.constant 0 : index
    %c0_187 = arith.constant 0 : index
    %428 = vector.load %arg26[%c0_185, %c0_186, %c0_187] : memref<2x1x64xf32, #tpu.memory_space<vmem>>, vector<1x1x64xf32>
    %429 = vector.shape_cast %428 : vector<1x1x64xf32> to vector<1x64xf32>
    %430 = vector.broadcast %429 : vector<1x64xf32> to vector<16x64xf32>
    %431 = arith.addf %427, %430 : vector<16x64xf32>
    %c0_188 = arith.constant 0 : index
    %c0_189 = arith.constant 0 : index
    %c0_190 = arith.constant 0 : index
    %432 = vector.load %arg27[%c0_188, %c0_189, %c0_190] : memref<2x64x128xbf16, #tpu.memory_space<vmem>>, vector<1x64x128xbf16>
    %433 = vector.shape_cast %432 : vector<1x64x128xbf16> to vector<64x128xbf16>
    %434 = arith.truncf %314 : vector<16x64xf32> to vector<16x64xbf16>
    %cst_191 = arith.constant dense<0.000000e+00> : vector<16x128xf32>
    %435 = tpu.matmul %434, %433, %cst_191 {dimension_numbers = #tpu.dot_dimension_numbers<[1], [0], [0], [1], [0, 0, 1, 1], [], []>} : vector<16x64xbf16>, vector<64x128xbf16>, vector<16x128xf32> -> vector<16x128xf32>
    %c0_192 = arith.constant 0 : index
    %c0_193 = arith.constant 0 : index
    %c0_194 = arith.constant 0 : index
    %436 = vector.load %arg28[%c0_192, %c0_193, %c0_194] : memref<2x1x128xf32, #tpu.memory_space<vmem>>, vector<1x1x128xf32>
    %437 = vector.shape_cast %436 : vector<1x1x128xf32> to vector<1x128xf32>
    %438 = vector.broadcast %437 : vector<1x128xf32> to vector<16x128xf32>
    %439 = arith.addf %435, %438 : vector<16x128xf32>
    %440 = vector.extract_strided_slice %439 {offsets = [0, 0], sizes = [16, 64], strides = [1, 1]} : vector<16x128xf32> to vector<16x64xf32>
    %441 = vector.extract_strided_slice %439 {offsets = [0, 64], sizes = [16, 64], strides = [1, 1]} : vector<16x128xf32> to vector<16x64xf32>
    %c0_195 = arith.constant 0 : index
    %c0_196 = arith.constant 0 : index
    %c0_197 = arith.constant 0 : index
    %442 = vector.load %arg29[%c0_195, %c0_196, %c0_197] : memref<2x64x64xbf16, #tpu.memory_space<vmem>>, vector<1x64x64xbf16>
    %443 = vector.shape_cast %442 : vector<1x64x64xbf16> to vector<64x64xbf16>
    %444 = vector.shape_cast %431 : vector<16x64xf32> to vector<2x8x64xf32>
    %445 = vector.shape_cast %440 : vector<16x64xf32> to vector<2x8x64xf32>
    %446 = vector.shape_cast %441 : vector<16x64xf32> to vector<2x8x64xf32>
    %cst_198 = arith.constant 0.000000e+00 : f32
    %447 = vector.broadcast %cst_198 : f32 to vector<16x64xf32>
    %448 = vector.extract_strided_slice %444 {offsets = [0, 0, 0], sizes = [2, 8, 32], strides = [1, 1, 1]} : vector<2x8x64xf32> to vector<2x8x32xf32>
    %cst_199 = arith.constant 0.176776692 : f32
    %449 = vector.broadcast %cst_199 : f32 to vector<2x8x32xf32>
    %450 = arith.mulf %448, %449 : vector<2x8x32xf32>
    %451 = arith.truncf %450 : vector<2x8x32xf32> to vector<2x8x32xbf16>
    %452 = vector.extract_strided_slice %445 {offsets = [0, 0, 0], sizes = [2, 8, 32], strides = [1, 1, 1]} : vector<2x8x64xf32> to vector<2x8x32xf32>
    %453 = arith.truncf %452 : vector<2x8x32xf32> to vector<2x8x32xbf16>
    %454 = vector.extract_strided_slice %446 {offsets = [0, 0, 0], sizes = [2, 8, 32], strides = [1, 1, 1]} : vector<2x8x64xf32> to vector<2x8x32xf32>
    %455 = arith.truncf %454 : vector<2x8x32xf32> to vector<2x8x32xbf16>
    %cst_200 = arith.constant dense<0.000000e+00> : vector<2x8x8xf32>
    %456 = tpu.matmul %451, %453, %cst_200 {dimension_numbers = #tpu.dot_dimension_numbers<[2], [2], [1], [1], [0, 0, 0, 1, 1, 1], [0], [0]>} : vector<2x8x32xbf16>, vector<2x8x32xbf16>, vector<2x8x8xf32> -> vector<2x8x8xf32>
    %cst_201 = arith.constant dense<0xFF800000> : vector<2x8xf32>
    %457 = vector.multi_reduction <maximumf>, %456, %cst_201 [2] : vector<2x8x8xf32> to vector<2x8xf32>
    %458 = vector.shape_cast %457 : vector<2x8xf32> to vector<2x8x1xf32>
    %459 = vector.broadcast %458 : vector<2x8x1xf32> to vector<2x8x8xf32>
    %460 = arith.subf %456, %459 : vector<2x8x8xf32>
    %461 = math.exp %460 : vector<2x8x8xf32>
    %cst_202 = arith.constant dense<0.000000e+00> : vector<2x8xf32>
    %462 = vector.multi_reduction <add>, %461, %cst_202 [2] : vector<2x8x8xf32> to vector<2x8xf32>
    %463 = vector.shape_cast %462 : vector<2x8xf32> to vector<2x8x1xf32>
    %464 = tpu.reciprocal %463 {approx = true} : vector<2x8x1xf32> -> vector<2x8x1xf32>
    %465 = vector.broadcast %464 : vector<2x8x1xf32> to vector<2x8x8xf32>
    %466 = arith.mulf %461, %465 : vector<2x8x8xf32>
    %467 = arith.truncf %466 : vector<2x8x8xf32> to vector<2x8x8xbf16>
    %cst_203 = arith.constant dense<0.000000e+00> : vector<2x8x32xf32>
    %468 = tpu.matmul %467, %455, %cst_203 {dimension_numbers = #tpu.dot_dimension_numbers<[2], [1], [1], [2], [0, 0, 0, 1, 1, 2], [0], [0]>} : vector<2x8x8xbf16>, vector<2x8x32xbf16>, vector<2x8x32xf32> -> vector<2x8x32xf32>
    %469 = vector.shape_cast %468 : vector<2x8x32xf32> to vector<16x32xf32>
    %470 = vector.extract_strided_slice %443 {offsets = [0, 0], sizes = [32, 64], strides = [1, 1]} : vector<64x64xbf16> to vector<32x64xbf16>
    %471 = arith.truncf %469 : vector<16x32xf32> to vector<16x32xbf16>
    %cst_204 = arith.constant dense<0.000000e+00> : vector<16x64xf32>
    %472 = tpu.matmul %471, %470, %cst_204 {dimension_numbers = #tpu.dot_dimension_numbers<[1], [0], [0], [1], [0, 0, 1, 1], [], []>} : vector<16x32xbf16>, vector<32x64xbf16>, vector<16x64xf32> -> vector<16x64xf32>
    %473 = arith.addf %447, %472 : vector<16x64xf32>
    %474 = vector.extract_strided_slice %444 {offsets = [0, 0, 32], sizes = [2, 8, 32], strides = [1, 1, 1]} : vector<2x8x64xf32> to vector<2x8x32xf32>
    %cst_205 = arith.constant 0.176776692 : f32
    %475 = vector.broadcast %cst_205 : f32 to vector<2x8x32xf32>
    %476 = arith.mulf %474, %475 : vector<2x8x32xf32>
    %477 = arith.truncf %476 : vector<2x8x32xf32> to vector<2x8x32xbf16>
    %478 = vector.extract_strided_slice %445 {offsets = [0, 0, 32], sizes = [2, 8, 32], strides = [1, 1, 1]} : vector<2x8x64xf32> to vector<2x8x32xf32>
    %479 = arith.truncf %478 : vector<2x8x32xf32> to vector<2x8x32xbf16>
    %480 = vector.extract_strided_slice %446 {offsets = [0, 0, 32], sizes = [2, 8, 32], strides = [1, 1, 1]} : vector<2x8x64xf32> to vector<2x8x32xf32>
    %481 = arith.truncf %480 : vector<2x8x32xf32> to vector<2x8x32xbf16>
    %cst_206 = arith.constant dense<0.000000e+00> : vector<2x8x8xf32>
    %482 = tpu.matmul %477, %479, %cst_206 {dimension_numbers = #tpu.dot_dimension_numbers<[2], [2], [1], [1], [0, 0, 0, 1, 1, 1], [0], [0]>} : vector<2x8x32xbf16>, vector<2x8x32xbf16>, vector<2x8x8xf32> -> vector<2x8x8xf32>
    %cst_207 = arith.constant dense<0xFF800000> : vector<2x8xf32>
    %483 = vector.multi_reduction <maximumf>, %482, %cst_207 [2] : vector<2x8x8xf32> to vector<2x8xf32>
    %484 = vector.shape_cast %483 : vector<2x8xf32> to vector<2x8x1xf32>
    %485 = vector.broadcast %484 : vector<2x8x1xf32> to vector<2x8x8xf32>
    %486 = arith.subf %482, %485 : vector<2x8x8xf32>
    %487 = math.exp %486 : vector<2x8x8xf32>
    %cst_208 = arith.constant dense<0.000000e+00> : vector<2x8xf32>
    %488 = vector.multi_reduction <add>, %487, %cst_208 [2] : vector<2x8x8xf32> to vector<2x8xf32>
    %489 = vector.shape_cast %488 : vector<2x8xf32> to vector<2x8x1xf32>
    %490 = tpu.reciprocal %489 {approx = true} : vector<2x8x1xf32> -> vector<2x8x1xf32>
    %491 = vector.broadcast %490 : vector<2x8x1xf32> to vector<2x8x8xf32>
    %492 = arith.mulf %487, %491 : vector<2x8x8xf32>
    %493 = arith.truncf %492 : vector<2x8x8xf32> to vector<2x8x8xbf16>
    %cst_209 = arith.constant dense<0.000000e+00> : vector<2x8x32xf32>
    %494 = tpu.matmul %493, %481, %cst_209 {dimension_numbers = #tpu.dot_dimension_numbers<[2], [1], [1], [2], [0, 0, 0, 1, 1, 2], [0], [0]>} : vector<2x8x8xbf16>, vector<2x8x32xbf16>, vector<2x8x32xf32> -> vector<2x8x32xf32>
    %495 = vector.shape_cast %494 : vector<2x8x32xf32> to vector<16x32xf32>
    %496 = vector.extract_strided_slice %443 {offsets = [32, 0], sizes = [32, 64], strides = [1, 1]} : vector<64x64xbf16> to vector<32x64xbf16>
    %497 = arith.truncf %495 : vector<16x32xf32> to vector<16x32xbf16>
    %cst_210 = arith.constant dense<0.000000e+00> : vector<16x64xf32>
    %498 = tpu.matmul %497, %496, %cst_210 {dimension_numbers = #tpu.dot_dimension_numbers<[1], [0], [0], [1], [0, 0, 1, 1], [], []>} : vector<16x32xbf16>, vector<32x64xbf16>, vector<16x64xf32> -> vector<16x64xf32>
    %499 = arith.addf %473, %498 : vector<16x64xf32>
    %c0_211 = arith.constant 0 : index
    %c0_212 = arith.constant 0 : index
    %c0_213 = arith.constant 0 : index
    %500 = vector.load %arg30[%c0_211, %c0_212, %c0_213] : memref<2x1x64xf32, #tpu.memory_space<vmem>>, vector<1x1x64xf32>
    %501 = vector.shape_cast %500 : vector<1x1x64xf32> to vector<1x64xf32>
    %502 = vector.broadcast %501 : vector<1x64xf32> to vector<16x64xf32>
    %503 = arith.addf %499, %502 : vector<16x64xf32>
    %504 = arith.addf %423, %503 : vector<16x64xf32>
    %c0_214 = arith.constant 0 : index
    %c0_215 = arith.constant 0 : index
    %c0_216 = arith.constant 0 : index
    %505 = vector.load %arg31[%c0_214, %c0_215, %c0_216] : memref<2x1x64xf32, #tpu.memory_space<vmem>>, vector<1x1x64xf32>
    %506 = vector.shape_cast %505 : vector<1x1x64xf32> to vector<1x64xf32>
    %c0_217 = arith.constant 0 : index
    %c0_218 = arith.constant 0 : index
    %c0_219 = arith.constant 0 : index
    %507 = vector.load %arg32[%c0_217, %c0_218, %c0_219] : memref<2x1x64xf32, #tpu.memory_space<vmem>>, vector<1x1x64xf32>
    %508 = vector.shape_cast %507 : vector<1x1x64xf32> to vector<1x64xf32>
    %cst_220 = arith.constant dense<0.000000e+00> : vector<16xf32>
    %509 = vector.multi_reduction <add>, %504, %cst_220 [1] : vector<16x64xf32> to vector<16xf32>
    %510 = vector.shape_cast %509 : vector<16xf32> to vector<16x1xf32>
    %cst_221 = arith.constant 6.400000e+01 : f32
    %511 = vector.broadcast %cst_221 : f32 to vector<16x1xf32>
    %512 = arith.divf %510, %511 : vector<16x1xf32>
    %513 = vector.broadcast %512 : vector<16x1xf32> to vector<16x64xf32>
    %514 = arith.subf %504, %513 : vector<16x64xf32>
    %515 = arith.mulf %514, %514 : vector<16x64xf32>
    %cst_222 = arith.constant dense<0.000000e+00> : vector<16xf32>
    %516 = vector.multi_reduction <add>, %515, %cst_222 [1] : vector<16x64xf32> to vector<16xf32>
    %517 = vector.shape_cast %516 : vector<16xf32> to vector<16x1xf32>
    %cst_223 = arith.constant 6.400000e+01 : f32
    %518 = vector.broadcast %cst_223 : f32 to vector<16x1xf32>
    %519 = arith.divf %517, %518 : vector<16x1xf32>
    %cst_224 = arith.constant 9.99999974E-6 : f32
    %520 = vector.broadcast %cst_224 : f32 to vector<16x1xf32>
    %521 = arith.addf %519, %520 : vector<16x1xf32>
    %522 = math.rsqrt %521 : vector<16x1xf32>
    %523 = vector.broadcast %522 : vector<16x1xf32> to vector<16x64xf32>
    %524 = arith.mulf %514, %523 : vector<16x64xf32>
    %525 = vector.broadcast %506 : vector<1x64xf32> to vector<16x64xf32>
    %526 = arith.mulf %524, %525 : vector<16x64xf32>
    %527 = vector.broadcast %508 : vector<1x64xf32> to vector<16x64xf32>
    %528 = arith.addf %526, %527 : vector<16x64xf32>
    %c0_225 = arith.constant 0 : index
    %c0_226 = arith.constant 0 : index
    %c0_227 = arith.constant 0 : index
    %529 = vector.load %arg33[%c0_225, %c0_226, %c0_227] : memref<2x64x128xbf16, #tpu.memory_space<vmem>>, vector<1x64x128xbf16>
    %530 = vector.shape_cast %529 : vector<1x64x128xbf16> to vector<64x128xbf16>
    %531 = arith.truncf %528 : vector<16x64xf32> to vector<16x64xbf16>
    %cst_228 = arith.constant dense<0.000000e+00> : vector<16x128xf32>
    %532 = tpu.matmul %531, %530, %cst_228 {dimension_numbers = #tpu.dot_dimension_numbers<[1], [0], [0], [1], [0, 0, 1, 1], [], []>} : vector<16x64xbf16>, vector<64x128xbf16>, vector<16x128xf32> -> vector<16x128xf32>
    %c0_229 = arith.constant 0 : index
    %c0_230 = arith.constant 0 : index
    %c0_231 = arith.constant 0 : index
    %533 = vector.load %arg34[%c0_229, %c0_230, %c0_231] : memref<2x1x128xf32, #tpu.memory_space<vmem>>, vector<1x1x128xf32>
    %534 = vector.shape_cast %533 : vector<1x1x128xf32> to vector<1x128xf32>
    %535 = vector.broadcast %534 : vector<1x128xf32> to vector<16x128xf32>
    %536 = arith.addf %532, %535 : vector<16x128xf32>
    %cst_232 = arith.constant 0.000000e+00 : f32
    %537 = vector.broadcast %cst_232 : f32 to vector<16x128xf32>
    %538 = arith.maximumf %536, %537 : vector<16x128xf32>
    %c0_233 = arith.constant 0 : index
    %c0_234 = arith.constant 0 : index
    %c0_235 = arith.constant 0 : index
    %539 = vector.load %arg35[%c0_233, %c0_234, %c0_235] : memref<2x128x64xbf16, #tpu.memory_space<vmem>>, vector<1x128x64xbf16>
    %540 = vector.shape_cast %539 : vector<1x128x64xbf16> to vector<128x64xbf16>
    %541 = arith.truncf %538 : vector<16x128xf32> to vector<16x128xbf16>
    %cst_236 = arith.constant dense<0.000000e+00> : vector<16x64xf32>
    %542 = tpu.matmul %541, %540, %cst_236 {dimension_numbers = #tpu.dot_dimension_numbers<[1], [0], [0], [1], [0, 0, 1, 1], [], []>} : vector<16x128xbf16>, vector<128x64xbf16>, vector<16x64xf32> -> vector<16x64xf32>
    %c0_237 = arith.constant 0 : index
    %c0_238 = arith.constant 0 : index
    %c0_239 = arith.constant 0 : index
    %543 = vector.load %arg36[%c0_237, %c0_238, %c0_239] : memref<2x1x64xf32, #tpu.memory_space<vmem>>, vector<1x1x64xf32>
    %544 = vector.shape_cast %543 : vector<1x1x64xf32> to vector<1x64xf32>
    %545 = vector.broadcast %544 : vector<1x64xf32> to vector<16x64xf32>
    %546 = arith.addf %542, %545 : vector<16x64xf32>
    %547 = arith.addf %528, %546 : vector<16x64xf32>
    %c0_240 = arith.constant 0 : index
    %c0_241 = arith.constant 0 : index
    %c0_242 = arith.constant 0 : index
    %548 = vector.load %arg37[%c0_240, %c0_241, %c0_242] : memref<2x1x64xf32, #tpu.memory_space<vmem>>, vector<1x1x64xf32>
    %549 = vector.shape_cast %548 : vector<1x1x64xf32> to vector<1x64xf32>
    %c0_243 = arith.constant 0 : index
    %c0_244 = arith.constant 0 : index
    %c0_245 = arith.constant 0 : index
    %550 = vector.load %arg38[%c0_243, %c0_244, %c0_245] : memref<2x1x64xf32, #tpu.memory_space<vmem>>, vector<1x1x64xf32>
    %551 = vector.shape_cast %550 : vector<1x1x64xf32> to vector<1x64xf32>
    %cst_246 = arith.constant dense<0.000000e+00> : vector<16xf32>
    %552 = vector.multi_reduction <add>, %547, %cst_246 [1] : vector<16x64xf32> to vector<16xf32>
    %553 = vector.shape_cast %552 : vector<16xf32> to vector<16x1xf32>
    %cst_247 = arith.constant 6.400000e+01 : f32
    %554 = vector.broadcast %cst_247 : f32 to vector<16x1xf32>
    %555 = arith.divf %553, %554 : vector<16x1xf32>
    %556 = vector.broadcast %555 : vector<16x1xf32> to vector<16x64xf32>
    %557 = arith.subf %547, %556 : vector<16x64xf32>
    %558 = arith.mulf %557, %557 : vector<16x64xf32>
    %cst_248 = arith.constant dense<0.000000e+00> : vector<16xf32>
    %559 = vector.multi_reduction <add>, %558, %cst_248 [1] : vector<16x64xf32> to vector<16xf32>
    %560 = vector.shape_cast %559 : vector<16xf32> to vector<16x1xf32>
    %cst_249 = arith.constant 6.400000e+01 : f32
    %561 = vector.broadcast %cst_249 : f32 to vector<16x1xf32>
    %562 = arith.divf %560, %561 : vector<16x1xf32>
    %cst_250 = arith.constant 9.99999974E-6 : f32
    %563 = vector.broadcast %cst_250 : f32 to vector<16x1xf32>
    %564 = arith.addf %562, %563 : vector<16x1xf32>
    %565 = math.rsqrt %564 : vector<16x1xf32>
    %566 = vector.broadcast %565 : vector<16x1xf32> to vector<16x64xf32>
    %567 = arith.mulf %557, %566 : vector<16x64xf32>
    %568 = vector.broadcast %549 : vector<1x64xf32> to vector<16x64xf32>
    %569 = arith.mulf %567, %568 : vector<16x64xf32>
    %570 = vector.broadcast %551 : vector<1x64xf32> to vector<16x64xf32>
    %571 = arith.addf %569, %570 : vector<16x64xf32>
    %c1_251 = arith.constant 1 : index
    %c0_252 = arith.constant 0 : index
    %c0_253 = arith.constant 0 : index
    %572 = vector.load %arg19[%c1_251, %c0_252, %c0_253] : memref<2x64x192xbf16, #tpu.memory_space<vmem>>, vector<1x64x192xbf16>
    %573 = vector.shape_cast %572 : vector<1x64x192xbf16> to vector<64x192xbf16>
    %574 = arith.truncf %571 : vector<16x64xf32> to vector<16x64xbf16>
    %cst_254 = arith.constant dense<0.000000e+00> : vector<16x192xf32>
    %575 = tpu.matmul %574, %573, %cst_254 {dimension_numbers = #tpu.dot_dimension_numbers<[1], [0], [0], [1], [0, 0, 1, 1], [], []>} : vector<16x64xbf16>, vector<64x192xbf16>, vector<16x192xf32> -> vector<16x192xf32>
    %c1_255 = arith.constant 1 : index
    %c0_256 = arith.constant 0 : index
    %c0_257 = arith.constant 0 : index
    %576 = vector.load %arg20[%c1_255, %c0_256, %c0_257] : memref<2x1x192xf32, #tpu.memory_space<vmem>>, vector<1x1x192xf32>
    %577 = vector.shape_cast %576 : vector<1x1x192xf32> to vector<1x192xf32>
    %578 = vector.broadcast %577 : vector<1x192xf32> to vector<16x192xf32>
    %579 = arith.addf %575, %578 : vector<16x192xf32>
    %580 = vector.extract_strided_slice %579 {offsets = [0, 0], sizes = [16, 64], strides = [1, 1]} : vector<16x192xf32> to vector<16x64xf32>
    %581 = vector.extract_strided_slice %579 {offsets = [0, 64], sizes = [16, 64], strides = [1, 1]} : vector<16x192xf32> to vector<16x64xf32>
    %582 = vector.extract_strided_slice %579 {offsets = [0, 128], sizes = [16, 64], strides = [1, 1]} : vector<16x192xf32> to vector<16x64xf32>
    %c1_258 = arith.constant 1 : index
    %c0_259 = arith.constant 0 : index
    %c0_260 = arith.constant 0 : index
    %583 = vector.load %arg21[%c1_258, %c0_259, %c0_260] : memref<2x64x64xbf16, #tpu.memory_space<vmem>>, vector<1x64x64xbf16>
    %584 = vector.shape_cast %583 : vector<1x64x64xbf16> to vector<64x64xbf16>
    %585 = vector.shape_cast %580 : vector<16x64xf32> to vector<2x8x64xf32>
    %586 = vector.shape_cast %581 : vector<16x64xf32> to vector<2x8x64xf32>
    %587 = vector.shape_cast %582 : vector<16x64xf32> to vector<2x8x64xf32>
    %cst_261 = arith.constant 0.000000e+00 : f32
    %588 = vector.broadcast %cst_261 : f32 to vector<16x64xf32>
    %589 = vector.extract_strided_slice %585 {offsets = [0, 0, 0], sizes = [2, 8, 32], strides = [1, 1, 1]} : vector<2x8x64xf32> to vector<2x8x32xf32>
    %cst_262 = arith.constant 0.176776692 : f32
    %590 = vector.broadcast %cst_262 : f32 to vector<2x8x32xf32>
    %591 = arith.mulf %589, %590 : vector<2x8x32xf32>
    %592 = arith.truncf %591 : vector<2x8x32xf32> to vector<2x8x32xbf16>
    %593 = vector.extract_strided_slice %586 {offsets = [0, 0, 0], sizes = [2, 8, 32], strides = [1, 1, 1]} : vector<2x8x64xf32> to vector<2x8x32xf32>
    %594 = arith.truncf %593 : vector<2x8x32xf32> to vector<2x8x32xbf16>
    %595 = vector.extract_strided_slice %587 {offsets = [0, 0, 0], sizes = [2, 8, 32], strides = [1, 1, 1]} : vector<2x8x64xf32> to vector<2x8x32xf32>
    %596 = arith.truncf %595 : vector<2x8x32xf32> to vector<2x8x32xbf16>
    %cst_263 = arith.constant dense<0.000000e+00> : vector<2x8x8xf32>
    %597 = tpu.matmul %592, %594, %cst_263 {dimension_numbers = #tpu.dot_dimension_numbers<[2], [2], [1], [1], [0, 0, 0, 1, 1, 1], [0], [0]>} : vector<2x8x32xbf16>, vector<2x8x32xbf16>, vector<2x8x8xf32> -> vector<2x8x8xf32>
    %cst_264 = arith.constant dense<0xFF800000> : vector<2x8xf32>
    %598 = vector.multi_reduction <maximumf>, %597, %cst_264 [2] : vector<2x8x8xf32> to vector<2x8xf32>
    %599 = vector.shape_cast %598 : vector<2x8xf32> to vector<2x8x1xf32>
    %600 = vector.broadcast %599 : vector<2x8x1xf32> to vector<2x8x8xf32>
    %601 = arith.subf %597, %600 : vector<2x8x8xf32>
    %602 = math.exp %601 : vector<2x8x8xf32>
    %cst_265 = arith.constant dense<0.000000e+00> : vector<2x8xf32>
    %603 = vector.multi_reduction <add>, %602, %cst_265 [2] : vector<2x8x8xf32> to vector<2x8xf32>
    %604 = vector.shape_cast %603 : vector<2x8xf32> to vector<2x8x1xf32>
    %605 = tpu.reciprocal %604 {approx = true} : vector<2x8x1xf32> -> vector<2x8x1xf32>
    %606 = vector.broadcast %605 : vector<2x8x1xf32> to vector<2x8x8xf32>
    %607 = arith.mulf %602, %606 : vector<2x8x8xf32>
    %608 = arith.truncf %607 : vector<2x8x8xf32> to vector<2x8x8xbf16>
    %cst_266 = arith.constant dense<0.000000e+00> : vector<2x8x32xf32>
    %609 = tpu.matmul %608, %596, %cst_266 {dimension_numbers = #tpu.dot_dimension_numbers<[2], [1], [1], [2], [0, 0, 0, 1, 1, 2], [0], [0]>} : vector<2x8x8xbf16>, vector<2x8x32xbf16>, vector<2x8x32xf32> -> vector<2x8x32xf32>
    %610 = vector.shape_cast %609 : vector<2x8x32xf32> to vector<16x32xf32>
    %611 = vector.extract_strided_slice %584 {offsets = [0, 0], sizes = [32, 64], strides = [1, 1]} : vector<64x64xbf16> to vector<32x64xbf16>
    %612 = arith.truncf %610 : vector<16x32xf32> to vector<16x32xbf16>
    %cst_267 = arith.constant dense<0.000000e+00> : vector<16x64xf32>
    %613 = tpu.matmul %612, %611, %cst_267 {dimension_numbers = #tpu.dot_dimension_numbers<[1], [0], [0], [1], [0, 0, 1, 1], [], []>} : vector<16x32xbf16>, vector<32x64xbf16>, vector<16x64xf32> -> vector<16x64xf32>
    %614 = arith.addf %588, %613 : vector<16x64xf32>
    %615 = vector.extract_strided_slice %585 {offsets = [0, 0, 32], sizes = [2, 8, 32], strides = [1, 1, 1]} : vector<2x8x64xf32> to vector<2x8x32xf32>
    %cst_268 = arith.constant 0.176776692 : f32
    %616 = vector.broadcast %cst_268 : f32 to vector<2x8x32xf32>
    %617 = arith.mulf %615, %616 : vector<2x8x32xf32>
    %618 = arith.truncf %617 : vector<2x8x32xf32> to vector<2x8x32xbf16>
    %619 = vector.extract_strided_slice %586 {offsets = [0, 0, 32], sizes = [2, 8, 32], strides = [1, 1, 1]} : vector<2x8x64xf32> to vector<2x8x32xf32>
    %620 = arith.truncf %619 : vector<2x8x32xf32> to vector<2x8x32xbf16>
    %621 = vector.extract_strided_slice %587 {offsets = [0, 0, 32], sizes = [2, 8, 32], strides = [1, 1, 1]} : vector<2x8x64xf32> to vector<2x8x32xf32>
    %622 = arith.truncf %621 : vector<2x8x32xf32> to vector<2x8x32xbf16>
    %cst_269 = arith.constant dense<0.000000e+00> : vector<2x8x8xf32>
    %623 = tpu.matmul %618, %620, %cst_269 {dimension_numbers = #tpu.dot_dimension_numbers<[2], [2], [1], [1], [0, 0, 0, 1, 1, 1], [0], [0]>} : vector<2x8x32xbf16>, vector<2x8x32xbf16>, vector<2x8x8xf32> -> vector<2x8x8xf32>
    %cst_270 = arith.constant dense<0xFF800000> : vector<2x8xf32>
    %624 = vector.multi_reduction <maximumf>, %623, %cst_270 [2] : vector<2x8x8xf32> to vector<2x8xf32>
    %625 = vector.shape_cast %624 : vector<2x8xf32> to vector<2x8x1xf32>
    %626 = vector.broadcast %625 : vector<2x8x1xf32> to vector<2x8x8xf32>
    %627 = arith.subf %623, %626 : vector<2x8x8xf32>
    %628 = math.exp %627 : vector<2x8x8xf32>
    %cst_271 = arith.constant dense<0.000000e+00> : vector<2x8xf32>
    %629 = vector.multi_reduction <add>, %628, %cst_271 [2] : vector<2x8x8xf32> to vector<2x8xf32>
    %630 = vector.shape_cast %629 : vector<2x8xf32> to vector<2x8x1xf32>
    %631 = tpu.reciprocal %630 {approx = true} : vector<2x8x1xf32> -> vector<2x8x1xf32>
    %632 = vector.broadcast %631 : vector<2x8x1xf32> to vector<2x8x8xf32>
    %633 = arith.mulf %628, %632 : vector<2x8x8xf32>
    %634 = arith.truncf %633 : vector<2x8x8xf32> to vector<2x8x8xbf16>
    %cst_272 = arith.constant dense<0.000000e+00> : vector<2x8x32xf32>
    %635 = tpu.matmul %634, %622, %cst_272 {dimension_numbers = #tpu.dot_dimension_numbers<[2], [1], [1], [2], [0, 0, 0, 1, 1, 2], [0], [0]>} : vector<2x8x8xbf16>, vector<2x8x32xbf16>, vector<2x8x32xf32> -> vector<2x8x32xf32>
    %636 = vector.shape_cast %635 : vector<2x8x32xf32> to vector<16x32xf32>
    %637 = vector.extract_strided_slice %584 {offsets = [32, 0], sizes = [32, 64], strides = [1, 1]} : vector<64x64xbf16> to vector<32x64xbf16>
    %638 = arith.truncf %636 : vector<16x32xf32> to vector<16x32xbf16>
    %cst_273 = arith.constant dense<0.000000e+00> : vector<16x64xf32>
    %639 = tpu.matmul %638, %637, %cst_273 {dimension_numbers = #tpu.dot_dimension_numbers<[1], [0], [0], [1], [0, 0, 1, 1], [], []>} : vector<16x32xbf16>, vector<32x64xbf16>, vector<16x64xf32> -> vector<16x64xf32>
    %640 = arith.addf %614, %639 : vector<16x64xf32>
    %c1_274 = arith.constant 1 : index
    %c0_275 = arith.constant 0 : index
    %c0_276 = arith.constant 0 : index
    %641 = vector.load %arg22[%c1_274, %c0_275, %c0_276] : memref<2x1x64xf32, #tpu.memory_space<vmem>>, vector<1x1x64xf32>
    %642 = vector.shape_cast %641 : vector<1x1x64xf32> to vector<1x64xf32>
    %643 = vector.broadcast %642 : vector<1x64xf32> to vector<16x64xf32>
    %644 = arith.addf %640, %643 : vector<16x64xf32>
    %645 = arith.addf %571, %644 : vector<16x64xf32>
    %c1_277 = arith.constant 1 : index
    %c0_278 = arith.constant 0 : index
    %c0_279 = arith.constant 0 : index
    %646 = vector.load %arg23[%c1_277, %c0_278, %c0_279] : memref<2x1x64xf32, #tpu.memory_space<vmem>>, vector<1x1x64xf32>
    %647 = vector.shape_cast %646 : vector<1x1x64xf32> to vector<1x64xf32>
    %c1_280 = arith.constant 1 : index
    %c0_281 = arith.constant 0 : index
    %c0_282 = arith.constant 0 : index
    %648 = vector.load %arg24[%c1_280, %c0_281, %c0_282] : memref<2x1x64xf32, #tpu.memory_space<vmem>>, vector<1x1x64xf32>
    %649 = vector.shape_cast %648 : vector<1x1x64xf32> to vector<1x64xf32>
    %cst_283 = arith.constant dense<0.000000e+00> : vector<16xf32>
    %650 = vector.multi_reduction <add>, %645, %cst_283 [1] : vector<16x64xf32> to vector<16xf32>
    %651 = vector.shape_cast %650 : vector<16xf32> to vector<16x1xf32>
    %cst_284 = arith.constant 6.400000e+01 : f32
    %652 = vector.broadcast %cst_284 : f32 to vector<16x1xf32>
    %653 = arith.divf %651, %652 : vector<16x1xf32>
    %654 = vector.broadcast %653 : vector<16x1xf32> to vector<16x64xf32>
    %655 = arith.subf %645, %654 : vector<16x64xf32>
    %656 = arith.mulf %655, %655 : vector<16x64xf32>
    %cst_285 = arith.constant dense<0.000000e+00> : vector<16xf32>
    %657 = vector.multi_reduction <add>, %656, %cst_285 [1] : vector<16x64xf32> to vector<16xf32>
    %658 = vector.shape_cast %657 : vector<16xf32> to vector<16x1xf32>
    %cst_286 = arith.constant 6.400000e+01 : f32
    %659 = vector.broadcast %cst_286 : f32 to vector<16x1xf32>
    %660 = arith.divf %658, %659 : vector<16x1xf32>
    %cst_287 = arith.constant 9.99999974E-6 : f32
    %661 = vector.broadcast %cst_287 : f32 to vector<16x1xf32>
    %662 = arith.addf %660, %661 : vector<16x1xf32>
    %663 = math.rsqrt %662 : vector<16x1xf32>
    %664 = vector.broadcast %663 : vector<16x1xf32> to vector<16x64xf32>
    %665 = arith.mulf %655, %664 : vector<16x64xf32>
    %666 = vector.broadcast %647 : vector<1x64xf32> to vector<16x64xf32>
    %667 = arith.mulf %665, %666 : vector<16x64xf32>
    %668 = vector.broadcast %649 : vector<1x64xf32> to vector<16x64xf32>
    %669 = arith.addf %667, %668 : vector<16x64xf32>
    %c1_288 = arith.constant 1 : index
    %c0_289 = arith.constant 0 : index
    %c0_290 = arith.constant 0 : index
    %670 = vector.load %arg25[%c1_288, %c0_289, %c0_290] : memref<2x64x64xbf16, #tpu.memory_space<vmem>>, vector<1x64x64xbf16>
    %671 = vector.shape_cast %670 : vector<1x64x64xbf16> to vector<64x64xbf16>
    %672 = arith.truncf %669 : vector<16x64xf32> to vector<16x64xbf16>
    %cst_291 = arith.constant dense<0.000000e+00> : vector<16x64xf32>
    %673 = tpu.matmul %672, %671, %cst_291 {dimension_numbers = #tpu.dot_dimension_numbers<[1], [0], [0], [1], [0, 0, 1, 1], [], []>} : vector<16x64xbf16>, vector<64x64xbf16>, vector<16x64xf32> -> vector<16x64xf32>
    %c1_292 = arith.constant 1 : index
    %c0_293 = arith.constant 0 : index
    %c0_294 = arith.constant 0 : index
    %674 = vector.load %arg26[%c1_292, %c0_293, %c0_294] : memref<2x1x64xf32, #tpu.memory_space<vmem>>, vector<1x1x64xf32>
    %675 = vector.shape_cast %674 : vector<1x1x64xf32> to vector<1x64xf32>
    %676 = vector.broadcast %675 : vector<1x64xf32> to vector<16x64xf32>
    %677 = arith.addf %673, %676 : vector<16x64xf32>
    %c1_295 = arith.constant 1 : index
    %c0_296 = arith.constant 0 : index
    %c0_297 = arith.constant 0 : index
    %678 = vector.load %arg27[%c1_295, %c0_296, %c0_297] : memref<2x64x128xbf16, #tpu.memory_space<vmem>>, vector<1x64x128xbf16>
    %679 = vector.shape_cast %678 : vector<1x64x128xbf16> to vector<64x128xbf16>
    %680 = arith.truncf %314 : vector<16x64xf32> to vector<16x64xbf16>
    %cst_298 = arith.constant dense<0.000000e+00> : vector<16x128xf32>
    %681 = tpu.matmul %680, %679, %cst_298 {dimension_numbers = #tpu.dot_dimension_numbers<[1], [0], [0], [1], [0, 0, 1, 1], [], []>} : vector<16x64xbf16>, vector<64x128xbf16>, vector<16x128xf32> -> vector<16x128xf32>
    %c1_299 = arith.constant 1 : index
    %c0_300 = arith.constant 0 : index
    %c0_301 = arith.constant 0 : index
    %682 = vector.load %arg28[%c1_299, %c0_300, %c0_301] : memref<2x1x128xf32, #tpu.memory_space<vmem>>, vector<1x1x128xf32>
    %683 = vector.shape_cast %682 : vector<1x1x128xf32> to vector<1x128xf32>
    %684 = vector.broadcast %683 : vector<1x128xf32> to vector<16x128xf32>
    %685 = arith.addf %681, %684 : vector<16x128xf32>
    %686 = vector.extract_strided_slice %685 {offsets = [0, 0], sizes = [16, 64], strides = [1, 1]} : vector<16x128xf32> to vector<16x64xf32>
    %687 = vector.extract_strided_slice %685 {offsets = [0, 64], sizes = [16, 64], strides = [1, 1]} : vector<16x128xf32> to vector<16x64xf32>
    %c1_302 = arith.constant 1 : index
    %c0_303 = arith.constant 0 : index
    %c0_304 = arith.constant 0 : index
    %688 = vector.load %arg29[%c1_302, %c0_303, %c0_304] : memref<2x64x64xbf16, #tpu.memory_space<vmem>>, vector<1x64x64xbf16>
    %689 = vector.shape_cast %688 : vector<1x64x64xbf16> to vector<64x64xbf16>
    %690 = vector.shape_cast %677 : vector<16x64xf32> to vector<2x8x64xf32>
    %691 = vector.shape_cast %686 : vector<16x64xf32> to vector<2x8x64xf32>
    %692 = vector.shape_cast %687 : vector<16x64xf32> to vector<2x8x64xf32>
    %cst_305 = arith.constant 0.000000e+00 : f32
    %693 = vector.broadcast %cst_305 : f32 to vector<16x64xf32>
    %694 = vector.extract_strided_slice %690 {offsets = [0, 0, 0], sizes = [2, 8, 32], strides = [1, 1, 1]} : vector<2x8x64xf32> to vector<2x8x32xf32>
    %cst_306 = arith.constant 0.176776692 : f32
    %695 = vector.broadcast %cst_306 : f32 to vector<2x8x32xf32>
    %696 = arith.mulf %694, %695 : vector<2x8x32xf32>
    %697 = arith.truncf %696 : vector<2x8x32xf32> to vector<2x8x32xbf16>
    %698 = vector.extract_strided_slice %691 {offsets = [0, 0, 0], sizes = [2, 8, 32], strides = [1, 1, 1]} : vector<2x8x64xf32> to vector<2x8x32xf32>
    %699 = arith.truncf %698 : vector<2x8x32xf32> to vector<2x8x32xbf16>
    %700 = vector.extract_strided_slice %692 {offsets = [0, 0, 0], sizes = [2, 8, 32], strides = [1, 1, 1]} : vector<2x8x64xf32> to vector<2x8x32xf32>
    %701 = arith.truncf %700 : vector<2x8x32xf32> to vector<2x8x32xbf16>
    %cst_307 = arith.constant dense<0.000000e+00> : vector<2x8x8xf32>
    %702 = tpu.matmul %697, %699, %cst_307 {dimension_numbers = #tpu.dot_dimension_numbers<[2], [2], [1], [1], [0, 0, 0, 1, 1, 1], [0], [0]>} : vector<2x8x32xbf16>, vector<2x8x32xbf16>, vector<2x8x8xf32> -> vector<2x8x8xf32>
    %cst_308 = arith.constant dense<0xFF800000> : vector<2x8xf32>
    %703 = vector.multi_reduction <maximumf>, %702, %cst_308 [2] : vector<2x8x8xf32> to vector<2x8xf32>
    %704 = vector.shape_cast %703 : vector<2x8xf32> to vector<2x8x1xf32>
    %705 = vector.broadcast %704 : vector<2x8x1xf32> to vector<2x8x8xf32>
    %706 = arith.subf %702, %705 : vector<2x8x8xf32>
    %707 = math.exp %706 : vector<2x8x8xf32>
    %cst_309 = arith.constant dense<0.000000e+00> : vector<2x8xf32>
    %708 = vector.multi_reduction <add>, %707, %cst_309 [2] : vector<2x8x8xf32> to vector<2x8xf32>
    %709 = vector.shape_cast %708 : vector<2x8xf32> to vector<2x8x1xf32>
    %710 = tpu.reciprocal %709 {approx = true} : vector<2x8x1xf32> -> vector<2x8x1xf32>
    %711 = vector.broadcast %710 : vector<2x8x1xf32> to vector<2x8x8xf32>
    %712 = arith.mulf %707, %711 : vector<2x8x8xf32>
    %713 = arith.truncf %712 : vector<2x8x8xf32> to vector<2x8x8xbf16>
    %cst_310 = arith.constant dense<0.000000e+00> : vector<2x8x32xf32>
    %714 = tpu.matmul %713, %701, %cst_310 {dimension_numbers = #tpu.dot_dimension_numbers<[2], [1], [1], [2], [0, 0, 0, 1, 1, 2], [0], [0]>} : vector<2x8x8xbf16>, vector<2x8x32xbf16>, vector<2x8x32xf32> -> vector<2x8x32xf32>
    %715 = vector.shape_cast %714 : vector<2x8x32xf32> to vector<16x32xf32>
    %716 = vector.extract_strided_slice %689 {offsets = [0, 0], sizes = [32, 64], strides = [1, 1]} : vector<64x64xbf16> to vector<32x64xbf16>
    %717 = arith.truncf %715 : vector<16x32xf32> to vector<16x32xbf16>
    %cst_311 = arith.constant dense<0.000000e+00> : vector<16x64xf32>
    %718 = tpu.matmul %717, %716, %cst_311 {dimension_numbers = #tpu.dot_dimension_numbers<[1], [0], [0], [1], [0, 0, 1, 1], [], []>} : vector<16x32xbf16>, vector<32x64xbf16>, vector<16x64xf32> -> vector<16x64xf32>
    %719 = arith.addf %693, %718 : vector<16x64xf32>
    %720 = vector.extract_strided_slice %690 {offsets = [0, 0, 32], sizes = [2, 8, 32], strides = [1, 1, 1]} : vector<2x8x64xf32> to vector<2x8x32xf32>
    %cst_312 = arith.constant 0.176776692 : f32
    %721 = vector.broadcast %cst_312 : f32 to vector<2x8x32xf32>
    %722 = arith.mulf %720, %721 : vector<2x8x32xf32>
    %723 = arith.truncf %722 : vector<2x8x32xf32> to vector<2x8x32xbf16>
    %724 = vector.extract_strided_slice %691 {offsets = [0, 0, 32], sizes = [2, 8, 32], strides = [1, 1, 1]} : vector<2x8x64xf32> to vector<2x8x32xf32>
    %725 = arith.truncf %724 : vector<2x8x32xf32> to vector<2x8x32xbf16>
    %726 = vector.extract_strided_slice %692 {offsets = [0, 0, 32], sizes = [2, 8, 32], strides = [1, 1, 1]} : vector<2x8x64xf32> to vector<2x8x32xf32>
    %727 = arith.truncf %726 : vector<2x8x32xf32> to vector<2x8x32xbf16>
    %cst_313 = arith.constant dense<0.000000e+00> : vector<2x8x8xf32>
    %728 = tpu.matmul %723, %725, %cst_313 {dimension_numbers = #tpu.dot_dimension_numbers<[2], [2], [1], [1], [0, 0, 0, 1, 1, 1], [0], [0]>} : vector<2x8x32xbf16>, vector<2x8x32xbf16>, vector<2x8x8xf32> -> vector<2x8x8xf32>
    %cst_314 = arith.constant dense<0xFF800000> : vector<2x8xf32>
    %729 = vector.multi_reduction <maximumf>, %728, %cst_314 [2] : vector<2x8x8xf32> to vector<2x8xf32>
    %730 = vector.shape_cast %729 : vector<2x8xf32> to vector<2x8x1xf32>
    %731 = vector.broadcast %730 : vector<2x8x1xf32> to vector<2x8x8xf32>
    %732 = arith.subf %728, %731 : vector<2x8x8xf32>
    %733 = math.exp %732 : vector<2x8x8xf32>
    %cst_315 = arith.constant dense<0.000000e+00> : vector<2x8xf32>
    %734 = vector.multi_reduction <add>, %733, %cst_315 [2] : vector<2x8x8xf32> to vector<2x8xf32>
    %735 = vector.shape_cast %734 : vector<2x8xf32> to vector<2x8x1xf32>
    %736 = tpu.reciprocal %735 {approx = true} : vector<2x8x1xf32> -> vector<2x8x1xf32>
    %737 = vector.broadcast %736 : vector<2x8x1xf32> to vector<2x8x8xf32>
    %738 = arith.mulf %733, %737 : vector<2x8x8xf32>
    %739 = arith.truncf %738 : vector<2x8x8xf32> to vector<2x8x8xbf16>
    %cst_316 = arith.constant dense<0.000000e+00> : vector<2x8x32xf32>
    %740 = tpu.matmul %739, %727, %cst_316 {dimension_numbers = #tpu.dot_dimension_numbers<[2], [1], [1], [2], [0, 0, 0, 1, 1, 2], [0], [0]>} : vector<2x8x8xbf16>, vector<2x8x32xbf16>, vector<2x8x32xf32> -> vector<2x8x32xf32>
    %741 = vector.shape_cast %740 : vector<2x8x32xf32> to vector<16x32xf32>
    %742 = vector.extract_strided_slice %689 {offsets = [32, 0], sizes = [32, 64], strides = [1, 1]} : vector<64x64xbf16> to vector<32x64xbf16>
    %743 = arith.truncf %741 : vector<16x32xf32> to vector<16x32xbf16>
    %cst_317 = arith.constant dense<0.000000e+00> : vector<16x64xf32>
    %744 = tpu.matmul %743, %742, %cst_317 {dimension_numbers = #tpu.dot_dimension_numbers<[1], [0], [0], [1], [0, 0, 1, 1], [], []>} : vector<16x32xbf16>, vector<32x64xbf16>, vector<16x64xf32> -> vector<16x64xf32>
    %745 = arith.addf %719, %744 : vector<16x64xf32>
    %c1_318 = arith.constant 1 : index
    %c0_319 = arith.constant 0 : index
    %c0_320 = arith.constant 0 : index
    %746 = vector.load %arg30[%c1_318, %c0_319, %c0_320] : memref<2x1x64xf32, #tpu.memory_space<vmem>>, vector<1x1x64xf32>
    %747 = vector.shape_cast %746 : vector<1x1x64xf32> to vector<1x64xf32>
    %748 = vector.broadcast %747 : vector<1x64xf32> to vector<16x64xf32>
    %749 = arith.addf %745, %748 : vector<16x64xf32>
    %750 = arith.addf %669, %749 : vector<16x64xf32>
    %c1_321 = arith.constant 1 : index
    %c0_322 = arith.constant 0 : index
    %c0_323 = arith.constant 0 : index
    %751 = vector.load %arg31[%c1_321, %c0_322, %c0_323] : memref<2x1x64xf32, #tpu.memory_space<vmem>>, vector<1x1x64xf32>
    %752 = vector.shape_cast %751 : vector<1x1x64xf32> to vector<1x64xf32>
    %c1_324 = arith.constant 1 : index
    %c0_325 = arith.constant 0 : index
    %c0_326 = arith.constant 0 : index
    %753 = vector.load %arg32[%c1_324, %c0_325, %c0_326] : memref<2x1x64xf32, #tpu.memory_space<vmem>>, vector<1x1x64xf32>
    %754 = vector.shape_cast %753 : vector<1x1x64xf32> to vector<1x64xf32>
    %cst_327 = arith.constant dense<0.000000e+00> : vector<16xf32>
    %755 = vector.multi_reduction <add>, %750, %cst_327 [1] : vector<16x64xf32> to vector<16xf32>
    %756 = vector.shape_cast %755 : vector<16xf32> to vector<16x1xf32>
    %cst_328 = arith.constant 6.400000e+01 : f32
    %757 = vector.broadcast %cst_328 : f32 to vector<16x1xf32>
    %758 = arith.divf %756, %757 : vector<16x1xf32>
    %759 = vector.broadcast %758 : vector<16x1xf32> to vector<16x64xf32>
    %760 = arith.subf %750, %759 : vector<16x64xf32>
    %761 = arith.mulf %760, %760 : vector<16x64xf32>
    %cst_329 = arith.constant dense<0.000000e+00> : vector<16xf32>
    %762 = vector.multi_reduction <add>, %761, %cst_329 [1] : vector<16x64xf32> to vector<16xf32>
    %763 = vector.shape_cast %762 : vector<16xf32> to vector<16x1xf32>
    %cst_330 = arith.constant 6.400000e+01 : f32
    %764 = vector.broadcast %cst_330 : f32 to vector<16x1xf32>
    %765 = arith.divf %763, %764 : vector<16x1xf32>
    %cst_331 = arith.constant 9.99999974E-6 : f32
    %766 = vector.broadcast %cst_331 : f32 to vector<16x1xf32>
    %767 = arith.addf %765, %766 : vector<16x1xf32>
    %768 = math.rsqrt %767 : vector<16x1xf32>
    %769 = vector.broadcast %768 : vector<16x1xf32> to vector<16x64xf32>
    %770 = arith.mulf %760, %769 : vector<16x64xf32>
    %771 = vector.broadcast %752 : vector<1x64xf32> to vector<16x64xf32>
    %772 = arith.mulf %770, %771 : vector<16x64xf32>
    %773 = vector.broadcast %754 : vector<1x64xf32> to vector<16x64xf32>
    %774 = arith.addf %772, %773 : vector<16x64xf32>
    %c1_332 = arith.constant 1 : index
    %c0_333 = arith.constant 0 : index
    %c0_334 = arith.constant 0 : index
    %775 = vector.load %arg33[%c1_332, %c0_333, %c0_334] : memref<2x64x128xbf16, #tpu.memory_space<vmem>>, vector<1x64x128xbf16>
    %776 = vector.shape_cast %775 : vector<1x64x128xbf16> to vector<64x128xbf16>
    %777 = arith.truncf %774 : vector<16x64xf32> to vector<16x64xbf16>
    %cst_335 = arith.constant dense<0.000000e+00> : vector<16x128xf32>
    %778 = tpu.matmul %777, %776, %cst_335 {dimension_numbers = #tpu.dot_dimension_numbers<[1], [0], [0], [1], [0, 0, 1, 1], [], []>} : vector<16x64xbf16>, vector<64x128xbf16>, vector<16x128xf32> -> vector<16x128xf32>
    %c1_336 = arith.constant 1 : index
    %c0_337 = arith.constant 0 : index
    %c0_338 = arith.constant 0 : index
    %779 = vector.load %arg34[%c1_336, %c0_337, %c0_338] : memref<2x1x128xf32, #tpu.memory_space<vmem>>, vector<1x1x128xf32>
    %780 = vector.shape_cast %779 : vector<1x1x128xf32> to vector<1x128xf32>
    %781 = vector.broadcast %780 : vector<1x128xf32> to vector<16x128xf32>
    %782 = arith.addf %778, %781 : vector<16x128xf32>
    %cst_339 = arith.constant 0.000000e+00 : f32
    %783 = vector.broadcast %cst_339 : f32 to vector<16x128xf32>
    %784 = arith.maximumf %782, %783 : vector<16x128xf32>
    %c1_340 = arith.constant 1 : index
    %c0_341 = arith.constant 0 : index
    %c0_342 = arith.constant 0 : index
    %785 = vector.load %arg35[%c1_340, %c0_341, %c0_342] : memref<2x128x64xbf16, #tpu.memory_space<vmem>>, vector<1x128x64xbf16>
    %786 = vector.shape_cast %785 : vector<1x128x64xbf16> to vector<128x64xbf16>
    %787 = arith.truncf %784 : vector<16x128xf32> to vector<16x128xbf16>
    %cst_343 = arith.constant dense<0.000000e+00> : vector<16x64xf32>
    %788 = tpu.matmul %787, %786, %cst_343 {dimension_numbers = #tpu.dot_dimension_numbers<[1], [0], [0], [1], [0, 0, 1, 1], [], []>} : vector<16x128xbf16>, vector<128x64xbf16>, vector<16x64xf32> -> vector<16x64xf32>
    %c1_344 = arith.constant 1 : index
    %c0_345 = arith.constant 0 : index
    %c0_346 = arith.constant 0 : index
    %789 = vector.load %arg36[%c1_344, %c0_345, %c0_346] : memref<2x1x64xf32, #tpu.memory_space<vmem>>, vector<1x1x64xf32>
    %790 = vector.shape_cast %789 : vector<1x1x64xf32> to vector<1x64xf32>
    %791 = vector.broadcast %790 : vector<1x64xf32> to vector<16x64xf32>
    %792 = arith.addf %788, %791 : vector<16x64xf32>
    %793 = arith.addf %774, %792 : vector<16x64xf32>
    %c1_347 = arith.constant 1 : index
    %c0_348 = arith.constant 0 : index
    %c0_349 = arith.constant 0 : index
    %794 = vector.load %arg37[%c1_347, %c0_348, %c0_349] : memref<2x1x64xf32, #tpu.memory_space<vmem>>, vector<1x1x64xf32>
    %795 = vector.shape_cast %794 : vector<1x1x64xf32> to vector<1x64xf32>
    %c1_350 = arith.constant 1 : index
    %c0_351 = arith.constant 0 : index
    %c0_352 = arith.constant 0 : index
    %796 = vector.load %arg38[%c1_350, %c0_351, %c0_352] : memref<2x1x64xf32, #tpu.memory_space<vmem>>, vector<1x1x64xf32>
    %797 = vector.shape_cast %796 : vector<1x1x64xf32> to vector<1x64xf32>
    %cst_353 = arith.constant dense<0.000000e+00> : vector<16xf32>
    %798 = vector.multi_reduction <add>, %793, %cst_353 [1] : vector<16x64xf32> to vector<16xf32>
    %799 = vector.shape_cast %798 : vector<16xf32> to vector<16x1xf32>
    %cst_354 = arith.constant 6.400000e+01 : f32
    %800 = vector.broadcast %cst_354 : f32 to vector<16x1xf32>
    %801 = arith.divf %799, %800 : vector<16x1xf32>
    %802 = vector.broadcast %801 : vector<16x1xf32> to vector<16x64xf32>
    %803 = arith.subf %793, %802 : vector<16x64xf32>
    %804 = arith.mulf %803, %803 : vector<16x64xf32>
    %cst_355 = arith.constant dense<0.000000e+00> : vector<16xf32>
    %805 = vector.multi_reduction <add>, %804, %cst_355 [1] : vector<16x64xf32> to vector<16xf32>
    %806 = vector.shape_cast %805 : vector<16xf32> to vector<16x1xf32>
    %cst_356 = arith.constant 6.400000e+01 : f32
    %807 = vector.broadcast %cst_356 : f32 to vector<16x1xf32>
    %808 = arith.divf %806, %807 : vector<16x1xf32>
    %cst_357 = arith.constant 9.99999974E-6 : f32
    %809 = vector.broadcast %cst_357 : f32 to vector<16x1xf32>
    %810 = arith.addf %808, %809 : vector<16x1xf32>
    %811 = math.rsqrt %810 : vector<16x1xf32>
    %812 = vector.broadcast %811 : vector<16x1xf32> to vector<16x64xf32>
    %813 = arith.mulf %803, %812 : vector<16x64xf32>
    %814 = vector.broadcast %795 : vector<1x64xf32> to vector<16x64xf32>
    %815 = arith.mulf %813, %814 : vector<16x64xf32>
    %816 = vector.broadcast %797 : vector<1x64xf32> to vector<16x64xf32>
    %817 = arith.addf %815, %816 : vector<16x64xf32>
    %c0_358 = arith.constant 0 : index
    %c0_359 = arith.constant 0 : index
    %818 = vector.load %arg39[%c0_358, %c0_359] : memref<1x64xf32, #tpu.memory_space<vmem>>, vector<1x64xf32>
    %c0_360 = arith.constant 0 : index
    %c0_361 = arith.constant 0 : index
    %819 = vector.load %arg40[%c0_360, %c0_361] : memref<1x64xf32, #tpu.memory_space<vmem>>, vector<1x64xf32>
    %cst_362 = arith.constant dense<0.000000e+00> : vector<16xf32>
    %820 = vector.multi_reduction <add>, %817, %cst_362 [1] : vector<16x64xf32> to vector<16xf32>
    %821 = vector.shape_cast %820 : vector<16xf32> to vector<16x1xf32>
    %cst_363 = arith.constant 6.400000e+01 : f32
    %822 = vector.broadcast %cst_363 : f32 to vector<16x1xf32>
    %823 = arith.divf %821, %822 : vector<16x1xf32>
    %824 = vector.broadcast %823 : vector<16x1xf32> to vector<16x64xf32>
    %825 = arith.subf %817, %824 : vector<16x64xf32>
    %826 = arith.mulf %825, %825 : vector<16x64xf32>
    %cst_364 = arith.constant dense<0.000000e+00> : vector<16xf32>
    %827 = vector.multi_reduction <add>, %826, %cst_364 [1] : vector<16x64xf32> to vector<16xf32>
    %828 = vector.shape_cast %827 : vector<16xf32> to vector<16x1xf32>
    %cst_365 = arith.constant 6.400000e+01 : f32
    %829 = vector.broadcast %cst_365 : f32 to vector<16x1xf32>
    %830 = arith.divf %828, %829 : vector<16x1xf32>
    %cst_366 = arith.constant 9.99999974E-6 : f32
    %831 = vector.broadcast %cst_366 : f32 to vector<16x1xf32>
    %832 = arith.addf %830, %831 : vector<16x1xf32>
    %833 = math.rsqrt %832 : vector<16x1xf32>
    %834 = vector.broadcast %833 : vector<16x1xf32> to vector<16x64xf32>
    %835 = arith.mulf %825, %834 : vector<16x64xf32>
    %836 = vector.broadcast %818 : vector<1x64xf32> to vector<16x64xf32>
    %837 = arith.mulf %835, %836 : vector<16x64xf32>
    %838 = vector.broadcast %819 : vector<1x64xf32> to vector<16x64xf32>
    %839 = arith.addf %837, %838 : vector<16x64xf32>
    %c0_367 = arith.constant 0 : index
    %c0_368 = arith.constant 0 : index
    %840 = vector.load %arg41[%c0_367, %c0_368] : memref<64x128xbf16, #tpu.memory_space<vmem>>, vector<64x128xbf16>
    %841 = arith.truncf %839 : vector<16x64xf32> to vector<16x64xbf16>
    %cst_369 = arith.constant dense<0.000000e+00> : vector<16x128xf32>
    %842 = tpu.matmul %841, %840, %cst_369 {dimension_numbers = #tpu.dot_dimension_numbers<[1], [0], [0], [1], [0, 0, 1, 1], [], []>} : vector<16x64xbf16>, vector<64x128xbf16>, vector<16x128xf32> -> vector<16x128xf32>
    %c0_370 = arith.constant 0 : index
    %c0_371 = arith.constant 0 : index
    %843 = vector.load %arg42[%c0_370, %c0_371] : memref<1x128xf32, #tpu.memory_space<vmem>>, vector<1x128xf32>
    %844 = vector.broadcast %843 : vector<1x128xf32> to vector<16x128xf32>
    %845 = arith.addf %842, %844 : vector<16x128xf32>
    %c0_372 = arith.constant 0 : index
    %c0_373 = arith.constant 0 : index
    %846 = vector.load %arg43[%c0_372, %c0_373] : memref<16x128xf32, #tpu.memory_space<vmem>>, vector<16x128xf32>
    tpu.vector_store %arg43[%c0_372, %c0_373], %845 {strides = array<i32>} : memref<16x128xf32, #tpu.memory_space<vmem>>, vector<16x128xf32>,
    return
  }
  func.func @transform_0(%arg0: i32) -> (i32, i32) {
    %c0_i32 = arith.constant 0 : i32
    %c0_i32_0 = arith.constant 0 : i32
    %c0_i32_1 = arith.constant 0 : i32
    return %c0_i32, %c0_i32_0 : i32, i32
  }
  func.func @transform_1(%arg0: i32) -> (i32, i32) {
    %c0_i32 = arith.constant 0 : i32
    %c0_i32_0 = arith.constant 0 : i32
    %c0_i32_1 = arith.constant 0 : i32
    return %c0_i32, %c0_i32_0 : i32, i32
  }
  func.func @transform_2(%arg0: i32) -> (i32, i32) {
    %c0_i32 = arith.constant 0 : i32
    %c0_i32_0 = arith.constant 0 : i32
    %c0_i32_1 = arith.constant 0 : i32
    return %c0_i32, %c0_i32_0 : i32, i32
  }
  func.func @transform_3(%arg0: i32) -> (i32, i32) {
    %c0_i32 = arith.constant 0 : i32
    %c0_i32_0 = arith.constant 0 : i32
    %c0_i32_1 = arith.constant 0 : i32
    return %c0_i32, %c0_i32_0 : i32, i32
  }
  func.func @transform_4(%arg0: i32) -> (i32, i32, i32) {
    %c0_i32 = arith.constant 0 : i32
    %c0_i32_0 = arith.constant 0 : i32
    %c0_i32_1 = arith.constant 0 : i32
    %c0_i32_2 = arith.constant 0 : i32
    return %c0_i32, %c0_i32_0, %c0_i32_1 : i32, i32, i32
  }
  func.func @transform_5(%arg0: i32) -> (i32, i32, i32) {
    %c0_i32 = arith.constant 0 : i32
    %c0_i32_0 = arith.constant 0 : i32
    %c0_i32_1 = arith.constant 0 : i32
    %c0_i32_2 = arith.constant 0 : i32
    return %c0_i32, %c0_i32_0, %c0_i32_1 : i32, i32, i32
  }
  func.func @transform_6(%arg0: i32) -> (i32, i32, i32) {
    %c0_i32 = arith.constant 0 : i32
    %c0_i32_0 = arith.constant 0 : i32
    %c0_i32_1 = arith.constant 0 : i32
    %c0_i32_2 = arith.constant 0 : i32
    return %c0_i32, %c0_i32_0, %c0_i32_1 : i32, i32, i32
  }
  func.func @transform_7(%arg0: i32) -> (i32, i32, i32) {
    %c0_i32 = arith.constant 0 : i32
    %c0_i32_0 = arith.constant 0 : i32
    %c0_i32_1 = arith.constant 0 : i32
    %c0_i32_2 = arith.constant 0 : i32
    return %c0_i32, %c0_i32_0, %c0_i32_1 : i32, i32, i32
  }
  func.func @transform_8(%arg0: i32) -> (i32, i32, i32) {
    %c0_i32 = arith.constant 0 : i32
    %c0_i32_0 = arith.constant 0 : i32
    %c0_i32_1 = arith.constant 0 : i32
    %c0_i32_2 = arith.constant 0 : i32
    return %c0_i32, %c0_i32_0, %c0_i32_1 : i32, i32, i32
  }
  func.func @transform_9(%arg0: i32) -> (i32, i32, i32) {
    %c0_i32 = arith.constant 0 : i32
    %c0_i32_0 = arith.constant 0 : i32
    %c0_i32_1 = arith.constant 0 : i32
    %c0_i32_2 = arith.constant 0 : i32
    return %c0_i32, %c0_i32_0, %c0_i32_1 : i32, i32, i32
  }
  func.func @transform_10(%arg0: i32) -> (i32, i32, i32) {
    %c0_i32 = arith.constant 0 : i32
    %c0_i32_0 = arith.constant 0 : i32
    %c0_i32_1 = arith.constant 0 : i32
    %c0_i32_2 = arith.constant 0 : i32
    return %c0_i32, %c0_i32_0, %c0_i32_1 : i32, i32, i32
  }
  func.func @transform_11(%arg0: i32) -> (i32, i32, i32) {
    %c0_i32 = arith.constant 0 : i32
    %c0_i32_0 = arith.constant 0 : i32
    %c0_i32_1 = arith.constant 0 : i32
    %c0_i32_2 = arith.constant 0 : i32
    return %c0_i32, %c0_i32_0, %c0_i32_1 : i32, i32, i32
  }
  func.func @transform_12(%arg0: i32) -> (i32, i32, i32) {
    %c0_i32 = arith.constant 0 : i32
    %c0_i32_0 = arith.constant 0 : i32
    %c0_i32_1 = arith.constant 0 : i32
    %c0_i32_2 = arith.constant 0 : i32
    return %c0_i32, %c0_i32_0, %c0_i32_1 : i32, i32, i32
  }
  func.func @transform_13(%arg0: i32) -> (i32, i32, i32) {
    %c0_i32 = arith.constant 0 : i32
    %c0_i32_0 = arith.constant 0 : i32
    %c0_i32_1 = arith.constant 0 : i32
    %c0_i32_2 = arith.constant 0 : i32
    return %c0_i32, %c0_i32_0, %c0_i32_1 : i32, i32, i32
  }
  func.func @transform_14(%arg0: i32) -> (i32, i32, i32) {
    %c0_i32 = arith.constant 0 : i32
    %c0_i32_0 = arith.constant 0 : i32
    %c0_i32_1 = arith.constant 0 : i32
    %c0_i32_2 = arith.constant 0 : i32
    return %c0_i32, %c0_i32_0, %c0_i32_1 : i32, i32, i32
  }
  func.func @transform_15(%arg0: i32) -> (i32, i32, i32) {
    %c0_i32 = arith.constant 0 : i32
    %c0_i32_0 = arith.constant 0 : i32
    %c0_i32_1 = arith.constant 0 : i32
    %c0_i32_2 = arith.constant 0 : i32
    return %c0_i32, %c0_i32_0, %c0_i32_1 : i32, i32, i32
  }
  func.func @transform_16(%arg0: i32) -> (i32, i32) {
    %c0_i32 = arith.constant 0 : i32
    %c0_i32_0 = arith.constant 0 : i32
    %c0_i32_1 = arith.constant 0 : i32
    return %c0_i32, %c0_i32_0 : i32, i32
  }
  func.func @transform_17(%arg0: i32) -> (i32, i32) {
    %c0_i32 = arith.constant 0 : i32
    %c0_i32_0 = arith.constant 0 : i32
    %c0_i32_1 = arith.constant 0 : i32
    return %c0_i32, %c0_i32_0 : i32, i32
  }
  func.func @transform_18(%arg0: i32) -> (i32, i32, i32) {
    %c0_i32 = arith.constant 0 : i32
    %c0_i32_0 = arith.constant 0 : i32
    %c0_i32_1 = arith.constant 0 : i32
    %c0_i32_2 = arith.constant 0 : i32
    return %c0_i32, %c0_i32_0, %c0_i32_1 : i32, i32, i32
  }
  func.func @transform_19(%arg0: i32) -> (i32, i32, i32) {
    %c0_i32 = arith.constant 0 : i32
    %c0_i32_0 = arith.constant 0 : i32
    %c0_i32_1 = arith.constant 0 : i32
    %c0_i32_2 = arith.constant 0 : i32
    return %c0_i32, %c0_i32_0, %c0_i32_1 : i32, i32, i32
  }
  func.func @transform_20(%arg0: i32) -> (i32, i32, i32) {
    %c0_i32 = arith.constant 0 : i32
    %c0_i32_0 = arith.constant 0 : i32
    %c0_i32_1 = arith.constant 0 : i32
    %c0_i32_2 = arith.constant 0 : i32
    return %c0_i32, %c0_i32_0, %c0_i32_1 : i32, i32, i32
  }
  func.func @transform_21(%arg0: i32) -> (i32, i32, i32) {
    %c0_i32 = arith.constant 0 : i32
    %c0_i32_0 = arith.constant 0 : i32
    %c0_i32_1 = arith.constant 0 : i32
    %c0_i32_2 = arith.constant 0 : i32
    return %c0_i32, %c0_i32_0, %c0_i32_1 : i32, i32, i32
  }
  func.func @transform_22(%arg0: i32) -> (i32, i32, i32) {
    %c0_i32 = arith.constant 0 : i32
    %c0_i32_0 = arith.constant 0 : i32
    %c0_i32_1 = arith.constant 0 : i32
    %c0_i32_2 = arith.constant 0 : i32
    return %c0_i32, %c0_i32_0, %c0_i32_1 : i32, i32, i32
  }
  func.func @transform_23(%arg0: i32) -> (i32, i32, i32) {
    %c0_i32 = arith.constant 0 : i32
    %c0_i32_0 = arith.constant 0 : i32
    %c0_i32_1 = arith.constant 0 : i32
    %c0_i32_2 = arith.constant 0 : i32
    return %c0_i32, %c0_i32_0, %c0_i32_1 : i32, i32, i32
  }
  func.func @transform_24(%arg0: i32) -> (i32, i32, i32) {
    %c0_i32 = arith.constant 0 : i32
    %c0_i32_0 = arith.constant 0 : i32
    %c0_i32_1 = arith.constant 0 : i32
    %c0_i32_2 = arith.constant 0 : i32
    return %c0_i32, %c0_i32_0, %c0_i32_1 : i32, i32, i32
  }
  func.func @transform_25(%arg0: i32) -> (i32, i32, i32) {
    %c0_i32 = arith.constant 0 : i32
    %c0_i32_0 = arith.constant 0 : i32
    %c0_i32_1 = arith.constant 0 : i32
    %c0_i32_2 = arith.constant 0 : i32
    return %c0_i32, %c0_i32_0, %c0_i32_1 : i32, i32, i32
  }
  func.func @transform_26(%arg0: i32) -> (i32, i32, i32) {
    %c0_i32 = arith.constant 0 : i32
    %c0_i32_0 = arith.constant 0 : i32
    %c0_i32_1 = arith.constant 0 : i32
    %c0_i32_2 = arith.constant 0 : i32
    return %c0_i32, %c0_i32_0, %c0_i32_1 : i32, i32, i32
  }
  func.func @transform_27(%arg0: i32) -> (i32, i32, i32) {
    %c0_i32 = arith.constant 0 : i32
    %c0_i32_0 = arith.constant 0 : i32
    %c0_i32_1 = arith.constant 0 : i32
    %c0_i32_2 = arith.constant 0 : i32
    return %c0_i32, %c0_i32_0, %c0_i32_1 : i32, i32, i32
  }
  func.func @transform_28(%arg0: i32) -> (i32, i32, i32) {
    %c0_i32 = arith.constant 0 : i32
    %c0_i32_0 = arith.constant 0 : i32
    %c0_i32_1 = arith.constant 0 : i32
    %c0_i32_2 = arith.constant 0 : i32
    return %c0_i32, %c0_i32_0, %c0_i32_1 : i32, i32, i32
  }
  func.func @transform_29(%arg0: i32) -> (i32, i32, i32) {
    %c0_i32 = arith.constant 0 : i32
    %c0_i32_0 = arith.constant 0 : i32
    %c0_i32_1 = arith.constant 0 : i32
    %c0_i32_2 = arith.constant 0 : i32
    return %c0_i32, %c0_i32_0, %c0_i32_1 : i32, i32, i32
  }
  func.func @transform_30(%arg0: i32) -> (i32, i32, i32) {
    %c0_i32 = arith.constant 0 : i32
    %c0_i32_0 = arith.constant 0 : i32
    %c0_i32_1 = arith.constant 0 : i32
    %c0_i32_2 = arith.constant 0 : i32
    return %c0_i32, %c0_i32_0, %c0_i32_1 : i32, i32, i32
  }
  func.func @transform_31(%arg0: i32) -> (i32, i32, i32) {
    %c0_i32 = arith.constant 0 : i32
    %c0_i32_0 = arith.constant 0 : i32
    %c0_i32_1 = arith.constant 0 : i32
    %c0_i32_2 = arith.constant 0 : i32
    return %c0_i32, %c0_i32_0, %c0_i32_1 : i32, i32, i32
  }
  func.func @transform_32(%arg0: i32) -> (i32, i32, i32) {
    %c0_i32 = arith.constant 0 : i32
    %c0_i32_0 = arith.constant 0 : i32
    %c0_i32_1 = arith.constant 0 : i32
    %c0_i32_2 = arith.constant 0 : i32
    return %c0_i32, %c0_i32_0, %c0_i32_1 : i32, i32, i32
  }
  func.func @transform_33(%arg0: i32) -> (i32, i32, i32) {
    %c0_i32 = arith.constant 0 : i32
    %c0_i32_0 = arith.constant 0 : i32
    %c0_i32_1 = arith.constant 0 : i32
    %c0_i32_2 = arith.constant 0 : i32
    return %c0_i32, %c0_i32_0, %c0_i32_1 : i32, i32, i32
  }
  func.func @transform_34(%arg0: i32) -> (i32, i32, i32) {
    %c0_i32 = arith.constant 0 : i32
    %c0_i32_0 = arith.constant 0 : i32
    %c0_i32_1 = arith.constant 0 : i32
    %c0_i32_2 = arith.constant 0 : i32
    return %c0_i32, %c0_i32_0, %c0_i32_1 : i32, i32, i32
  }
  func.func @transform_35(%arg0: i32) -> (i32, i32, i32) {
    %c0_i32 = arith.constant 0 : i32
    %c0_i32_0 = arith.constant 0 : i32
    %c0_i32_1 = arith.constant 0 : i32
    %c0_i32_2 = arith.constant 0 : i32
    return %c0_i32, %c0_i32_0, %c0_i32_1 : i32, i32, i32
  }
  func.func @transform_36(%arg0: i32) -> (i32, i32, i32) {
    %c0_i32 = arith.constant 0 : i32
    %c0_i32_0 = arith.constant 0 : i32
    %c0_i32_1 = arith.constant 0 : i32
    %c0_i32_2 = arith.constant 0 : i32
    return %c0_i32, %c0_i32_0, %c0_i32_1 : i32, i32, i32
  }
  func.func @transform_37(%arg0: i32) -> (i32, i32, i32) {
    %c0_i32 = arith.constant 0 : i32
    %c0_i32_0 = arith.constant 0 : i32
    %c0_i32_1 = arith.constant 0 : i32
    %c0_i32_2 = arith.constant 0 : i32
    return %c0_i32, %c0_i32_0, %c0_i32_1 : i32, i32, i32
  }
  func.func @transform_38(%arg0: i32) -> (i32, i32) {
    %c0_i32 = arith.constant 0 : i32
    %c0_i32_0 = arith.constant 0 : i32
    %c0_i32_1 = arith.constant 0 : i32
    return %c0_i32, %c0_i32_0 : i32, i32
  }
  func.func @transform_39(%arg0: i32) -> (i32, i32) {
    %c0_i32 = arith.constant 0 : i32
    %c0_i32_0 = arith.constant 0 : i32
    %c0_i32_1 = arith.constant 0 : i32
    return %c0_i32, %c0_i32_0 : i32, i32
  }
  func.func @transform_40(%arg0: i32) -> (i32, i32) {
    %c0_i32 = arith.constant 0 : i32
    %c0_i32_0 = arith.constant 0 : i32
    %c0_i32_1 = arith.constant 0 : i32
    return %c0_i32, %c0_i32_0 : i32, i32
  }
  func.func @transform_41(%arg0: i32) -> (i32, i32) {
    %c0_i32 = arith.constant 0 : i32
    %c0_i32_0 = arith.constant 0 : i32
    %c0_i32_1 = arith.constant 0 : i32
    return %c0_i32, %c0_i32_0 : i32, i32
  }
  func.func @transform_42(%arg0: i32) -> (i32, i32) {
    %c0_i32 = arith.constant 0 : i32
    %c0_i32_0 = arith.constant 0 : i32
    %c0_i32_1 = arith.constant 0 : i32
    return %c0_i32, %c0_i32_0 : i32, i32
  }
}

</mosaic_0001>

<bundles_post_ra>
// kernel: transformer_forward.1
= control target key start
LH: loop header
LB: loop body
LE: loop exit
PB: predicated region body
PF: predicated region fallthrough
CT: control target
= control target key end

     0   :  { %s8710_s6 = smov 1   ;;  %s8711_s10 = smov 2   ;;  %s10006_s0 = inlined_call_operand.smem [shape: u32[43], index: -1, kind: input, shape index: {}] }
   0x1   :  { %s8801_s5 = sld [smem:[%s10006_s0]]   ;;  %s8712_s14 = smov 3  }
   0x2   :  { %s8806_s9 = sld [smem:[%s10006_s0 + %s8710_s6]]   ;;  %s8713_s18 = smov 4  }
   0x3   :  { %s8811_s13 = sld [smem:[%s10006_s0 + %s8711_s10]]   ;;  %s8714_s22 = smov 5  }
   0x4   :  { %s8816_s17 = sld [smem:[%s10006_s0 + %s8712_s14]]   ;;  %s8715_s26 = smov 6  }
   0x5   :  { %s8821_s21 = sld [smem:[%s10006_s0 + %s8713_s18]]   ;;  %s8716_s30 = smov 7  }
   0x6   :  { %s8826_s25 = sld [smem:[%s10006_s0 + %s8714_s22]]   ;;  %s8717_s4 = smov 8  }
   0x7   :  { %10021 = sst [smem:[#allocation60_spill]] %s8801_s5  ;;  %s8718_s10 = smov 9  }
   0x8   :  { %10022 = sst [smem:[#allocation61_spill]] %s8806_s9  ;;  %s8719_s15 = smov 10  }
   0x9   :  { %10023 = sst [smem:[#allocation62_spill]] %s8811_s13  ;;  %s8720_s20 = smov 11  }
   0xa   :  { %10024 = sst [smem:[#allocation63_spill]] %s8816_s17  ;;  %s8722_s1 = smov 13  }
   0xb   :  { %10025 = sst [smem:[#allocation64_spill]] %s8821_s21  ;;  %s8723_s7 = smov 14  }
   0xc   :  { %s8831_s29 = sld [smem:[%s10006_s0 + %s8715_s26]]   ;;  %s8721_s26 = smov 12  }
   0xd   :  { %s8836_s3 = sld [smem:[%s10006_s0 + %s8716_s30]]   ;;  %s8725_s22 = smov 16  }
   0xe   :  { %s8841_s8 = sld [smem:[%s10006_s0 + %s8717_s4]]   ;;  %s8726_s28 = smov 17  }
   0xf   :  { %s8846_s14 = sld [smem:[%s10006_s0 + %s8718_s10]]  }
  0x10   :  { %s8851_s19 = sld [smem:[%s10006_s0 + %s8719_s15]]   ;;  %s8724_s15 = smov 15  }
  0x11   :  { %s8856_s24 = sld [smem:[%s10006_s0 + %s8720_s20]]  }
  0x12   :  { %10026 = sst [smem:[#allocation65_spill]] %s8831_s29 }
  0x13   :  { %s8861_s30 = sld [smem:[%s10006_s0 + %s8721_s26]]  }
  0x14   :  { %s8866_s6 = sld [smem:[%s10006_s0 + %s8722_s1]]  }
  0x15   :  { %s8871_s12 = sld [smem:[%s10006_s0 + %s8723_s7]]   ;;  %s8727_s7 = smov 18  }
  0x16   :  { %10027 = sst [smem:[#allocation66_spill]] %s8851_s19 }
  0x17   :  { %10028 = sst [smem:[#allocation67_spill]] %s8856_s24 }
  0x18   :  { %s8876_s20 = sld [smem:[%s10006_s0 + %s8724_s15]]   ;;  %s8728_s15 = smov 19  }
  0x19   :  { %10029 = sst [smem:[#allocation68_spill]] %s8861_s30 }
  0x1a   :  { %s8881_s27 = sld [smem:[%s10006_s0 + %s8725_s22]]   ;;  %s8729_s22 = smov 20  }
  0x1b   :  { %10030 = sst [smem:[#allocation69_spill]] %s8871_s12 }
  0x1c   :  { %s8886_s4 = sld [smem:[%s10006_s0 + %s8726_s28]]   ;;  %s8730_s28 = smov 21  }
  0x1d   :  { %s8891_s17 = sld [smem:[%s10006_s0 + %s8727_s7]]   ;;  %s8731_s7 = smov 22  }
  0x1e   :  { %s8896_s9 = sld [smem:[%s10006_s0 + %s8728_s15]]   ;;  %s8732_s15 = smov 23  }
  0x1f   :  { %s8901_s30 = sld [smem:[%s10006_s0 + %s8729_s22]]   ;;  %s8733_s22 = smov 24  }
  0x20   :  { %10031 = sst [smem:[#allocation70_spill]] %s8881_s27 }
  0x21   :  { %s8906_s19 = sld [smem:[%s10006_s0 + %s8730_s28]]   ;;  %s8734_s28 = smov 25  }
  0x22   :  { %s8916_s29 = sld [smem:[%s10006_s0 + %s8732_s15]]   ;;  %s8736_s15 = smov 27  }
  0x23   :  { %10032 = sst [smem:[#allocation71_spill]] %s8891_s17 }
  0x24   :  { %10033 = sst [smem:[#allocation72_spill]] %s8896_s9 }
  0x25   :  { %10034 = sst [smem:[#allocation73_spill]] %s8901_s30 }
  0x26   :  { %s8911_s17 = sld [smem:[%s10006_s0 + %s8731_s7]]   ;;  %s8735_s7 = smov 26  }
  0x27   :  { %s8921_s30 = sld [smem:[%s10006_s0 + %s8733_s22]]   ;;  %s8737_s22 = smov 28  }
  0x28   :  { %s8926_s21 = sld [smem:[%s10006_s0 + %s8734_s28]]   ;;  %s8738_s28 = smov 29  }
  0x29   :  { %s8931_s13 = sld [smem:[%s10006_s0 + %s8735_s7]]   ;;  %s8739_s7 = smov 30  }
  0x2a   :  { %s8936_s5 = sld [smem:[%s10006_s0 + %s8736_s15]]   ;;  %s8740_s15 = smov 31  }
  0x2c   :  { %10035 = sst [smem:[#allocation74_spill]] %s8911_s17 }
  0x2d   :  { %10036 = sst [smem:[#allocation75_spill]] %s8921_s30 }
  0x2e   :  { %10037 = sst [smem:[#allocation76_spill]] %s8926_s21 }
  0x2f   :  { %10038 = sst [smem:[#allocation77_spill]] %s8931_s13 }
  0x30   :  { %s8941_s30 = sld [smem:[%s10006_s0 + %s8737_s22]]   ;;  %s8741_s22 = smov 32  }
  0x31   :  { %s8946_s21 = sld [smem:[%s10006_s0 + %s8738_s28]]   ;;  %s8742_s28 = smov 33  }
  0x32   :  { %s8951_s13 = sld [smem:[%s10006_s0 + %s8739_s7]]   ;;  %s8743_s7 = smov 34  }
  0x33   :  { %s8956_s17 = sld [smem:[%s10006_s0 + %s8740_s15]]   ;;  %s8744_s15 = smov 35  }
  0x34   :  { %s8966_s9 = sld [smem:[%s10006_s0 + %s8742_s28]]   ;;  %s8746_s28 = smov 37  }
  0x35   :  { %s8976_s27 = sld [smem:[%s10006_s0 + %s8744_s15]]   ;;  %s8748_s15 = smov 39  }
  0x36   :  { %10039 = sst [smem:[#allocation78_spill]] %s8941_s30 }
  0x37   :  { %s8961_s30 = sld [smem:[%s10006_s0 + %s8741_s22]]   ;;  %s8745_s22 = smov 36  }
  0x38   :  { %10040 = sst [smem:[#allocation79_spill]] %s8951_s13 }
  0x39   :  { %s8971_s13 = sld [smem:[%s10006_s0 + %s8743_s7]]   ;;  %s8747_s7 = smov 38  }
  0x3a   :  { %10042 = sst [smem:[#allocation81_spill]] %s8966_s9 }
  0x3b   :  { %s8986_s9 = sld [smem:[%s10006_s0 + %s8746_s28]]   ;;  %s8750_s28 = smov 41  }
  0x3c   :  { %s8996_s12 = sld [smem:[%s10006_s0 + %s8748_s15]]  }
  0x3d   :  { %10041 = sst [smem:[#allocation80_spill]] %s8961_s30 }
  0x3e   :  { %s8981_s30 = sld [smem:[%s10006_s0 + %s8745_s22]]   ;;  %s8749_s22 = smov 40  }
  0x3f   :  { %10043 = sst [smem:[#allocation82_spill]] %s8971_s13 }
  0x40   :  { %s8991_s13 = sld [smem:[%s10006_s0 + %s8747_s7]]   ;;  %s8751_s7 = smov 42  }
  0x41   :  { %s9006_s24 = sld [smem:[%s10006_s0 + %s8750_s28]]  }
  0x44   :  { %10044 = sst [smem:[#allocation83_spill]] %s8981_s30 }
  0x45   :  { %s9001_s30 = sld [smem:[%s10006_s0 + %s8749_s22]]  }
  0x46   :  { %10045 = sst [smem:[#allocation84_spill]] %s8991_s13 }
  0x47   :  { %s9011_s13 = sld [smem:[%s10006_s0 + %s8751_s7]]  }
  0x48   :  { %90 = vsyncpa [#allocation3], 0 }
  0x49   :  { %91 = vsyncpa [#allocation6], 0 }
  0x4a   :  { %92 = vsyncpa [#allocation9], 0 }
  0x4b   :  { %93 = vsyncpa [#allocation12], 0 }
  0x4c   :  { %94 = vsyncpa [#allocation15], 0 }
  0x4d   :  { %95 = vsyncpa [#allocation18], 0 }
  0x4e   :  { %96 = vsyncpa [#allocation21], 0 }
  0x4f   :  { %97 = vsyncpa [#allocation24], 0 }
  0x50   :  { %98 = vsyncpa [#allocation27], 0 }
  0x51   :  { %99 = vsyncpa [#allocation30], 0 }
  0x52   :  { %100 = vsyncpa [#allocation33], 0 }
  0x53   :  { %101 = vsyncpa [#allocation36], 0 }
  0x54   :  { %102 = vsyncpa [#allocation39], 0 }
  0x55   :  { %103 = vsyncpa [#allocation42], 0 }
  0x56   :  { %104 = vsyncpa [#allocation4], 0  ;;  %s8752_s15 = smov [#allocation5]  }
  0x57   :  { %s134_s16 = sshll.u32 %s8752_s15, 4  ;;  %s135_s16 = int_to_ptr.vmem [resolvable:$true] %s134_s16 }
  0x58   :  { %s8128_s0 = scalar_lea.vmem %s135_s16, 32  ;;  %p8133_p1 = scmp.lt.s32.totalorder %s135_s16, %s135_s16 }
  0x59   :  { %p8129_p0 = scmp.ne.s32.totalorder %s135_s16, %s8128_s0  ;;  %p8134_p2 = scmp.lt.s32.totalorder %s8128_s0, %s8128_s0 }
  0x5b   :  { %p8135_p3 = por %p8134_p2, %p8133_p1 }
  0x5d   :  { %p8136_p4 = pnand %p8135_p3, %p8129_p0 }
  0x5f   :  { %8139 = shalt.err (!%p8136_p4)
}
  0x60   :  { %s8753_s18 = smov 16   ;;  %s8754_s22 = smov 1  }
  0x61   :  { %140 = dma.hbm_to_vmem [thread:$0]  %s8836_s3, 32, %s135_s16, [#allocation6], %s8753_s18, %s8753_s18, %s8754_s22  }
  0x62   :  { %s8755_s23 = smov [#allocation8]   ;;  %s8756_s28 = smov [#allocation11]  }
  0x63   :  { %s158_s26 = sshll.u32 %s8755_s23, 4  ;;  %s186_s1 = sshll.u32 %s8756_s28, 4  ;;  %s159_s26 = int_to_ptr.vmem [resolvable:$true] %s158_s26  ;;  %s187_s1 = int_to_ptr.vmem [resolvable:$true] %s186_s1 }
  0x64   :  { %s8148_s2 = scalar_lea.vmem %s159_s26, 32  ;;  %p8153_p6 = scmp.lt.s32.totalorder %s159_s26, %s159_s26 }
  0x65   :  { %p8149_p5 = scmp.ne.s32.totalorder %s159_s26, %s8148_s2  ;;  %p8154_p7 = scmp.lt.s32.totalorder %s8148_s2, %s8148_s2 }
  0x67   :  { %p8155_p8 = por %p8154_p7, %p8153_p6 }
  0x69   :  { %p8156_p9 = pnand %p8155_p8, %p8149_p5 }
  0x6b   :  { %8159 = shalt.err (!%p8156_p9)
}
  0x6c   :  { %164 = dma.hbm_to_vmem [thread:$0]  %s8846_s14, 32, %s159_s26, [#allocation9], %s8753_s18, %s8753_s18, %s8754_s22  }
  0x6d   :  { %s8168_s7 = scalar_lea.vmem %s187_s1, 32  ;;  %p8173_p11 = scmp.lt.s32.totalorder %s187_s1, %s187_s1 }
  0x6e   :  { %p8169_p10 = scmp.ne.s32.totalorder %s187_s1, %s8168_s7  ;;  %p8174_p12 = scmp.lt.s32.totalorder %s8168_s7, %s8168_s7 }
  0x70   :  { %p8175_p13 = por %p8174_p12, %p8173_p11 }
  0x72   :  { %p8176_p0 = pnand %p8175_p13, %p8169_p10 }
  0x74   :  { %8179 = shalt.err (!%p8176_p0)
}
  0x75   :  { %192 = dma.hbm_to_vmem [thread:$0]  %s8866_s6, 32, %s187_s1, [#allocation12], %s8753_s18, %s8753_s18, %s8754_s22  }
  0x76   :  { %s8757_s3 = smov [#allocation14]   ;;  %s8758_s11 = smov [#allocation17]  }
  0x77   :  { %s210_s10 = sshll.u32 %s8757_s3, 4  ;;  %s233_s15 = sshll.u32 %s8758_s11, 4  ;;  %s211_s10 = int_to_ptr.vmem [resolvable:$true] %s210_s10  ;;  %s234_s15 = int_to_ptr.vmem [resolvable:$true] %s233_s15 }
  0x78   :  { %s8188_s16 = scalar_lea.vmem %s211_s10, 32  ;;  %p8193_p2 = scmp.lt.s32.totalorder %s211_s10, %s211_s10 }
  0x79   :  { %p8189_p1 = scmp.ne.s32.totalorder %s211_s10, %s8188_s16  ;;  %p8194_p3 = scmp.lt.s32.totalorder %s8188_s16, %s8188_s16 }
  0x7b   :  { %p8195_p4 = por %p8194_p3, %p8193_p2 }
  0x7d   :  { %p8196_p5 = pnand %p8195_p4, %p8189_p1 }
  0x7f   :  { %8199 = shalt.err (!%p8196_p5)
}
  0x80   :  { %216 = dma.hbm_to_vmem [thread:$0]  %s8876_s20, 32, %s211_s10, [#allocation15], %s8753_s18, %s8753_s18, %s8754_s22  }
  0x81   :  { %s8208_s14 = scalar_lea.vmem %s234_s15, 16  ;;  %s8212_s6 = scalar_lea.vmem %s234_s15, 32 }
  0x82   :  { %p8209_p6 = scmp.ne.s32.totalorder %s234_s15, %s8208_s14  ;;  %p8213_p7 = scmp.lt.s32.totalorder %s234_s15, %s234_s15 }
  0x83   :  { %p8214_p8 = scmp.lt.s32.totalorder %s8212_s6, %s8208_s14 }
  0x85   :  { %p8215_p9 = por %p8214_p8, %p8213_p7 }
  0x87   :  { %p8216_p10 = pnand %p8215_p9, %p8209_p6 }
  0x89   :  { %8219 = shalt.err (!%p8216_p10)
}
  0x8a   :  { %236 = dma.hbm_to_vmem [thread:$0]  %s8886_s4, 16, %s234_s15, [#allocation18]  }
  0x8b   :  { %s8759_s0 = smov [#allocation20]   ;;  %s8760_s26 = smov [#allocation23]  }
  0x8c   :  { %s258_s23 = sshll.u32 %s8759_s0, 4  ;;  %s282_s28 = sshll.u32 %s8760_s26, 4  ;;  %s259_s23 = int_to_ptr.vmem [resolvable:$true] %s258_s23  ;;  %s283_s28 = int_to_ptr.vmem [resolvable:$true] %s282_s28 }
  0x8d   :  { %s8228_s1 = scalar_lea.vmem %s259_s23, 32  ;;  %p8233_p12 = scmp.lt.s32.totalorder %s259_s23, %s259_s23 }
  0x8e   :  { %p8229_p11 = scmp.ne.s32.totalorder %s259_s23, %s8228_s1  ;;  %p8234_p13 = scmp.lt.s32.totalorder %s8228_s1, %s8228_s1 }
  0x90   :  { %p8235_p0 = por %p8234_p13, %p8233_p12 }
  0x92   :  { %p8236_p1 = pnand %p8235_p0, %p8229_p11 }
  0x94   :  { %8239 = shalt.err (!%p8236_p1)
}
  0x95   :  { %264 = dma.hbm_to_vmem [thread:$0]  %s8906_s19, 32, %s259_s23, [#allocation21], %s8753_s18, %s8753_s18, %s8754_s22  }
  0x96   :  { %s8248_s20 = scalar_lea.vmem %s283_s28, 32  ;;  %p8253_p3 = scmp.lt.s32.totalorder %s283_s28, %s283_s28 }
  0x97   :  { %p8249_p2 = scmp.ne.s32.totalorder %s283_s28, %s8248_s20  ;;  %p8254_p4 = scmp.lt.s32.totalorder %s8248_s20, %s8248_s20 }
  0x99   :  { %p8255_p5 = por %p8254_p4, %p8253_p3 }
  0x9b   :  { %p8256_p6 = pnand %p8255_p5, %p8249_p2 }
  0x9d   :  { %8259 = shalt.err (!%p8256_p6)
}
  0x9e   :  { %288 = dma.hbm_to_vmem [thread:$0]  %s8916_s29, 32, %s283_s28, [#allocation24], %s8753_s18, %s8753_s18, %s8754_s22  }
  0x9f   :  { %s8761_s4 = smov [#allocation26]   ;;  %s8762_s7 = smov [#allocation29]  }
  0xa0   :  { %s310_s2 = sshll.u32 %s8761_s4, 4  ;;  %s334_s3 = sshll.u32 %s8762_s7, 4  ;;  %s311_s2 = int_to_ptr.vmem [resolvable:$true] %s310_s2  ;;  %s335_s3 = int_to_ptr.vmem [resolvable:$true] %s334_s3 }
  0xa1   :  { %s8268_s10 = scalar_lea.vmem %s311_s2, 32  ;;  %p8273_p8 = scmp.lt.s32.totalorder %s311_s2, %s311_s2 }
  0xa2   :  { %p8269_p7 = scmp.ne.s32.totalorder %s311_s2, %s8268_s10  ;;  %p8274_p9 = scmp.lt.s32.totalorder %s8268_s10, %s8268_s10 }
  0xa4   :  { %p8275_p10 = por %p8274_p9, %p8273_p8 }
  0xa6   :  { %p8276_p11 = pnand %p8275_p10, %p8269_p7 }
  0xa8   :  { %8279 = shalt.err (!%p8276_p11)
}
  0xa9   :  { %316 = dma.hbm_to_vmem [thread:$0]  %s8936_s5, 32, %s311_s2, [#allocation27], %s8753_s18, %s8753_s18, %s8754_s22  }
  0xaa   :  { %s8288_s19 = scalar_lea.vmem %s335_s3, 32  ;;  %p8293_p13 = scmp.lt.s32.totalorder %s335_s3, %s335_s3 }
  0xab   :  { %p8289_p12 = scmp.ne.s32.totalorder %s335_s3, %s8288_s19  ;;  %p8294_p0 = scmp.lt.s32.totalorder %s8288_s19, %s8288_s19 }
  0xad   :  { %p8295_p1 = por %p8294_p0, %p8293_p13 }
  0xaf   :  { %p8296_p2 = pnand %p8295_p1, %p8289_p12 }
  0xb1   :  { %8299 = shalt.err (!%p8296_p2)
}
  0xb2   :  { %340 = dma.hbm_to_vmem [thread:$0]  %s8946_s21, 32, %s335_s3, [#allocation30], %s8753_s18, %s8753_s18, %s8754_s22  }
  0xb3   :  { %s8763_s29 = smov [#allocation32]   ;;  %s8764_s15 = smov [#allocation35]  }
  0xb4   :  { %s358_s11 = sshll.u32 %s8763_s29, 4  ;;  %s386_s16 = sshll.u32 %s8764_s15, 4  ;;  %s359_s11 = int_to_ptr.vmem [resolvable:$true] %s358_s11  ;;  %s387_s16 = int_to_ptr.vmem [resolvable:$true] %s386_s16 }
  0xb5   :  { %s8308_s14 = scalar_lea.vmem %s359_s11, 32  ;;  %p8313_p4 = scmp.lt.s32.totalorder %s359_s11, %s359_s11 }
  0xb6   :  { %p8309_p3 = scmp.ne.s32.totalorder %s359_s11, %s8308_s14  ;;  %p8314_p5 = scmp.lt.s32.totalorder %s8308_s14, %s8308_s14 }
  0xb8   :  { %p8315_p6 = por %p8314_p5, %p8313_p4 }
  0xba   :  { %p8316_p7 = pnand %p8315_p6, %p8309_p3 }
  0xbc   :  { %8319 = shalt.err (!%p8316_p7)
}
  0xbd   :  { %364 = dma.hbm_to_vmem [thread:$0]  %s8956_s17, 32, %s359_s11, [#allocation33], %s8753_s18, %s8753_s18, %s8754_s22  }
  0xbe   :  { %s8328_s5 = scalar_lea.vmem %s387_s16, 32  ;;  %p8333_p9 = scmp.lt.s32.totalorder %s387_s16, %s387_s16 }
  0xbf   :  { %p8329_p8 = scmp.ne.s32.totalorder %s387_s16, %s8328_s5  ;;  %p8334_p10 = scmp.lt.s32.totalorder %s8328_s5, %s8328_s5 }
  0xc1   :  { %p8335_p11 = por %p8334_p10, %p8333_p9 }
  0xc3   :  { %p8336_p12 = pnand %p8335_p11, %p8329_p8 }
  0xc5   :  { %8339 = shalt.err (!%p8336_p12)
}
  0xc6   :  { %392 = dma.hbm_to_vmem [thread:$0]  %s8976_s27, 32, %s387_s16, [#allocation36], %s8753_s18, %s8753_s18, %s8754_s22  }
  0xc7   :  { %s8765_s21 = smov [#allocation38]   ;;  %s8766_s0 = smov [#allocation41]  }
  0xc8   :  { %s410_s6 = sshll.u32 %s8765_s21, 4  ;;  %s433_s23 = sshll.u32 %s8766_s0, 4  ;;  %s411_s6 = int_to_ptr.vmem [resolvable:$true] %s410_s6  ;;  %s434_s23 = int_to_ptr.vmem [resolvable:$true] %s433_s23 }
  0xc9   :  { %s8348_s26 = scalar_lea.vmem %s411_s6, 32  ;;  %p8353_p0 = scmp.lt.s32.totalorder %s411_s6, %s411_s6 }
  0xca   :  { %p8349_p13 = scmp.ne.s32.totalorder %s411_s6, %s8348_s26  ;;  %p8354_p1 = scmp.lt.s32.totalorder %s8348_s26, %s8348_s26 }
  0xcc   :  { %p8355_p2 = por %p8354_p1, %p8353_p0 }
  0xce   :  { %p8356_p3 = pnand %p8355_p2, %p8349_p13 }
  0xd0   :  { %8359 = shalt.err (!%p8356_p3)
}
  0xd1   :  { %416 = dma.hbm_to_vmem [thread:$0]  %s8986_s9, 32, %s411_s6, [#allocation39], %s8753_s18, %s8753_s18, %s8754_s22  }
  0xd2   :  { %s8368_s17 = scalar_lea.vmem %s434_s23, 16  ;;  %s8372_s27 = scalar_lea.vmem %s434_s23, 32 }
  0xd3   :  { %p8369_p4 = scmp.ne.s32.totalorder %s434_s23, %s8368_s17  ;;  %p8373_p5 = scmp.lt.s32.totalorder %s434_s23, %s434_s23 }
  0xd4   :  { %p8374_p6 = scmp.lt.s32.totalorder %s8372_s27, %s8368_s17 }
  0xd6   :  { %p8375_p7 = por %p8374_p6, %p8373_p5 }
  0xd8   :  { %p8376_p8 = pnand %p8375_p7, %p8369_p4 }
  0xda   :  { %8379 = shalt.err (!%p8376_p8)
}
  0xdb   :  { %436 = dma.hbm_to_vmem [thread:$0]  %s8996_s12, 16, %s434_s23, [#allocation42]  }
  0xdc   :  { %s8767_s28 = smov [#allocation2]  }
  0xdd   :  { %s120_s1 = sshll.u32 %s8767_s28, 4  ;;  %s121_s1 = int_to_ptr.vmem [resolvable:$true] %s120_s1 }
  0xde   :  { %s8388_s20 = scalar_lea.vmem %s121_s1, 64  ;;  %p8393_p10 = scmp.lt.s32.totalorder %s121_s1, %s121_s1 }
  0xdf   :  { %p8389_p9 = scmp.ne.s32.totalorder %s121_s1, %s8388_s20  ;;  %p8394_p11 = scmp.lt.s32.totalorder %s8388_s20, %s8388_s20 }
  0xe1   :  { %p8395_p12 = por %p8394_p11, %p8393_p10 }
  0xe3   :  { %p8396_p13 = pnand %p8395_p12, %p8389_p9 }
  0xe5   :  { %8399 = shalt.err (!%p8396_p13)
}
  0xe6   :  { %s8768_s9 = smov 32   ;;  %s8769_s4 = smov 2  }
  0xe7   :  { %126 = dma.hbm_to_vmem [thread:$0]  %s8826_s25, 64, %s121_s1, [#allocation3], %s8768_s9, %s8768_s9, %s8769_s4  }
  0xe8   :  { %s8770_s2 = smov [#allocation7]   ;;  %s8771_s12 = smov [#allocation10]  }
  0xe9   :  { %s146_s7 = sshll.u32 %s8770_s2, 4  ;;  %s172_s3 = sshll.u32 %s8771_s12, 4  ;;  %s147_s7 = int_to_ptr.vmem [resolvable:$true] %s146_s7  ;;  %s173_s3 = int_to_ptr.vmem [resolvable:$true] %s172_s3 }
  0xea   :  { %s8408_s10 = scalar_lea.vmem %s147_s7, 32  ;;  %p8413_p1 = scmp.lt.s32.totalorder %s147_s7, %s147_s7 }
  0xeb   :  { %p8409_p0 = scmp.ne.s32.totalorder %s147_s7, %s8408_s10  ;;  %p8414_p2 = scmp.lt.s32.totalorder %s8408_s10, %s8408_s10 }
  0xed   :  { %p8415_p3 = por %p8414_p2, %p8413_p1 }
  0xef   :  { %p8416_p4 = pnand %p8415_p3, %p8409_p0 }
  0xf1   :  { %8419 = shalt.err (!%p8416_p4)
}
  0xf2   :  { %152 = dma.hbm_to_vmem [thread:$0]  %s8841_s8, 32, %s147_s7, [#allocation6], %s8753_s18, %s8753_s18, %s8754_s22  }
  0xf3   :  { %s8428_s19 = scalar_lea.vmem %s173_s3, 32  ;;  %p8433_p6 = scmp.lt.s32.totalorder %s173_s3, %s173_s3 }
  0xf4   :  { %p8429_p5 = scmp.ne.s32.totalorder %s173_s3, %s8428_s19  ;;  %p8434_p7 = scmp.lt.s32.totalorder %s8428_s19, %s8428_s19 }
  0xf6   :  { %p8435_p8 = por %p8434_p7, %p8433_p6 }
  0xf8   :  { %p8436_p9 = pnand %p8435_p8, %p8429_p5 }
  0xfa   :  { %8439 = shalt.err (!%p8436_p9)
}
  0xfb   :  { %s10046_s25 = sld [smem:[#allocation67_spill]]  ;;  %s8772_s29 = smov [#allocation13]  }
  0xfc   :  { %s198_s11 = sshll.u32 %s8772_s29, 4  ;;  %s8773_s15 = smov [#allocation16]   ;;  %s199_s11 = int_to_ptr.vmem [resolvable:$true] %s198_s11 }
  0xfd   :  { %s223_s16 = sshll.u32 %s8773_s15, 4  ;;  %s8448_s14 = scalar_lea.vmem %s199_s11, 32  ;;  %s224_s16 = int_to_ptr.vmem [resolvable:$true] %s223_s16 }
  0xfe   :  { %p8449_p10 = scmp.ne.s32.totalorder %s199_s11, %s8448_s14  ;;  %p8453_p11 = scmp.lt.s32.totalorder %s199_s11, %s199_s11 }
  0xff   :  { %p8454_p12 = scmp.lt.s32.totalorder %s8448_s14, %s8448_s14 }
 0x101   :  { %178 = dma.hbm_to_vmem [thread:$0]  %s10046_s25, 32, %s173_s3, [#allocation9], %s8753_s18, %s8753_s18, %s8754_s22  }
 0x102   :  { %p8455_p13 = por %p8454_p12, %p8453_p11 }
 0x104   :  { %p8456_p0 = pnand %p8455_p13, %p8449_p10 }
 0x106   :  { %8459 = shalt.err (!%p8456_p0)
}
 0x107   :  { %s10047_s8 = sld [smem:[#allocation69_spill]]  ;;  %s8468_s5 = scalar_lea.vmem %s224_s16, 16 }
 0x108   :  { %p8469_p1 = scmp.ne.s32.totalorder %s224_s16, %s8468_s5  ;;  %s8472_s21 = scalar_lea.vmem %s224_s16, 32 }
 0x109   :  { %p8473_p2 = scmp.lt.s32.totalorder %s224_s16, %s224_s16  ;;  %p8474_p3 = scmp.lt.s32.totalorder %s8472_s21, %s8468_s5 }
 0x10b   :  { %p8475_p4 = por %p8474_p3, %p8473_p2 }
 0x10d   :  { %204 = dma.hbm_to_vmem [thread:$0]  %s10047_s8, 32, %s199_s11, [#allocation12], %s8753_s18, %s8753_s18, %s8754_s22  }
 0x10e   :  { %p8476_p5 = pnand %p8475_p4, %p8469_p1 }
 0x110   :  { %8479 = shalt.err (!%p8476_p5)
}
 0x111   :  { %s10048_s6 = sld [smem:[#allocation70_spill]]  ;;  %s8774_s0 = smov [#allocation19]  }
 0x112   :  { %s244_s23 = sshll.u32 %s8774_s0, 4  ;;  %s8775_s26 = smov [#allocation22]   ;;  %s245_s23 = int_to_ptr.vmem [resolvable:$true] %s244_s23 }
 0x113   :  { %s270_s17 = sshll.u32 %s8775_s26, 4  ;;  %s8488_s27 = scalar_lea.vmem %s245_s23, 64  ;;  %s271_s17 = int_to_ptr.vmem [resolvable:$true] %s270_s17 }
 0x114   :  { %p8489_p6 = scmp.ne.s32.totalorder %s245_s23, %s8488_s27  ;;  %p8493_p7 = scmp.lt.s32.totalorder %s245_s23, %s245_s23 }
 0x115   :  { %p8494_p8 = scmp.lt.s32.totalorder %s8488_s27, %s8488_s27 }
 0x117   :  { %226 = dma.hbm_to_vmem [thread:$0]  %s10048_s6, 16, %s224_s16, [#allocation15]  }
 0x118   :  { %p8495_p9 = por %p8494_p8, %p8493_p7 }
 0x11a   :  { %p8496_p10 = pnand %p8495_p9, %p8489_p6 }
 0x11c   :  { %8499 = shalt.err (!%p8496_p10)
}
 0x11d   :  { %s10049_s28 = sld [smem:[#allocation72_spill]]  ;;  %s8508_s1 = scalar_lea.vmem %s271_s17, 32 }
 0x11e   :  { %p8509_p11 = scmp.ne.s32.totalorder %s271_s17, %s8508_s1  ;;  %p8513_p12 = scmp.lt.s32.totalorder %s271_s17, %s271_s17 }
 0x11f   :  { %p8514_p13 = scmp.lt.s32.totalorder %s8508_s1, %s8508_s1 }
 0x121   :  { %p8515_p0 = por %p8514_p13, %p8513_p12 }
 0x123   :  { %250 = dma.hbm_to_vmem [thread:$0]  %s10049_s28, 64, %s245_s23, [#allocation18], %s8768_s9, %s8768_s9, %s8769_s4  }
 0x124   :  { %p8516_p1 = pnand %p8515_p0, %p8509_p11 }
 0x126   :  { %8519 = shalt.err (!%p8516_p1)
}
 0x127   :  { %s10050_s20 = sld [smem:[#allocation74_spill]]  ;;  %s8776_s2 = smov [#allocation25]  }
 0x128   :  { %s296_s7 = sshll.u32 %s8776_s2, 4  ;;  %s8777_s12 = smov [#allocation28]   ;;  %s297_s7 = int_to_ptr.vmem [resolvable:$true] %s296_s7 }
 0x129   :  { %s322_s3 = sshll.u32 %s8777_s12, 4  ;;  %s8528_s10 = scalar_lea.vmem %s297_s7, 32  ;;  %s323_s3 = int_to_ptr.vmem [resolvable:$true] %s322_s3 }
 0x12a   :  { %p8529_p2 = scmp.ne.s32.totalorder %s297_s7, %s8528_s10  ;;  %p8533_p3 = scmp.lt.s32.totalorder %s297_s7, %s297_s7 }
 0x12b   :  { %p8534_p4 = scmp.lt.s32.totalorder %s8528_s10, %s8528_s10 }
 0x12d   :  { %276 = dma.hbm_to_vmem [thread:$0]  %s10050_s20, 32, %s271_s17, [#allocation21], %s8753_s18, %s8753_s18, %s8754_s22  }
 0x12e   :  { %p8535_p5 = por %p8534_p4, %p8533_p3 }
 0x130   :  { %p8536_p6 = pnand %p8535_p5, %p8529_p2 }
 0x132   :  { %8539 = shalt.err (!%p8536_p6)
}
 0x133   :  { %s10051_s4 = sld [smem:[#allocation76_spill]]  ;;  %s8548_s19 = scalar_lea.vmem %s323_s3, 1024 }
 0x134   :  { %p8549_p7 = scmp.ne.s32.totalorder %s323_s3, %s8548_s19  ;;  %p8553_p8 = scmp.lt.s32.totalorder %s323_s3, %s323_s3 }
 0x135   :  { %p8554_p9 = scmp.lt.s32.totalorder %s8548_s19, %s8548_s19 }
 0x137   :  { %p8555_p10 = por %p8554_p9, %p8553_p8 }
 0x139   :  { %302 = dma.hbm_to_vmem [thread:$0]  %s10051_s4, 32, %s297_s7, [#allocation24], %s8753_s18, %s8753_s18, %s8754_s22  }
 0x13a   :  { %p8556_p11 = pnand %p8555_p10, %p8549_p7 }
 0x13c   :  { %8559 = shalt.err (!%p8556_p11)
}
 0x13d   :  { %s8778_s25 = smov 64   ;;  %s10052_s29 = sld [smem:[#allocation78_spill]] }
 0x13e   :  { %s8779_s11 = smov 4   ;;  %s8780_s15 = smov [#allocation31]  }
 0x13f   :  { %s346_s16 = sshll.u32 %s8780_s15, 4  ;;  %s8781_s14 = smov [#allocation34]   ;;  %s347_s16 = int_to_ptr.vmem [resolvable:$true] %s346_s16 }
 0x140   :  { %s372_s8 = sshll.u32 %s8781_s14, 4  ;;  %s8568_s5 = scalar_lea.vmem %s347_s16, 32  ;;  %s373_s8 = int_to_ptr.vmem [resolvable:$true] %s372_s8 }
 0x141   :  { %p8569_p12 = scmp.ne.s32.totalorder %s347_s16, %s8568_s5  ;;  %p8573_p13 = scmp.lt.s32.totalorder %s347_s16, %s347_s16 }
 0x142   :  { %p8574_p0 = scmp.lt.s32.totalorder %s8568_s5, %s8568_s5 }
 0x143   :  { %328 = dma.hbm_to_vmem [thread:$0]  %s10052_s29, 1024, %s323_s3, [#allocation27], %s8778_s25, %s8778_s25, %s8779_s11  }
 0x144   :  { %p8575_p1 = por %p8574_p0, %p8573_p13 }
 0x146   :  { %p8576_p2 = pnand %p8575_p1, %p8569_p12 }
 0x148   :  { %8579 = shalt.err (!%p8576_p2)
}
 0x149   :  { %s10053_s21 = sld [smem:[#allocation79_spill]]  ;;  %s8588_s6 = scalar_lea.vmem %s373_s8, 32 }
 0x14a   :  { %p8589_p3 = scmp.ne.s32.totalorder %s373_s8, %s8588_s6  ;;  %p8593_p4 = scmp.lt.s32.totalorder %s373_s8, %s373_s8 }
 0x14b   :  { %p8594_p5 = scmp.lt.s32.totalorder %s8588_s6, %s8588_s6 }
 0x14d   :  { %p8595_p6 = por %p8594_p5, %p8593_p4 }
 0x14f   :  { %352 = dma.hbm_to_vmem [thread:$0]  %s10053_s21, 32, %s347_s16, [#allocation30], %s8753_s18, %s8753_s18, %s8754_s22  }
 0x150   :  { %p8596_p7 = pnand %p8595_p6, %p8589_p3 }
 0x152   :  { %8599 = shalt.err (!%p8596_p7)
}
 0x153   :  { %s10054_s0 = sld [smem:[#allocation81_spill]]  ;;  %s8782_s23 = smov [#allocation37]  }
 0x154   :  { %s398_s26 = sshll.u32 %s8782_s23, 4  ;;  %s8783_s17 = smov [#allocation40]   ;;  %s399_s26 = int_to_ptr.vmem [resolvable:$true] %s398_s26 }
 0x155   :  { %s423_s27 = sshll.u32 %s8783_s17, 4  ;;  %s8608_s28 = scalar_lea.vmem %s399_s26, 32  ;;  %s424_s27 = int_to_ptr.vmem [resolvable:$true] %s423_s27 }
 0x156   :  { %p8609_p8 = scmp.ne.s32.totalorder %s399_s26, %s8608_s28  ;;  %p8613_p9 = scmp.lt.s32.totalorder %s399_s26, %s399_s26 }
 0x157   :  { %p8614_p10 = scmp.lt.s32.totalorder %s8608_s28, %s8608_s28 }
 0x159   :  { %378 = dma.hbm_to_vmem [thread:$0]  %s10054_s0, 32, %s373_s8, [#allocation33], %s8753_s18, %s8753_s18, %s8754_s22  }
 0x15a   :  { %p8615_p11 = por %p8614_p10, %p8613_p9 }
 0x15c   :  { %p8616_p12 = pnand %p8615_p11, %p8609_p8 }
 0x15e   :  { %8619 = shalt.err (!%p8616_p12)
}
 0x15f   :  { %s10055_s1 = sld [smem:[#allocation83_spill]]  ;;  %s8628_s20 = scalar_lea.vmem %s424_s27, 16 }
 0x160   :  { %p8629_p13 = scmp.ne.s32.totalorder %s424_s27, %s8628_s20  ;;  %s8632_s2 = scalar_lea.vmem %s424_s27, 32 }
 0x161   :  { %p8633_p0 = scmp.lt.s32.totalorder %s424_s27, %s424_s27  ;;  %p8634_p1 = scmp.lt.s32.totalorder %s8632_s2, %s8628_s20 }
 0x163   :  { %p8635_p2 = por %p8634_p1, %p8633_p0 }
 0x165   :  { %404 = dma.hbm_to_vmem [thread:$0]  %s10055_s1, 32, %s399_s26, [#allocation36], %s8753_s18, %s8753_s18, %s8754_s22  }
 0x166   :  { %p8636_p3 = pnand %p8635_p2, %p8629_p13 }
 0x168   :  { %8639 = shalt.err (!%p8636_p3)
}
 0x169   :  { %s10056_s7 = sld [smem:[#allocation84_spill]]  ;;  %s8784_s12 = smov [#allocation43]  }
 0x16a   :  { %s442_s3 = sshll.u32 %s8784_s12, 4  ;;  %s443_s3 = int_to_ptr.vmem [resolvable:$true] %s442_s3 }
 0x16b   :  { %s8648_s10 = scalar_lea.vmem %s443_s3, 512  ;;  %p8653_p5 = scmp.lt.s32.totalorder %s443_s3, %s443_s3 }
 0x16c   :  { %p8649_p4 = scmp.ne.s32.totalorder %s443_s3, %s8648_s10  ;;  %p8654_p6 = scmp.lt.s32.totalorder %s8648_s10, %s8648_s10 }
 0x16e   :  { %p8655_p7 = por %p8654_p6, %p8653_p5 }
 0x16f   :  { %426 = dma.hbm_to_vmem [thread:$0]  %s10056_s7, 16, %s424_s27, [#allocation39]  }
 0x170   :  { %p8656_p8 = pnand %p8655_p7, %p8649_p4 }
 0x172   :  { %8659 = shalt.err (!%p8656_p8)
}
 0x173   :  { %448 = dma.hbm_to_vmem [thread:$0]  %s9001_s30, 512, %s443_s3, [#allocation42], %s8778_s25, %s8778_s25, %s8779_s11  }
 0x174   :  { %8680 = dma.done.wait [#allocation3], 64  }
 0x175   :  { %8681 = vsyncadd [#allocation3], 4294967232 }
 0x176   :  { %8682 = dma.done.wait [#allocation6], 64  }
 0x177   :  { %8683 = vsyncadd [#allocation6], 4294967232 }
 0x178   :  { %8684 = dma.done.wait [#allocation9], 64  }
 0x179   :  { %8685 = vsyncadd [#allocation9], 4294967232 }
 0x17a   :  { %8686 = dma.done.wait [#allocation12], 64  }
 0x17b   :  { %8687 = vsyncadd [#allocation12], 4294967232 }
 0x17c   :  { %8688 = dma.done.wait [#allocation15], 48  }
 0x17d   :  { %8689 = vsyncadd [#allocation15], 4294967248 }
 0x17e   :  { %8690 = dma.done.wait [#allocation18], 80  }
 0x17f   :  { %8691 = vsyncadd [#allocation18], 4294967216 }
 0x180   :  { %8692 = dma.done.wait [#allocation21], 64  }
 0x181   :  { %8693 = vsyncadd [#allocation21], 4294967232 }
 0x182   :  { %8694 = dma.done.wait [#allocation24], 64  }
 0x183   :  { %8695 = vsyncadd [#allocation24], 4294967232 }
 0x184   :  { %8696 = dma.done.wait [#allocation27], 1056  }
 0x185   :  { %8697 = vsyncadd [#allocation27], 4294966240 }
 0x186   :  { %8698 = dma.done.wait [#allocation30], 64  }
 0x187   :  { %8699 = vsyncadd [#allocation30], 4294967232 }
 0x188   :  { %8700 = dma.done.wait [#allocation33], 64  }
 0x189   :  { %8701 = vsyncadd [#allocation33], 4294967232 }
 0x18a   :  { %8702 = dma.done.wait [#allocation36], 64  }
 0x18b   :  { %8703 = vsyncadd [#allocation36], 4294967232 }
 0x18c   :  { %8704 = dma.done.wait [#allocation39], 48  }
 0x18d   :  { %8705 = vsyncadd [#allocation39], 4294967248 }
 0x18e   :  { %8706 = dma.done.wait [#allocation42], 528  }
 0x18f   :  { %8707 = vsyncadd [#allocation42], 4294966768  ;;  %s10057_s30 = sld [smem:[#allocation60_spill]]  ;;  %v8785_v0 = vmov 0   ;;  %v8786_v1 = vmov 0.0   ;;  %vm8787_vm0 = vmmov 0   ;;  %v551_v16 = vlaneseq }
 0x190   :  { %s10058_s18 = sld [smem:[#allocation62_spill]]  ;;  %7818 = vset.pattern.permute.xlu0 %v8785_v0  ;;  %7123 = vmatprep.subr.bf16.mxu0 %v8786_v1  ;;  %v8788_v20 = vmov 1.0|1.0   ;;  %vm718_vm4 = vcmask 523264   ;;  %v666_v34 = vld [vmem:[#allocation2] sm:$0x3] }
 0x191   :  { %754 = vmatprep.mubr.bf16.mxu1 %v8785_v0  ;;  %s10059_s22 = sld [smem:[#allocation64_spill]]  ;;  %7819 = vset.pattern.permute.xlu1 %v8785_v0  ;;  %v9137_v18 = vand.u32 127, %v551_v16  ;;  %v669_v32 = vshrl.u32 %v551_v16, 7  ;;  %vm908_vm5 = vcmask 1043456   ;;  %vm784_vm6 = vcmask 261120   ;;  %s8789_s4 = smov 96  }
 0x192   :  { %7139 = vmatprep.mubr.msk.bf16.mxu0 %vm8787_vm0, %v8786_v1  ;;  %vm880_vm7 = vcmask 64512   ;;  %s10060_s19 = sld [smem:[#allocation65_spill]] }
 0x193   :  { %v9158_v33 = vsub.s32 0, %v669_v32  ;;  %v9160_v35 = vsub.s32 1, %v669_v32  ;;  %s10061_s29 = sld [smem:[#allocation66_spill]] }
 0x194   :  { %s10062_s11 = sld [smem:[#allocation68_spill]] }
 0x195   :  { %v533_v2 = vld [vmem:[%s10057_s30] sm:$0xff]  ;;  %v534_v4 = vld [vmem:[%s10057_s30 + $0x8] sm:$0xff]  ;;  %v671_v36 = vrot.slane %v666_v34, %v9158_v33  ;;  %v675_v37 = vrot.slane %v666_v34, %v9160_v35  ;;  %s10063_s15 = sld [smem:[#allocation61_spill]] }
 0x196   :  { %554 = vperm.xlu0 %7818, %v533_v2   ;;  %v7820_v3 = vld [vmem:[%s10058_s18 + $0x38] sm:$0xff]   ;;  %v7821_v5 = vld [vmem:[%s10058_s18 + $0x30] sm:$0xff]   ;;  %v7822_v6 = vld [vmem:[%s10058_s18 + $0x28] sm:$0xff]   ;;  %s10064_s16 = sld [smem:[#allocation63_spill]] }
 0x197   :  { %7124 = vmatpush3.bf16.msra.mxu0 %v7820_v3  ;;  %v7823_v7 = vld [vmem:[%s10058_s18 + $0x20] sm:$0xff]   ;;  %v7828_v8 = vld [vmem:[%s10059_s22 + $0x34] ss:$8 sps:$4 sm:$0xff]   ;;  %v7830_v9 = vld [vmem:[%s10059_s22 + $0x30] ss:$8 sps:$4 sm:$0xff]   ;;  %s10065_s14 = sld [smem:[#allocation71_spill]] }
 0x198   :  { %7125 = vmatprep.subr.bf16.mxu0 %v8786_v1  ;;  %v7831_v10 = vld [vmem:[%s10059_s22 + $0x24] ss:$8 sps:$4 sm:$0xff]   ;;  %730 = vmatprep.subr.bf16.mxu1 %v7828_v8  ;;  %v7833_v11 = vld [vmem:[%s10059_s22 + $0x20] ss:$8 sps:$4 sm:$0xff]   ;;  %v7824_v12 = vld [vmem:[%s10058_s18 + $0x18] sm:$0xff]   ;;  %s10066_s8 = sld [smem:[#allocation73_spill]] }
 0x199   :  { %731 = vmatpush1.bf16.msra.mxu1 %v7830_v9  ;;  %v7825_v13 = vld [vmem:[%s10058_s18 + $0x10] sm:$0xff]   ;;  %v7826_v14 = vld [vmem:[%s10058_s18 + $0x8] sm:$0xff]   ;;  %v7827_v15 = vld [vmem:[%s10058_s18] sm:$0xff]   ;;  %s10067_s5 = sld [smem:[#allocation77_spill]] }
 0x19a   :  { %557 = vperm.xlu0 %7818, %v534_v4   ;;  %732 = vmatprep.subr.bf16.mxu1 %v7831_v10  ;;  %v7834_v21 = vld [vmem:[%s10059_s22 + $0x14] ss:$8 sps:$4 sm:$0xff]   ;;  %v7836_v22 = vld [vmem:[%s10059_s22 + $0x10] ss:$8 sps:$4 sm:$0xff]   ;;  %v7837_v23 = vld [vmem:[%s10059_s22 + $0x4] ss:$8 sps:$4 sm:$0xff]  }
 0x19b   :  { %7126 = vmatpush3.bf16.msra.mxu0 %v7821_v5  ;;  %v7839_v24 = vld [vmem:[%s10059_s22] ss:$8 sps:$4 sm:$0xff]   ;;  %s10068_s21 = sld [smem:[#allocation75_spill]] }
 0x19c   :  { %7127 = vmatprep.subr.bf16.mxu0 %v8786_v1  ;;  %s10069_s6 = sld [smem:[#allocation80_spill]] }
 0x19d   :  { %733 = vmatpush1.bf16.msra.mxu1 %v7833_v11  ;;  %s10070_s0 = sld [smem:[#allocation82_spill]] }
 0x19e   :  { %734 = vmatprep.subr.bf16.mxu1 %v7834_v21 }
 0x19f   :  { %7128 = vmatpush3.bf16.msra.mxu0 %v7822_v6 }
 0x1a0   :  { %7129 = vmatprep.subr.bf16.mxu0 %v8786_v1 }
 0x1a1   :  { %735 = vmatpush1.bf16.msra.mxu1 %v7836_v22 }
 0x1a2   :  { %736 = vmatprep.subr.bf16.mxu1 %v7837_v23 }
 0x1a3   :  { %7130 = vmatpush3.bf16.msra.mxu0 %v7823_v7 }
 0x1a4   :  { %7131 = vmatprep.subr.bf16.mxu0 %v8786_v1 }
 0x1a5   :  { %737 = vmatpush1.bf16.msra.mxu1 %v7839_v24 }
 0x1a6   :  { %7143 = vmatprep.subr.bf16.mxu1 %v8786_v1 }
 0x1a7   :  { %7132 = vmatpush3.bf16.msra.mxu0 %v7824_v12 }
 0x1a8   :  { %7133 = vmatprep.subr.bf16.mxu0 %v8786_v1 }
 0x1ab   :  { %7134 = vmatpush3.bf16.msra.mxu0 %v7825_v13 }
 0x1ac   :  { %7135 = vmatprep.subr.bf16.mxu0 %v8786_v1 }
 0x1af   :  { %7136 = vmatpush3.bf16.msra.mxu0 %v7826_v14 }
 0x1b0   :  { %7137 = vmatprep.subr.bf16.mxu0 %v8786_v1 }
 0x1b3   :  { %7138 = vmatpush3.bf16.msra.mxu0 %v7827_v15 }
 0x1b4   :  { %7155 = vmatprep.subr.bf16.mxu0 %v8786_v1 }
 0x211   :  { %v555_v17 = vpop.permute.xlu0 %554 }
 0x212   :  { %vm559_vm1 = vcmp.eq.s32.totalorder %v9137_v18, %v555_v17 }
 0x215   :  { %v558_v19 = vpop.permute.xlu0 %557 }
 0x216   :  { %vm560_vm2 = vcmp.eq.s32.totalorder %v9137_v18, %v558_v19 }
 0x217   :  { %vm6542_vm3 = vmpackc.low %vm560_vm2, %vm559_vm1 }
 0x218   :  { %7140 = vmatmul.mubr.msk.bf16.vlgmr.msra.gmra.mxu0 %vm6542_vm3, %v8788_v20 }
 0x219   :  { %7157 = vmatprep.mubr.msk.bf16.mxu0 %vm8787_vm0, %v8786_v1 }
 0x2d8   :  { %v648_v25 = vpop.f32.mrf.mxu0 }
 0x2d9   :  { %v9149_v28 = vmul.f32 8.0, %v648_v25 }
 0x2da   :  { %v7141_v26 = vpop.f32.mrf.mxu0 }
 0x2dc   :  { %v651_v27 = vpop.f32.mrf.mxu0 }
 0x2dd   :  { %v9151_v29 = vmul.f32 8.0, %v651_v27 }
 0x2de   :  { %v7142_v30 = vpop.f32.mrf.mxu0 }
 0x2df   :  { %v665_v31 = vpack.c.bf16 %v9151_v29, %v9149_v28 }
 0x2e1   :  { %6552 = vmatmul.mubr.msk.bf16.vlgmr.msra.gmra.mxu1 %vm718_vm4, %v665_v31 }
 0x2e2   :  { %7145 = vmatprep.mubr.msk.bf16.mxu1 %vm8787_vm0, %v8786_v1 }
 0x3a1   :  { %v756_v38 = vpop.f32.mrf.mxu1 }
 0x3a2   :  { %v757_v39 = vadd.f32 %v756_v38, %v671_v36 }
 0x3a3   :  { %v758_v40 = vpop.f32.mrf.mxu1 }
 0x3a4   :  { %v759_v41 = vadd.f32 %v758_v40, %v675_v37  ;;  %v777_v42 = vpack.c.bf16 %v757_v39, %v757_v39  ;;  %v773_v50 = vmul.f32 0.17677669, %v757_v39 }
 0x3a5   :  { %v760_v43 = vpop.f32.mrf.mxu1 }
 0x3a6   :  { %v9164_v44 = vpack.c.bf16 %v759_v41, %v759_v41  ;;  %v761_v45 = vadd.f32 %v760_v43, %v671_v36  ;;  %782 = vrot.lane.b32.xlu1 %v777_v42, %s8778_s25  ;;  %v775_v53 = vpack.c.bf16 %v773_v50, %v773_v50 }
 0x3a7   :  { %v762_v51 = vpop.f32.mrf.mxu1 }
 0x3a8   :  { %v910_v46 = vsel %vm908_vm5, %v9164_v44, 0  ;;  %v778_v47 = vpack.c.bf16 %v761_v45, %v761_v45  ;;  %v763_v54 = vadd.f32 %v762_v51, %v675_v37  ;;  %v774_v56 = vmul.f32 0.17677669, %v761_v45 }
 0x3a9   :  { %7156 = vmatpush3.bf16.msra.mxu0 %v910_v46 }
 0x3aa   :  { %832 = vrot.lane.b32.xlu1 %v778_v47, %s8778_s25  ;;  %7167 = vmatprep.subr.bf16.mxu0 %v8786_v1  ;;  %v9178_v57 = vpack.c.bf16 %v763_v54, %v763_v54  ;;  %v776_v58 = vpack.c.bf16 %v774_v56, %v774_v56 }
 0x3ac   :  { %v956_v59 = vsel %vm908_vm5, %v9178_v57, 0 }
 0x418   :  { %v783_v48 = vpop.permute.xlu1 %782 }
 0x419   :  { %v789_v49 = vsel %vm784_vm6, %v783_v48, 0 }
 0x41a   :  { %7144 = vmatpush3.bf16.xpose.msra.mxu1 %v789_v49 }
 0x41b   :  { %7149 = vmatprep.subr.bf16.mxu1 %v8786_v1 }
 0x41c   :  { %v833_v52 = vpop.permute.xlu1 %832 }
 0x41d   :  { %v838_v55 = vsel %vm784_vm6, %v833_v52, 0 }
 0x421   :  { %7146 = vmatmul.mubr.msk.bf16.vlgmr.msra.gmra.mxu1 %vm784_vm6, %v775_v53 }
 0x422   :  { %7150 = vmatpush3.bf16.xpose.msra.mxu1 %v838_v55  ;;  %7151 = vmatprep.mubr.msk.bf16.mxu1 %vm8787_vm0, %v8786_v1 }
 0x423   :  { %7161 = vmatprep.subr.bf16.mxu1 %v8786_v1 }
 0x429   :  { %7152 = vmatmul.mubr.msk.bf16.vlgmr.msra.gmra.mxu1 %vm784_vm6, %v776_v58 }
 0x42a   :  { %7162 = vmatpush3.bf16.msra.mxu1 %v956_v59  ;;  %7163 = vmatprep.mubr.msk.bf16.mxu1 %vm8787_vm0, %v8786_v1 }
 0x42b   :  { %7173 = vmatprep.subr.bf16.mxu1 %v8786_v1 }
 0x4e1   :  { %v825_v60 = vpop.f32.mrf.mxu1 }
 0x4e2   :  { %v881_v61 = vsel %vm880_vm7, %v825_v60, -inf }
 0x4e3   :  { %882 = vmax.xlane.f32.xlu0 %v881_v61  ;;  %v7147_v62 = vpop.f32.mrf.mxu1 }
 0x4e5   :  { %v828_v63 = vpop.f32.mrf.mxu1 }
 0x4e7   :  { %v7148_v2 = vpop.f32.mrf.mxu1 }
 0x4e9   :  { %v874_v3 = vpop.f32.mrf.mxu1 }
 0x4ea   :  { %v884_v4 = vsel %vm880_vm7, %v874_v3, -inf }
 0x4eb   :  { %885 = vmax.xlane.f32.xlu1 %v884_v4  ;;  %v7153_v5 = vpop.f32.mrf.mxu1 }
 0x4ed   :  { %v877_v6 = vpop.f32.mrf.mxu1 }
 0x4ef   :  { %v7154_v7 = vpop.f32.mrf.mxu1 }
 0x4fc   :  { %1002 = vrot.lane.b32.xlu1 %v777_v42, %s8768_s9 }
 0x500   :  { %1000 = vrot.lane.b32.xlu1 %v775_v53, %s8789_s4 }
 0x504   :  { %1051 = vrot.lane.b32.xlu1 %v776_v58, %s8789_s4 }
 0x56c   :  { %v883_v8 = vpop.xlane.xlu0 %882 }
 0x56d   :  { %v887_v9 = vsub.f32 %v825_v60, %v883_v8 }
 0x56f   :  { %v889_v10 = vmul.f32 1.442695, %v887_v9 }
 0x571   :  { %7976 = vpow2.f32 %v889_v10 }
 0x574   :  { %v886_v11 = vpop.xlane.xlu1 %885 }
 0x575   :  { %v888_v12 = vsub.f32 %v874_v3, %v886_v11 }
 0x577   :  { %v891_v13 = vmul.f32 1.442695, %v888_v12 }
 0x578   :  { %v1003_v24 = vpop.permute.xlu1 %1002 }
 0x579   :  { %7978 = vpow2.f32 %v891_v13  ;;  %v1008_v26 = vsel %vm784_vm6, %v1003_v24, 0 }
 0x57c   :  { %v1001_v34 = vpop.permute.xlu1 %1000 }
 0x57e   :  { %v7977_v14 = vpop.eup %7976 }
 0x57f   :  { %v893_v15 = vsel %vm880_vm7, %v7977_v14, 0.0 }
 0x580   :  { %894 = vadd.xlane.f32.xlu0 %v893_v15  ;;  %v1052_v37 = vpop.permute.xlu1 %1051 }
 0x586   :  { %v7979_v16 = vpop.eup %7978 }
 0x587   :  { %v896_v17 = vsel %vm880_vm7, %v7979_v16, 0.0 }
 0x588   :  { %897 = vadd.xlane.f32.xlu0 %v896_v17 }
 0x59e   :  { %1053 = vrot.lane.b32.xlu0 %v778_v47, %s8768_s9 }
 0x609   :  { %v895_v19 = vpop.xlane.xlu0 %894 }
 0x60a   :  { %7980 = vrcp.f32 %v895_v19  ;;  %v7841_v19 = vld [vmem:[%s10060_s19] sm:$0xff]  }
 0x611   :  { %v898_v21 = vpop.xlane.xlu0 %897 }
 0x612   :  { %7982 = vrcp.f32 %v898_v21  ;;  %v7842_v21 = vld [vmem:[%s10060_s19 + $0x18] sm:$0xff]  }
 0x615   :  { %v1054_v31 = vpop.permute.xlu0 %1053 }
 0x616   :  { %v1059_v36 = vsel %vm784_vm6, %v1054_v31, 0 }
 0x617   :  { %v7981_v22 = vpop.eup %7980 }
 0x618   :  { %v901_v23 = vmul.f32 %v7981_v22, %v7977_v14  ;;  %v7843_v22 = vld [vmem:[%s10060_s19 + $0x10] sm:$0xff]  }
 0x61a   :  { %v903_v25 = vpack.c.bf16 %v901_v23, %v901_v23 }
 0x61c   :  { %7158 = vmatmul.mubr.msk.bf16.vlgmr.msra.gmra.mxu0 %vm880_vm7, %v903_v25 }
 0x61d   :  { %7168 = vmatpush3.bf16.xpose.msra.mxu0 %v1008_v26  ;;  %7169 = vmatprep.mubr.msk.bf16.mxu0 %vm8787_vm0, %v8786_v1 }
 0x61e   :  { %7179 = vmatprep.subr.bf16.mxu0 %v8786_v1 }
 0x61f   :  { %v7983_v27 = vpop.eup %7982 }
 0x620   :  { %v902_v30 = vmul.f32 %v7983_v27, %v7979_v16  ;;  %v7840_v16 = vld [vmem:[%s10060_s19 + $0x8] sm:$0xff]  }
 0x622   :  { %v904_v32 = vpack.c.bf16 %v902_v30, %v902_v30 }
 0x624   :  { %7164 = vmatmul.mubr.msk.bf16.vlgmr.msra.gmra.mxu1 %vm880_vm7, %v904_v32  ;;  %7170 = vmatmul.mubr.msk.bf16.vlgmr.msra.gmra.mxu0 %vm784_vm6, %v1001_v34 }
 0x625   :  { %7174 = vmatpush3.bf16.xpose.msra.mxu1 %v1059_v36  ;;  %7175 = vmatprep.mubr.msk.bf16.mxu1 %vm8787_vm0, %v8786_v1 }
 0x626   :  { %7185 = vmatprep.subr.bf16.mxu1 %v8786_v1  ;;  %7181 = vmatprep.mubr.msk.bf16.mxu0 %vm8787_vm0, %v8786_v1 }
 0x62c   :  { %7176 = vmatmul.mubr.msk.bf16.vlgmr.msra.gmra.mxu1 %vm784_vm6, %v1052_v37 }
 0x62d   :  { %7187 = vmatprep.mubr.msk.bf16.mxu1 %vm8787_vm0, %v8786_v1 }
 0x6dc   :  { %v9210_v38 = vpop.f32.mrf.mxu0 }
 0x6de   :  { %v7159_v39 = vpop.f32.mrf.mxu0 }
 0x6e0   :  { %v949_v40 = vpop.f32.mrf.mxu0 }
 0x6e2   :  { %v7160_v41 = vpop.f32.mrf.mxu0 }
 0x6e3   :  { %v6567_v41 = vld [vmem:[#allocation5] ss:$0 sm:$0xff] }
 0x6e4   :  { %v992_v42 = vpop.f32.mrf.mxu1  ;;  %v1044_v43 = vpop.f32.mrf.mxu0 }
 0x6e5   :  { %v998_v45 = vpack.c.bf16 %v992_v42, %v9210_v38  ;;  %v1101_v46 = vsel %vm880_vm7, %v1044_v43, -inf }
 0x6e6   :  { %v7165_v47 = vpop.f32.mrf.mxu1  ;;  %1102 = vmax.xlane.f32.xlu0 %v1101_v46  ;;  %v7171_v48 = vpop.f32.mrf.mxu0 }
 0x6e8   :  { %v995_v49 = vpop.f32.mrf.mxu1  ;;  %v1047_v50 = vpop.f32.mrf.mxu0 }
 0x6ea   :  { %v7166_v51 = vpop.f32.mrf.mxu1  ;;  %v7172_v52 = vpop.f32.mrf.mxu0 }
 0x6ec   :  { %v1095_v53 = vpop.f32.mrf.mxu1 }
 0x6ed   :  { %v1104_v54 = vsel %vm880_vm7, %v1095_v53, -inf }
 0x6ee   :  { %1105 = vmax.xlane.f32.xlu1 %v1104_v54  ;;  %v7177_v55 = vpop.f32.mrf.mxu1 }
 0x6f0   :  { %v1098_v56 = vpop.f32.mrf.mxu1 }
 0x6f2   :  { %v7178_v58 = vpop.f32.mrf.mxu1 }
 0x6ff   :  { %1126 = vrot.lane.b32.xlu1 %v9164_v44, %s8789_s4 }
 0x76f   :  { %v1103_v59 = vpop.xlane.xlu0 %1102 }
 0x770   :  { %v1107_v60 = vsub.f32 %v1044_v43, %v1103_v59 }
 0x772   :  { %v1109_v61 = vmul.f32 1.442695, %v1107_v60 }
 0x774   :  { %7984 = vpow2.f32 %v1109_v61 }
 0x777   :  { %v1106_v62 = vpop.xlane.xlu1 %1105 }
 0x778   :  { %v1108_v63 = vsub.f32 %v1095_v53, %v1106_v62 }
 0x77a   :  { %v1111_v2 = vmul.f32 1.442695, %v1108_v63  ;;  %v7844_v63 = vld [vmem:[%s10061_s29 + $0x18] sm:$0xff]  }
 0x77b   :  { %v1127_v3 = vpop.permute.xlu1 %1126 }
 0x77c   :  { %7986 = vpow2.f32 %v1111_v2  ;;  %v1132_v4 = vsel %vm908_vm5, %v1127_v3, 0  ;;  %v7845_v2 = vld [vmem:[%s10061_s29 + $0x10] sm:$0xff]   ;;  %v7846_v3 = vld [vmem:[%s10061_s29 + $0x8] sm:$0xff]  }
 0x77d   :  { %7180 = vmatpush3.bf16.msra.mxu0 %v1132_v4  ;;  %v7847_v4 = vld [vmem:[%s10061_s29] sm:$0xff]  }
 0x77e   :  { %7191 = vmatprep.subr.bf16.mxu0 %v8786_v1 }
 0x781   :  { %v7985_v5 = vpop.eup %7984 }
 0x782   :  { %v1113_v6 = vsel %vm880_vm7, %v7985_v5, 0.0 }
 0x783   :  { %1114 = vadd.xlane.f32.xlu0 %v1113_v6  ;;  %v7849_v6 = vld [vmem:[%s10062_s11 + $0x30] sm:$0xff]  }
 0x789   :  { %v7987_v7 = vpop.eup %7986 }
 0x78a   :  { %v1116_v44 = vsel %vm880_vm7, %v7987_v7, 0.0 }
 0x78b   :  { %1117 = vadd.xlane.f32.xlu0 %v1116_v44  ;;  %v7851_v44 = vld [vmem:[%s10062_s11 + $0x20] sm:$0xff]  }
 0x7a1   :  { %1175 = vrot.lane.b32.xlu0 %v9178_v57, %s8789_s4 }
 0x80c   :  { %v1115_v8 = vpop.xlane.xlu0 %1114 }
 0x80d   :  { %7988 = vrcp.f32 %v1115_v8  ;;  %v7852_v8 = vld [vmem:[%s10062_s11 + $0x18] sm:$0xff]  }
 0x814   :  { %v1118_v9 = vpop.xlane.xlu0 %1117 }
 0x815   :  { %7990 = vrcp.f32 %v1118_v9 }
 0x818   :  { %v1176_v10 = vpop.permute.xlu0 %1175 }
 0x819   :  { %v1181_v11 = vsel %vm908_vm5, %v1176_v10, 0 }
 0x81a   :  { %v7989_v12 = vpop.eup %7988  ;;  %7186 = vmatpush3.bf16.msra.mxu1 %v1181_v11 }
 0x81b   :  { %v1121_v13 = vmul.f32 %v7989_v12, %v7985_v5  ;;  %7199 = vmatprep.subr.bf16.mxu1 %v8786_v1  ;;  %v7848_v5 = vld [vmem:[%s10062_s11 + $0x38] sm:$0xff]  }
 0x81d   :  { %v1123_v14 = vpack.c.bf16 %v1121_v13, %v1121_v13 }
 0x81f   :  { %7182 = vmatmul.mubr.msk.bf16.vlgmr.msra.gmra.mxu0 %vm880_vm7, %v1123_v14 }
 0x820   :  { %7195 = vmatprep.mubr.msk.bf16.mxu0 %vm8787_vm0, %v8786_v1  ;;  %7192 = vmatpush3.bf16.msra.mxu0 %v7842_v21 }
 0x821   :  { %7193 = vmatprep.subr.bf16.mxu0 %v8786_v1 }
 0x822   :  { %v7991_v57 = vpop.eup %7990 }
 0x823   :  { %v1122_v15 = vmul.f32 %v7991_v57, %v7987_v7  ;;  %v7850_v7 = vld [vmem:[%s10062_s11 + $0x28] sm:$0xff]  }
 0x824   :  { %7194 = vmatpush3.bf16.msra.mxu0 %v7843_v22  ;;  %v6569_v22 = vld [vmem:[#allocation8] ss:$0 sm:$0xff] }
 0x825   :  { %v1124_v17 = vpack.c.bf16 %v1122_v15, %v1122_v15  ;;  %7207 = vmatprep.subr.bf16.mxu0 %v8786_v1 }
 0x827   :  { %7188 = vmatmul.mubr.msk.bf16.vlgmr.msra.gmra.mxu1 %vm880_vm7, %v1124_v17 }
 0x828   :  { %7200 = vmatpush3.bf16.msra.mxu1 %v7840_v16  ;;  %7203 = vmatprep.mubr.msk.bf16.mxu1 %vm8787_vm0, %v8786_v1  ;;  %v6568_v16 = vld [vmem:[#allocation7] ss:$0 sm:$0xff] }
 0x829   :  { %7201 = vmatprep.subr.bf16.mxu1 %v8786_v1 }
 0x82c   :  { %7202 = vmatpush3.bf16.msra.mxu1 %v7841_v19 }
 0x82d   :  { %7219 = vmatprep.subr.bf16.mxu1 %v8786_v1 }
 0x82f   :  { %7204 = vmatmul.mubr.msk.bf16.vlgmr.msra.gmra.mxu1 %vm784_vm6, %v998_v45 }
 0x830   :  { %7235 = vmatprep.mubr.msk.bf16.mxu1 %vm8787_vm0, %v8786_v1  ;;  %7220 = vmatpush3.bf16.msra.mxu1 %v7848_v5  ;;  %v7861_v5 = vld [vmem:[%s10059_s22 + $0x64] ss:$8 sps:$4 sm:$0xff]  }
 0x831   :  { %7221 = vmatprep.subr.bf16.mxu1 %v8786_v1 }
 0x834   :  { %7222 = vmatpush3.bf16.msra.mxu1 %v7849_v6  ;;  %v7859_v6 = vld [vmem:[%s10059_s22 + $0x60] ss:$8 sps:$4 sm:$0xff]  }
 0x835   :  { %7223 = vmatprep.subr.bf16.mxu1 %v8786_v1 }
 0x838   :  { %7224 = vmatpush3.bf16.msra.mxu1 %v7850_v7  ;;  %v7864_v7 = vld [vmem:[%s10059_s22 + $0x54] ss:$8 sps:$4 sm:$0xff]  }
 0x839   :  { %7225 = vmatprep.subr.bf16.mxu1 %v8786_v1 }
 0x83c   :  { %7226 = vmatpush3.bf16.msra.mxu1 %v7851_v44  ;;  %v7862_v44 = vld [vmem:[%s10059_s22 + $0x50] ss:$8 sps:$4 sm:$0xff]  }
 0x83d   :  { %7227 = vmatprep.subr.bf16.mxu1 %v8786_v1 }
 0x840   :  { %7228 = vmatpush3.bf16.msra.mxu1 %v7852_v8  ;;  %v7867_v8 = vld [vmem:[%s10059_s22 + $0x44] ss:$8 sps:$4 sm:$0xff]  }
 0x841   :  { %7229 = vmatprep.subr.bf16.mxu1 %v8786_v1 }
 0x8df   :  { %v1168_v23 = vpop.f32.mrf.mxu0 }
 0x8e1   :  { %v7183_v24 = vpop.f32.mrf.mxu0 }
 0x8e3   :  { %v1171_v25 = vpop.f32.mrf.mxu0 }
 0x8e5   :  { %v7184_v26 = vpop.f32.mrf.mxu0 }
 0x8e7   :  { %v1217_v27 = vpop.f32.mrf.mxu1 }
 0x8e8   :  { %v1223_v30 = vpack.c.bf16 %v1217_v27, %v1168_v23  ;;  %v7853_v27 = vld [vmem:[%s10062_s11 + $0x10] sm:$0xff]  }
 0x8e9   :  { %v7189_v31 = vpop.f32.mrf.mxu1  ;;  %7230 = vmatpush3.bf16.msra.mxu1 %v7853_v27 }
 0x8ea   :  { %7196 = vmatmul.mubr.msk.bf16.vlgmr.msra.gmra.mxu0 %vm784_vm6, %v1223_v30  ;;  %7231 = vmatprep.subr.bf16.mxu1 %v8786_v1  ;;  %v7854_v30 = vld [vmem:[%s10062_s11 + $0x8] sm:$0xff]   ;;  %v7855_v31 = vld [vmem:[%s10062_s11] sm:$0xff]  }
 0x8eb   :  { %v1220_v32 = vpop.f32.mrf.mxu1  ;;  %7215 = vmatprep.mubr.msk.bf16.mxu0 %vm8787_vm0, %v8786_v1  ;;  %7208 = vmatpush3.bf16.msra.mxu0 %v7844_v63 }
 0x8ec   :  { %7209 = vmatprep.subr.bf16.mxu0 %v8786_v1  ;;  %v6570_v32 = vld [vmem:[#allocation10] ss:$0 sm:$0xff] }
 0x8ed   :  { %v7190_v34 = vpop.f32.mrf.mxu1  ;;  %7232 = vmatpush3.bf16.msra.mxu1 %v7854_v30  ;;  %v1648_v30 = vld [vmem:[#allocation2 + $0x2] sm:$0x3] }
 0x8ee   :  { %7233 = vmatprep.subr.bf16.mxu1 %v8786_v1 }
 0x8ef   :  { %v1329_v36 = vpop.f32.mrf.mxu1  ;;  %7210 = vmatpush3.bf16.msra.mxu0 %v7845_v2 }
 0x8f0   :  { %7211 = vmatprep.subr.bf16.mxu0 %v8786_v1 }
 0x8f1   :  { %v7205_v37 = vpop.f32.mrf.mxu1  ;;  %7234 = vmatpush3.bf16.msra.mxu1 %v7855_v31  ;;  %v1653_v31 = vrot.slane %v1648_v30, %v9158_v33 }
 0x8f2   :  { %7245 = vmatprep.subr.bf16.mxu1 %v8786_v1 }
 0x8f3   :  { %v1332_v38 = vpop.f32.mrf.mxu1  ;;  %7212 = vmatpush3.bf16.msra.mxu0 %v7846_v3  ;;  %v7858_v3 = vld [vmem:[%s10059_s22 + $0x74] ss:$8 sps:$4 sm:$0xff]  }
 0x8f4   :  { %7213 = vmatprep.subr.bf16.mxu0 %v8786_v1 }
 0x8f5   :  { %v7206_v39 = vpop.f32.mrf.mxu1 }
 0x8f7   :  { %7214 = vmatpush3.bf16.msra.mxu0 %v7847_v4  ;;  %v7856_v4 = vld [vmem:[%s10059_s22 + $0x70] ss:$8 sps:$4 sm:$0xff]  }
 0x8f8   :  { %1711 = vmatprep.subr.bf16.mxu0 %v7858_v3 }
 0x9aa   :  { %v1273_v40 = vpop.f32.mrf.mxu0 }
 0x9ab   :  { %v1330_v42 = vadd.f32 %v1329_v36, %v1273_v40 }
 0x9ac   :  { %v7197_v43 = vpop.f32.mrf.mxu0 }
 0x9ad   :  { %v1343_v45 = vadd.f32 %v6567_v41, %v1330_v42 }
 0x9ae   :  { %v1276_v46 = vpop.f32.mrf.mxu0 }
 0x9af   :  { %v1333_v47 = vadd.f32 %v1332_v38, %v1276_v46  ;;  %v1345_v48 = vadd.f32 %v1343_v45, %v9149_v28  ;;  %v6576_v45 = vld [vmem:[#allocation11] ss:$0 sm:$0xff] }
 0x9b0   :  { %v7198_v49 = vpop.f32.mrf.mxu0 }
 0x9b1   :  { %v1344_v50 = vadd.f32 %v6567_v41, %v1333_v47  ;;  %v1349_v51 = vsel %vm718_vm4, %v1345_v48, 0.0 }
 0x9b2   :  { %1350 = vadd.xlane.f32.xlu1 %v1349_v51 }
 0x9b3   :  { %v1346_v52 = vadd.f32 %v1344_v50, %v9151_v29 }
 0x9b5   :  { %v1352_v53 = vsel %vm718_vm4, %v1346_v52, 0.0 }
 0x9b6   :  { %1353 = vadd.xlane.f32.xlu0 %v1352_v53 }
 0xa3b   :  { %v1351_v54 = vpop.xlane.xlu1 %1350 }
 0xa3c   :  { %v1356_v55 = vmul.f32 0.015625, %v1351_v54 }
 0xa3e   :  { %v1358_v56 = vsub.f32 %v1345_v48, %v1356_v55 }
 0xa3f   :  { %v1354_v58 = vpop.xlane.xlu0 %1353 }
 0xa40   :  { %v1357_v59 = vmul.f32 0.015625, %v1354_v58  ;;  %v1360_v28 = vmul.f32 %v1358_v56, %v1358_v56 }
 0xa42   :  { %v1359_v60 = vsub.f32 %v1346_v52, %v1357_v59  ;;  %v1362_v61 = vsel %vm718_vm4, %v1360_v28, 0.0 }
 0xa43   :  { %1363 = vadd.xlane.f32.xlu1 %v1362_v61 }
 0xa44   :  { %v1361_v62 = vmul.f32 %v1359_v60, %v1359_v60 }
 0xa46   :  { %v1365_v29 = vsel %vm718_vm4, %v1361_v62, 0.0 }
 0xa47   :  { %1366 = vadd.xlane.f32.xlu0 %v1365_v29 }
 0xacc   :  { %v1364_v9 = vpop.xlane.xlu1 %1363 }
 0xacd   :  { %v1368_v10 = vmul.f32 0.015625, %v1364_v9  ;;  %v7865_v9 = vld [vmem:[%s10059_s22 + $0x40] ss:$8 sps:$4 sm:$0xff]  }
 0xacf   :  { %v1370_v11 = vadd.f32 1e-05, %v1368_v10 }
 0xad0   :  { %v1367_v12 = vpop.xlane.xlu0 %1366 }
 0xad1   :  { %7992 = vrsqrt.f32 %v1370_v11  ;;  %v1369_v13 = vmul.f32 0.015625, %v1367_v12 }
 0xad3   :  { %v1371_v14 = vadd.f32 1e-05, %v1369_v13 }
 0xad5   :  { %7994 = vrsqrt.f32 %v1371_v14 }
 0xade   :  { %v7993_v57 = vpop.eup %7992 }
 0xadf   :  { %v1374_v15 = vmul.f32 %v7993_v57, %v1358_v56 }
 0xae1   :  { %v1382_v21 = vmul.f32 %v6568_v16, %v1374_v15 }
 0xae2   :  { %v7995_v17 = vpop.eup %7994 }
 0xae3   :  { %v1375_v19 = vmul.f32 %v7995_v17, %v1359_v60  ;;  %v1390_v24 = vadd.f32 %v6569_v22, %v1382_v21  ;;  %v6585_v17 = vld [vmem:[#allocation13] ss:$0 sm:$0xff] }
 0xae5   :  { %v1383_v23 = vmul.f32 %v6568_v16, %v1375_v19 }
 0xae7   :  { %v1391_v25 = vadd.f32 %v6569_v22, %v1383_v23  ;;  %v6586_v23 = vld [vmem:[#allocation14] ss:$0 sm:$0xff] }
 0xae9   :  { %v1400_v26 = vpack.c.bf16 %v1391_v25, %v1390_v24 }
 0xaeb   :  { %7216 = vmatmul.mubr.msk.bf16.vlgmr.msra.gmra.mxu0 %vm718_vm4, %v1400_v26 }
 0xaec   :  { %1735 = vmatprep.mubr.bf16.mxu0 %v8785_v0  ;;  %1712 = vmatpush1.bf16.msra.mxu0 %v7856_v4 }
 0xaed   :  { %1713 = vmatprep.subr.bf16.mxu0 %v7861_v5 }
 0xaf0   :  { %1714 = vmatpush1.bf16.msra.mxu0 %v7859_v6 }
 0xaf1   :  { %1715 = vmatprep.subr.bf16.mxu0 %v7864_v7 }
 0xaf4   :  { %1716 = vmatpush1.bf16.msra.mxu0 %v7862_v44 }
 0xaf5   :  { %1717 = vmatprep.subr.bf16.mxu0 %v7867_v8 }
 0xaf8   :  { %1718 = vmatpush1.bf16.msra.mxu0 %v7865_v9 }
 0xaf9   :  { %7239 = vmatprep.subr.bf16.mxu0 %v8786_v1 }
 0xbab   :  { %v1469_v34 = vpop.f32.mrf.mxu0 }
 0xbac   :  { %v1470_v37 = vadd.f32 %v6570_v32, %v1469_v34 }
 0xbad   :  { %v7217_v36 = vpop.f32.mrf.mxu0 }
 0xbae   :  { %v1476_v41 = vmax.f32 %v1470_v37, 0.0 }
 0xbaf   :  { %v1472_v38 = vpop.f32.mrf.mxu0 }
 0xbb0   :  { %v1473_v39 = vadd.f32 %v6570_v32, %v1472_v38 }
 0xbb1   :  { %v7218_v40 = vpop.f32.mrf.mxu0 }
 0xbb2   :  { %v1477_v42 = vmax.f32 %v1473_v39, 0.0 }
 0xbb4   :  { %v1494_v43 = vpack.c.bf16 %v1477_v42, %v1476_v41  ;;  %v1657_v41 = vrot.slane %v1648_v30, %v9160_v35 }
 0xbb6   :  { %7236 = vmatmul.mubr.bf16.vlgmr.msra.gmra.mxu1 %v1494_v43 }
 0xbb7   :  { %7247 = vmatprep.mubr.msk.bf16.mxu1 %vm8787_vm0, %v8786_v1 }
 0xc76   :  { %v1584_v46 = vpop.f32.mrf.mxu1 }
 0xc77   :  { %v1585_v47 = vadd.f32 %v6576_v45, %v1584_v46 }
 0xc78   :  { %v7237_v48 = vpop.f32.mrf.mxu1 }
 0xc79   :  { %v1591_v49 = vadd.f32 %v1585_v47, %v1390_v24 }
 0xc7a   :  { %v1587_v50 = vpop.f32.mrf.mxu1 }
 0xc7b   :  { %v1588_v51 = vadd.f32 %v6576_v45, %v1587_v50  ;;  %v1595_v52 = vsel %vm718_vm4, %v1591_v49, 0.0 }
 0xc7c   :  { %1596 = vadd.xlane.f32.xlu1 %v1595_v52  ;;  %v7238_v53 = vpop.f32.mrf.mxu1 }
 0xc7d   :  { %v1592_v54 = vadd.f32 %v1588_v51, %v1391_v25 }
 0xc7f   :  { %v1598_v55 = vsel %vm718_vm4, %v1592_v54, 0.0 }
 0xc80   :  { %1599 = vadd.xlane.f32.xlu0 %v1598_v55 }
 0xd05   :  { %v1597_v56 = vpop.xlane.xlu1 %1596 }
 0xd06   :  { %v1601_v58 = vmul.f32 0.015625, %v1597_v56 }
 0xd08   :  { %v1603_v59 = vsub.f32 %v1591_v49, %v1601_v58 }
 0xd09   :  { %v1600_v28 = vpop.xlane.xlu0 %1599 }
 0xd0a   :  { %v1602_v60 = vmul.f32 0.015625, %v1600_v28  ;;  %v1605_v61 = vmul.f32 %v1603_v59, %v1603_v59 }
 0xd0c   :  { %v1604_v62 = vsub.f32 %v1592_v54, %v1602_v60  ;;  %v1607_v29 = vsel %vm718_vm4, %v1605_v61, 0.0 }
 0xd0d   :  { %1608 = vadd.xlane.f32.xlu1 %v1607_v29 }
 0xd0e   :  { %v1606_v63 = vmul.f32 %v1604_v62, %v1604_v62 }
 0xd10   :  { %v1610_v2 = vsel %vm718_vm4, %v1606_v63, 0.0 }
 0xd11   :  { %1611 = vadd.xlane.f32.xlu0 %v1610_v2 }
 0xd96   :  { %v1609_v10 = vpop.xlane.xlu1 %1608 }
 0xd97   :  { %v1613_v11 = vmul.f32 0.015625, %v1609_v10 }
 0xd99   :  { %v1615_v12 = vadd.f32 1e-05, %v1613_v11 }
 0xd9a   :  { %v1612_v13 = vpop.xlane.xlu0 %1611 }
 0xd9b   :  { %7996 = vrsqrt.f32 %v1615_v12  ;;  %v1614_v14 = vmul.f32 0.015625, %v1612_v13 }
 0xd9d   :  { %v1616_v57 = vadd.f32 1e-05, %v1614_v14 }
 0xd9f   :  { %7998 = vrsqrt.f32 %v1616_v57 }
 0xda8   :  { %v7997_v15 = vpop.eup %7996 }
 0xda9   :  { %v1619_v16 = vmul.f32 %v7997_v15, %v1603_v59 }
 0xdab   :  { %v1627_v22 = vmul.f32 %v6585_v17, %v1619_v16 }
 0xdac   :  { %v7999_v19 = vpop.eup %7998 }
 0xdad   :  { %v1620_v21 = vmul.f32 %v7999_v19, %v1604_v62  ;;  %v9291_v25 = vadd.f32 %v6586_v23, %v1627_v22 }
 0xdaf   :  { %v1628_v24 = vmul.f32 %v6585_v17, %v1620_v21 }
 0xdb1   :  { %v9293_v26 = vadd.f32 %v6586_v23, %v1628_v24 }
 0xdb3   :  { %v1646_v27 = vpack.c.bf16 %v9293_v26, %v9291_v25 }
 0xdb5   :  { %6603 = vmatmul.mubr.msk.bf16.vlgmr.msra.gmra.mxu0 %vm718_vm4, %v1646_v27 }
 0xdb6   :  { %7241 = vmatprep.mubr.msk.bf16.mxu0 %vm8787_vm0, %v8786_v1 }
 0xe75   :  { %v1737_v32 = vpop.f32.mrf.mxu0 }
 0xe76   :  { %v1738_v34 = vadd.f32 %v1737_v32, %v1653_v31 }
 0xe77   :  { %v1739_v36 = vpop.f32.mrf.mxu0 }
 0xe78   :  { %v1759_v37 = vpack.c.bf16 %v1738_v34, %v1738_v34  ;;  %v1740_v43 = vadd.f32 %v1739_v36, %v1657_v41  ;;  %v1755_v47 = vmul.f32 0.17677669, %v1738_v34 }
 0xe79   :  { %v1741_v38 = vpop.f32.mrf.mxu0 }
 0xe7a   :  { %v1742_v39 = vadd.f32 %v1741_v38, %v1653_v31  ;;  %1764 = vrot.lane.b32.xlu1 %v1759_v37, %s8778_s25  ;;  %v9306_v49 = vpack.c.bf16 %v1740_v43, %v1740_v43  ;;  %v1757_v52 = vpack.c.bf16 %v1755_v47, %v1755_v47 }
 0xe7b   :  { %v1743_v46 = vpop.f32.mrf.mxu0 }
 0xe7c   :  { %v1760_v40 = vpack.c.bf16 %v1742_v39, %v1742_v39  ;;  %v1744_v50 = vadd.f32 %v1743_v46, %v1657_v41  ;;  %v1756_v53 = vmul.f32 0.17677669, %v1742_v39  ;;  %v1889_v54 = vsel %vm908_vm5, %v9306_v49, 0 }
 0xe7e   :  { %1813 = vrot.lane.b32.xlu0 %v1760_v40, %s8778_s25  ;;  %v9312_v55 = vpack.c.bf16 %v1744_v50, %v1744_v50  ;;  %v1758_v56 = vpack.c.bf16 %v1756_v53, %v1756_v53 }
 0xe80   :  { %v1935_v58 = vsel %vm908_vm5, %v9312_v55, 0 }
 0xeec   :  { %v1765_v42 = vpop.permute.xlu1 %1764 }
 0xeed   :  { %v1770_v45 = vsel %vm784_vm6, %v1765_v42, 0 }
 0xeee   :  { %7240 = vmatpush3.bf16.xpose.msra.mxu0 %v1770_v45 }
 0xeef   :  { %7251 = vmatprep.subr.bf16.mxu0 %v8786_v1 }
 0xef0   :  { %v1814_v48 = vpop.permute.xlu0 %1813 }
 0xef1   :  { %v1819_v51 = vsel %vm784_vm6, %v1814_v48, 0 }
 0xef2   :  { %7246 = vmatpush3.bf16.xpose.msra.mxu1 %v1819_v51 }
 0xef3   :  { %7257 = vmatprep.subr.bf16.mxu1 %v8786_v1 }
 0xef5   :  { %7242 = vmatmul.mubr.msk.bf16.vlgmr.msra.gmra.mxu0 %vm784_vm6, %v1757_v52 }
 0xef6   :  { %7252 = vmatpush3.bf16.msra.mxu0 %v1889_v54  ;;  %7253 = vmatprep.mubr.msk.bf16.mxu0 %vm8787_vm0, %v8786_v1 }
 0xef7   :  { %7263 = vmatprep.subr.bf16.mxu0 %v8786_v1 }
 0xef9   :  { %7248 = vmatmul.mubr.msk.bf16.vlgmr.msra.gmra.mxu1 %vm784_vm6, %v1758_v56 }
 0xefa   :  { %7258 = vmatpush3.bf16.msra.mxu1 %v1935_v58  ;;  %7259 = vmatprep.mubr.msk.bf16.mxu1 %vm8787_vm0, %v8786_v1 }
 0xefb   :  { %7269 = vmatprep.subr.bf16.mxu1 %v8786_v1 }
 0xfb5   :  { %v1806_v59 = vpop.f32.mrf.mxu0 }
 0xfb6   :  { %v1861_v28 = vsel %vm880_vm7, %v1806_v59, -inf }
 0xfb7   :  { %1862 = vmax.xlane.f32.xlu1 %v1861_v28  ;;  %v7243_v60 = vpop.f32.mrf.mxu0 }
 0xfb9   :  { %v1809_v61 = vpop.f32.mrf.mxu0  ;;  %v1855_v62 = vpop.f32.mrf.mxu1 }
 0xfba   :  { %v1864_v29 = vsel %vm880_vm7, %v1855_v62, -inf }
 0xfbb   :  { %1865 = vmax.xlane.f32.xlu0 %v1864_v29  ;;  %v7244_v63 = vpop.f32.mrf.mxu0  ;;  %v7249_v2 = vpop.f32.mrf.mxu1 }
 0xfbd   :  { %v1858_v3 = vpop.f32.mrf.mxu1 }
 0xfbf   :  { %v7250_v4 = vpop.f32.mrf.mxu1 }
 0xfc8   :  { %1981 = vrot.lane.b32.xlu1 %v1759_v37, %s8768_s9 }
0x1040   :  { %v1863_v5 = vpop.xlane.xlu1 %1862 }
0x1041   :  { %v1867_v6 = vsub.f32 %v1806_v59, %v1863_v5 }
0x1043   :  { %v1869_v7 = vmul.f32 1.442695, %v1867_v6 }
0x1044   :  { %v1866_v44 = vpop.xlane.xlu0 %1865  ;;  %v1982_v14 = vpop.permute.xlu1 %1981 }
0x1045   :  { %8000 = vpow2.f32 %v1869_v7  ;;  %v1868_v8 = vsub.f32 %v1855_v62, %v1866_v44  ;;  %v1987_v22 = vsel %vm784_vm6, %v1982_v14, 0  ;;  %v7869_v14 = vld [vmem:[%s10060_s19 + $0x20] sm:$0xff]  }
0x1047   :  { %v1871_v9 = vmul.f32 1.442695, %v1868_v8 }
0x1049   :  { %8002 = vpow2.f32 %v1871_v9 }
0x1052   :  { %v8001_v10 = vpop.eup %8000 }
0x1053   :  { %v1873_v11 = vsel %vm880_vm7, %v8001_v10, 0.0 }
0x1054   :  { %1874 = vadd.xlane.f32.xlu1 %v1873_v11 }
0x1056   :  { %v8003_v12 = vpop.eup %8002 }
0x1057   :  { %v1876_v13 = vsel %vm880_vm7, %v8003_v12, 0.0 }
0x1058   :  { %1877 = vadd.xlane.f32.xlu0 %v1876_v13 }
0x1065   :  { %1979 = vrot.lane.b32.xlu1 %v1757_v52, %s8789_s4 }
0x1069   :  { %2030 = vrot.lane.b32.xlu1 %v1758_v56, %s8789_s4 }
0x106e   :  { %2032 = vrot.lane.b32.xlu0 %v1760_v40, %s8768_s9 }
0x10dd   :  { %v1875_v57 = vpop.xlane.xlu1 %1874 }
0x10de   :  { %8004 = vrcp.f32 %v1875_v57  ;;  %v7870_v57 = vld [vmem:[%s10060_s19 + $0x38] sm:$0xff]  }
0x10e1   :  { %v1878_v15 = vpop.xlane.xlu0 %1877  ;;  %v1980_v31 = vpop.permute.xlu1 %1979 }
0x10e2   :  { %8006 = vrcp.f32 %v1878_v15  ;;  %v7871_v15 = vld [vmem:[%s10060_s19 + $0x30] sm:$0xff]  }
0x10e5   :  { %v2033_v24 = vpop.permute.xlu0 %2032  ;;  %v2031_v32 = vpop.permute.xlu1 %2030 }
0x10e6   :  { %v2038_v30 = vsel %vm784_vm6, %v2033_v24, 0 }
0x10eb   :  { %v8005_v16 = vpop.eup %8004 }
0x10ec   :  { %v1881_v17 = vmul.f32 %v8005_v16, %v8001_v10 }
0x10ee   :  { %v1883_v19 = vpack.c.bf16 %v1881_v17, %v1881_v17 }
0x10ef   :  { %v8007_v21 = vpop.eup %8006 }
0x10f0   :  { %7254 = vmatmul.mubr.msk.bf16.vlgmr.msra.gmra.mxu0 %vm880_vm7, %v1883_v19  ;;  %v1882_v23 = vmul.f32 %v8007_v21, %v8003_v12 }
0x10f1   :  { %7264 = vmatpush3.bf16.xpose.msra.mxu0 %v1987_v22  ;;  %7265 = vmatprep.mubr.msk.bf16.mxu0 %vm8787_vm0, %v8786_v1 }
0x10f2   :  { %v1884_v27 = vpack.c.bf16 %v1882_v23, %v1882_v23  ;;  %7275 = vmatprep.subr.bf16.mxu0 %v8786_v1 }
0x10f4   :  { %7260 = vmatmul.mubr.msk.bf16.vlgmr.msra.gmra.mxu1 %vm880_vm7, %v1884_v27 }
0x10f5   :  { %7270 = vmatpush3.bf16.xpose.msra.mxu1 %v2038_v30  ;;  %7271 = vmatprep.mubr.msk.bf16.mxu1 %vm8787_vm0, %v8786_v1 }
0x10f6   :  { %7281 = vmatprep.subr.bf16.mxu1 %v8786_v1 }
0x10f8   :  { %7266 = vmatmul.mubr.msk.bf16.vlgmr.msra.gmra.mxu0 %vm784_vm6, %v1980_v31 }
0x10f9   :  { %7277 = vmatprep.mubr.msk.bf16.mxu0 %vm8787_vm0, %v8786_v1 }
0x10fc   :  { %7272 = vmatmul.mubr.msk.bf16.vlgmr.msra.gmra.mxu1 %vm784_vm6, %v2031_v32 }
0x10fd   :  { %7283 = vmatprep.mubr.msk.bf16.mxu1 %vm8787_vm0, %v8786_v1 }
0x11b0   :  { %v9348_v34 = vpop.f32.mrf.mxu0 }
0x11b2   :  { %v7255_v36 = vpop.f32.mrf.mxu0 }
0x11b4   :  { %v1928_v37 = vpop.f32.mrf.mxu0  ;;  %v9350_v38 = vpop.f32.mrf.mxu1 }
0x11b5   :  { %v1977_v39 = vpack.c.bf16 %v9350_v38, %v9348_v34  ;;  %v6626_v38 = vld [vmem:[#allocation5 + $0x1] ss:$0 sm:$0xff] }
0x11b6   :  { %v7256_v40 = vpop.f32.mrf.mxu0  ;;  %v7261_v41 = vpop.f32.mrf.mxu1 }
0x11b8   :  { %v1974_v42 = vpop.f32.mrf.mxu1  ;;  %v2023_v43 = vpop.f32.mrf.mxu0 }
0x11b9   :  { %v2080_v45 = vsel %vm880_vm7, %v2023_v43, -inf }
0x11ba   :  { %v7262_v46 = vpop.f32.mrf.mxu1  ;;  %2081 = vmax.xlane.f32.xlu0 %v2080_v45  ;;  %v7267_v47 = vpop.f32.mrf.mxu0 }
0x11bc   :  { %v2026_v48 = vpop.f32.mrf.mxu0  ;;  %v2074_v50 = vpop.f32.mrf.mxu1 }
0x11bd   :  { %v2083_v51 = vsel %vm880_vm7, %v2074_v50, -inf }
0x11be   :  { %2084 = vmax.xlane.f32.xlu1 %v2083_v51  ;;  %v7268_v52 = vpop.f32.mrf.mxu0  ;;  %v7273_v53 = vpop.f32.mrf.mxu1 }
0x11c0   :  { %v2077_v54 = vpop.f32.mrf.mxu1 }
0x11c2   :  { %v7274_v56 = vpop.f32.mrf.mxu1 }
0x11cf   :  { %2105 = vrot.lane.b32.xlu1 %v9306_v49, %s8789_s4 }
0x1243   :  { %v2082_v58 = vpop.xlane.xlu0 %2081 }
0x1244   :  { %v2086_v59 = vsub.f32 %v2023_v43, %v2082_v58 }
0x1246   :  { %v2088_v28 = vmul.f32 1.442695, %v2086_v59 }
0x1247   :  { %v2085_v60 = vpop.xlane.xlu1 %2084 }
0x1248   :  { %8008 = vpow2.f32 %v2088_v28  ;;  %v2087_v61 = vsub.f32 %v2074_v50, %v2085_v60 }
0x124a   :  { %v2090_v62 = vmul.f32 1.442695, %v2087_v61  ;;  %v2668_v61 = vld [vmem:[%s10063_s15] sm:$0xff] }
0x124b   :  { %v2106_v29 = vpop.permute.xlu1 %2105 }
0x124c   :  { %8010 = vpow2.f32 %v2090_v62  ;;  %v2111_v63 = vsel %vm908_vm5, %v2106_v29, 0  ;;  %v2669_v62 = vld [vmem:[%s10063_s15 + $0x8] sm:$0xff]  ;;  %v7872_v29 = vld [vmem:[%s10061_s29 + $0x38] sm:$0xff]  }
0x124d   :  { %7276 = vmatpush3.bf16.msra.mxu0 %v2111_v63  ;;  %v7873_v63 = vld [vmem:[%s10061_s29 + $0x30] sm:$0xff]  }
0x124e   :  { %7287 = vmatprep.subr.bf16.mxu0 %v8786_v1 }
0x1255   :  { %v8009_v2 = vpop.eup %8008 }
0x1256   :  { %v2092_v3 = vsel %vm880_vm7, %v8009_v2, 0.0 }
0x1257   :  { %2093 = vadd.xlane.f32.xlu0 %v2092_v3  ;;  %v7875_v3 = vld [vmem:[%s10061_s29 + $0x20] sm:$0xff]  }
0x1259   :  { %v8011_v4 = vpop.eup %8010 }
0x125a   :  { %v2095_v49 = vsel %vm880_vm7, %v8011_v4, 0.0 }
0x125b   :  { %2096 = vadd.xlane.f32.xlu0 %v2095_v49  ;;  %v7885_v49 = vld [vmem:[%s10062_s11 + $0x70] sm:$0xff]  }
0x1271   :  { %2154 = vrot.lane.b32.xlu0 %v9312_v55, %s8789_s4  ;;  %v7868_v55 = vld [vmem:[%s10060_s19 + $0x28] sm:$0xff]  }
0x12e0   :  { %v2094_v5 = vpop.xlane.xlu0 %2093 }
0x12e1   :  { %8012 = vrcp.f32 %v2094_v5  ;;  %v7886_v5 = vld [vmem:[%s10062_s11 + $0x68] sm:$0xff]  }
0x12e4   :  { %v2097_v6 = vpop.xlane.xlu0 %2096 }
0x12e5   :  { %8014 = vrcp.f32 %v2097_v6  ;;  %v7887_v6 = vld [vmem:[%s10062_s11 + $0x60] sm:$0xff]  }
0x12e8   :  { %v2155_v7 = vpop.permute.xlu0 %2154 }
0x12e9   :  { %v2160_v44 = vsel %vm908_vm5, %v2155_v7, 0  ;;  %v7888_v7 = vld [vmem:[%s10062_s11 + $0x58] sm:$0xff]  }
0x12ea   :  { %7282 = vmatpush3.bf16.msra.mxu1 %v2160_v44 }
0x12eb   :  { %7295 = vmatprep.subr.bf16.mxu1 %v8786_v1 }
0x12ee   :  { %v8013_v8 = vpop.eup %8012 }
0x12ef   :  { %v2100_v9 = vmul.f32 %v8013_v8, %v8009_v2  ;;  %v7874_v2 = vld [vmem:[%s10061_s29 + $0x28] sm:$0xff]  }
0x12f1   :  { %v2102_v10 = vpack.c.bf16 %v2100_v9, %v2100_v9 }
0x12f2   :  { %v8015_v11 = vpop.eup %8014 }
0x12f3   :  { %7278 = vmatmul.mubr.msk.bf16.vlgmr.msra.gmra.mxu0 %vm880_vm7, %v2102_v10  ;;  %v2101_v12 = vmul.f32 %v8015_v11, %v8011_v4  ;;  %v7884_v4 = vld [vmem:[%s10062_s11 + $0x78] sm:$0xff]  }
0x12f4   :  { %7291 = vmatprep.mubr.msk.bf16.mxu0 %vm8787_vm0, %v8786_v1  ;;  %7288 = vmatpush3.bf16.msra.mxu0 %v7870_v57 }
0x12f5   :  { %v2103_v13 = vpack.c.bf16 %v2101_v12, %v2101_v12  ;;  %7289 = vmatprep.subr.bf16.mxu0 %v8786_v1 }
0x12f7   :  { %7284 = vmatmul.mubr.msk.bf16.vlgmr.msra.gmra.mxu1 %vm880_vm7, %v2103_v13 }
0x12f8   :  { %7296 = vmatpush3.bf16.msra.mxu1 %v7868_v55  ;;  %7299 = vmatprep.mubr.msk.bf16.mxu1 %vm8787_vm0, %v8786_v1 }
0x12f9   :  { %7297 = vmatprep.subr.bf16.mxu1 %v8786_v1  ;;  %7290 = vmatpush3.bf16.msra.mxu0 %v7871_v15 }
0x12fa   :  { %7303 = vmatprep.subr.bf16.mxu0 %v8786_v1 }
0x12fc   :  { %7298 = vmatpush3.bf16.msra.mxu1 %v7869_v14  ;;  %v6627_v14 = vld [vmem:[#allocation7 + $0x1] ss:$0 sm:$0xff] }
0x12fd   :  { %7315 = vmatprep.subr.bf16.mxu1 %v8786_v1 }
0x12ff   :  { %7300 = vmatmul.mubr.msk.bf16.vlgmr.msra.gmra.mxu1 %vm784_vm6, %v1977_v39 }
0x1300   :  { %7331 = vmatprep.mubr.msk.bf16.mxu1 %vm8787_vm0, %v8786_v1  ;;  %7316 = vmatpush3.bf16.msra.mxu1 %v7884_v4 }
0x1301   :  { %7317 = vmatprep.subr.bf16.mxu1 %v8786_v1 }
0x1304   :  { %7318 = vmatpush3.bf16.msra.mxu1 %v7885_v49 }
0x1305   :  { %7319 = vmatprep.subr.bf16.mxu1 %v8786_v1 }
0x1308   :  { %7320 = vmatpush3.bf16.msra.mxu1 %v7886_v5  ;;  %v9468_v5 = vld [vmem:[#allocation11 + $0x1] ss:$0 sm:$0xff] }
0x1309   :  { %7321 = vmatprep.subr.bf16.mxu1 %v8786_v1 }
0x130c   :  { %7322 = vmatpush3.bf16.msra.mxu1 %v7887_v6 }
0x130d   :  { %7323 = vmatprep.subr.bf16.mxu1 %v8786_v1 }
0x1310   :  { %7324 = vmatpush3.bf16.msra.mxu1 %v7888_v7 }
0x1311   :  { %7325 = vmatprep.subr.bf16.mxu1 %v8786_v1 }
0x13b3   :  { %v2147_v16 = vpop.f32.mrf.mxu0 }
0x13b5   :  { %v7279_v17 = vpop.f32.mrf.mxu0 }
0x13b6   :  { %v6628_v17 = vld [vmem:[#allocation8 + $0x1] ss:$0 sm:$0xff] }
0x13b7   :  { %v2150_v19 = vpop.f32.mrf.mxu0  ;;  %v2196_v21 = vpop.f32.mrf.mxu1 }
0x13b8   :  { %v2202_v22 = vpack.c.bf16 %v2196_v21, %v2147_v16 }
0x13b9   :  { %v7280_v23 = vpop.f32.mrf.mxu0  ;;  %v7285_v24 = vpop.f32.mrf.mxu1 }
0x13ba   :  { %7292 = vmatmul.mubr.msk.bf16.vlgmr.msra.gmra.mxu0 %vm784_vm6, %v2202_v22  ;;  %v7876_v23 = vld [vmem:[%s10064_s16 + $0x38] sm:$0xff]  }
0x13bb   :  { %v2199_v27 = vpop.f32.mrf.mxu1  ;;  %7311 = vmatprep.mubr.msk.bf16.mxu0 %vm8787_vm0, %v8786_v1  ;;  %7304 = vmatpush3.bf16.msra.mxu0 %v7872_v29 }
0x13bc   :  { %7305 = vmatprep.subr.bf16.mxu0 %v8786_v1  ;;  %v7877_v27 = vld [vmem:[%s10064_s16 + $0x30] sm:$0xff]  }
0x13bd   :  { %v7286_v30 = vpop.f32.mrf.mxu1 }
0x13be   :  { %v7878_v30 = vld [vmem:[%s10064_s16 + $0x28] sm:$0xff]  }
0x13bf   :  { %v2308_v31 = vpop.f32.mrf.mxu1  ;;  %7306 = vmatpush3.bf16.msra.mxu0 %v7873_v63 }
0x13c0   :  { %7307 = vmatprep.subr.bf16.mxu0 %v8786_v1 }
0x13c1   :  { %v7301_v32 = vpop.f32.mrf.mxu1 }
0x13c2   :  { %v7880_v32 = vld [vmem:[%s10064_s16 + $0x18] sm:$0xff]  }
0x13c3   :  { %v2311_v34 = vpop.f32.mrf.mxu1  ;;  %7308 = vmatpush3.bf16.msra.mxu0 %v7874_v2 }
0x13c4   :  { %7309 = vmatprep.subr.bf16.mxu0 %v8786_v1 }
0x13c5   :  { %v7302_v36 = vpop.f32.mrf.mxu1 }
0x13c6   :  { %v7882_v36 = vld [vmem:[%s10064_s16 + $0x8] sm:$0xff]  }
0x13c7   :  { %7310 = vmatpush3.bf16.msra.mxu0 %v7875_v3 }
0x13c8   :  { %7335 = vmatprep.subr.bf16.mxu0 %v8786_v1 }
0x147a   :  { %v2252_v37 = vpop.f32.mrf.mxu0 }
0x147b   :  { %v2309_v39 = vadd.f32 %v2308_v31, %v2252_v37  ;;  %v7879_v31 = vld [vmem:[%s10064_s16 + $0x20] sm:$0xff]  }
0x147c   :  { %v7293_v40 = vpop.f32.mrf.mxu0 }
0x147d   :  { %v2323_v41 = vadd.f32 %v6626_v38, %v2309_v39  ;;  %v7883_v39 = vld [vmem:[%s10064_s16] sm:$0xff]   ;;  %v7889_v40 = vld [vmem:[%s10062_s11 + $0x50] sm:$0xff]  }
0x147e   :  { %v2255_v42 = vpop.f32.mrf.mxu0  ;;  %7326 = vmatpush3.bf16.msra.mxu1 %v7889_v40 }
0x147f   :  { %v2312_v43 = vadd.f32 %v2311_v34, %v2255_v42  ;;  %v2325_v45 = vadd.f32 %v2323_v41, %v9291_v25  ;;  %v7881_v34 = vld [vmem:[%s10064_s16 + $0x10] sm:$0xff]   ;;  %7327 = vmatprep.subr.bf16.mxu1 %v8786_v1  ;;  %v7890_v41 = vld [vmem:[%s10062_s11 + $0x48] sm:$0xff]  }
0x1480   :  { %v7294_v46 = vpop.f32.mrf.mxu0  ;;  %v7894_v42 = vld [vmem:[%s10065_s14 + $0x34] ss:$8 sps:$4 sm:$0xff]  }
0x1481   :  { %v2324_v47 = vadd.f32 %v6626_v38, %v2312_v43  ;;  %v2331_v48 = vsel %vm718_vm4, %v2325_v45, 0.0  ;;  %v6637_v43 = vld [vmem:[#allocation10 + $0x1] ss:$0 sm:$0xff] }
0x1482   :  { %2332 = vadd.xlane.f32.xlu1 %v2331_v48  ;;  %7328 = vmatpush3.bf16.msra.mxu1 %v7890_v41 }
0x1483   :  { %v2326_v50 = vadd.f32 %v2324_v47, %v9293_v26  ;;  %7329 = vmatprep.subr.bf16.mxu1 %v8786_v1 }
0x1485   :  { %v2334_v51 = vsel %vm718_vm4, %v2326_v50, 0.0 }
0x1486   :  { %2335 = vadd.xlane.f32.xlu0 %v2334_v51 }
0x150b   :  { %v2333_v52 = vpop.xlane.xlu1 %2332 }
0x150c   :  { %v2337_v53 = vmul.f32 0.015625, %v2333_v52 }
0x150e   :  { %v2339_v54 = vsub.f32 %v2325_v45, %v2337_v53  ;;  %v7892_v53 = vld [vmem:[%s10065_s14 + $0x30] ss:$8 sps:$4 sm:$0xff]  }
0x150f   :  { %v2336_v56 = vpop.xlane.xlu0 %2335 }
0x1510   :  { %v2338_v58 = vmul.f32 0.015625, %v2336_v56  ;;  %v2341_v25 = vmul.f32 %v2339_v54, %v2339_v54  ;;  %v7897_v56 = vld [vmem:[%s10065_s14 + $0x24] ss:$8 sps:$4 sm:$0xff]  }
0x1512   :  { %v2340_v59 = vsub.f32 %v2326_v50, %v2338_v58  ;;  %v2343_v28 = vsel %vm718_vm4, %v2341_v25, 0.0  ;;  %v7895_v58 = vld [vmem:[%s10065_s14 + $0x20] ss:$8 sps:$4 sm:$0xff]   ;;  %v7900_v25 = vld [vmem:[%s10065_s14 + $0x14] ss:$8 sps:$4 sm:$0xff]  }
0x1513   :  { %2344 = vadd.xlane.f32.xlu1 %v2343_v28  ;;  %v7903_v28 = vld [vmem:[%s10065_s14 + $0x4] ss:$8 sps:$4 sm:$0xff]  }
0x1514   :  { %v2342_v60 = vmul.f32 %v2340_v59, %v2340_v59 }
0x1516   :  { %v2346_v26 = vsel %vm718_vm4, %v2342_v60, 0.0  ;;  %v7901_v60 = vld [vmem:[%s10065_s14] ss:$8 sps:$4 sm:$0xff]  }
0x1517   :  { %2347 = vadd.xlane.f32.xlu0 %v2346_v26 }
0x1524   :  { %2687 = vperm.xlu1 %7819, %v2668_v61  }
0x152d   :  { %2690 = vperm.xlu0 %7818, %v2669_v62  }
0x159c   :  { %v2345_v44 = vpop.xlane.xlu1 %2344 }
0x159d   :  { %v2349_v8 = vmul.f32 0.015625, %v2345_v44 }
0x159f   :  { %v2351_v9 = vadd.f32 1e-05, %v2349_v8  ;;  %v2799_v8 = vld [vmem:[#allocation19] sm:$0x3] }
0x15a0   :  { %v2348_v10 = vpop.xlane.xlu0 %2347  ;;  %v2688_v37 = vpop.permute.xlu1 %2687 }
0x15a1   :  { %8016 = vrsqrt.f32 %v2351_v9  ;;  %v2350_v11 = vmul.f32 0.015625, %v2348_v10  ;;  %vm2692_vm8 = vcmp.eq.s32.totalorder %v9137_v18, %v2688_v37  ;;  %v2804_v9 = vrot.slane %v2799_v8, %v9158_v33 }
0x15a2   :  { %v2808_v10 = vrot.slane %v2799_v8, %v9160_v35 }
0x15a3   :  { %v2352_v12 = vadd.f32 1e-05, %v2350_v11 }
0x15a5   :  { %8018 = vrsqrt.f32 %v2352_v12 }
0x15a8   :  { %v2691_v38 = vpop.permute.xlu0 %2690 }
0x15a9   :  { %vm2693_vm9 = vcmp.eq.s32.totalorder %v9137_v18, %v2691_v38  ;;  %v7891_v18 = vld [vmem:[%s10062_s11 + $0x40] sm:$0xff]  }
0x15aa   :  { %vm6682_vm10 = vmpackc.low %vm2693_vm9, %vm2692_vm8  ;;  %7330 = vmatpush3.bf16.msra.mxu1 %v7891_v18 }
0x15ab   :  { %2862 = vmatprep.subr.bf16.mxu1 %v7894_v42 }
0x15ae   :  { %v8017_v55 = vpop.eup %8016 }
0x15af   :  { %v2355_v13 = vmul.f32 %v8017_v55, %v2339_v54 }
0x15b1   :  { %v2363_v16 = vmul.f32 %v6627_v14, %v2355_v13 }
0x15b2   :  { %v8019_v57 = vpop.eup %8018 }
0x15b3   :  { %v2356_v15 = vmul.f32 %v8019_v57, %v2340_v59  ;;  %v9412_v21 = vadd.f32 %v6628_v17, %v2363_v16  ;;  %v7898_v59 = vld [vmem:[%s10065_s14 + $0x10] ss:$8 sps:$4 sm:$0xff]  }
0x15b5   :  { %v2364_v19 = vmul.f32 %v6627_v14, %v2356_v15 }
0x15b7   :  { %v9414_v22 = vadd.f32 %v6628_v17, %v2364_v19 }
0x15b9   :  { %v2382_v24 = vpack.c.bf16 %v9414_v22, %v9412_v21 }
0x15bb   :  { %7312 = vmatmul.mubr.msk.bf16.vlgmr.msra.gmra.mxu0 %vm718_vm4, %v2382_v24 }
0x15bc   :  { %7336 = vmatpush3.bf16.msra.mxu0 %v7876_v23  ;;  %7351 = vmatprep.mubr.msk.bf16.mxu0 %vm8787_vm0, %v8786_v1 }
0x15bd   :  { %7337 = vmatprep.subr.bf16.mxu0 %v8786_v1 }
0x15c0   :  { %7338 = vmatpush3.bf16.msra.mxu0 %v7877_v27 }
0x15c1   :  { %7339 = vmatprep.subr.bf16.mxu0 %v8786_v1 }
0x15c4   :  { %7340 = vmatpush3.bf16.msra.mxu0 %v7878_v30 }
0x15c5   :  { %7341 = vmatprep.subr.bf16.mxu0 %v8786_v1 }
0x15c8   :  { %7342 = vmatpush3.bf16.msra.mxu0 %v7879_v31 }
0x15c9   :  { %7343 = vmatprep.subr.bf16.mxu0 %v8786_v1 }
0x15cc   :  { %7344 = vmatpush3.bf16.msra.mxu0 %v7880_v32 }
0x15cd   :  { %7345 = vmatprep.subr.bf16.mxu0 %v8786_v1 }
0x15d0   :  { %7346 = vmatpush3.bf16.msra.mxu0 %v7881_v34 }
0x15d1   :  { %7347 = vmatprep.subr.bf16.mxu0 %v8786_v1 }
0x15d4   :  { %7348 = vmatpush3.bf16.msra.mxu0 %v7882_v36 }
0x15d5   :  { %7349 = vmatprep.subr.bf16.mxu0 %v8786_v1 }
0x15d8   :  { %7350 = vmatpush3.bf16.msra.mxu0 %v7883_v39 }
0x15d9   :  { %7355 = vmatprep.subr.bf16.mxu0 %v8786_v1 }
0x15db   :  { %7352 = vmatmul.mubr.msk.bf16.vlgmr.msra.gmra.mxu0 %vm6682_vm10, %v8788_v20 }
0x15dc   :  { %7357 = vmatprep.mubr.msk.bf16.mxu0 %vm8787_vm0, %v8786_v1 }
0x167b   :  { %v2452_v20 = vpop.f32.mrf.mxu0 }
0x167c   :  { %v2453_v46 = vadd.f32 %v6637_v43, %v2452_v20 }
0x167d   :  { %v7313_v45 = vpop.f32.mrf.mxu0 }
0x167e   :  { %v2459_v51 = vmax.f32 %v2453_v46, 0.0 }
0x167f   :  { %v2455_v47 = vpop.f32.mrf.mxu0 }
0x1680   :  { %v2456_v48 = vadd.f32 %v6637_v43, %v2455_v47 }
0x1681   :  { %v7314_v50 = vpop.f32.mrf.mxu0 }
0x1682   :  { %v2460_v52 = vmax.f32 %v2456_v48, 0.0 }
0x1684   :  { %v2478_v54 = vpack.c.bf16 %v2460_v52, %v2459_v51 }
0x1686   :  { %7332 = vmatmul.mubr.bf16.vlgmr.msra.gmra.mxu1 %v2478_v54 }
0x1687   :  { %2863 = vmatpush1.bf16.msra.mxu1 %v7892_v53  ;;  %2886 = vmatprep.mubr.bf16.mxu1 %v8785_v0 }
0x1688   :  { %2864 = vmatprep.subr.bf16.mxu1 %v7897_v56 }
0x168b   :  { %2865 = vmatpush1.bf16.msra.mxu1 %v7895_v58 }
0x168c   :  { %2866 = vmatprep.subr.bf16.mxu1 %v7900_v25 }
0x168f   :  { %2867 = vmatpush1.bf16.msra.mxu1 %v7898_v59 }
0x1690   :  { %2868 = vmatprep.subr.bf16.mxu1 %v7903_v28 }
0x1693   :  { %2869 = vmatpush1.bf16.msra.mxu1 %v7901_v60 }
0x1694   :  { %7361 = vmatprep.subr.bf16.mxu1 %v8786_v1 }
0x169b   :  { %v2781_v26 = vpop.f32.mrf.mxu0 }
0x169c   :  { %v9457_v29 = vmul.f32 8.0, %v2781_v26 }
0x169d   :  { %v7353_v61 = vpop.f32.mrf.mxu0 }
0x169f   :  { %v2784_v62 = vpop.f32.mrf.mxu0 }
0x16a0   :  { %v9459_v63 = vmul.f32 8.0, %v2784_v62 }
0x16a1   :  { %v7354_v2 = vpop.f32.mrf.mxu0 }
0x16a2   :  { %v2798_v3 = vpack.c.bf16 %v9459_v63, %v9457_v29 }
0x16a4   :  { %6692 = vmatmul.mubr.msk.bf16.vlgmr.msra.gmra.mxu1 %vm718_vm4, %v2798_v3 }
0x16a5   :  { %7363 = vmatprep.mubr.msk.bf16.mxu1 %vm8787_vm0, %v8786_v1 }
0x1746   :  { %v9466_v4 = vpop.f32.mrf.mxu1 }
0x1748   :  { %v7333_v49 = vpop.f32.mrf.mxu1 }
0x174a   :  { %v2572_v6 = vpop.f32.mrf.mxu1 }
0x174b   :  { %v9471_v7 = vadd.f32 %v9468_v5, %v2572_v6 }
0x174c   :  { %v7334_v44 = vpop.f32.mrf.mxu1 }
0x1764   :  { %v2888_v11 = vpop.f32.mrf.mxu1 }
0x1765   :  { %v2889_v12 = vadd.f32 %v2888_v11, %v2804_v9 }
0x1766   :  { %v2890_v55 = vpop.f32.mrf.mxu1 }
0x1767   :  { %v2891_v13 = vadd.f32 %v2890_v55, %v2808_v10  ;;  %v2909_v14 = vpack.c.bf16 %v2889_v12, %v2889_v12  ;;  %v2905_v24 = vmul.f32 0.17677669, %v2889_v12 }
0x1768   :  { %v2892_v57 = vpop.f32.mrf.mxu1 }
0x1769   :  { %v2893_v15 = vadd.f32 %v2892_v57, %v2804_v9  ;;  %2914 = vrot.lane.b32.xlu1 %v2909_v14, %s8778_s25  ;;  %v9479_v30 = vpack.c.bf16 %v2891_v13, %v2891_v13  ;;  %v2907_v34 = vpack.c.bf16 %v2905_v24, %v2905_v24 }
0x176a   :  { %v2894_v23 = vpop.f32.mrf.mxu1 }
0x176b   :  { %v2910_v16 = vpack.c.bf16 %v2893_v15, %v2893_v15  ;;  %v2895_v31 = vadd.f32 %v2894_v23, %v2808_v10  ;;  %v2906_v36 = vmul.f32 0.17677669, %v2893_v15  ;;  %v3039_v37 = vsel %vm908_vm5, %v9479_v30, 0 }
0x176d   :  { %2963 = vrot.lane.b32.xlu1 %v2910_v16, %s8778_s25  ;;  %v9485_v38 = vpack.c.bf16 %v2895_v31, %v2895_v31  ;;  %v2908_v39 = vpack.c.bf16 %v2906_v36, %v2906_v36 }
0x176f   :  { %v3085_v40 = vsel %vm908_vm5, %v9485_v38, 0 }
0x17db   :  { %v2915_v17 = vpop.permute.xlu1 %2914 }
0x17dc   :  { %v2920_v19 = vsel %vm784_vm6, %v2915_v17, 0 }
0x17dd   :  { %7356 = vmatpush3.bf16.xpose.msra.mxu0 %v2920_v19 }
0x17de   :  { %7367 = vmatprep.subr.bf16.mxu0 %v8786_v1 }
0x17df   :  { %v2964_v27 = vpop.permute.xlu1 %2963 }
0x17e0   :  { %v2969_v32 = vsel %vm784_vm6, %v2964_v27, 0 }
0x17e1   :  { %7362 = vmatpush3.bf16.xpose.msra.mxu1 %v2969_v32 }
0x17e2   :  { %7373 = vmatprep.subr.bf16.mxu1 %v8786_v1 }
0x17e4   :  { %7358 = vmatmul.mubr.msk.bf16.vlgmr.msra.gmra.mxu0 %vm784_vm6, %v2907_v34 }
0x17e5   :  { %7368 = vmatpush3.bf16.msra.mxu0 %v3039_v37  ;;  %7369 = vmatprep.mubr.msk.bf16.mxu0 %vm8787_vm0, %v8786_v1 }
0x17e6   :  { %7379 = vmatprep.subr.bf16.mxu0 %v8786_v1 }
0x17e8   :  { %7364 = vmatmul.mubr.msk.bf16.vlgmr.msra.gmra.mxu1 %vm784_vm6, %v2908_v39 }
0x17e9   :  { %7374 = vmatpush3.bf16.msra.mxu1 %v3085_v40  ;;  %7375 = vmatprep.mubr.msk.bf16.mxu1 %vm8787_vm0, %v8786_v1 }
0x17ea   :  { %7385 = vmatprep.subr.bf16.mxu1 %v8786_v1 }
0x18a4   :  { %v2956_v41 = vpop.f32.mrf.mxu0 }
0x18a5   :  { %v3011_v18 = vsel %vm880_vm7, %v2956_v41, -inf }
0x18a6   :  { %3012 = vmax.xlane.f32.xlu0 %v3011_v18  ;;  %v7359_v42 = vpop.f32.mrf.mxu0 }
0x18a7   :  { %v2570_v42 = vadd.f32 %v9468_v5, %v9466_v4 }
0x18a8   :  { %v2959_v43 = vpop.f32.mrf.mxu0  ;;  %v3005_v20 = vpop.f32.mrf.mxu1 }
0x18a9   :  { %v3014_v45 = vsel %vm880_vm7, %v3005_v20, -inf  ;;  %v2576_v43 = vadd.f32 %v2570_v42, %v9412_v21 }
0x18aa   :  { %3015 = vmax.xlane.f32.xlu1 %v3014_v45  ;;  %v7360_v46 = vpop.f32.mrf.mxu0  ;;  %v7365_v47 = vpop.f32.mrf.mxu1 }
0x18ac   :  { %v3008_v48 = vpop.f32.mrf.mxu1 }
0x18ae   :  { %v7366_v50 = vpop.f32.mrf.mxu1 }
0x18bb   :  { %3131 = vrot.lane.b32.xlu1 %v2909_v14, %s8768_s9 }
0x18bf   :  { %3129 = vrot.lane.b32.xlu1 %v2907_v34, %s8789_s4 }
0x18c3   :  { %3180 = vrot.lane.b32.xlu1 %v2908_v39, %s8789_s4 }
0x192f   :  { %v3013_v51 = vpop.xlane.xlu0 %3012 }
0x1930   :  { %v3017_v52 = vsub.f32 %v2956_v41, %v3013_v51 }
0x1932   :  { %v3019_v53 = vmul.f32 1.442695, %v3017_v52 }
0x1933   :  { %v3016_v54 = vpop.xlane.xlu1 %3015 }
0x1934   :  { %8020 = vpow2.f32 %v3019_v53  ;;  %v3018_v56 = vsub.f32 %v3005_v20, %v3016_v54  ;;  %v2582_v20 = vsel %vm718_vm4, %v2576_v43, 0.0 }
0x1936   :  { %v3021_v58 = vmul.f32 1.442695, %v3018_v56 }
0x1937   :  { %v3132_v3 = vpop.permute.xlu1 %3131 }
0x1938   :  { %8022 = vpow2.f32 %v3021_v58  ;;  %v3137_v44 = vsel %vm784_vm6, %v3132_v3, 0 }
0x193b   :  { %v3130_v12 = vpop.permute.xlu1 %3129 }
0x193f   :  { %v3181_v55 = vpop.permute.xlu1 %3180 }
0x1941   :  { %v8021_v25 = vpop.eup %8020 }
0x1942   :  { %v3023_v59 = vsel %vm880_vm7, %v8021_v25, 0.0 }
0x1943   :  { %3024 = vadd.xlane.f32.xlu0 %v3023_v59 }
0x1945   :  { %v8023_v28 = vpop.eup %8022 }
0x1946   :  { %v3026_v60 = vsel %vm880_vm7, %v8023_v28, 0.0 }
0x1947   :  { %3027 = vadd.xlane.f32.xlu0 %v3026_v60 }
0x195d   :  { %3182 = vrot.lane.b32.xlu0 %v2910_v16, %s8768_s9 }
0x19cc   :  { %v3025_v26 = vpop.xlane.xlu0 %3024 }
0x19cd   :  { %8024 = vrcp.f32 %v3025_v26 }
0x19d0   :  { %v3028_v61 = vpop.xlane.xlu0 %3027 }
0x19d1   :  { %8026 = vrcp.f32 %v3028_v61 }
0x19d4   :  { %v3183_v9 = vpop.permute.xlu0 %3182 }
0x19d5   :  { %v3188_v11 = vsel %vm784_vm6, %v3183_v9, 0 }
0x19da   :  { %v8025_v62 = vpop.eup %8024 }
0x19db   :  { %v3031_v2 = vmul.f32 %v8025_v62, %v8021_v25 }
0x19dd   :  { %v3033_v49 = vpack.c.bf16 %v3031_v2, %v3031_v2 }
0x19de   :  { %v8027_v6 = vpop.eup %8026 }
0x19df   :  { %7370 = vmatmul.mubr.msk.bf16.vlgmr.msra.gmra.mxu0 %vm880_vm7, %v3033_v49  ;;  %v3032_v8 = vmul.f32 %v8027_v6, %v8023_v28  ;;  %v2577_v28 = vadd.f32 %v9471_v7, %v9414_v22  ;;  %v7904_v7 = vld [vmem:[%s10066_s8 + $0x8] sm:$0xff]  }
0x19e0   :  { %7380 = vmatpush3.bf16.xpose.msra.mxu0 %v3137_v44  ;;  %7381 = vmatprep.mubr.msk.bf16.mxu0 %vm8787_vm0, %v8786_v1 }
0x19e1   :  { %v3034_v10 = vpack.c.bf16 %v3032_v8, %v3032_v8  ;;  %7391 = vmatprep.subr.bf16.mxu0 %v8786_v1  ;;  %v2585_v60 = vsel %vm718_vm4, %v2577_v28, 0.0  ;;  %v7905_v8 = vld [vmem:[%s10066_s8] sm:$0xff]  }
0x19e3   :  { %7376 = vmatmul.mubr.msk.bf16.vlgmr.msra.gmra.mxu1 %vm880_vm7, %v3034_v10 }
0x19e4   :  { %7386 = vmatpush3.bf16.xpose.msra.mxu1 %v3188_v11  ;;  %7387 = vmatprep.mubr.msk.bf16.mxu1 %vm8787_vm0, %v8786_v1 }
0x19e5   :  { %7397 = vmatprep.subr.bf16.mxu1 %v8786_v1 }
0x19e7   :  { %7382 = vmatmul.mubr.msk.bf16.vlgmr.msra.gmra.mxu0 %vm784_vm6, %v3130_v12 }
0x19e8   :  { %7393 = vmatprep.mubr.msk.bf16.mxu0 %vm8787_vm0, %v8786_v1 }
0x19eb   :  { %7388 = vmatmul.mubr.msk.bf16.vlgmr.msra.gmra.mxu1 %vm784_vm6, %v3181_v55 }
0x19ec   :  { %7399 = vmatprep.mubr.msk.bf16.mxu1 %vm8787_vm0, %v8786_v1 }
0x1a9f   :  { %v9521_v13 = vpop.f32.mrf.mxu0 }
0x1aa1   :  { %v7371_v14 = vpop.f32.mrf.mxu0 }
0x1aa3   :  { %v3078_v57 = vpop.f32.mrf.mxu0  ;;  %v9523_v15 = vpop.f32.mrf.mxu1 }
0x1aa4   :  { %v3127_v16 = vpack.c.bf16 %v9523_v15, %v9521_v13  ;;  %v6669_v15 = vld [vmem:[#allocation14 + $0x1] ss:$0 sm:$0xff] }
0x1aa5   :  { %v7372_v17 = vpop.f32.mrf.mxu0  ;;  %v7377_v19 = vpop.f32.mrf.mxu1 }
0x1aa6   :  { %v6668_v19 = vld [vmem:[#allocation13 + $0x1] ss:$0 sm:$0xff] }
0x1aa7   :  { %v3124_v23 = vpop.f32.mrf.mxu1  ;;  %v3173_v24 = vpop.f32.mrf.mxu0 }
0x1aa8   :  { %v3230_v27 = vsel %vm880_vm7, %v3173_v24, -inf }
0x1aa9   :  { %v7378_v31 = vpop.f32.mrf.mxu1  ;;  %3231 = vmax.xlane.f32.xlu0 %v3230_v27  ;;  %v7383_v32 = vpop.f32.mrf.mxu0 }
0x1aaa   :  { %v7906_v31 = vld [vmem:[%s10066_s8 + $0x18] sm:$0xff]   ;;  %v7907_v32 = vld [vmem:[%s10066_s8 + $0x10] sm:$0xff]  }
0x1aab   :  { %v3176_v34 = vpop.f32.mrf.mxu0  ;;  %v3224_v36 = vpop.f32.mrf.mxu1 }
0x1aac   :  { %v3233_v37 = vsel %vm880_vm7, %v3224_v36, -inf }
0x1aad   :  { %3234 = vmax.xlane.f32.xlu1 %v3233_v37  ;;  %v7384_v39 = vpop.f32.mrf.mxu0  ;;  %v7389_v40 = vpop.f32.mrf.mxu1 }
0x1aaf   :  { %v3227_v41 = vpop.f32.mrf.mxu1 }
0x1ab1   :  { %v7390_v18 = vpop.f32.mrf.mxu1 }
0x1abe   :  { %3255 = vrot.lane.b32.xlu1 %v9479_v30, %s8789_s4 }
0x1ae2   :  { %2583 = vadd.xlane.f32.xlu1 %v2582_v20 }
0x1b32   :  { %v3232_v45 = vpop.xlane.xlu0 %3231 }
0x1b33   :  { %v3236_v46 = vsub.f32 %v3173_v24, %v3232_v45 }
0x1b35   :  { %v3238_v47 = vmul.f32 1.442695, %v3236_v46 }
0x1b36   :  { %v3235_v48 = vpop.xlane.xlu1 %3234 }
0x1b37   :  { %8028 = vpow2.f32 %v3238_v47  ;;  %v3237_v50 = vsub.f32 %v3224_v36, %v3235_v48 }
0x1b39   :  { %v3240_v51 = vmul.f32 1.442695, %v3237_v50 }
0x1b3a   :  { %v3256_v52 = vpop.permute.xlu1 %3255 }
0x1b3b   :  { %8030 = vpow2.f32 %v3240_v51  ;;  %v3261_v53 = vsel %vm908_vm5, %v3256_v52, 0 }
0x1b3c   :  { %7392 = vmatpush3.bf16.msra.mxu0 %v3261_v53 }
0x1b3d   :  { %7403 = vmatprep.subr.bf16.mxu0 %v8786_v1 }
0x1b44   :  { %v8029_v4 = vpop.eup %8028 }
0x1b45   :  { %v3242_v21 = vsel %vm880_vm7, %v8029_v4, 0.0 }
0x1b46   :  { %3243 = vadd.xlane.f32.xlu0 %v3242_v21 }
0x1b48   :  { %v8031_v5 = vpop.eup %8030 }
0x1b49   :  { %v3245_v30 = vsel %vm880_vm7, %v8031_v5, 0.0 }
0x1b4a   :  { %3246 = vadd.xlane.f32.xlu0 %v3245_v30 }
0x1b60   :  { %3304 = vrot.lane.b32.xlu0 %v9485_v38, %s8789_s4 }
0x1b6b   :  { %v2584_v54 = vpop.xlane.xlu1 %2583 }
0x1b6c   :  { %v2588_v56 = vmul.f32 0.015625, %v2584_v54 }
0x1b6e   :  { %v2590_v58 = vsub.f32 %v2576_v43, %v2588_v56 }
0x1b70   :  { %v2592_v25 = vmul.f32 %v2590_v58, %v2590_v58 }
0x1b72   :  { %v2594_v59 = vsel %vm718_vm4, %v2592_v25, 0.0  ;;  %v6707_v25 = vld [vmem:[#allocation20] ss:$0 sm:$0xff] }
0x1b73   :  { %2595 = vadd.xlane.f32.xlu1 %v2594_v59 }
0x1b7f   :  { %2586 = vadd.xlane.f32.xlu0 %v2585_v60 }
0x1bcf   :  { %v3244_v26 = vpop.xlane.xlu0 %3243 }
0x1bd0   :  { %8032 = vrcp.f32 %v3244_v26 }
0x1bd3   :  { %v3247_v61 = vpop.xlane.xlu0 %3246 }
0x1bd4   :  { %8034 = vrcp.f32 %v3247_v61 }
0x1bd7   :  { %v3305_v38 = vpop.permute.xlu0 %3304 }
0x1bd8   :  { %v3310_v62 = vsel %vm908_vm5, %v3305_v38, 0 }
0x1bd9   :  { %7398 = vmatpush3.bf16.msra.mxu1 %v3310_v62 }
0x1bda   :  { %7411 = vmatprep.subr.bf16.mxu1 %v8786_v1 }
0x1bdd   :  { %v8033_v2 = vpop.eup %8032 }
0x1bde   :  { %v3250_v3 = vmul.f32 %v8033_v2, %v8029_v4 }
0x1be0   :  { %v3252_v49 = vpack.c.bf16 %v3250_v3, %v3250_v3 }
0x1be1   :  { %v8035_v6 = vpop.eup %8034 }
0x1be2   :  { %7394 = vmatmul.mubr.msk.bf16.vlgmr.msra.gmra.mxu0 %vm880_vm7, %v3252_v49  ;;  %v3251_v22 = vmul.f32 %v8035_v6, %v8031_v5 }
0x1be3   :  { %7407 = vmatprep.mubr.msk.bf16.mxu0 %vm8787_vm0, %v8786_v1  ;;  %7404 = vmatpush3.bf16.msra.mxu0 %v7906_v31 }
0x1be4   :  { %v3253_v44 = vpack.c.bf16 %v3251_v22, %v3251_v22  ;;  %7405 = vmatprep.subr.bf16.mxu0 %v8786_v1 }
0x1be6   :  { %7400 = vmatmul.mubr.msk.bf16.vlgmr.msra.gmra.mxu1 %vm880_vm7, %v3253_v44 }
0x1be7   :  { %7412 = vmatpush3.bf16.msra.mxu1 %v7904_v7  ;;  %7415 = vmatprep.mubr.msk.bf16.mxu1 %vm8787_vm0, %v8786_v1 }
0x1be8   :  { %7413 = vmatprep.subr.bf16.mxu1 %v8786_v1  ;;  %7406 = vmatpush3.bf16.msra.mxu0 %v7907_v32 }
0x1be9   :  { %7419 = vmatprep.subr.bf16.mxu0 %v8786_v1 }
0x1beb   :  { %7414 = vmatpush3.bf16.msra.mxu1 %v7905_v8 }
0x1bec   :  { %7431 = vmatprep.subr.bf16.mxu1 %v8786_v1 }
0x1bee   :  { %7416 = vmatmul.mubr.msk.bf16.vlgmr.msra.gmra.mxu1 %vm784_vm6, %v3127_v16 }
0x1bef   :  { %7439 = vmatprep.mubr.msk.bf16.mxu1 %vm8787_vm0, %v8786_v1 }
0x1bfc   :  { %v2596_v9 = vpop.xlane.xlu1 %2595 }
0x1bfd   :  { %v2600_v10 = vmul.f32 0.015625, %v2596_v9 }
0x1bff   :  { %v2602_v11 = vadd.f32 1e-05, %v2600_v10 }
0x1c01   :  { %8036 = vrsqrt.f32 %v2602_v11  ;;  %v7908_v11 = vld [vmem:[%s10067_s5 + $0x18] sm:$0xff]  }
0x1c02   :  { %7432 = vmatpush3.bf16.msra.mxu1 %v7908_v11 }
0x1c03   :  { %7433 = vmatprep.subr.bf16.mxu1 %v8786_v1 }
0x1c08   :  { %v2587_v12 = vpop.xlane.xlu0 %2586 }
0x1c09   :  { %v2589_v55 = vmul.f32 0.015625, %v2587_v12  ;;  %v7909_v12 = vld [vmem:[%s10067_s5 + $0x10] sm:$0xff]  }
0x1c0a   :  { %7434 = vmatpush3.bf16.msra.mxu1 %v7909_v12 }
0x1c0b   :  { %v2591_v14 = vsub.f32 %v2577_v28, %v2589_v55  ;;  %7435 = vmatprep.subr.bf16.mxu1 %v8786_v1  ;;  %v7911_v55 = vld [vmem:[%s10067_s5] sm:$0xff]  }
0x1c0d   :  { %v2593_v57 = vmul.f32 %v2591_v14, %v2591_v14 }
0x1c0e   :  { %v8037_v17 = vpop.eup %8036 }
0x1c0f   :  { %v2597_v23 = vsel %vm718_vm4, %v2593_v57, 0.0  ;;  %v2606_v13 = vmul.f32 %v8037_v17, %v2590_v58 }
0x1c10   :  { %2598 = vadd.xlane.f32.xlu0 %v2597_v23 }
0x1c11   :  { %v2614_v16 = vmul.f32 %v6668_v19, %v2606_v13 }
0x1c13   :  { %v2622_v24 = vadd.f32 %v6669_v15, %v2614_v16 }
0x1c15   :  { %v2626_v27 = vsel %vm718_vm4, %v2622_v24, 0.0 }
0x1c16   :  { %2627 = vadd.xlane.f32.xlu1 %v2626_v27 }
0x1c99   :  { %v2599_v34 = vpop.xlane.xlu0 %2598 }
0x1c9a   :  { %v2601_v36 = vmul.f32 0.015625, %v2599_v34 }
0x1c9c   :  { %v2603_v37 = vadd.f32 1e-05, %v2601_v36 }
0x1c9e   :  { %8038 = vrsqrt.f32 %v2603_v37 }
0x1c9f   :  { %v2628_v30 = vpop.xlane.xlu1 %2627 }
0x1ca0   :  { %v2632_v54 = vmul.f32 0.015625, %v2628_v30 }
0x1ca2   :  { %v3297_v39 = vpop.f32.mrf.mxu0  ;;  %v2634_v60 = vsub.f32 %v2622_v24, %v2632_v54 }
0x1ca4   :  { %v7395_v40 = vpop.f32.mrf.mxu0  ;;  %v2636_v7 = vmul.f32 %v2634_v60, %v2634_v60 }
0x1ca6   :  { %v3300_v41 = vpop.f32.mrf.mxu0  ;;  %v3346_v18 = vpop.f32.mrf.mxu1  ;;  %v2638_v8 = vsel %vm718_vm4, %v2636_v7, 0.0 }
0x1ca7   :  { %v3352_v42 = vpack.c.bf16 %v3346_v18, %v3297_v39  ;;  %v6670_v18 = vld [vmem:[#allocation16] ss:$0 sm:$0xff] }
0x1ca8   :  { %v7396_v43 = vpop.f32.mrf.mxu0  ;;  %v7401_v20 = vpop.f32.mrf.mxu1 }
0x1ca9   :  { %7408 = vmatmul.mubr.msk.bf16.vlgmr.msra.gmra.mxu0 %vm784_vm6, %v3352_v42 }
0x1caa   :  { %v3349_v45 = vpop.f32.mrf.mxu1  ;;  %7427 = vmatprep.mubr.msk.bf16.mxu0 %vm8787_vm0, %v8786_v1 }
0x1cab   :  { %v8039_v46 = vpop.eup %8038  ;;  %v6671_v45 = vld [vmem:[#allocation17] ss:$0 sm:$0xff] }
0x1cac   :  { %v7402_v47 = vpop.f32.mrf.mxu1  ;;  %v2607_v48 = vmul.f32 %v8039_v46, %v2591_v14 }
0x1cae   :  { %v3458_v50 = vpop.f32.mrf.mxu1  ;;  %v2615_v51 = vmul.f32 %v6668_v19, %v2607_v48 }
0x1cb0   :  { %v7417_v52 = vpop.f32.mrf.mxu1  ;;  %v2623_v53 = vadd.f32 %v6669_v15, %v2615_v51 }
0x1cb1   :  { %v7913_v52 = vld [vmem:[%s10068_s21 + $0x10] sm:$0xff]  }
0x1cb2   :  { %v3461_v4 = vpop.f32.mrf.mxu1  ;;  %v2629_v21 = vsel %vm718_vm4, %v2623_v53, 0.0 }
0x1cb3   :  { %2630 = vadd.xlane.f32.xlu0 %v2629_v21 }
0x1cb4   :  { %v7418_v5 = vpop.f32.mrf.mxu1 }
0x1d3c   :  { %v2631_v56 = vpop.xlane.xlu0 %2630 }
0x1d3d   :  { %v2633_v26 = vmul.f32 0.015625, %v2631_v56 }
0x1d3f   :  { %v2635_v49 = vsub.f32 %v2623_v53, %v2633_v26  ;;  %v7914_v53 = vld [vmem:[%s10068_s21 + $0x8] sm:$0xff]  }
0x1d41   :  { %v2637_v10 = vmul.f32 %v2635_v49, %v2635_v49 }
0x1d69   :  { %v3402_v58 = vpop.f32.mrf.mxu0 }
0x1d6a   :  { %v3459_v59 = vadd.f32 %v3458_v50, %v3402_v58  ;;  %v7912_v50 = vld [vmem:[%s10068_s21 + $0x18] sm:$0xff]  }
0x1d6b   :  { %v7409_v28 = vpop.f32.mrf.mxu0  ;;  %7420 = vmatpush3.bf16.msra.mxu0 %v7912_v50 }
0x1d6c   :  { %v3472_v61 = vadd.f32 %v6707_v25, %v3459_v59  ;;  %7421 = vmatprep.subr.bf16.mxu0 %v8786_v1  ;;  %v6708_v28 = vld [vmem:[#allocation22] ss:$0 sm:$0xff] }
0x1d6d   :  { %v3405_v38 = vpop.f32.mrf.mxu0 }
0x1d6e   :  { %v3462_v62 = vadd.f32 %v3461_v4, %v3405_v38  ;;  %v3474_v2 = vadd.f32 %v3472_v61, %v9457_v29  ;;  %v2641_v29 = vsel %vm718_vm4, %v2637_v10, 0.0  ;;  %v7915_v4 = vld [vmem:[%s10068_s21] sm:$0xff]   ;;  %v6709_v38 = vld [vmem:[#allocation23] ss:$0 sm:$0xff] }
0x1d6f   :  { %v7410_v3 = vpop.f32.mrf.mxu0  ;;  %7422 = vmatpush3.bf16.msra.mxu0 %v7913_v52 }
0x1d70   :  { %v3473_v6 = vadd.f32 %v6707_v25, %v3462_v62  ;;  %v3478_v22 = vsel %vm718_vm4, %v3474_v2, 0.0  ;;  %7423 = vmatprep.subr.bf16.mxu0 %v8786_v1 }
0x1d71   :  { %3479 = vadd.xlane.f32.xlu1 %v3478_v22 }
0x1d72   :  { %v3475_v44 = vadd.f32 %v3473_v6, %v9459_v63  ;;  %v7910_v63 = vld [vmem:[%s10067_s5 + $0x8] sm:$0xff]   ;;  %v6716_v6 = vld [vmem:[#allocation26] ss:$0 sm:$0xff] }
0x1d73   :  { %7436 = vmatpush3.bf16.msra.mxu1 %v7910_v63  ;;  %7424 = vmatpush3.bf16.msra.mxu0 %v7914_v53 }
0x1d74   :  { %v3481_v9 = vsel %vm718_vm4, %v3475_v44, 0.0  ;;  %7437 = vmatprep.subr.bf16.mxu1 %v8786_v1  ;;  %7425 = vmatprep.subr.bf16.mxu0 %v8786_v1 }
0x1d75   :  { %2639 = vadd.xlane.f32.xlu1 %v2638_v8  ;;  %3482 = vadd.xlane.f32.xlu0 %v3481_v9 }
0x1d77   :  { %7438 = vmatpush3.bf16.msra.mxu1 %v7911_v55  ;;  %7426 = vmatpush3.bf16.msra.mxu0 %v7915_v4  ;;  %v6710_v55 = vld [vmem:[#allocation25] ss:$0 sm:$0xff] }
0x1d78   :  { %7449 = vmatprep.subr.bf16.mxu1 %v8786_v1  ;;  %7443 = vmatprep.subr.bf16.mxu0 %v8786_v1 }
0x1d79   :  { %2642 = vadd.xlane.f32.xlu0 %v2641_v29 }
0x1dfa   :  { %v3480_v14 = vpop.xlane.xlu1 %3479 }
0x1dfb   :  { %v3484_v57 = vmul.f32 0.015625, %v3480_v14 }
0x1dfd   :  { %v3486_v17 = vsub.f32 %v3474_v2, %v3484_v57 }
0x1dfe   :  { %v2640_v19 = vpop.xlane.xlu1 %2639  ;;  %v3483_v23 = vpop.xlane.xlu0 %3482 }
0x1dff   :  { %v2644_v13 = vmul.f32 0.015625, %v2640_v19  ;;  %v3485_v15 = vmul.f32 0.015625, %v3483_v23  ;;  %v3488_v16 = vmul.f32 %v3486_v17, %v3486_v17 }
0x1e01   :  { %v2646_v24 = vadd.f32 1e-05, %v2644_v13  ;;  %v3487_v27 = vsub.f32 %v3475_v44, %v3485_v15  ;;  %v3490_v31 = vsel %vm718_vm4, %v3488_v16, 0.0 }
0x1e02   :  { %3491 = vadd.xlane.f32.xlu1 %v3490_v31  ;;  %v2643_v32 = vpop.xlane.xlu0 %2642 }
0x1e03   :  { %8040 = vrsqrt.f32 %v2646_v24  ;;  %v2645_v34 = vmul.f32 0.015625, %v2643_v32  ;;  %v3489_v36 = vmul.f32 %v3487_v27, %v3487_v27 }
0x1e05   :  { %v2647_v37 = vadd.f32 1e-05, %v2645_v34  ;;  %v3493_v39 = vsel %vm718_vm4, %v3489_v36, 0.0 }
0x1e06   :  { %3494 = vadd.xlane.f32.xlu0 %v3493_v39 }
0x1e07   :  { %8042 = vrsqrt.f32 %v2647_v37 }
0x1e10   :  { %v8041_v40 = vpop.eup %8040 }
0x1e11   :  { %v2650_v41 = vmul.f32 %v8041_v40, %v2634_v60 }
0x1e13   :  { %v2658_v20 = vmul.f32 %v6670_v18, %v2650_v41 }
0x1e14   :  { %v8043_v42 = vpop.eup %8042 }
0x1e15   :  { %v2651_v43 = vmul.f32 %v8043_v42, %v2635_v49  ;;  %v2666_v47 = vadd.f32 %v6671_v45, %v2658_v20 }
0x1e17   :  { %v2659_v46 = vmul.f32 %v6670_v18, %v2651_v43 }
0x1e19   :  { %v2667_v48 = vadd.f32 %v6671_v45, %v2659_v46 }
0x1e1b   :  { %v9590_v51 = vpack.c.bf16 %v2667_v48, %v2666_v47 }
0x1e1d   :  { %7440 = vmatmul.mubr.msk.bf16.vlgmr.msra.gmra.mxu1 %vm718_vm4, %v9590_v51 }
0x1e1e   :  { %7451 = vmatprep.mubr.msk.bf16.mxu1 %vm8787_vm0, %v8786_v1 }
0x1e8b   :  { %v3492_v21 = vpop.xlane.xlu1 %3491 }
0x1e8c   :  { %v3496_v5 = vmul.f32 0.015625, %v3492_v21 }
0x1e8e   :  { %v3498_v30 = vadd.f32 1e-05, %v3496_v5 }
0x1e8f   :  { %v3495_v54 = vpop.xlane.xlu0 %3494 }
0x1e90   :  { %8044 = vrsqrt.f32 %v3498_v30  ;;  %v3497_v56 = vmul.f32 0.015625, %v3495_v54 }
0x1e92   :  { %v3499_v58 = vadd.f32 1e-05, %v3497_v56 }
0x1e94   :  { %8046 = vrsqrt.f32 %v3499_v58 }
0x1e9d   :  { %v8045_v25 = vpop.eup %8044 }
0x1e9e   :  { %v3502_v59 = vmul.f32 %v8045_v25, %v3486_v17 }
0x1ea0   :  { %v3510_v61 = vmul.f32 %v6708_v28, %v3502_v59 }
0x1ea1   :  { %v8047_v60 = vpop.eup %8046 }
0x1ea2   :  { %v3503_v26 = vmul.f32 %v8047_v60, %v3487_v27  ;;  %v9603_v2 = vadd.f32 %v6709_v38, %v3510_v61 }
0x1ea4   :  { %v3511_v62 = vmul.f32 %v6708_v28, %v3503_v26 }
0x1ea6   :  { %v9605_v3 = vadd.f32 %v6709_v38, %v3511_v62 }
0x1ea8   :  { %v3528_v49 = vpack.c.bf16 %v9605_v3, %v9603_v2 }
0x1eaa   :  { %7428 = vmatmul.mubr.msk.bf16.vlgmr.msra.gmra.mxu0 %vm718_vm4, %v3528_v49 }
0x1eab   :  { %7445 = vmatprep.mubr.msk.bf16.mxu0 %vm8787_vm0, %v8786_v1 }
0x1edd   :  { %v3681_v22 = vpop.f32.mrf.mxu1 }
0x1ede   :  { %v3682_v7 = vadd.f32 %v6716_v6, %v3681_v22 }
0x1edf   :  { %v7441_v44 = vpop.f32.mrf.mxu1 }
0x1ee0   :  { %v9612_v8 = vpack.c.bf16 %v3682_v7, %v3682_v7 }
0x1ee1   :  { %v3684_v9 = vpop.f32.mrf.mxu1 }
0x1ee2   :  { %v3685_v10 = vadd.f32 %v6716_v6, %v3684_v9  ;;  %v3706_v29 = vsel %vm784_vm6, %v9612_v8, 0 }
0x1ee3   :  { %v7442_v11 = vpop.f32.mrf.mxu1  ;;  %7444 = vmatpush3.bf16.xpose.msra.mxu0 %v3706_v29 }
0x1ee4   :  { %v9616_v12 = vpack.c.bf16 %v3685_v10, %v3685_v10  ;;  %7455 = vmatprep.subr.bf16.mxu0 %v8786_v1 }
0x1ee6   :  { %v3752_v63 = vsel %vm784_vm6, %v9616_v12, 0 }
0x1ee7   :  { %7450 = vmatpush3.bf16.xpose.msra.mxu1 %v3752_v63 }
0x1ee8   :  { %7461 = vmatprep.subr.bf16.mxu1 %v8786_v1 }
0x1f6a   :  { %v3597_v14 = vpop.f32.mrf.mxu0 }
0x1f6b   :  { %v3598_v57 = vadd.f32 %v6710_v55, %v3597_v14 }
0x1f6c   :  { %v7429_v17 = vpop.f32.mrf.mxu0 }
0x1f6d   :  { %v3696_v19 = vmul.f32 0.17677669, %v3598_v57 }
0x1f6e   :  { %v3600_v23 = vpop.f32.mrf.mxu0 }
0x1f6f   :  { %v3698_v13 = vpack.c.bf16 %v3696_v19, %v3696_v19  ;;  %v3601_v15 = vadd.f32 %v6710_v55, %v3600_v23 }
0x1f70   :  { %v7430_v16 = vpop.f32.mrf.mxu0 }
0x1f71   :  { %v3697_v24 = vmul.f32 0.17677669, %v3601_v15  ;;  %7446 = vmatmul.mubr.msk.bf16.vlgmr.msra.gmra.mxu0 %vm784_vm6, %v3698_v13 }
0x1f72   :  { %7457 = vmatprep.mubr.msk.bf16.mxu0 %vm8787_vm0, %v8786_v1 }
0x1f73   :  { %v3699_v27 = vpack.c.bf16 %v3697_v24, %v3697_v24 }
0x1f75   :  { %7452 = vmatmul.mubr.msk.bf16.vlgmr.msra.gmra.mxu1 %vm784_vm6, %v3699_v27 }
0x1f76   :  { %7463 = vmatprep.mubr.msk.bf16.mxu1 %vm8787_vm0, %v8786_v1 }
0x2031   :  { %v3742_v31 = vpop.f32.mrf.mxu0 }
0x2032   :  { %v3794_v32 = vsel %vm880_vm7, %v3742_v31, -inf }
0x2033   :  { %3795 = vmax.xlane.f32.xlu1 %v3794_v32  ;;  %v7447_v34 = vpop.f32.mrf.mxu0 }
0x2035   :  { %v3745_v36 = vpop.f32.mrf.mxu0  ;;  %v3788_v37 = vpop.f32.mrf.mxu1 }
0x2036   :  { %v3797_v39 = vsel %vm880_vm7, %v3788_v37, -inf }
0x2037   :  { %3798 = vmax.xlane.f32.xlu0 %v3797_v39  ;;  %v7448_v40 = vpop.f32.mrf.mxu0  ;;  %v7453_v41 = vpop.f32.mrf.mxu1 }
0x2039   :  { %v3791_v18 = vpop.f32.mrf.mxu1 }
0x203b   :  { %v7454_v42 = vpop.f32.mrf.mxu1 }
0x2044   :  { %3819 = vrot.lane.b32.xlu1 %v9612_v8, %s8778_s25 }
0x20bc   :  { %v3796_v43 = vpop.xlane.xlu1 %3795 }
0x20bd   :  { %v3800_v20 = vsub.f32 %v3742_v31, %v3796_v43 }
0x20bf   :  { %v3802_v45 = vmul.f32 1.442695, %v3800_v20 }
0x20c0   :  { %v3799_v46 = vpop.xlane.xlu0 %3798  ;;  %v3820_v47 = vpop.permute.xlu1 %3819 }
0x20c1   :  { %8048 = vpow2.f32 %v3802_v45  ;;  %v3801_v48 = vsub.f32 %v3788_v37, %v3799_v46  ;;  %v3825_v50 = vsel %vm908_vm5, %v3820_v47, 0 }
0x20c2   :  { %7456 = vmatpush3.bf16.msra.mxu0 %v3825_v50 }
0x20c3   :  { %v3804_v52 = vmul.f32 1.442695, %v3801_v48  ;;  %7467 = vmatprep.subr.bf16.mxu0 %v8786_v1 }
0x20c5   :  { %8050 = vpow2.f32 %v3804_v52 }
0x20ce   :  { %v8049_v53 = vpop.eup %8048 }
0x20cf   :  { %v3806_v4 = vsel %vm880_vm7, %v8049_v53, 0.0 }
0x20d0   :  { %3807 = vadd.xlane.f32.xlu1 %v3806_v4 }
0x20d2   :  { %v8051_v21 = vpop.eup %8050 }
0x20d3   :  { %v3809_v5 = vsel %vm880_vm7, %v8051_v21, 0.0 }
0x20d4   :  { %3810 = vadd.xlane.f32.xlu0 %v3809_v5 }
0x20e1   :  { %3920 = vrot.lane.b32.xlu1 %v9612_v8, %s8789_s4 }
0x20e5   :  { %3971 = vrot.lane.b32.xlu1 %v9616_v12, %s8789_s4 }
0x20e9   :  { %3969 = vrot.lane.b32.xlu1 %v3699_v27, %s8789_s4 }
0x20ea   :  { %3868 = vrot.lane.b32.xlu0 %v9616_v12, %s8778_s25 }
0x20ee   :  { %3918 = vrot.lane.b32.xlu0 %v3698_v13, %s8789_s4 }
0x2159   :  { %v3808_v30 = vpop.xlane.xlu1 %3807 }
0x215a   :  { %8052 = vrcp.f32 %v3808_v30  ;;  %v7916_v30 = vld [vmem:[#allocation28 + $0x8] sm:$0xff]  }
0x215d   :  { %v3811_v54 = vpop.xlane.xlu0 %3810  ;;  %v3921_v59 = vpop.permute.xlu1 %3920 }
0x215e   :  { %8054 = vrcp.f32 %v3811_v54  ;;  %v3926_v61 = vsel %vm784_vm6, %v3921_v59, 0  ;;  %v7917_v54 = vld [vmem:[#allocation28] sm:$0xff]  }
0x2161   :  { %v3869_v56 = vpop.permute.xlu0 %3868  ;;  %v3972_v62 = vpop.permute.xlu1 %3971 }
0x2162   :  { %v3874_v58 = vsel %vm908_vm5, %v3869_v56, 0  ;;  %v3977_v6 = vsel %vm784_vm6, %v3972_v62, 0  ;;  %v7918_v56 = vld [vmem:[#allocation28 + $0x18] sm:$0xff]  }
0x2163   :  { %7462 = vmatpush3.bf16.msra.mxu1 %v3874_v58  ;;  %v7919_v58 = vld [vmem:[#allocation28 + $0x10] sm:$0xff]  }
0x2164   :  { %7473 = vmatprep.subr.bf16.mxu1 %v8786_v1 }
0x2165   :  { %v3919_v22 = vpop.permute.xlu0 %3918  ;;  %v3970_v7 = vpop.permute.xlu1 %3969 }
0x2167   :  { %v8053_v25 = vpop.eup %8052 }
0x2168   :  { %v3814_v28 = vmul.f32 %v8053_v25, %v8049_v53 }
0x216a   :  { %v3816_v60 = vpack.c.bf16 %v3814_v28, %v3814_v28 }
0x216b   :  { %v8055_v26 = vpop.eup %8054 }
0x216c   :  { %7458 = vmatmul.mubr.msk.bf16.vlgmr.msra.gmra.mxu0 %vm880_vm7, %v3816_v60  ;;  %v3815_v38 = vmul.f32 %v8055_v26, %v8051_v21 }
0x216d   :  { %7468 = vmatpush3.bf16.xpose.msra.mxu0 %v3926_v61  ;;  %7469 = vmatprep.mubr.msk.bf16.mxu0 %vm8787_vm0, %v8786_v1 }
0x216e   :  { %v3817_v49 = vpack.c.bf16 %v3815_v38, %v3815_v38  ;;  %7479 = vmatprep.subr.bf16.mxu0 %v8786_v1 }
0x2170   :  { %7464 = vmatmul.mubr.msk.bf16.vlgmr.msra.gmra.mxu1 %vm880_vm7, %v3817_v49 }
0x2171   :  { %7474 = vmatpush3.bf16.xpose.msra.mxu1 %v3977_v6  ;;  %7475 = vmatprep.mubr.msk.bf16.mxu1 %vm8787_vm0, %v8786_v1 }
0x2172   :  { %7485 = vmatprep.subr.bf16.mxu1 %v8786_v1 }
0x2174   :  { %7470 = vmatmul.mubr.msk.bf16.vlgmr.msra.gmra.mxu0 %vm784_vm6, %v3919_v22 }
0x2175   :  { %7481 = vmatprep.mubr.msk.bf16.mxu0 %vm8787_vm0, %v8786_v1 }
0x2178   :  { %7476 = vmatmul.mubr.msk.bf16.vlgmr.msra.gmra.mxu1 %vm784_vm6, %v3970_v7 }
0x2179   :  { %7487 = vmatprep.mubr.msk.bf16.mxu1 %vm8787_vm0, %v8786_v1 }
0x222c   :  { %v9662_v44 = vpop.f32.mrf.mxu0 }
0x222e   :  { %v7459_v9 = vpop.f32.mrf.mxu0 }
0x2230   :  { %v3864_v10 = vpop.f32.mrf.mxu0  ;;  %v9664_v29 = vpop.f32.mrf.mxu1 }
0x2231   :  { %v3916_v11 = vpack.c.bf16 %v9664_v29, %v9662_v44  ;;  %v6736_v10 = vld [vmem:[#allocation29] ss:$0 sm:$0xff] }
0x2232   :  { %v7460_v63 = vpop.f32.mrf.mxu0  ;;  %v7465_v55 = vpop.f32.mrf.mxu1 }
0x2234   :  { %v3913_v14 = vpop.f32.mrf.mxu1  ;;  %v3962_v57 = vpop.f32.mrf.mxu0 }
0x2235   :  { %v4019_v17 = vsel %vm880_vm7, %v3962_v57, -inf }
0x2236   :  { %v7466_v19 = vpop.f32.mrf.mxu1  ;;  %4020 = vmax.xlane.f32.xlu0 %v4019_v17  ;;  %v7471_v23 = vpop.f32.mrf.mxu0 }
0x2238   :  { %v3965_v13 = vpop.f32.mrf.mxu0  ;;  %v4013_v15 = vpop.f32.mrf.mxu1 }
0x2239   :  { %v4022_v16 = vsel %vm880_vm7, %v4013_v15, -inf }
0x223a   :  { %4023 = vmax.xlane.f32.xlu1 %v4022_v16  ;;  %v7472_v24 = vpop.f32.mrf.mxu0  ;;  %v7477_v27 = vpop.f32.mrf.mxu1 }
0x223c   :  { %v4016_v31 = vpop.f32.mrf.mxu1 }
0x223e   :  { %v7478_v32 = vpop.f32.mrf.mxu1 }
0x224b   :  { %4043 = vrot.lane.b32.xlu1 %v9612_v8, %s8768_s9 }
0x22bf   :  { %v4021_v34 = vpop.xlane.xlu0 %4020 }
0x22c0   :  { %v4025_v36 = vsub.f32 %v3962_v57, %v4021_v34 }
0x22c2   :  { %v4027_v37 = vmul.f32 1.442695, %v4025_v36 }
0x22c3   :  { %v4024_v39 = vpop.xlane.xlu1 %4023 }
0x22c4   :  { %8056 = vpow2.f32 %v4027_v37  ;;  %v4026_v40 = vsub.f32 %v4013_v15, %v4024_v39  ;;  %v7920_v39 = vld [vmem:[%s10069_s6 + $0x18] sm:$0xff]  }
0x22c6   :  { %v4029_v41 = vmul.f32 1.442695, %v4026_v40  ;;  %v7921_v40 = vld [vmem:[%s10069_s6 + $0x10] sm:$0xff]  }
0x22c7   :  { %v4044_v18 = vpop.permute.xlu1 %4043 }
0x22c8   :  { %8058 = vpow2.f32 %v4029_v41  ;;  %v4049_v42 = vsel %vm908_vm5, %v4044_v18, 0  ;;  %v7922_v41 = vld [vmem:[%s10069_s6 + $0x8] sm:$0xff]   ;;  %v7923_v18 = vld [vmem:[%s10069_s6] sm:$0xff]  }
0x22c9   :  { %7480 = vmatpush3.bf16.msra.mxu0 %v4049_v42  ;;  %v7924_v42 = vld [vmem:[%s10070_s0 + $0x38] sm:$0xff]  }
0x22ca   :  { %7491 = vmatprep.subr.bf16.mxu0 %v8786_v1 }
0x22d1   :  { %v8057_v43 = vpop.eup %8056 }
0x22d2   :  { %v4031_v20 = vsel %vm880_vm7, %v8057_v43, 0.0 }
0x22d3   :  { %4032 = vadd.xlane.f32.xlu0 %v4031_v20  ;;  %v7926_v20 = vld [vmem:[%s10070_s0 + $0x28] sm:$0xff]  }
0x22d5   :  { %v8059_v45 = vpop.eup %8058 }
0x22d6   :  { %v4034_v8 = vsel %vm880_vm7, %v8059_v45, 0.0 }
0x22d7   :  { %4035 = vadd.xlane.f32.xlu0 %v4034_v8  ;;  %v7928_v8 = vld [vmem:[%s10070_s0 + $0x18] sm:$0xff]  }
0x22ed   :  { %4091 = vrot.lane.b32.xlu0 %v9616_v12, %s8768_s9 }
0x235c   :  { %v4033_v46 = vpop.xlane.xlu0 %4032 }
0x235d   :  { %8060 = vrcp.f32 %v4033_v46 }
0x2360   :  { %v4036_v47 = vpop.xlane.xlu0 %4035 }
0x2361   :  { %8062 = vrcp.f32 %v4036_v47 }
0x2364   :  { %v4092_v48 = vpop.permute.xlu0 %4091 }
0x2365   :  { %v4097_v50 = vsel %vm908_vm5, %v4092_v48, 0 }
0x2366   :  { %7486 = vmatpush3.bf16.msra.mxu1 %v4097_v50 }
0x2367   :  { %7499 = vmatprep.subr.bf16.mxu1 %v8786_v1 }
0x236a   :  { %v8061_v52 = vpop.eup %8060 }
0x236b   :  { %v4039_v53 = vmul.f32 %v8061_v52, %v8057_v43  ;;  %v7925_v43 = vld [vmem:[%s10070_s0 + $0x30] sm:$0xff]  }
0x236d   :  { %v4041_v4 = vpack.c.bf16 %v4039_v53, %v4039_v53 }
0x236e   :  { %v8063_v21 = vpop.eup %8062 }
0x236f   :  { %7482 = vmatmul.mubr.msk.bf16.vlgmr.msra.gmra.mxu0 %vm880_vm7, %v4041_v4  ;;  %v4040_v5 = vmul.f32 %v8063_v21, %v8059_v45  ;;  %v7927_v45 = vld [vmem:[%s10070_s0 + $0x20] sm:$0xff]  }
0x2370   :  { %7495 = vmatprep.mubr.msk.bf16.mxu0 %vm8787_vm0, %v8786_v1  ;;  %7492 = vmatpush3.bf16.msra.mxu0 %v7918_v56  ;;  %v6738_v56 = vld [vmem:[#allocation32] ss:$0 sm:$0xff] }
0x2371   :  { %v4042_v12 = vpack.c.bf16 %v4040_v5, %v4040_v5  ;;  %7493 = vmatprep.subr.bf16.mxu0 %v8786_v1  ;;  %v6737_v5 = vld [vmem:[#allocation31] ss:$0 sm:$0xff] }
0x2373   :  { %7488 = vmatmul.mubr.msk.bf16.vlgmr.msra.gmra.mxu1 %vm880_vm7, %v4042_v12 }
0x2374   :  { %7500 = vmatpush3.bf16.msra.mxu1 %v7916_v30  ;;  %7503 = vmatprep.mubr.msk.bf16.mxu1 %vm8787_vm0, %v8786_v1 }
0x2375   :  { %7501 = vmatprep.subr.bf16.mxu1 %v8786_v1  ;;  %7494 = vmatpush3.bf16.msra.mxu0 %v7919_v58 }
0x2376   :  { %7507 = vmatprep.subr.bf16.mxu0 %v8786_v1 }
0x2378   :  { %7502 = vmatpush3.bf16.msra.mxu1 %v7917_v54 }
0x2379   :  { %7519 = vmatprep.subr.bf16.mxu1 %v8786_v1 }
0x237b   :  { %7504 = vmatmul.mubr.msk.bf16.vlgmr.msra.gmra.mxu1 %vm784_vm6, %v3916_v11 }
0x237c   :  { %7535 = vmatprep.mubr.msk.bf16.mxu1 %vm8787_vm0, %v8786_v1  ;;  %7520 = vmatpush3.bf16.msra.mxu1 %v7924_v42  ;;  %v7940_v42 = vld [vmem:[%s10065_s14 + $0x54] ss:$8 sps:$4 sm:$0xff]  }
0x237d   :  { %7521 = vmatprep.subr.bf16.mxu1 %v8786_v1 }
0x2380   :  { %7522 = vmatpush3.bf16.msra.mxu1 %v7925_v43  ;;  %v7938_v43 = vld [vmem:[%s10065_s14 + $0x50] ss:$8 sps:$4 sm:$0xff]  }
0x2381   :  { %7523 = vmatprep.subr.bf16.mxu1 %v8786_v1 }
0x2384   :  { %7524 = vmatpush3.bf16.msra.mxu1 %v7926_v20  ;;  %v7943_v20 = vld [vmem:[%s10065_s14 + $0x44] ss:$8 sps:$4 sm:$0xff]  }
0x2385   :  { %7525 = vmatprep.subr.bf16.mxu1 %v8786_v1 }
0x2388   :  { %7526 = vmatpush3.bf16.msra.mxu1 %v7927_v45  ;;  %v7941_v45 = vld [vmem:[%s10065_s14 + $0x40] ss:$8 sps:$4 sm:$0xff]  }
0x2389   :  { %7527 = vmatprep.subr.bf16.mxu1 %v8786_v1 }
0x238c   :  { %7528 = vmatpush3.bf16.msra.mxu1 %v7928_v8 }
0x238d   :  { %7529 = vmatprep.subr.bf16.mxu1 %v8786_v1 }
0x242f   :  { %v4085_v25 = vpop.f32.mrf.mxu0 }
0x2431   :  { %v7483_v59 = vpop.f32.mrf.mxu0 }
0x2433   :  { %v4088_v28 = vpop.f32.mrf.mxu0  ;;  %v4133_v60 = vpop.f32.mrf.mxu1 }
0x2434   :  { %v4139_v26 = vpack.c.bf16 %v4133_v60, %v4085_v25  ;;  %v7929_v60 = vld [vmem:[%s10070_s0 + $0x10] sm:$0xff]  }
0x2435   :  { %v7484_v61 = vpop.f32.mrf.mxu0  ;;  %v7489_v38 = vpop.f32.mrf.mxu1  ;;  %7530 = vmatpush3.bf16.msra.mxu1 %v7929_v60 }
0x2436   :  { %7496 = vmatmul.mubr.msk.bf16.vlgmr.msra.gmra.mxu0 %vm784_vm6, %v4139_v26  ;;  %7531 = vmatprep.subr.bf16.mxu1 %v8786_v1  ;;  %v7930_v26 = vld [vmem:[%s10070_s0 + $0x8] sm:$0xff]   ;;  %v7931_v61 = vld [vmem:[%s10070_s0] sm:$0xff]  }
0x2437   :  { %v4136_v62 = vpop.f32.mrf.mxu1  ;;  %7515 = vmatprep.mubr.msk.bf16.mxu0 %vm8787_vm0, %v8786_v1  ;;  %7508 = vmatpush3.bf16.msra.mxu0 %v7920_v39  ;;  %v6739_v38 = vld [vmem:[#allocation34] ss:$0 sm:$0xff]  ;;  %v7934_v39 = vld [vmem:[%s10065_s14 + $0x74] ss:$8 sps:$4 sm:$0xff]  }
0x2438   :  { %7509 = vmatprep.subr.bf16.mxu0 %v8786_v1 }
0x2439   :  { %v7490_v49 = vpop.f32.mrf.mxu1  ;;  %7532 = vmatpush3.bf16.msra.mxu1 %v7930_v26 }
0x243a   :  { %7533 = vmatprep.subr.bf16.mxu1 %v8786_v1 }
0x243b   :  { %v4245_v6 = vpop.f32.mrf.mxu1  ;;  %7510 = vmatpush3.bf16.msra.mxu0 %v7921_v40  ;;  %v7932_v40 = vld [vmem:[%s10065_s14 + $0x70] ss:$8 sps:$4 sm:$0xff]  }
0x243c   :  { %7511 = vmatprep.subr.bf16.mxu0 %v8786_v1 }
0x243d   :  { %v7505_v22 = vpop.f32.mrf.mxu1  ;;  %7534 = vmatpush3.bf16.msra.mxu1 %v7931_v61 }
0x243e   :  { %7545 = vmatprep.subr.bf16.mxu1 %v8786_v1 }
0x243f   :  { %v4248_v7 = vpop.f32.mrf.mxu1  ;;  %7512 = vmatpush3.bf16.msra.mxu0 %v7922_v41  ;;  %v7937_v41 = vld [vmem:[%s10065_s14 + $0x64] ss:$8 sps:$4 sm:$0xff]  }
0x2440   :  { %7513 = vmatprep.subr.bf16.mxu0 %v8786_v1 }
0x2441   :  { %v7506_v44 = vpop.f32.mrf.mxu1 }
0x2443   :  { %7514 = vmatpush3.bf16.msra.mxu0 %v7923_v18  ;;  %v7935_v18 = vld [vmem:[%s10065_s14 + $0x60] ss:$8 sps:$4 sm:$0xff]  }
0x2444   :  { %4626 = vmatprep.subr.bf16.mxu0 %v7934_v39 }
0x24f6   :  { %v4189_v9 = vpop.f32.mrf.mxu0 }
0x24f7   :  { %v4246_v29 = vadd.f32 %v4245_v6, %v4189_v9 }
0x24f8   :  { %v7497_v11 = vpop.f32.mrf.mxu0 }
0x24f9   :  { %v4259_v63 = vadd.f32 %v6736_v10, %v4246_v29  ;;  %v6745_v29 = vld [vmem:[#allocation35] ss:$0 sm:$0xff] }
0x24fa   :  { %v4192_v55 = vpop.f32.mrf.mxu0 }
0x24fb   :  { %v4249_v14 = vadd.f32 %v4248_v7, %v4192_v55  ;;  %v4261_v57 = vadd.f32 %v4259_v63, %v9603_v2 }
0x24fc   :  { %v7498_v17 = vpop.f32.mrf.mxu0 }
0x24fd   :  { %v4260_v19 = vadd.f32 %v6736_v10, %v4249_v14  ;;  %v4265_v23 = vsel %vm718_vm4, %v4261_v57, 0.0 }
0x24fe   :  { %4266 = vadd.xlane.f32.xlu1 %v4265_v23 }
0x24ff   :  { %v4262_v13 = vadd.f32 %v4260_v19, %v9605_v3 }
0x2501   :  { %v4268_v15 = vsel %vm718_vm4, %v4262_v13, 0.0 }
0x2502   :  { %4269 = vadd.xlane.f32.xlu0 %v4268_v15 }
0x2587   :  { %v4267_v16 = vpop.xlane.xlu1 %4266 }
0x2588   :  { %v4271_v24 = vmul.f32 0.015625, %v4267_v16 }
0x258a   :  { %v4273_v27 = vsub.f32 %v4261_v57, %v4271_v24 }
0x258b   :  { %v4270_v31 = vpop.xlane.xlu0 %4269 }
0x258c   :  { %v4272_v32 = vmul.f32 0.015625, %v4270_v31  ;;  %v4275_v2 = vmul.f32 %v4273_v27, %v4273_v27 }
0x258e   :  { %v4274_v34 = vsub.f32 %v4262_v13, %v4272_v32  ;;  %v4277_v36 = vsel %vm718_vm4, %v4275_v2, 0.0 }
0x258f   :  { %4278 = vadd.xlane.f32.xlu1 %v4277_v36 }
0x2590   :  { %v4276_v37 = vmul.f32 %v4274_v34, %v4274_v34 }
0x2592   :  { %v4280_v3 = vsel %vm718_vm4, %v4276_v37, 0.0 }
0x2593   :  { %4281 = vadd.xlane.f32.xlu0 %v4280_v3 }
0x2618   :  { %v4279_v46 = vpop.xlane.xlu1 %4278 }
0x2619   :  { %v4283_v47 = vmul.f32 0.015625, %v4279_v46 }
0x261b   :  { %v4285_v48 = vadd.f32 1e-05, %v4283_v47 }
0x261c   :  { %v4282_v50 = vpop.xlane.xlu0 %4281 }
0x261d   :  { %8064 = vrsqrt.f32 %v4285_v48  ;;  %v4284_v52 = vmul.f32 0.015625, %v4282_v50 }
0x261f   :  { %v4286_v53 = vadd.f32 1e-05, %v4284_v52 }
0x2621   :  { %8066 = vrsqrt.f32 %v4286_v53 }
0x262a   :  { %v8065_v4 = vpop.eup %8064 }
0x262b   :  { %v4289_v21 = vmul.f32 %v8065_v4, %v4273_v27 }
0x262d   :  { %v4297_v54 = vmul.f32 %v6737_v5, %v4289_v21  ;;  %v6754_v21 = vld [vmem:[#allocation37] ss:$0 sm:$0xff] }
0x262e   :  { %v8067_v30 = vpop.eup %8066 }
0x262f   :  { %v4290_v12 = vmul.f32 %v8067_v30, %v4274_v34  ;;  %v4305_v25 = vadd.f32 %v6738_v56, %v4297_v54  ;;  %v6755_v54 = vld [vmem:[#allocation38] ss:$0 sm:$0xff] }
0x2631   :  { %v4298_v58 = vmul.f32 %v6737_v5, %v4290_v12 }
0x2633   :  { %v4306_v59 = vadd.f32 %v6738_v56, %v4298_v58 }
0x2635   :  { %v4315_v28 = vpack.c.bf16 %v4306_v59, %v4305_v25 }
0x2637   :  { %7516 = vmatmul.mubr.msk.bf16.vlgmr.msra.gmra.mxu0 %vm718_vm4, %v4315_v28  ;;  %v4563_v28 = vld [vmem:[#allocation19 + $0x2] sm:$0x3] }
0x2638   :  { %4650 = vmatprep.mubr.bf16.mxu0 %v8785_v0  ;;  %4627 = vmatpush1.bf16.msra.mxu0 %v7932_v40  ;;  %v4568_v60 = vrot.slane %v4563_v28, %v9158_v33 }
0x2639   :  { %4628 = vmatprep.subr.bf16.mxu0 %v7937_v41 }
0x263c   :  { %4629 = vmatpush1.bf16.msra.mxu0 %v7935_v18 }
0x263d   :  { %4630 = vmatprep.subr.bf16.mxu0 %v7940_v42 }
0x2640   :  { %4631 = vmatpush1.bf16.msra.mxu0 %v7938_v43 }
0x2641   :  { %4632 = vmatprep.subr.bf16.mxu0 %v7943_v20 }
0x2644   :  { %4633 = vmatpush1.bf16.msra.mxu0 %v7941_v45 }
0x2645   :  { %7539 = vmatprep.subr.bf16.mxu0 %v8786_v1 }
0x26f7   :  { %v4384_v62 = vpop.f32.mrf.mxu0 }
0x26f8   :  { %v4385_v6 = vadd.f32 %v6739_v38, %v4384_v62 }
0x26f9   :  { %v7517_v49 = vpop.f32.mrf.mxu0 }
0x26fa   :  { %v4391_v0 = vmax.f32 %v4385_v6, 0.0 }
0x26fb   :  { %v4387_v22 = vpop.f32.mrf.mxu0 }
0x26fc   :  { %v4388_v7 = vadd.f32 %v6739_v38, %v4387_v22 }
0x26fd   :  { %v7518_v44 = vpop.f32.mrf.mxu0 }
0x26fe   :  { %v4392_v9 = vmax.f32 %v4388_v7, 0.0  ;;  %v4572_v7 = vrot.slane %v4563_v28, %v9160_v35 }
0x2700   :  { %v4409_v10 = vpack.c.bf16 %v4392_v9, %v4391_v0 }
0x2702   :  { %7536 = vmatmul.mubr.bf16.vlgmr.msra.gmra.mxu1 %v4409_v10 }
0x2703   :  { %7547 = vmatprep.mubr.msk.bf16.mxu1 %vm8787_vm0, %v8786_v1 }
0x27c2   :  { %v4499_v11 = vpop.f32.mrf.mxu1 }
0x27c3   :  { %v4500_v63 = vadd.f32 %v6745_v29, %v4499_v11 }
0x27c4   :  { %v7537_v55 = vpop.f32.mrf.mxu1 }
0x27c5   :  { %v4506_v14 = vadd.f32 %v4500_v63, %v4305_v25 }
0x27c6   :  { %v4502_v57 = vpop.f32.mrf.mxu1 }
0x27c7   :  { %v4503_v17 = vadd.f32 %v6745_v29, %v4502_v57  ;;  %v4510_v19 = vsel %vm718_vm4, %v4506_v14, 0.0 }
0x27c8   :  { %4511 = vadd.xlane.f32.xlu1 %v4510_v19  ;;  %v7538_v23 = vpop.f32.mrf.mxu1 }
0x27c9   :  { %v4507_v13 = vadd.f32 %v4503_v17, %v4306_v59 }
0x27cb   :  { %v4513_v15 = vsel %vm718_vm4, %v4507_v13, 0.0 }
0x27cc   :  { %4514 = vadd.xlane.f32.xlu0 %v4513_v15 }
0x2851   :  { %v4512_v16 = vpop.xlane.xlu1 %4511 }
0x2852   :  { %v4516_v24 = vmul.f32 0.015625, %v4512_v16 }
0x2854   :  { %v4518_v27 = vsub.f32 %v4506_v14, %v4516_v24 }
0x2855   :  { %v4515_v31 = vpop.xlane.xlu0 %4514 }
0x2856   :  { %v4517_v32 = vmul.f32 0.015625, %v4515_v31  ;;  %v4520_v2 = vmul.f32 %v4518_v27, %v4518_v27 }
0x2858   :  { %v4519_v34 = vsub.f32 %v4507_v13, %v4517_v32  ;;  %v4522_v36 = vsel %vm718_vm4, %v4520_v2, 0.0 }
0x2859   :  { %4523 = vadd.xlane.f32.xlu1 %v4522_v36 }
0x285a   :  { %v4521_v37 = vmul.f32 %v4519_v34, %v4519_v34 }
0x285c   :  { %v4525_v3 = vsel %vm718_vm4, %v4521_v37, 0.0 }
0x285d   :  { %4526 = vadd.xlane.f32.xlu0 %v4525_v3 }
0x28e2   :  { %v4524_v8 = vpop.xlane.xlu1 %4523 }
0x28e3   :  { %v4528_v46 = vmul.f32 0.015625, %v4524_v8 }
0x28e5   :  { %v4530_v47 = vadd.f32 1e-05, %v4528_v46 }
0x28e6   :  { %v4527_v48 = vpop.xlane.xlu0 %4526 }
0x28e7   :  { %8068 = vrsqrt.f32 %v4530_v47  ;;  %v4529_v50 = vmul.f32 0.015625, %v4527_v48 }
0x28e9   :  { %v4531_v52 = vadd.f32 1e-05, %v4529_v50 }
0x28eb   :  { %8070 = vrsqrt.f32 %v4531_v52 }
0x28f4   :  { %v8069_v53 = vpop.eup %8068 }
0x28f5   :  { %v4534_v4 = vmul.f32 %v8069_v53, %v4518_v27 }
0x28f7   :  { %v4542_v12 = vmul.f32 %v6754_v21, %v4534_v4 }
0x28f8   :  { %v8071_v5 = vpop.eup %8070 }
0x28f9   :  { %v4535_v30 = vmul.f32 %v8071_v5, %v4519_v34  ;;  %v9742_v58 = vadd.f32 %v6755_v54, %v4542_v12 }
0x28fb   :  { %v4543_v56 = vmul.f32 %v6754_v21, %v4535_v30 }
0x28fd   :  { %v9744_v25 = vadd.f32 %v6755_v54, %v4543_v56 }
0x28ff   :  { %v4561_v59 = vpack.c.bf16 %v9744_v25, %v9742_v58 }
0x2901   :  { %6772 = vmatmul.mubr.msk.bf16.vlgmr.msra.gmra.mxu0 %vm718_vm4, %v4561_v59 }
0x2902   :  { %7541 = vmatprep.mubr.msk.bf16.mxu0 %vm8787_vm0, %v8786_v1 }
0x29c1   :  { %v4652_v26 = vpop.f32.mrf.mxu0 }
0x29c2   :  { %v4653_v61 = vadd.f32 %v4652_v26, %v4568_v60 }
0x29c3   :  { %v4654_v38 = vpop.f32.mrf.mxu0 }
0x29c4   :  { %v4674_v62 = vpack.c.bf16 %v4653_v61, %v4653_v61  ;;  %v4655_v0 = vadd.f32 %v4654_v38, %v4572_v7  ;;  %v4670_v33 = vmul.f32 0.17677669, %v4653_v61 }
0x29c5   :  { %v4656_v49 = vpop.f32.mrf.mxu0 }
0x29c6   :  { %v4657_v6 = vadd.f32 %v4656_v49, %v4568_v60  ;;  %4679 = vrot.lane.b32.xlu1 %v4674_v62, %s8778_s25  ;;  %v9757_v11 = vpack.c.bf16 %v4655_v0, %v4655_v0  ;;  %v4672_v14 = vpack.c.bf16 %v4670_v33, %v4670_v33 }
0x29c7   :  { %v4658_v10 = vpop.f32.mrf.mxu0 }
0x29c8   :  { %v4675_v22 = vpack.c.bf16 %v4657_v6, %v4657_v6  ;;  %v4659_v63 = vadd.f32 %v4658_v10, %v4572_v7  ;;  %v4671_v57 = vmul.f32 0.17677669, %v4657_v6  ;;  %v4804_v35 = vsel %vm908_vm5, %v9757_v11, 0 }
0x29ca   :  { %4728 = vrot.lane.b32.xlu0 %v4675_v22, %s8778_s25  ;;  %v9763_v17 = vpack.c.bf16 %v4659_v63, %v4659_v63  ;;  %v4673_v19 = vpack.c.bf16 %v4671_v57, %v4671_v57 }
0x29cc   :  { %v4850_v23 = vsel %vm908_vm5, %v9763_v17, 0 }
0x2a38   :  { %v4680_v44 = vpop.permute.xlu1 %4679 }
0x2a39   :  { %v4685_v9 = vsel %vm784_vm6, %v4680_v44, 0 }
0x2a3a   :  { %7540 = vmatpush3.bf16.xpose.msra.mxu0 %v4685_v9 }
0x2a3b   :  { %7551 = vmatprep.subr.bf16.mxu0 %v8786_v1 }
0x2a3c   :  { %v4729_v29 = vpop.permute.xlu0 %4728 }
0x2a3d   :  { %v4734_v55 = vsel %vm784_vm6, %v4729_v29, 0 }
0x2a3e   :  { %7546 = vmatpush3.bf16.xpose.msra.mxu1 %v4734_v55 }
0x2a3f   :  { %7557 = vmatprep.subr.bf16.mxu1 %v8786_v1 }
0x2a41   :  { %7542 = vmatmul.mubr.msk.bf16.vlgmr.msra.gmra.mxu0 %vm784_vm6, %v4672_v14 }
0x2a42   :  { %7552 = vmatpush3.bf16.msra.mxu0 %v4804_v35  ;;  %7553 = vmatprep.mubr.msk.bf16.mxu0 %vm8787_vm0, %v8786_v1 }
0x2a43   :  { %7563 = vmatprep.subr.bf16.mxu0 %v8786_v1 }
0x2a45   :  { %7548 = vmatmul.mubr.msk.bf16.vlgmr.msra.gmra.mxu1 %vm784_vm6, %v4673_v19 }
0x2a46   :  { %7558 = vmatpush3.bf16.msra.mxu1 %v4850_v23  ;;  %7559 = vmatprep.mubr.msk.bf16.mxu1 %vm8787_vm0, %v8786_v1 }
0x2a47   :  { %7569 = vmatprep.subr.bf16.mxu1 %v8786_v1 }
0x2b01   :  { %v4721_v13 = vpop.f32.mrf.mxu0 }
0x2b02   :  { %v4776_v15 = vsel %vm880_vm7, %v4721_v13, -inf }
0x2b03   :  { %4777 = vmax.xlane.f32.xlu1 %v4776_v15  ;;  %v7543_v16 = vpop.f32.mrf.mxu0 }
0x2b05   :  { %v4724_v24 = vpop.f32.mrf.mxu0  ;;  %v4770_v27 = vpop.f32.mrf.mxu1 }
0x2b06   :  { %v4779_v31 = vsel %vm880_vm7, %v4770_v27, -inf }
0x2b07   :  { %4780 = vmax.xlane.f32.xlu0 %v4779_v31  ;;  %v7544_v32 = vpop.f32.mrf.mxu0  ;;  %v7549_v2 = vpop.f32.mrf.mxu1 }
0x2b09   :  { %v4773_v34 = vpop.f32.mrf.mxu1 }
0x2b0b   :  { %v7550_v36 = vpop.f32.mrf.mxu1 }
0x2b14   :  { %4896 = vrot.lane.b32.xlu1 %v4674_v62, %s8768_s9 }
0x2b8c   :  { %v4778_v37 = vpop.xlane.xlu1 %4777 }
0x2b8d   :  { %v4782_v3 = vsub.f32 %v4721_v13, %v4778_v37 }
0x2b8f   :  { %v4784_v39 = vmul.f32 1.442695, %v4782_v3 }
0x2b90   :  { %v4781_v40 = vpop.xlane.xlu0 %4780  ;;  %v4897_v8 = vpop.permute.xlu1 %4896 }
0x2b91   :  { %8072 = vpow2.f32 %v4784_v39  ;;  %v4783_v41 = vsub.f32 %v4770_v27, %v4781_v40  ;;  %v4902_v4 = vsel %vm784_vm6, %v4897_v8, 0  ;;  %v7949_v8 = vld [vmem:[%s10067_s5 + $0x20] sm:$0xff]  }
0x2b93   :  { %v4786_v18 = vmul.f32 1.442695, %v4783_v41 }
0x2b95   :  { %8074 = vpow2.f32 %v4786_v18 }
0x2b9e   :  { %v8073_v42 = vpop.eup %8072 }
0x2b9f   :  { %v4788_v43 = vsel %vm880_vm7, %v8073_v42, 0.0 }
0x2ba0   :  { %4789 = vadd.xlane.f32.xlu1 %v4788_v43  ;;  %v7946_v43 = vld [vmem:[%s10067_s5 + $0x38] sm:$0xff]  }
0x2ba2   :  { %v8075_v20 = vpop.eup %8074 }
0x2ba3   :  { %v4791_v45 = vsel %vm880_vm7, %v8075_v20, 0.0 }
0x2ba4   :  { %4792 = vadd.xlane.f32.xlu0 %v4791_v45  ;;  %v7948_v45 = vld [vmem:[%s10067_s5 + $0x28] sm:$0xff]  }
0x2bb1   :  { %4894 = vrot.lane.b32.xlu1 %v4672_v14, %s8789_s4 }
0x2bb5   :  { %4945 = vrot.lane.b32.xlu1 %v4673_v19, %s8789_s4 }
0x2bba   :  { %4947 = vrot.lane.b32.xlu0 %v4675_v22, %s8768_s9 }
0x2c29   :  { %v4790_v46 = vpop.xlane.xlu1 %4789 }
0x2c2a   :  { %8076 = vrcp.f32 %v4790_v46  ;;  %v7950_v46 = vld [vmem:[%s10066_s8 + $0x38] sm:$0xff]  }
0x2c2d   :  { %v4793_v47 = vpop.xlane.xlu0 %4792  ;;  %v4895_v54 = vpop.permute.xlu1 %4894 }
0x2c2e   :  { %8078 = vrcp.f32 %v4793_v47  ;;  %v7951_v47 = vld [vmem:[%s10066_s8 + $0x30] sm:$0xff]  }
0x2c31   :  { %v4948_v5 = vpop.permute.xlu0 %4947  ;;  %v4946_v56 = vpop.permute.xlu1 %4945 }
0x2c32   :  { %v4953_v12 = vsel %vm784_vm6, %v4948_v5, 0 }
0x2c37   :  { %v8077_v48 = vpop.eup %8076 }
0x2c38   :  { %v4796_v50 = vmul.f32 %v8077_v48, %v8073_v42  ;;  %v7945_v42 = vld [vmem:[%s10066_s8 + $0x20] sm:$0xff]  }
0x2c3a   :  { %v4798_v52 = vpack.c.bf16 %v4796_v50, %v4796_v50 }
0x2c3b   :  { %v8079_v53 = vpop.eup %8078 }
0x2c3c   :  { %v4797_v21 = vmul.f32 %v8079_v53, %v8075_v20  ;;  %7554 = vmatmul.mubr.msk.bf16.vlgmr.msra.gmra.mxu0 %vm880_vm7, %v4798_v52  ;;  %v7947_v20 = vld [vmem:[%s10067_s5 + $0x30] sm:$0xff]  }
0x2c3d   :  { %7564 = vmatpush3.bf16.xpose.msra.mxu0 %v4902_v4  ;;  %7565 = vmatprep.mubr.msk.bf16.mxu0 %vm8787_vm0, %v8786_v1 }
0x2c3e   :  { %v4799_v30 = vpack.c.bf16 %v4797_v21, %v4797_v21  ;;  %7575 = vmatprep.subr.bf16.mxu0 %v8786_v1 }
0x2c40   :  { %7560 = vmatmul.mubr.msk.bf16.vlgmr.msra.gmra.mxu1 %vm880_vm7, %v4799_v30 }
0x2c41   :  { %7570 = vmatpush3.bf16.xpose.msra.mxu1 %v4953_v12  ;;  %7571 = vmatprep.mubr.msk.bf16.mxu1 %vm8787_vm0, %v8786_v1 }
0x2c42   :  { %7581 = vmatprep.subr.bf16.mxu1 %v8786_v1 }
0x2c44   :  { %7566 = vmatmul.mubr.msk.bf16.vlgmr.msra.gmra.mxu0 %vm784_vm6, %v4895_v54 }
0x2c45   :  { %7577 = vmatprep.mubr.msk.bf16.mxu0 %vm8787_vm0, %v8786_v1 }
0x2c48   :  { %7572 = vmatmul.mubr.msk.bf16.vlgmr.msra.gmra.mxu1 %vm784_vm6, %v4946_v56 }
0x2c49   :  { %7583 = vmatprep.mubr.msk.bf16.mxu1 %vm8787_vm0, %v8786_v1 }
0x2cfc   :  { %v9799_v59 = vpop.f32.mrf.mxu0 }
0x2cfe   :  { %v7555_v28 = vpop.f32.mrf.mxu0 }
0x2cff   :  { %v6820_v28 = vld [vmem:[#allocation26 + $0x1] ss:$0 sm:$0xff] }
0x2d00   :  { %v4843_v60 = vpop.f32.mrf.mxu0  ;;  %v9801_v26 = vpop.f32.mrf.mxu1 }
0x2d01   :  { %v4892_v61 = vpack.c.bf16 %v9801_v26, %v9799_v59 }
0x2d02   :  { %v7556_v38 = vpop.f32.mrf.mxu0  ;;  %v7561_v62 = vpop.f32.mrf.mxu1 }
0x2d04   :  { %v4889_v49 = vpop.f32.mrf.mxu1  ;;  %v4938_v6 = vpop.f32.mrf.mxu0 }
0x2d05   :  { %v4995_v22 = vsel %vm880_vm7, %v4938_v6, -inf }
0x2d06   :  { %v7562_v7 = vpop.f32.mrf.mxu1  ;;  %4996 = vmax.xlane.f32.xlu0 %v4995_v22  ;;  %v7567_v44 = vpop.f32.mrf.mxu0 }
0x2d07   :  { %v6795_v44 = vld [vmem:[#allocation20 + $0x1] ss:$0 sm:$0xff] }
0x2d08   :  { %v4941_v0 = vpop.f32.mrf.mxu0  ;;  %v4989_v9 = vpop.f32.mrf.mxu1 }
0x2d09   :  { %v4998_v10 = vsel %vm880_vm7, %v4989_v9, -inf }
0x2d0a   :  { %4999 = vmax.xlane.f32.xlu1 %v4998_v10  ;;  %v7568_v33 = vpop.f32.mrf.mxu0  ;;  %v7573_v29 = vpop.f32.mrf.mxu1 }
0x2d0c   :  { %v4992_v63 = vpop.f32.mrf.mxu1 }
0x2d0e   :  { %v7574_v55 = vpop.f32.mrf.mxu1 }
0x2d1b   :  { %5020 = vrot.lane.b32.xlu1 %v9757_v11, %s8789_s4 }
0x2d8f   :  { %v4997_v14 = vpop.xlane.xlu0 %4996 }
0x2d90   :  { %v5001_v57 = vsub.f32 %v4938_v6, %v4997_v14 }
0x2d92   :  { %v5003_v35 = vmul.f32 1.442695, %v5001_v57 }
0x2d93   :  { %v5000_v19 = vpop.xlane.xlu1 %4999 }
0x2d94   :  { %8080 = vpow2.f32 %v5003_v35  ;;  %v5002_v23 = vsub.f32 %v4989_v9, %v5000_v19 }
0x2d96   :  { %v5005_v13 = vmul.f32 1.442695, %v5002_v23 }
0x2d97   :  { %v5021_v15 = vpop.permute.xlu1 %5020 }
0x2d98   :  { %8082 = vpow2.f32 %v5005_v13  ;;  %v5026_v16 = vsel %vm908_vm5, %v5021_v15, 0 }
0x2d99   :  { %7576 = vmatpush3.bf16.msra.mxu0 %v5026_v16 }
0x2d9a   :  { %7587 = vmatprep.subr.bf16.mxu0 %v8786_v1 }
0x2da1   :  { %v8081_v24 = vpop.eup %8080 }
0x2da2   :  { %v5007_v27 = vsel %vm880_vm7, %v8081_v24, 0.0 }
0x2da3   :  { %5008 = vadd.xlane.f32.xlu0 %v5007_v27 }
0x2da5   :  { %v8083_v31 = vpop.eup %8082 }
0x2da6   :  { %v5010_v11 = vsel %vm880_vm7, %v8083_v31, 0.0 }
0x2da7   :  { %5011 = vadd.xlane.f32.xlu0 %v5010_v11 }
0x2dbd   :  { %5069 = vrot.lane.b32.xlu0 %v9763_v17, %s8789_s4  ;;  %v7944_v17 = vld [vmem:[%s10066_s8 + $0x28] sm:$0xff]  }
0x2e2c   :  { %v5009_v32 = vpop.xlane.xlu0 %5008 }
0x2e2d   :  { %8084 = vrcp.f32 %v5009_v32 }
0x2e30   :  { %v5012_v2 = vpop.xlane.xlu0 %5011 }
0x2e31   :  { %8086 = vrcp.f32 %v5012_v2  ;;  %v7953_v2 = vld [vmem:[%s10068_s21 + $0x30] sm:$0xff]  }
0x2e34   :  { %v5070_v34 = vpop.permute.xlu0 %5069 }
0x2e35   :  { %v5075_v36 = vsel %vm908_vm5, %v5070_v34, 0  ;;  %v7954_v34 = vld [vmem:[%s10068_s21 + $0x28] sm:$0xff]  }
0x2e36   :  { %7582 = vmatpush3.bf16.msra.mxu1 %v5075_v36  ;;  %v7955_v36 = vld [vmem:[%s10068_s21 + $0x20] sm:$0xff]  }
0x2e37   :  { %7595 = vmatprep.subr.bf16.mxu1 %v8786_v1 }
0x2e3a   :  { %v8085_v37 = vpop.eup %8084 }
0x2e3b   :  { %v5015_v3 = vmul.f32 %v8085_v37, %v8081_v24 }
0x2e3d   :  { %v5017_v39 = vpack.c.bf16 %v5015_v3, %v5015_v3 }
0x2e3e   :  { %v8087_v40 = vpop.eup %8086 }
0x2e3f   :  { %v5016_v41 = vmul.f32 %v8087_v40, %v8083_v31  ;;  %7578 = vmatmul.mubr.msk.bf16.vlgmr.msra.gmra.mxu0 %vm880_vm7, %v5017_v39 }
0x2e40   :  { %7591 = vmatprep.mubr.msk.bf16.mxu0 %vm8787_vm0, %v8786_v1  ;;  %7588 = vmatpush3.bf16.msra.mxu0 %v7950_v46  ;;  %v6797_v46 = vld [vmem:[#allocation23 + $0x1] ss:$0 sm:$0xff] }
0x2e41   :  { %v5018_v18 = vpack.c.bf16 %v5016_v41, %v5016_v41  ;;  %7589 = vmatprep.subr.bf16.mxu0 %v8786_v1 }
0x2e43   :  { %7584 = vmatmul.mubr.msk.bf16.vlgmr.msra.gmra.mxu1 %vm880_vm7, %v5018_v18 }
0x2e44   :  { %7596 = vmatpush3.bf16.msra.mxu1 %v7944_v17  ;;  %7599 = vmatprep.mubr.msk.bf16.mxu1 %vm8787_vm0, %v8786_v1 }
0x2e45   :  { %7597 = vmatprep.subr.bf16.mxu1 %v8786_v1  ;;  %7590 = vmatpush3.bf16.msra.mxu0 %v7951_v47 }
0x2e46   :  { %7603 = vmatprep.subr.bf16.mxu0 %v8786_v1 }
0x2e48   :  { %7598 = vmatpush3.bf16.msra.mxu1 %v7945_v42 }
0x2e49   :  { %7615 = vmatprep.subr.bf16.mxu1 %v8786_v1 }
0x2e4b   :  { %7600 = vmatmul.mubr.msk.bf16.vlgmr.msra.gmra.mxu1 %vm784_vm6, %v4892_v61 }
0x2e4c   :  { %7616 = vmatpush3.bf16.msra.mxu1 %v7946_v43  ;;  %7623 = vmatprep.mubr.msk.bf16.mxu1 %vm8787_vm0, %v8786_v1  ;;  %v6796_v43 = vld [vmem:[#allocation22 + $0x1] ss:$0 sm:$0xff] }
0x2e4d   :  { %7617 = vmatprep.subr.bf16.mxu1 %v8786_v1 }
0x2e50   :  { %7618 = vmatpush3.bf16.msra.mxu1 %v7947_v20 }
0x2e51   :  { %7619 = vmatprep.subr.bf16.mxu1 %v8786_v1 }
0x2e54   :  { %7620 = vmatpush3.bf16.msra.mxu1 %v7948_v45 }
0x2e55   :  { %7621 = vmatprep.subr.bf16.mxu1 %v8786_v1 }
0x2e58   :  { %7622 = vmatpush3.bf16.msra.mxu1 %v7949_v8 }
0x2e59   :  { %7633 = vmatprep.subr.bf16.mxu1 %v8786_v1 }
0x2e5b   :  { %7624 = vmatmul.mubr.msk.bf16.vlgmr.msra.gmra.mxu1 %vm718_vm4, %v9590_v51 }
0x2e5c   :  { %7635 = vmatprep.mubr.msk.bf16.mxu1 %vm8787_vm0, %v8786_v1 }
0x2eff   :  { %v5062_v48 = vpop.f32.mrf.mxu0 }
0x2f01   :  { %v7579_v50 = vpop.f32.mrf.mxu0 }
0x2f03   :  { %v5065_v52 = vpop.f32.mrf.mxu0  ;;  %v5111_v53 = vpop.f32.mrf.mxu1 }
0x2f04   :  { %v5117_v4 = vpack.c.bf16 %v5111_v53, %v5062_v48 }
0x2f05   :  { %v7580_v21 = vpop.f32.mrf.mxu0  ;;  %v7585_v5 = vpop.f32.mrf.mxu1 }
0x2f06   :  { %7592 = vmatmul.mubr.msk.bf16.vlgmr.msra.gmra.mxu0 %vm784_vm6, %v5117_v4  ;;  %v6806_v21 = vld [vmem:[#allocation25 + $0x1] ss:$0 sm:$0xff] }
0x2f07   :  { %v5114_v51 = vpop.f32.mrf.mxu1  ;;  %7611 = vmatprep.mubr.msk.bf16.mxu0 %vm8787_vm0, %v8786_v1 }
0x2f09   :  { %v7586_v30 = vpop.f32.mrf.mxu1 }
0x2f0b   :  { %v5223_v12 = vpop.f32.mrf.mxu1 }
0x2f0d   :  { %v7601_v54 = vpop.f32.mrf.mxu1 }
0x2f0f   :  { %v5226_v56 = vpop.f32.mrf.mxu1 }
0x2f11   :  { %v7602_v59 = vpop.f32.mrf.mxu1 }
0x2f1b   :  { %v5449_v60 = vpop.f32.mrf.mxu1 }
0x2f1c   :  { %v9849_v26 = vadd.f32 %v6820_v28, %v5449_v60 }
0x2f1d   :  { %v7625_v61 = vpop.f32.mrf.mxu1 }
0x2f1e   :  { %v9872_v48 = vpack.c.bf16 %v9849_v26, %v9849_v26 }
0x2f1f   :  { %v5452_v38 = vpop.f32.mrf.mxu1 }
0x2f20   :  { %v5453_v62 = vadd.f32 %v6820_v28, %v5452_v38  ;;  %v5475_v4 = vsel %vm784_vm6, %v9872_v48, 0 }
0x2f21   :  { %v7626_v49 = vpop.f32.mrf.mxu1 }
0x2f22   :  { %v9851_v6 = vpack.c.bf16 %v5453_v62, %v5453_v62 }
0x2f24   :  { %v5521_v22 = vsel %vm784_vm6, %v9851_v6, 0 }
0x2f25   :  { %7634 = vmatpush3.bf16.xpose.msra.mxu1 %v5521_v22 }
0x2f26   :  { %7645 = vmatprep.subr.bf16.mxu1 %v8786_v1 }
0x2fc6   :  { %v5167_v7 = vpop.f32.mrf.mxu0 }
0x2fc7   :  { %v5224_v0 = vadd.f32 %v5223_v12, %v5167_v7 }
0x2fc8   :  { %v7593_v9 = vpop.f32.mrf.mxu0 }
0x2fc9   :  { %v5238_v10 = vadd.f32 %v6795_v44, %v5224_v0 }
0x2fca   :  { %v5170_v33 = vpop.f32.mrf.mxu0 }
0x2fcb   :  { %v5227_v29 = vadd.f32 %v5226_v56, %v5170_v33  ;;  %v5240_v63 = vadd.f32 %v5238_v10, %v9742_v58 }
0x2fcc   :  { %v7594_v55 = vpop.f32.mrf.mxu0 }
0x2fcd   :  { %v5239_v14 = vadd.f32 %v6795_v44, %v5227_v29  ;;  %v5246_v57 = vsel %vm718_vm4, %v5240_v63, 0.0 }
0x2fce   :  { %5247 = vadd.xlane.f32.xlu1 %v5246_v57 }
0x2fcf   :  { %v5241_v35 = vadd.f32 %v5239_v14, %v9744_v25  ;;  %v7952_v25 = vld [vmem:[%s10068_s21 + $0x38] sm:$0xff]  }
0x2fd0   :  { %7604 = vmatpush3.bf16.msra.mxu0 %v7952_v25 }
0x2fd1   :  { %v5249_v19 = vsel %vm718_vm4, %v5241_v35, 0.0  ;;  %7605 = vmatprep.subr.bf16.mxu0 %v8786_v1 }
0x2fd2   :  { %5250 = vadd.xlane.f32.xlu0 %v5249_v19 }
0x2fd4   :  { %7606 = vmatpush3.bf16.msra.mxu0 %v7953_v2 }
0x2fd5   :  { %7607 = vmatprep.subr.bf16.mxu0 %v8786_v1 }
0x2fd8   :  { %7608 = vmatpush3.bf16.msra.mxu0 %v7954_v34 }
0x2fd9   :  { %7609 = vmatprep.subr.bf16.mxu0 %v8786_v1 }
0x2fdc   :  { %7610 = vmatpush3.bf16.msra.mxu0 %v7955_v36 }
0x2fdd   :  { %7627 = vmatprep.subr.bf16.mxu0 %v8786_v1 }
0x3057   :  { %v5248_v23 = vpop.xlane.xlu1 %5247 }
0x3058   :  { %v5252_v13 = vmul.f32 0.015625, %v5248_v23 }
0x305a   :  { %v5254_v15 = vsub.f32 %v5240_v63, %v5252_v13 }
0x305b   :  { %v5251_v16 = vpop.xlane.xlu0 %5250 }
0x305c   :  { %v5253_v24 = vmul.f32 0.015625, %v5251_v16  ;;  %v5256_v27 = vmul.f32 %v5254_v15, %v5254_v15 }
0x305e   :  { %v5255_v58 = vsub.f32 %v5241_v35, %v5253_v24  ;;  %v5258_v31 = vsel %vm718_vm4, %v5256_v27, 0.0 }
0x305f   :  { %5259 = vadd.xlane.f32.xlu1 %v5258_v31 }
0x3060   :  { %v5257_v11 = vmul.f32 %v5255_v58, %v5255_v58 }
0x3062   :  { %v5261_v32 = vsel %vm718_vm4, %v5257_v11, 0.0 }
0x3063   :  { %5262 = vadd.xlane.f32.xlu0 %v5261_v32 }
0x30e8   :  { %v5260_v37 = vpop.xlane.xlu1 %5259 }
0x30e9   :  { %v5264_v3 = vmul.f32 0.015625, %v5260_v37 }
0x30eb   :  { %v5266_v39 = vadd.f32 1e-05, %v5264_v3 }
0x30ec   :  { %v5263_v40 = vpop.xlane.xlu0 %5262 }
0x30ed   :  { %8088 = vrsqrt.f32 %v5266_v39  ;;  %v5265_v41 = vmul.f32 0.015625, %v5263_v40 }
0x30ef   :  { %v5267_v17 = vadd.f32 1e-05, %v5265_v41 }
0x30f1   :  { %8090 = vrsqrt.f32 %v5267_v17 }
0x30fa   :  { %v8089_v18 = vpop.eup %8088 }
0x30fb   :  { %v5270_v42 = vmul.f32 %v8089_v18, %v5254_v15 }
0x30fd   :  { %v5278_v45 = vmul.f32 %v6796_v43, %v5270_v42 }
0x30fe   :  { %v8091_v20 = vpop.eup %8090 }
0x30ff   :  { %v5271_v8 = vmul.f32 %v8091_v20, %v5255_v58  ;;  %v9874_v50 = vadd.f32 %v6797_v46, %v5278_v45 }
0x3101   :  { %v5279_v47 = vmul.f32 %v6796_v43, %v5271_v8 }
0x3103   :  { %v9876_v52 = vadd.f32 %v6797_v46, %v5279_v47 }
0x3105   :  { %v5297_v53 = vpack.c.bf16 %v9876_v52, %v9874_v50 }
0x3107   :  { %7612 = vmatmul.mubr.msk.bf16.vlgmr.msra.gmra.mxu0 %vm718_vm4, %v5297_v53 }
0x3108   :  { %7628 = vmatpush3.bf16.xpose.msra.mxu0 %v5475_v4  ;;  %7629 = vmatprep.mubr.msk.bf16.mxu0 %vm8787_vm0, %v8786_v1 }
0x3109   :  { %7639 = vmatprep.subr.bf16.mxu0 %v8786_v1 }
0x31c7   :  { %v5367_v5 = vpop.f32.mrf.mxu0 }
0x31c8   :  { %v5368_v51 = vadd.f32 %v6806_v21, %v5367_v5 }
0x31c9   :  { %v7613_v30 = vpop.f32.mrf.mxu0 }
0x31ca   :  { %v5465_v12 = vmul.f32 0.17677669, %v5368_v51 }
0x31cb   :  { %v5370_v54 = vpop.f32.mrf.mxu0 }
0x31cc   :  { %v5467_v56 = vpack.c.bf16 %v5465_v12, %v5465_v12  ;;  %v5371_v59 = vadd.f32 %v6806_v21, %v5370_v54 }
0x31cd   :  { %v7614_v28 = vpop.f32.mrf.mxu0 }
0x31ce   :  { %v5466_v60 = vmul.f32 0.17677669, %v5371_v59  ;;  %7630 = vmatmul.mubr.msk.bf16.vlgmr.msra.gmra.mxu0 %vm784_vm6, %v5467_v56 }
0x31cf   :  { %7641 = vmatprep.mubr.msk.bf16.mxu0 %vm8787_vm0, %v8786_v1 }
0x31d0   :  { %v5468_v26 = vpack.c.bf16 %v5466_v60, %v5466_v60 }
0x31d2   :  { %7636 = vmatmul.mubr.msk.bf16.vlgmr.msra.gmra.mxu1 %vm784_vm6, %v5468_v26 }
0x31d3   :  { %7647 = vmatprep.mubr.msk.bf16.mxu1 %vm8787_vm0, %v8786_v1 }
0x328e   :  { %v5511_v61 = vpop.f32.mrf.mxu0 }
0x328f   :  { %v5563_v38 = vsel %vm880_vm7, %v5511_v61, -inf }
0x3290   :  { %5564 = vmax.xlane.f32.xlu1 %v5563_v38  ;;  %v7631_v62 = vpop.f32.mrf.mxu0 }
0x3292   :  { %v5514_v49 = vpop.f32.mrf.mxu0  ;;  %v5557_v22 = vpop.f32.mrf.mxu1 }
0x3293   :  { %v5566_v7 = vsel %vm880_vm7, %v5557_v22, -inf }
0x3294   :  { %5567 = vmax.xlane.f32.xlu0 %v5566_v7  ;;  %v7632_v44 = vpop.f32.mrf.mxu0  ;;  %v7637_v0 = vpop.f32.mrf.mxu1 }
0x3296   :  { %v5560_v9 = vpop.f32.mrf.mxu1 }
0x3298   :  { %v7638_v10 = vpop.f32.mrf.mxu1 }
0x32a1   :  { %5588 = vrot.lane.b32.xlu1 %v9872_v48, %s8778_s25 }
0x3319   :  { %v5565_v33 = vpop.xlane.xlu1 %5564 }
0x331a   :  { %v5569_v29 = vsub.f32 %v5511_v61, %v5565_v33 }
0x331c   :  { %v5571_v63 = vmul.f32 1.442695, %v5569_v29 }
0x331d   :  { %v5568_v55 = vpop.xlane.xlu0 %5567  ;;  %v5589_v14 = vpop.permute.xlu1 %5588 }
0x331e   :  { %8092 = vpow2.f32 %v5571_v63  ;;  %v5570_v57 = vsub.f32 %v5557_v22, %v5568_v55  ;;  %v5594_v35 = vsel %vm908_vm5, %v5589_v14, 0 }
0x331f   :  { %7640 = vmatpush3.bf16.msra.mxu0 %v5594_v35 }
0x3320   :  { %v5573_v19 = vmul.f32 1.442695, %v5570_v57  ;;  %7651 = vmatprep.subr.bf16.mxu0 %v8786_v1 }
0x3322   :  { %8094 = vpow2.f32 %v5573_v19 }
0x332b   :  { %v8093_v23 = vpop.eup %8092 }
0x332c   :  { %v5575_v13 = vsel %vm880_vm7, %v8093_v23, 0.0 }
0x332d   :  { %5576 = vadd.xlane.f32.xlu1 %v5575_v13  ;;  %v7957_v13 = vld [vmem:[#allocation28 + $0x20] sm:$0xff]  }
0x332f   :  { %v8095_v15 = vpop.eup %8094 }
0x3330   :  { %v5578_v16 = vsel %vm880_vm7, %v8095_v15, 0.0 }
0x3331   :  { %5579 = vadd.xlane.f32.xlu0 %v5578_v16  ;;  %v7959_v16 = vld [vmem:[#allocation28 + $0x30] sm:$0xff]  }
0x333e   :  { %5689 = vrot.lane.b32.xlu1 %v9872_v48, %s8789_s4 }
0x3342   :  { %5740 = vrot.lane.b32.xlu1 %v9851_v6, %s8789_s4 }
0x3346   :  { %5738 = vrot.lane.b32.xlu1 %v5468_v26, %s8789_s4 }
0x3347   :  { %5637 = vrot.lane.b32.xlu0 %v9851_v6, %s8778_s25 }
0x334b   :  { %5687 = vrot.lane.b32.xlu0 %v5467_v56, %s8789_s4 }
0x33b6   :  { %v5577_v24 = vpop.xlane.xlu1 %5576 }
0x33b7   :  { %8096 = vrcp.f32 %v5577_v24 }
0x33ba   :  { %v5580_v27 = vpop.xlane.xlu0 %5579  ;;  %v5690_v32 = vpop.permute.xlu1 %5689 }
0x33bb   :  { %8098 = vrcp.f32 %v5580_v27  ;;  %v5695_v37 = vsel %vm784_vm6, %v5690_v32, 0 }
0x33be   :  { %v5638_v58 = vpop.permute.xlu0 %5637  ;;  %v5741_v3 = vpop.permute.xlu1 %5740 }
0x33bf   :  { %v5643_v31 = vsel %vm908_vm5, %v5638_v58, 0  ;;  %v5746_v40 = vsel %vm784_vm6, %v5741_v3, 0 }
0x33c0   :  { %7646 = vmatpush3.bf16.msra.mxu1 %v5643_v31 }
0x33c1   :  { %7657 = vmatprep.subr.bf16.mxu1 %v8786_v1 }
0x33c2   :  { %v5688_v41 = vpop.permute.xlu0 %5687  ;;  %v5739_v17 = vpop.permute.xlu1 %5738 }
0x33c4   :  { %v8097_v11 = vpop.eup %8096 }
0x33c5   :  { %v5583_v25 = vmul.f32 %v8097_v11, %v8093_v23  ;;  %v7956_v23 = vld [vmem:[#allocation28 + $0x28] sm:$0xff]  }
0x33c7   :  { %v5585_v2 = vpack.c.bf16 %v5583_v25, %v5583_v25 }
0x33c8   :  { %v8099_v34 = vpop.eup %8098 }
0x33c9   :  { %v5584_v36 = vmul.f32 %v8099_v34, %v8095_v15  ;;  %7642 = vmatmul.mubr.msk.bf16.vlgmr.msra.gmra.mxu0 %vm880_vm7, %v5585_v2  ;;  %v7958_v15 = vld [vmem:[#allocation28 + $0x38] sm:$0xff]  }
0x33ca   :  { %7652 = vmatpush3.bf16.xpose.msra.mxu0 %v5695_v37  ;;  %7653 = vmatprep.mubr.msk.bf16.mxu0 %vm8787_vm0, %v8786_v1 }
0x33cb   :  { %v5586_v39 = vpack.c.bf16 %v5584_v36, %v5584_v36  ;;  %7663 = vmatprep.subr.bf16.mxu0 %v8786_v1 }
0x33cd   :  { %7648 = vmatmul.mubr.msk.bf16.vlgmr.msra.gmra.mxu1 %vm880_vm7, %v5586_v39 }
0x33ce   :  { %7658 = vmatpush3.bf16.xpose.msra.mxu1 %v5746_v40  ;;  %7659 = vmatprep.mubr.msk.bf16.mxu1 %vm8787_vm0, %v8786_v1 }
0x33cf   :  { %7669 = vmatprep.subr.bf16.mxu1 %v8786_v1 }
0x33d1   :  { %7654 = vmatmul.mubr.msk.bf16.vlgmr.msra.gmra.mxu0 %vm784_vm6, %v5688_v41  ;;  %v6840_v41 = vld [vmem:[#allocation29 + $0x1] ss:$0 sm:$0xff] }
0x33d2   :  { %7665 = vmatprep.mubr.msk.bf16.mxu0 %vm8787_vm0, %v8786_v1 }
0x33d5   :  { %7660 = vmatmul.mubr.msk.bf16.vlgmr.msra.gmra.mxu1 %vm784_vm6, %v5739_v17 }
0x33d6   :  { %7671 = vmatprep.mubr.msk.bf16.mxu1 %vm8787_vm0, %v8786_v1 }
0x3489   :  { %v9926_v18 = vpop.f32.mrf.mxu0 }
0x348b   :  { %v7643_v42 = vpop.f32.mrf.mxu0 }
0x348d   :  { %v5633_v43 = vpop.f32.mrf.mxu0  ;;  %v9928_v20 = vpop.f32.mrf.mxu1 }
0x348e   :  { %v5685_v45 = vpack.c.bf16 %v9928_v20, %v9926_v18 }
0x348f   :  { %v7644_v8 = vpop.f32.mrf.mxu0  ;;  %v7649_v46 = vpop.f32.mrf.mxu1 }
0x3491   :  { %v5682_v47 = vpop.f32.mrf.mxu1  ;;  %v5731_v53 = vpop.f32.mrf.mxu0 }
0x3492   :  { %v5788_v4 = vsel %vm880_vm7, %v5731_v53, -inf }
0x3493   :  { %v7650_v21 = vpop.f32.mrf.mxu1  ;;  %5789 = vmax.xlane.f32.xlu0 %v5788_v4  ;;  %v7655_v5 = vpop.f32.mrf.mxu0 }
0x3495   :  { %v5734_v51 = vpop.f32.mrf.mxu0  ;;  %v5782_v30 = vpop.f32.mrf.mxu1 }
0x3496   :  { %v5791_v12 = vsel %vm880_vm7, %v5782_v30, -inf }
0x3497   :  { %5792 = vmax.xlane.f32.xlu1 %v5791_v12  ;;  %v7656_v54 = vpop.f32.mrf.mxu0  ;;  %v7661_v56 = vpop.f32.mrf.mxu1 }
0x3499   :  { %v5785_v59 = vpop.f32.mrf.mxu1 }
0x349b   :  { %v7662_v28 = vpop.f32.mrf.mxu1 }
0x349c   :  { %v7960_v28 = vld [vmem:[%s10069_s6 + $0x38] sm:$0xff]  }
0x34a8   :  { %5812 = vrot.lane.b32.xlu1 %v9872_v48, %s8768_s9 }
0x351c   :  { %v5790_v60 = vpop.xlane.xlu0 %5789 }
0x351d   :  { %v5794_v26 = vsub.f32 %v5731_v53, %v5790_v60  ;;  %v7961_v60 = vld [vmem:[%s10069_s6 + $0x30] sm:$0xff]  }
0x351f   :  { %v5796_v61 = vmul.f32 1.442695, %v5794_v26  ;;  %v7962_v26 = vld [vmem:[%s10069_s6 + $0x28] sm:$0xff]  }
0x3520   :  { %v5793_v38 = vpop.xlane.xlu1 %5792 }
0x3521   :  { %8100 = vpow2.f32 %v5796_v61  ;;  %v5795_v62 = vsub.f32 %v5782_v30, %v5793_v38  ;;  %v7963_v61 = vld [vmem:[%s10069_s6 + $0x20] sm:$0xff]   ;;  %v7964_v38 = vld [vmem:[%s10070_s0 + $0x78] sm:$0xff]  }
0x3523   :  { %v5798_v49 = vmul.f32 1.442695, %v5795_v62  ;;  %v7965_v62 = vld [vmem:[%s10070_s0 + $0x70] sm:$0xff]  }
0x3524   :  { %v5813_v22 = vpop.permute.xlu1 %5812 }
0x3525   :  { %8102 = vpow2.f32 %v5798_v49  ;;  %v5818_v7 = vsel %vm908_vm5, %v5813_v22, 0  ;;  %v7966_v49 = vld [vmem:[%s10070_s0 + $0x68] sm:$0xff]   ;;  %v7967_v22 = vld [vmem:[%s10070_s0 + $0x60] sm:$0xff]  }
0x3526   :  { %7664 = vmatpush3.bf16.msra.mxu0 %v5818_v7  ;;  %v7968_v7 = vld [vmem:[%s10070_s0 + $0x58] sm:$0xff]  }
0x3527   :  { %7675 = vmatprep.subr.bf16.mxu0 %v8786_v1 }
0x352e   :  { %v8101_v44 = vpop.eup %8100 }
0x352f   :  { %v5800_v0 = vsel %vm880_vm7, %v8101_v44, 0.0 }
0x3530   :  { %5801 = vadd.xlane.f32.xlu0 %v5800_v0 }
0x3532   :  { %v8103_v9 = vpop.eup %8102 }
0x3533   :  { %v5803_v48 = vsel %vm880_vm7, %v8103_v9, 0.0 }
0x3534   :  { %5804 = vadd.xlane.f32.xlu0 %v5803_v48 }
0x354a   :  { %5860 = vrot.lane.b32.xlu0 %v9851_v6, %s8768_s9  ;;  %s8790_s9 = smov [#allocation44]  }
0x354b   :  { %s6465_s25 = sshll.u32 %s8790_s9, 4  ;;  %s6466_s25 = int_to_ptr.vmem [resolvable:$true] %s6465_s25 }
0x354c   :  { %s8660_s23 = scalar_lea.vmem %s6466_s25, 256  ;;  %p8665_p10 = scmp.lt.s32.totalorder %s6466_s25, %s6466_s25 }
0x354d   :  { %p8661_p9 = scmp.ne.s32.totalorder %s6466_s25, %s8660_s23  ;;  %p8666_p11 = scmp.lt.s32.totalorder %s8660_s23, %s8660_s23 }
0x354f   :  { %p8667_p12 = por %p8666_p11, %p8665_p10 }
0x3551   :  { %p8668_p13 = pnand %p8667_p12, %p8661_p9 }
0x35b9   :  { %v5802_v10 = vpop.xlane.xlu0 %5801 }
0x35ba   :  { %8104 = vrcp.f32 %v5802_v10 }
0x35bd   :  { %v5805_v33 = vpop.xlane.xlu0 %5804 }
0x35be   :  { %8106 = vrcp.f32 %v5805_v33 }
0x35c1   :  { %v5861_v29 = vpop.permute.xlu0 %5860 }
0x35c2   :  { %v5866_v63 = vsel %vm908_vm5, %v5861_v29, 0 }
0x35c3   :  { %7670 = vmatpush3.bf16.msra.mxu1 %v5866_v63 }
0x35c4   :  { %7683 = vmatprep.subr.bf16.mxu1 %v8786_v1 }
0x35c7   :  { %v8105_v55 = vpop.eup %8104 }
0x35c8   :  { %v5808_v14 = vmul.f32 %v8105_v55, %v8101_v44  ;;  %v6841_v55 = vld [vmem:[#allocation31 + $0x1] ss:$0 sm:$0xff] }
0x35ca   :  { %v5810_v57 = vpack.c.bf16 %v5808_v14, %v5808_v14 }
0x35cb   :  { %v8107_v35 = vpop.eup %8106 }
0x35cc   :  { %v5809_v19 = vmul.f32 %v8107_v35, %v8103_v9  ;;  %7666 = vmatmul.mubr.msk.bf16.vlgmr.msra.gmra.mxu0 %vm880_vm7, %v5810_v57 }
0x35cd   :  { %7679 = vmatprep.mubr.msk.bf16.mxu0 %vm8787_vm0, %v8786_v1  ;;  %7676 = vmatpush3.bf16.msra.mxu0 %v7958_v15 }
0x35ce   :  { %v5811_v6 = vpack.c.bf16 %v5809_v19, %v5809_v19  ;;  %7677 = vmatprep.subr.bf16.mxu0 %v8786_v1  ;;  %v6842_v19 = vld [vmem:[#allocation32 + $0x1] ss:$0 sm:$0xff] }
0x35d0   :  { %7672 = vmatmul.mubr.msk.bf16.vlgmr.msra.gmra.mxu1 %vm880_vm7, %v5811_v6 }
0x35d1   :  { %7684 = vmatpush3.bf16.msra.mxu1 %v7956_v23  ;;  %7687 = vmatprep.mubr.msk.bf16.mxu1 %vm8787_vm0, %v8786_v1 }
0x35d2   :  { %7685 = vmatprep.subr.bf16.mxu1 %v8786_v1  ;;  %7678 = vmatpush3.bf16.msra.mxu0 %v7959_v16  ;;  %v7969_v16 = vld [vmem:[%s10070_s0 + $0x50] sm:$0xff]  }
0x35d3   :  { %7691 = vmatprep.subr.bf16.mxu0 %v8786_v1 }
0x35d5   :  { %7686 = vmatpush3.bf16.msra.mxu1 %v7957_v13 }
0x35d6   :  { %7703 = vmatprep.subr.bf16.mxu1 %v8786_v1 }
0x35d8   :  { %7688 = vmatmul.mubr.msk.bf16.vlgmr.msra.gmra.mxu1 %vm784_vm6, %v5685_v45 }
0x35d9   :  { %7719 = vmatprep.mubr.msk.bf16.mxu1 %vm8787_vm0, %v8786_v1  ;;  %7704 = vmatpush3.bf16.msra.mxu1 %v7964_v38  ;;  %v6882_v38 = vld [vmem:[#allocation37 + $0x1] ss:$0 sm:$0xff] }
0x35da   :  { %7705 = vmatprep.subr.bf16.mxu1 %v8786_v1 }
0x35dd   :  { %7706 = vmatpush3.bf16.msra.mxu1 %v7965_v62 }
0x35de   :  { %7707 = vmatprep.subr.bf16.mxu1 %v8786_v1 }
0x35e1   :  { %7708 = vmatpush3.bf16.msra.mxu1 %v7966_v49  ;;  %v6883_v49 = vld [vmem:[#allocation38 + $0x1] ss:$0 sm:$0xff] }
0x35e2   :  { %7709 = vmatprep.subr.bf16.mxu1 %v8786_v1 }
0x35e5   :  { %7710 = vmatpush3.bf16.msra.mxu1 %v7967_v22 }
0x35e6   :  { %7711 = vmatprep.subr.bf16.mxu1 %v8786_v1 }
0x35e9   :  { %7712 = vmatpush3.bf16.msra.mxu1 %v7968_v7 }
0x35ea   :  { %7713 = vmatprep.subr.bf16.mxu1 %v8786_v1 }
0x35ed   :  { %7714 = vmatpush3.bf16.msra.mxu1 %v7969_v16  ;;  %v7973_v16 = vld [vmem:[#allocation43 + $0x10] sm:$0xff]  }
0x35ee   :  { %7715 = vmatprep.subr.bf16.mxu1 %v8786_v1 }
0x368c   :  { %v5854_v24 = vpop.f32.mrf.mxu0 }
0x368e   :  { %v7667_v27 = vpop.f32.mrf.mxu0 }
0x368f   :  { %v7971_v27 = vld [vmem:[%s10070_s0 + $0x40] sm:$0xff]  }
0x3690   :  { %v5857_v58 = vpop.f32.mrf.mxu0  ;;  %v5902_v31 = vpop.f32.mrf.mxu1 }
0x3691   :  { %v5908_v11 = vpack.c.bf16 %v5902_v31, %v5854_v24  ;;  %v7970_v24 = vld [vmem:[%s10070_s0 + $0x48] sm:$0xff]  }
0x3692   :  { %v7668_v32 = vpop.f32.mrf.mxu0  ;;  %v7673_v25 = vpop.f32.mrf.mxu1  ;;  %7716 = vmatpush3.bf16.msra.mxu1 %v7970_v24  ;;  %v6851_v58 = vld [vmem:[#allocation34 + $0x1] ss:$0 sm:$0xff]  ;;  %v7974_v24 = vld [vmem:[#allocation43 + $0x8] sm:$0xff]  }
0x3693   :  { %7680 = vmatmul.mubr.msk.bf16.vlgmr.msra.gmra.mxu0 %vm784_vm6, %v5908_v11  ;;  %7717 = vmatprep.subr.bf16.mxu1 %v8786_v1 }
0x3694   :  { %v5905_v2 = vpop.f32.mrf.mxu1  ;;  %7699 = vmatprep.mubr.msk.bf16.mxu0 %vm8787_vm0, %v8786_v1  ;;  %7692 = vmatpush3.bf16.msra.mxu0 %v7960_v28 }
0x3695   :  { %7693 = vmatprep.subr.bf16.mxu0 %v8786_v1 }
0x3696   :  { %v7674_v34 = vpop.f32.mrf.mxu1  ;;  %7718 = vmatpush3.bf16.msra.mxu1 %v7971_v27  ;;  %v7975_v27 = vld [vmem:[#allocation43] sm:$0xff]  }
0x3698   :  { %v6014_v36 = vpop.f32.mrf.mxu1  ;;  %7694 = vmatpush3.bf16.msra.mxu0 %v7961_v60 }
0x3699   :  { %7695 = vmatprep.subr.bf16.mxu0 %v8786_v1 }
0x369a   :  { %v7689_v37 = vpop.f32.mrf.mxu1 }
0x369c   :  { %v6017_v3 = vpop.f32.mrf.mxu1  ;;  %7696 = vmatpush3.bf16.msra.mxu0 %v7962_v26 }
0x369d   :  { %7697 = vmatprep.subr.bf16.mxu0 %v8786_v1 }
0x369e   :  { %v7690_v39 = vpop.f32.mrf.mxu1 }
0x369f   :  { %v6873_v39 = vld [vmem:[#allocation35 + $0x1] ss:$0 sm:$0xff] }
0x36a0   :  { %7698 = vmatpush3.bf16.msra.mxu0 %v7963_v61 }
0x36a1   :  { %7723 = vmatprep.subr.bf16.mxu0 %v8786_v1 }
0x3753   :  { %v5958_v40 = vpop.f32.mrf.mxu0 }
0x3754   :  { %v6015_v17 = vadd.f32 %v6014_v36, %v5958_v40 }
0x3755   :  { %v7681_v18 = vpop.f32.mrf.mxu0 }
0x3756   :  { %v6029_v42 = vadd.f32 %v6840_v41, %v6015_v17 }
0x3757   :  { %v5961_v43 = vpop.f32.mrf.mxu0 }
0x3758   :  { %v6018_v20 = vadd.f32 %v6017_v3, %v5961_v43  ;;  %v6031_v45 = vadd.f32 %v6029_v42, %v9874_v50 }
0x3759   :  { %v7682_v8 = vpop.f32.mrf.mxu0 }
0x375a   :  { %v6030_v46 = vadd.f32 %v6840_v41, %v6018_v20  ;;  %v6037_v47 = vsel %vm718_vm4, %v6031_v45, 0.0 }
0x375b   :  { %6038 = vadd.xlane.f32.xlu1 %v6037_v47 }
0x375c   :  { %v6032_v53 = vadd.f32 %v6030_v46, %v9876_v52 }
0x375e   :  { %v6040_v4 = vsel %vm718_vm4, %v6032_v53, 0.0 }
0x375f   :  { %6041 = vadd.xlane.f32.xlu0 %v6040_v4 }
0x37e4   :  { %v6039_v21 = vpop.xlane.xlu1 %6038 }
0x37e5   :  { %v6043_v5 = vmul.f32 0.015625, %v6039_v21 }
0x37e7   :  { %v6045_v51 = vsub.f32 %v6031_v45, %v6043_v5 }
0x37e8   :  { %v6042_v30 = vpop.xlane.xlu0 %6041 }
0x37e9   :  { %v6044_v12 = vmul.f32 0.015625, %v6042_v30  ;;  %v6047_v50 = vmul.f32 %v6045_v51, %v6045_v51 }
0x37eb   :  { %v6046_v54 = vsub.f32 %v6032_v53, %v6044_v12  ;;  %v6049_v56 = vsel %vm718_vm4, %v6047_v50, 0.0 }
0x37ec   :  { %6050 = vadd.xlane.f32.xlu1 %v6049_v56 }
0x37ed   :  { %v6048_v59 = vmul.f32 %v6046_v54, %v6046_v54 }
0x37ef   :  { %v6052_v52 = vsel %vm718_vm4, %v6048_v59, 0.0 }
0x37f0   :  { %6053 = vadd.xlane.f32.xlu0 %v6052_v52 }
0x3875   :  { %v6051_v44 = vpop.xlane.xlu1 %6050 }
0x3876   :  { %v6055_v0 = vmul.f32 0.015625, %v6051_v44 }
0x3878   :  { %v6057_v9 = vadd.f32 1e-05, %v6055_v0 }
0x3879   :  { %v6054_v48 = vpop.xlane.xlu0 %6053 }
0x387a   :  { %8108 = vrsqrt.f32 %v6057_v9  ;;  %v6056_v10 = vmul.f32 0.015625, %v6054_v48 }
0x387c   :  { %v6058_v33 = vadd.f32 1e-05, %v6056_v10 }
0x387e   :  { %8110 = vrsqrt.f32 %v6058_v33 }
0x3887   :  { %v8109_v29 = vpop.eup %8108 }
0x3888   :  { %v6061_v63 = vmul.f32 %v8109_v29, %v6045_v51 }
0x388a   :  { %v6069_v57 = vmul.f32 %v6841_v55, %v6061_v63 }
0x388b   :  { %v8111_v14 = vpop.eup %8110 }
0x388c   :  { %v6062_v35 = vmul.f32 %v8111_v14, %v6046_v54  ;;  %v6077_v6 = vadd.f32 %v6842_v19, %v6069_v57 }
0x388e   :  { %v6070_v23 = vmul.f32 %v6841_v55, %v6062_v35 }
0x3890   :  { %v6078_v13 = vadd.f32 %v6842_v19, %v6070_v23 }
0x3892   :  { %v6088_v15 = vpack.c.bf16 %v6078_v13, %v6077_v6 }
0x3894   :  { %7700 = vmatmul.mubr.msk.bf16.vlgmr.msra.gmra.mxu0 %vm718_vm4, %v6088_v15  ;;  %v7972_v15 = vld [vmem:[#allocation43 + $0x18] sm:$0xff]  }
0x3895   :  { %7731 = vmatprep.mubr.msk.bf16.mxu0 %vm8787_vm0, %v8786_v1  ;;  %7724 = vmatpush3.bf16.msra.mxu0 %v7972_v15 }
0x3896   :  { %7725 = vmatprep.subr.bf16.mxu0 %v8786_v1 }
0x3899   :  { %7726 = vmatpush3.bf16.msra.mxu0 %v7973_v16 }
0x389a   :  { %7727 = vmatprep.subr.bf16.mxu0 %v8786_v1 }
0x389d   :  { %7728 = vmatpush3.bf16.msra.mxu0 %v7974_v24 }
0x389e   :  { %7729 = vmatprep.subr.bf16.mxu0 %v8786_v1 }
0x38a1   :  { %7730 = vmatpush3.bf16.msra.mxu0 %v7975_v27 }
0x3954   :  { %v6158_v31 = vpop.f32.mrf.mxu0 }
0x3955   :  { %v6159_v32 = vadd.f32 %v6851_v58, %v6158_v31 }
0x3956   :  { %v7701_v11 = vpop.f32.mrf.mxu0 }
0x3957   :  { %v6165_v36 = vmax.f32 %v6159_v32, 0.0 }
0x3958   :  { %v6161_v25 = vpop.f32.mrf.mxu0 }
0x3959   :  { %v6162_v2 = vadd.f32 %v6851_v58, %v6161_v25 }
0x395a   :  { %v7702_v34 = vpop.f32.mrf.mxu0 }
0x395b   :  { %v6166_v37 = vmax.f32 %v6162_v2, 0.0 }
0x395d   :  { %v6184_v3 = vpack.c.bf16 %v6166_v37, %v6165_v36  ;;  %v6884_v37 = vld [vmem:[#allocation40] ss:$0 sm:$0xff] }
0x395f   :  { %7720 = vmatmul.mubr.bf16.vlgmr.msra.gmra.mxu1 %v6184_v3 }
0x3a1f   :  { %v6275_v40 = vpop.f32.mrf.mxu1 }
0x3a20   :  { %v6276_v41 = vadd.f32 %v6873_v39, %v6275_v40 }
0x3a21   :  { %v7721_v17 = vpop.f32.mrf.mxu1 }
0x3a22   :  { %v6282_v18 = vadd.f32 %v6276_v41, %v6077_v6  ;;  %v6885_v41 = vld [vmem:[#allocation41] ss:$0 sm:$0xff] }
0x3a23   :  { %v6278_v42 = vpop.f32.mrf.mxu1 }
0x3a24   :  { %v6279_v43 = vadd.f32 %v6873_v39, %v6278_v42  ;;  %v6288_v20 = vsel %vm718_vm4, %v6282_v18, 0.0 }
0x3a25   :  { %6289 = vadd.xlane.f32.xlu1 %v6288_v20  ;;  %v7722_v45 = vpop.f32.mrf.mxu1 }
0x3a26   :  { %v6283_v8 = vadd.f32 %v6279_v43, %v6078_v13  ;;  %v6886_v43 = vld [vmem:[%s9006_s24] ss:$0 sm:$0xff] }
0x3a28   :  { %v6291_v46 = vsel %vm718_vm4, %v6283_v8, 0.0 }
0x3a29   :  { %6292 = vadd.xlane.f32.xlu0 %v6291_v46 }
0x3aae   :  { %v6290_v47 = vpop.xlane.xlu1 %6289 }
0x3aaf   :  { %v6294_v53 = vmul.f32 0.015625, %v6290_v47 }
0x3ab1   :  { %v6296_v4 = vsub.f32 %v6282_v18, %v6294_v53 }
0x3ab2   :  { %v6293_v21 = vpop.xlane.xlu0 %6292 }
0x3ab3   :  { %v6295_v5 = vmul.f32 0.015625, %v6293_v21  ;;  %v6298_v51 = vmul.f32 %v6296_v4, %v6296_v4 }
0x3ab5   :  { %v6297_v30 = vsub.f32 %v6283_v8, %v6295_v5  ;;  %v6300_v12 = vsel %vm718_vm4, %v6298_v51, 0.0 }
0x3ab6   :  { %6301 = vadd.xlane.f32.xlu1 %v6300_v12 }
0x3ab7   :  { %v6299_v50 = vmul.f32 %v6297_v30, %v6297_v30 }
0x3ab9   :  { %v6303_v54 = vsel %vm718_vm4, %v6299_v50, 0.0 }
0x3aba   :  { %6304 = vadd.xlane.f32.xlu0 %v6303_v54 }
0x3b3f   :  { %v6302_v56 = vpop.xlane.xlu1 %6301 }
0x3b40   :  { %v6306_v59 = vmul.f32 0.015625, %v6302_v56 }
0x3b42   :  { %v6308_v52 = vadd.f32 1e-05, %v6306_v59 }
0x3b43   :  { %v6305_v28 = vpop.xlane.xlu0 %6304 }
0x3b44   :  { %8112 = vrsqrt.f32 %v6308_v52  ;;  %v6307_v60 = vmul.f32 0.015625, %v6305_v28 }
0x3b46   :  { %v6309_v26 = vadd.f32 1e-05, %v6307_v60 }
0x3b48   :  { %8114 = vrsqrt.f32 %v6309_v26 }
0x3b51   :  { %v8113_v61 = vpop.eup %8112 }
0x3b52   :  { %v6312_v62 = vmul.f32 %v8113_v61, %v6296_v4 }
0x3b54   :  { %v6320_v22 = vmul.f32 %v6882_v38, %v6312_v62 }
0x3b55   :  { %v8115_v7 = vpop.eup %8114 }
0x3b56   :  { %v6328_v44 = vadd.f32 %v6883_v49, %v6320_v22  ;;  %v6313_v0 = vmul.f32 %v8115_v7, %v6297_v30 }
0x3b58   :  { %v6332_v9 = vsel %vm718_vm4, %v6328_v44, 0.0  ;;  %v6321_v48 = vmul.f32 %v6882_v38, %v6313_v0 }
0x3b59   :  { %6333 = vadd.xlane.f32.xlu1 %v6332_v9 }
0x3b5a   :  { %v6329_v10 = vadd.f32 %v6883_v49, %v6321_v48 }
0x3b5c   :  { %v6335_v33 = vsel %vm718_vm4, %v6329_v10, 0.0 }
0x3b5d   :  { %6336 = vadd.xlane.f32.xlu0 %v6335_v33 }
0x3be2   :  { %v6334_v29 = vpop.xlane.xlu1 %6333 }
0x3be3   :  { %v6338_v63 = vmul.f32 0.015625, %v6334_v29 }
0x3be5   :  { %v6340_v55 = vsub.f32 %v6328_v44, %v6338_v63 }
0x3be6   :  { %v6337_v14 = vpop.xlane.xlu0 %6336 }
0x3be7   :  { %v6339_v57 = vmul.f32 0.015625, %v6337_v14  ;;  %v6342_v35 = vmul.f32 %v6340_v55, %v6340_v55 }
0x3be9   :  { %v6341_v19 = vsub.f32 %v6329_v10, %v6339_v57  ;;  %v6344_v23 = vsel %vm718_vm4, %v6342_v35, 0.0 }
0x3bea   :  { %6345 = vadd.xlane.f32.xlu1 %v6344_v23 }
0x3beb   :  { %v6343_v6 = vmul.f32 %v6341_v19, %v6341_v19 }
0x3bed   :  { %v6347_v13 = vsel %vm718_vm4, %v6343_v6, 0.0 }
0x3bee   :  { %6348 = vadd.xlane.f32.xlu0 %v6347_v13 }
0x3c73   :  { %v6346_v58 = vpop.xlane.xlu1 %6345 }
0x3c74   :  { %v6350_v31 = vmul.f32 0.015625, %v6346_v58 }
0x3c76   :  { %v6352_v11 = vadd.f32 1e-05, %v6350_v31 }
0x3c77   :  { %v6349_v32 = vpop.xlane.xlu0 %6348 }
0x3c78   :  { %8116 = vrsqrt.f32 %v6352_v11  ;;  %v6351_v25 = vmul.f32 0.015625, %v6349_v32 }
0x3c7a   :  { %v6353_v2 = vadd.f32 1e-05, %v6351_v25 }
0x3c7c   :  { %8118 = vrsqrt.f32 %v6353_v2 }
0x3c85   :  { %v8117_v34 = vpop.eup %8116 }
0x3c86   :  { %v6356_v36 = vmul.f32 %v8117_v34, %v6340_v55 }
0x3c88   :  { %v6364_v39 = vmul.f32 %v6884_v37, %v6356_v36 }
0x3c89   :  { %v8119_v3 = vpop.eup %8118 }
0x3c8a   :  { %v6357_v40 = vmul.f32 %v8119_v3, %v6341_v19  ;;  %v6372_v1 = vadd.f32 %v6885_v41, %v6364_v39 }
0x3c8c   :  { %v6365_v17 = vmul.f32 %v6884_v37, %v6357_v40 }
0x3c8e   :  { %v6373_v18 = vadd.f32 %v6885_v41, %v6365_v17 }
0x3c90   :  { %v6382_v42 = vpack.c.bf16 %v6373_v18, %v6372_v1 }
0x3c92   :  { %7732 = vmatmul.mubr.msk.bf16.vlgmr.msra.gmra.mxu0 %vm718_vm4, %v6382_v42 }
0x3d52   :  { %v6451_v20 = vpop.f32.mrf.mxu0 }
0x3d53   :  { %v6452_v45 = vadd.f32 %v6886_v43, %v6451_v20 }
0x3d54   :  { %v7733_v8 = vpop.f32.mrf.mxu0 }
0x3d55   :  { %6458 = vst [vmem:[#allocation44] sm:$0xff] %v6452_v45 }
0x3d56   :  { %v6454_v46 = vpop.f32.mrf.mxu0 }
0x3d57   :  { %v6455_v47 = vadd.f32 %v6886_v43, %v6454_v46 }
0x3d58   :  { %v7734_v53 = vpop.f32.mrf.mxu0 }
0x3d59   :  { %6459 = vst [vmem:[#allocation44 + $0x8] sm:$0xff] %v6455_v47 }
0x3d5a   :  { %8671 = shalt.err (!%p8668_p13)
}
0x3d5b   :  { %s8791_s26 = smov 128   ;;  %s8792_s24 = smov 8  }
0x3d5c   :  { %6471 = dma.vmem_to_hbm [thread:$0]  %s6466_s25, 256, %s9011_s13, [#allocation4], %s8791_s26, %s8791_s26, %s8792_s24  }
0x3d5d   :  { %8708 = dma.done.wait [#allocation4], 256  }
0x3d5e   :  { %8709 = vsyncadd [#allocation4], 4294967040 }
0x3d5f   :  { %6475 = vsyncpa [#allocation3], 1 }
0x3d60   :  { %6476 = vsyncpa [#allocation6], 1 }
0x3d61   :  { %6477 = vsyncpa [#allocation9], 1 }
0x3d62   :  { %6478 = vsyncpa [#allocation12], 1 }
0x3d63   :  { %6479 = vsyncpa [#allocation15], 1 }
0x3d64   :  { %6480 = vsyncpa [#allocation18], 1 }
0x3d65   :  { %6481 = vsyncpa [#allocation21], 1 }
0x3d66   :  { %6482 = vsyncpa [#allocation24], 1 }
0x3d67   :  { %6483 = vsyncpa [#allocation27], 1 }
0x3d68   :  { %6484 = vsyncpa [#allocation30], 1 }
0x3d69   :  { %6485 = vsyncpa [#allocation33], 1 }
0x3d6a   :  { %6486 = vsyncpa [#allocation36], 1 }
0x3d6b   :  { %6487 = vsyncpa [#allocation39], 1 }
0x3d6c   :  { %6488 = vsyncpa [#allocation42], 1 }
0x3d6d   :  { %6489 = vsyncpa [#allocation4], 1 }

</bundles_post_ra>
